<compile_context>
chip_gen: v5e
topology: v5e:2x2
jax: 0.10.0
libtpu: 0.0.40
codegen_flags: <defaults>
</compile_context>

<pallas_src>
import jax
import jax.numpy as jnp
from jax.experimental import pallas as pl
from jax.experimental.pallas import tpu as pltpu

_MM_DTYPE = jnp.bfloat16  # MXU operand dtype (accumulation stays f32)


# ---------------------------------------------------------------------------
# Kernel helpers
# ---------------------------------------------------------------------------
def _fill_reflect(pad_ref, img, p):
    """Reflection-pad `img` (H, W, C) by p into VMEM scratch `pad_ref` (H+2p, W+2p, C).

    torch.nn.ReflectionPad2d semantics (edge not repeated).  One interior store,
    2p one-column border stores, then 2p full-width row copies (which also fix
    the corners, since reflection is separable).
    """
    H, W, _ = img.shape
    pad_ref[p:p + H, p:p + W, :] = img
    for j in range(p):
        # left: padded col (p-1-j) <- original col (j+1); right: (p+W+j) <- (W-2-j)
        pad_ref[p:p + H, p - 1 - j:p - j, :] = img[:, j + 1:j + 2, :]
        pad_ref[p:p + H, p + W + j:p + W + j + 1, :] = img[:, W - 2 - j:W - 1 - j, :]
    for i in range(p):
        # top: padded row (p-1-i) <- padded row (p+1+i); bottom: (p+H+i) <- (p+H-2-i)
        pad_ref[p - 1 - i:p - i, :, :] = pad_ref[p + 1 + i:p + 2 + i, :, :]
        pad_ref[p + H + i:p + H + i + 1, :, :] = pad_ref[p + H - 2 - i:p + H - 1 - i, :, :]


def _conv3x3(pad_ref, w_ref, dil, H, W, C):
    """3x3 (dilated) conv as 9 shifted-window MXU matmuls, f32 accumulation.

    pad_ref: bf16 VMEM scratch (H + 2*dil, W + 2*dil, C); w_ref: bf16 (3, 3, C, C).
    Each tap is loaded dense from the scratch ref; the reshape to (H*W, C) is a
    layout relabel when W is a multiple of the bf16 sublane tile (16).
    Returns f32 (H*W, C).
    """
    acc = None
    for kh in range(3):
        for kw in range(3):
            patch = pad_ref[kh * dil:kh * dil + H, kw * dil:kw * dil + W, :]
            tap = jnp.dot(patch.reshape(H * W, C), w_ref[kh, kw],
                          preferred_element_type=jnp.float32)
            acc = tap if acc is None else acc + tap
    return acc


def _instance_norm(y):
    """InstanceNorm2d(affine=False) on (H*W, C) f32: fused sum / sum-of-squares pass."""
    n = y.shape[0]
    inv_n = 1.0 / float(n)
    s = jnp.sum(y, axis=0, keepdims=True)
    ss = jnp.sum(y * y, axis=0, keepdims=True)
    mean = s * inv_n
    var = jnp.maximum(ss * inv_n - mean * mean, 0.0)
    return (y - mean) * jax.lax.rsqrt(var + 1e-5)


def _resnet_block_kernel(x_ref, w1_ref, w2_ref, out_ref, pad1_ref, pad2_ref):
    # x_ref / out_ref: (H, W, C) f32 for the current batch element.
    H, W, C = x_ref.shape
    x = x_ref[...]

    # ReflectionPad2d(2) -> Conv2d(k=3, dilation=2) -> InstanceNorm -> ReLU
    _fill_reflect(pad1_ref, x.astype(_MM_DTYPE), 2)
    y = _conv3x3(pad1_ref, w1_ref, 2, H, W, C)           # (H*W, C) f32
    y = _instance_norm(y)
    y = jnp.maximum(y, 0.0)

    # ReflectionPad2d(1) -> Conv2d(k=3) -> InstanceNorm
    _fill_reflect(pad2_ref, y.reshape(H, W, C).astype(_MM_DTYPE), 1)
    y = _conv3x3(pad2_ref, w2_ref, 1, H, W, C)
    y = _instance_norm(y)

    # Residual connection (f32 on the VPU).
    out_ref[...] = (x + y.reshape(H, W, C)).astype(out_ref.dtype)


# ---------------------------------------------------------------------------
# Host wrapper
# ---------------------------------------------------------------------------
def _vmem_budget_bytes(H, W, C):
    f32, bf16 = 4, 2
    io = 2 * 2 * H * W * C * f32                       # x + out blocks, double-buffered
    wts = 2 * 2 * 9 * C * C * bf16                     # both conv weights, double-buffered
    pads = ((H + 4) * (W + 4) + (H + 2) * (W + 2)) * C * bf16
    live = 4 * H * W * C * f32                         # conv acc / normalized temporaries
    return io + wts + pads + live


def resnet_block_forward(x, params):
    """x: (B, C, H, W) float32 NCHW. Returns x + conv_block(x), same shape/dtype."""
    B, C, H, W = x.shape
    # Contract is NCHW; the kernel works NHWC so channels sit on the lane axis.
    x_nhwc = jnp.transpose(x, (0, 2, 3, 1))

    # bf16 weight copies for the MXU (accumulation stays f32 inside the kernel).
    w1 = params["w1"].astype(_MM_DTYPE)
    w2 = params["w2"].astype(_MM_DTYPE)
    # Biases b1/b2 are intentionally not passed: cancelled by InstanceNorm (see header).

    grid_spec = pltpu.PrefetchScalarGridSpec(
        num_scalar_prefetch=0,
        grid=(B,),
        in_specs=[
            pl.BlockSpec((None, H, W, C), lambda b: (b, 0, 0, 0)),   # x, one image/step
            pl.BlockSpec((3, 3, C, C), lambda b: (0, 0, 0, 0)),      # conv1 weight (kh,kw,cin,cout)
            pl.BlockSpec((3, 3, C, C), lambda b: (0, 0, 0, 0)),      # conv2 weight
        ],
        out_specs=pl.BlockSpec((None, H, W, C), lambda b: (b, 0, 0, 0)),
        scratch_shapes=[
            pltpu.VMEM((H + 4, W + 4, C), _MM_DTYPE),                # pad=2 (dilation 2) buffer
            pltpu.VMEM((H + 2, W + 2, C), _MM_DTYPE),                # pad=1 buffer
        ],
    )

    vmem_bytes = int(min(100 * 1024 * 1024,
                         max(32 * 1024 * 1024, int(1.5 * _vmem_budget_bytes(H, W, C)))))

    cost = pl.CostEstimate(
        flops=2 * 2 * B * H * W * C * C * 9,                 # two 3x3 convs
        transcendentals=2 * B * C,                           # rsqrt per channel per InstanceNorm
        bytes_accessed=4 * 2 * B * H * W * C + 2 * 2 * 9 * C * C,
    )

    out_nhwc = pl.pallas_call(
        _resnet_block_kernel,
        out_shape=jax.ShapeDtypeStruct((B, H, W, C), jnp.float32),
        grid_spec=grid_spec,
        compiler_params=pltpu.CompilerParams(
            dimension_semantics=("parallel",),
            vmem_limit_bytes=vmem_bytes,
        ),
        cost_estimate=cost,
    )(x_nhwc, w1, w2)

    return jnp.transpose(out_nhwc, (0, 3, 1, 2))             # NHWC -> NCHW


# ---------------------------------------------------------------------------
# Parameters (spectral_norm applied host-side, as torch does to the weight)
# ---------------------------------------------------------------------------
def _spectral_normalize(w, n_iter=30):
    """Divide the conv weight by its largest singular value (spectral_norm reparam).
    w in HWIO (kh, kw, cin, cout); sigma taken on the (cout, cin*kh*kw) matrix."""
    cout = w.shape[-1]
    m = jnp.transpose(w, (3, 2, 0, 1)).reshape(cout, -1)
    v = jnp.ones((m.shape[1],), jnp.float32) / jnp.sqrt(jnp.float32(m.shape[1]))
    u = jnp.ones((cout,), jnp.float32) / jnp.sqrt(jnp.float32(cout))
    for _ in range(n_iter):
        u = m @ v
        u = u / (jnp.linalg.norm(u) + 1e-12)
        v = m.T @ u
        v = v / (jnp.linalg.norm(v) + 1e-12)
    sigma = u @ (m @ v)
    return w / sigma


def init_params(key, dim):
    """Two spectral-normed Conv2d(dim, dim, 3) layers.  Weights in HWIO, biases (1, dim).
    (Biases exist for parity with the PyTorch module but are mathematically
    cancelled by the affine-free InstanceNorm that follows each conv.)"""
    ks = jax.random.split(key, 4)
    bound = 1.0 / jnp.sqrt(jnp.float32(dim * 9))

    def conv_w(k):
        w = jax.random.uniform(k, (3, 3, dim, dim), jnp.float32, -bound, bound)
        return _spectral_normalize(w)

    return {
        "w1": conv_w(ks[0]),
        "b1": jax.random.uniform(ks[1], (1, dim), jnp.float32, -bound, bound),
        "w2": conv_w(ks[2]),
        "b2": jax.random.uniform(ks[3], (1, dim), jnp.float32, -bound, bound),
    }


# ---------------------------------------------------------------------------
# Pure-JAX/XLA reference (exactly the PyTorch forward, f32, incl. the biases)
# ---------------------------------------------------------------------------
def reference_forward(x, params):
    dn = ("NCHW", "HWIO", "NCHW")

    def inorm(y):
        mean = jnp.mean(y, axis=(2, 3), keepdims=True)
        var = jnp.mean((y - mean) ** 2, axis=(2, 3), keepdims=True)
        return (y - mean) * jax.lax.rsqrt(var + 1e-5)

    y = jnp.pad(x, ((0, 0), (0, 0), (2, 2), (2, 2)), mode="reflect")
    y = jax.lax.conv_general_dilated(y, params["w1"], (1, 1), "VALID",
                                     rhs_dilation=(2, 2), dimension_numbers=dn,
                                     precision=jax.lax.Precision.HIGHEST)
    y = y + params["b1"][0][None, :, None, None]
    y = inorm(y)
    y = jnp.maximum(y, 0.0)
    y = jnp.pad(y, ((0, 0), (0, 0), (1, 1), (1, 1)), mode="reflect")
    y = jax.lax.conv_general_dilated(y, params["w2"], (1, 1), "VALID",
                                     dimension_numbers=dn,
                                     precision=jax.lax.Precision.HIGHEST)
    y = y + params["b2"][0][None, :, None, None]
    y = inorm(y)
    return x + y


if __name__ == "__main__":
    key = jax.random.PRNGKey(0)
    k_x, k_p = jax.random.split(key)

    B, dim, H, W = 2, 4, 16, 16
    x = jax.random.normal(k_x, (B, dim, H, W), jnp.float32)
    params = init_params(k_p, dim)

    y = resnet_block_forward(x, params)
    y = jax.block_until_ready(y)

    y_ref = reference_forward(x, params)
    assert y.shape == (B, dim, H, W)
    # bf16 MXU operands (f32 accumulation) vs. the f32 HIGHEST-precision reference.
    assert jnp.allclose(y, y_ref, atol=5e-2, rtol=5e-2), "mismatch vs reference"

    print("KERNEL_OK")
</pallas_src>

<mosaic_0001>
module attributes {stable_mosaic.version = 11 : i64} {
  func.func @_resnet_block_kernel(%arg0: i32, %arg1: memref<1x16x16x4xf32, #tpu.memory_space<vmem>>, %arg2: memref<3x3x4x4xbf16, #tpu.memory_space<vmem>>, %arg3: memref<3x3x4x4xbf16, #tpu.memory_space<vmem>>, %arg4: memref<1x16x16x4xf32, #tpu.memory_space<vmem>>, %arg5: memref<20x20x4xbf16, #tpu.memory_space<vmem>>, %arg6: memref<18x18x4xbf16, #tpu.memory_space<vmem>>) attributes {dimension_semantics = [#tpu.dimension_semantics<parallel>], iteration_bounds = array<i64: 2>, scalar_prefetch = 0 : i64, scratch_operands = 2 : i64, tpu.core_type = #tpu.core_type<tc>, window_params = [{transform_indices = @transform_0, window_bounds = array<i64: 1, 16, 16, 4>}, {pipeline_mode = #tpu.pipeline_mode<synchronous>, transform_indices = @transform_1, window_bounds = array<i64: 3, 3, 4, 4>}, {pipeline_mode = #tpu.pipeline_mode<synchronous>, transform_indices = @transform_2, window_bounds = array<i64: 3, 3, 4, 4>}, {transform_indices = @transform_3, window_bounds = array<i64: 1, 16, 16, 4>}]} {
    %c0 = arith.constant 0 : index
    %c0_0 = arith.constant 0 : index
    %c0_1 = arith.constant 0 : index
    %c0_2 = arith.constant 0 : index
    %0 = vector.load %arg1[%c0, %c0_0, %c0_1, %c0_2] : memref<1x16x16x4xf32, #tpu.memory_space<vmem>>, vector<1x16x16x4xf32>
    %1 = vector.shape_cast %0 : vector<1x16x16x4xf32> to vector<16x16x4xf32>
    %2 = arith.truncf %1 : vector<16x16x4xf32> to vector<16x16x4xbf16>
    %c2 = arith.constant 2 : index
    %c2_3 = arith.constant 2 : index
    %c0_4 = arith.constant 0 : index
    %3 = vector.load %arg5[%c2, %c2_3, %c0_4] : memref<20x20x4xbf16, #tpu.memory_space<vmem>>, vector<16x16x4xbf16>
    tpu.vector_store %arg5[%c2, %c2_3, %c0_4], %2 {strides = array<i32>} : memref<20x20x4xbf16, #tpu.memory_space<vmem>>, vector<16x16x4xbf16>,
    %4 = vector.extract_strided_slice %2 {offsets = [0, 1, 0], sizes = [16, 1, 4], strides = [1, 1, 1]} : vector<16x16x4xbf16> to vector<16x1x4xbf16>
    %c2_5 = arith.constant 2 : index
    %c1 = arith.constant 1 : index
    %c0_6 = arith.constant 0 : index
    %5 = vector.load %arg5[%c2_5, %c1, %c0_6] : memref<20x20x4xbf16, #tpu.memory_space<vmem>>, vector<16x1x4xbf16>
    tpu.vector_store %arg5[%c2_5, %c1, %c0_6], %4 {strides = array<i32>} : memref<20x20x4xbf16, #tpu.memory_space<vmem>>, vector<16x1x4xbf16>,
    %6 = vector.extract_strided_slice %2 {offsets = [0, 14, 0], sizes = [16, 1, 4], strides = [1, 1, 1]} : vector<16x16x4xbf16> to vector<16x1x4xbf16>
    %c2_7 = arith.constant 2 : index
    %c18 = arith.constant 18 : index
    %c0_8 = arith.constant 0 : index
    %7 = vector.load %arg5[%c2_7, %c18, %c0_8] : memref<20x20x4xbf16, #tpu.memory_space<vmem>>, vector<16x1x4xbf16>
    tpu.vector_store %arg5[%c2_7, %c18, %c0_8], %6 {strides = array<i32>} : memref<20x20x4xbf16, #tpu.memory_space<vmem>>, vector<16x1x4xbf16>,
    %8 = vector.extract_strided_slice %2 {offsets = [0, 2, 0], sizes = [16, 1, 4], strides = [1, 1, 1]} : vector<16x16x4xbf16> to vector<16x1x4xbf16>
    %c2_9 = arith.constant 2 : index
    %c0_10 = arith.constant 0 : index
    %c0_11 = arith.constant 0 : index
    %9 = vector.load %arg5[%c2_9, %c0_10, %c0_11] : memref<20x20x4xbf16, #tpu.memory_space<vmem>>, vector<16x1x4xbf16>
    tpu.vector_store %arg5[%c2_9, %c0_10, %c0_11], %8 {strides = array<i32>} : memref<20x20x4xbf16, #tpu.memory_space<vmem>>, vector<16x1x4xbf16>,
    %10 = vector.extract_strided_slice %2 {offsets = [0, 13, 0], sizes = [16, 1, 4], strides = [1, 1, 1]} : vector<16x16x4xbf16> to vector<16x1x4xbf16>
    %c2_12 = arith.constant 2 : index
    %c19 = arith.constant 19 : index
    %c0_13 = arith.constant 0 : index
    %11 = vector.load %arg5[%c2_12, %c19, %c0_13] : memref<20x20x4xbf16, #tpu.memory_space<vmem>>, vector<16x1x4xbf16>
    tpu.vector_store %arg5[%c2_12, %c19, %c0_13], %10 {strides = array<i32>} : memref<20x20x4xbf16, #tpu.memory_space<vmem>>, vector<16x1x4xbf16>,
    %c3 = arith.constant 3 : index
    %c0_14 = arith.constant 0 : index
    %c0_15 = arith.constant 0 : index
    %12 = vector.load %arg5[%c3, %c0_14, %c0_15] : memref<20x20x4xbf16, #tpu.memory_space<vmem>>, vector<1x20x4xbf16>
    %c1_16 = arith.constant 1 : index
    %c0_17 = arith.constant 0 : index
    %c0_18 = arith.constant 0 : index
    %13 = vector.load %arg5[%c1_16, %c0_17, %c0_18] : memref<20x20x4xbf16, #tpu.memory_space<vmem>>, vector<1x20x4xbf16>
    tpu.vector_store %arg5[%c1_16, %c0_17, %c0_18], %12 {strides = array<i32>} : memref<20x20x4xbf16, #tpu.memory_space<vmem>>, vector<1x20x4xbf16>,
    %c16 = arith.constant 16 : index
    %c0_19 = arith.constant 0 : index
    %c0_20 = arith.constant 0 : index
    %14 = vector.load %arg5[%c16, %c0_19, %c0_20] : memref<20x20x4xbf16, #tpu.memory_space<vmem>>, vector<1x20x4xbf16>
    %c18_21 = arith.constant 18 : index
    %c0_22 = arith.constant 0 : index
    %c0_23 = arith.constant 0 : index
    %15 = vector.load %arg5[%c18_21, %c0_22, %c0_23] : memref<20x20x4xbf16, #tpu.memory_space<vmem>>, vector<1x20x4xbf16>
    tpu.vector_store %arg5[%c18_21, %c0_22, %c0_23], %14 {strides = array<i32>} : memref<20x20x4xbf16, #tpu.memory_space<vmem>>, vector<1x20x4xbf16>,
    %c4 = arith.constant 4 : index
    %c0_24 = arith.constant 0 : index
    %c0_25 = arith.constant 0 : index
    %16 = vector.load %arg5[%c4, %c0_24, %c0_25] : memref<20x20x4xbf16, #tpu.memory_space<vmem>>, vector<1x20x4xbf16>
    %c0_26 = arith.constant 0 : index
    %c0_27 = arith.constant 0 : index
    %c0_28 = arith.constant 0 : index
    %17 = vector.load %arg5[%c0_26, %c0_27, %c0_28] : memref<20x20x4xbf16, #tpu.memory_space<vmem>>, vector<1x20x4xbf16>
    tpu.vector_store %arg5[%c0_26, %c0_27, %c0_28], %16 {strides = array<i32>} : memref<20x20x4xbf16, #tpu.memory_space<vmem>>, vector<1x20x4xbf16>,
    %c15 = arith.constant 15 : index
    %c0_29 = arith.constant 0 : index
    %c0_30 = arith.constant 0 : index
    %18 = vector.load %arg5[%c15, %c0_29, %c0_30] : memref<20x20x4xbf16, #tpu.memory_space<vmem>>, vector<1x20x4xbf16>
    %c19_31 = arith.constant 19 : index
    %c0_32 = arith.constant 0 : index
    %c0_33 = arith.constant 0 : index
    %19 = vector.load %arg5[%c19_31, %c0_32, %c0_33] : memref<20x20x4xbf16, #tpu.memory_space<vmem>>, vector<1x20x4xbf16>
    tpu.vector_store %arg5[%c19_31, %c0_32, %c0_33], %18 {strides = array<i32>} : memref<20x20x4xbf16, #tpu.memory_space<vmem>>, vector<1x20x4xbf16>,
    %c0_34 = arith.constant 0 : index
    %c0_35 = arith.constant 0 : index
    %c0_36 = arith.constant 0 : index
    %20 = vector.load %arg5[%c0_34, %c0_35, %c0_36] : memref<20x20x4xbf16, #tpu.memory_space<vmem>>, vector<16x16x4xbf16>
    %21 = vector.shape_cast %20 : vector<16x16x4xbf16> to vector<256x4xbf16>
    %c0_37 = arith.constant 0 : index
    %c0_38 = arith.constant 0 : index
    %c0_39 = arith.constant 0 : index
    %c0_40 = arith.constant 0 : index
    %22 = vector.load %arg2[%c0_37, %c0_38, %c0_39, %c0_40] : memref<3x3x4x4xbf16, #tpu.memory_space<vmem>>, vector<1x1x4x4xbf16>
    %23 = vector.shape_cast %22 : vector<1x1x4x4xbf16> to vector<4x4xbf16>
    %cst = arith.constant dense<0.000000e+00> : vector<256x4xf32>
    %24 = tpu.matmul %21, %23, %cst {dimension_numbers = #tpu.dot_dimension_numbers<[1], [0], [0], [1], [0, 0, 1, 1], [], []>} : vector<256x4xbf16>, vector<4x4xbf16>, vector<256x4xf32> -> vector<256x4xf32>
    %c0_41 = arith.constant 0 : index
    %c2_42 = arith.constant 2 : index
    %c0_43 = arith.constant 0 : index
    %25 = vector.load %arg5[%c0_41, %c2_42, %c0_43] : memref<20x20x4xbf16, #tpu.memory_space<vmem>>, vector<16x16x4xbf16>
    %26 = vector.shape_cast %25 : vector<16x16x4xbf16> to vector<256x4xbf16>
    %c0_44 = arith.constant 0 : index
    %c1_45 = arith.constant 1 : index
    %c0_46 = arith.constant 0 : index
    %c0_47 = arith.constant 0 : index
    %27 = vector.load %arg2[%c0_44, %c1_45, %c0_46, %c0_47] : memref<3x3x4x4xbf16, #tpu.memory_space<vmem>>, vector<1x1x4x4xbf16>
    %28 = vector.shape_cast %27 : vector<1x1x4x4xbf16> to vector<4x4xbf16>
    %cst_48 = arith.constant dense<0.000000e+00> : vector<256x4xf32>
    %29 = tpu.matmul %26, %28, %cst_48 {dimension_numbers = #tpu.dot_dimension_numbers<[1], [0], [0], [1], [0, 0, 1, 1], [], []>} : vector<256x4xbf16>, vector<4x4xbf16>, vector<256x4xf32> -> vector<256x4xf32>
    %30 = arith.addf %24, %29 : vector<256x4xf32>
    %c0_49 = arith.constant 0 : index
    %c4_50 = arith.constant 4 : index
    %c0_51 = arith.constant 0 : index
    %31 = vector.load %arg5[%c0_49, %c4_50, %c0_51] : memref<20x20x4xbf16, #tpu.memory_space<vmem>>, vector<16x16x4xbf16>
    %32 = vector.shape_cast %31 : vector<16x16x4xbf16> to vector<256x4xbf16>
    %c0_52 = arith.constant 0 : index
    %c2_53 = arith.constant 2 : index
    %c0_54 = arith.constant 0 : index
    %c0_55 = arith.constant 0 : index
    %33 = vector.load %arg2[%c0_52, %c2_53, %c0_54, %c0_55] : memref<3x3x4x4xbf16, #tpu.memory_space<vmem>>, vector<1x1x4x4xbf16>
    %34 = vector.shape_cast %33 : vector<1x1x4x4xbf16> to vector<4x4xbf16>
    %cst_56 = arith.constant dense<0.000000e+00> : vector<256x4xf32>
    %35 = tpu.matmul %32, %34, %cst_56 {dimension_numbers = #tpu.dot_dimension_numbers<[1], [0], [0], [1], [0, 0, 1, 1], [], []>} : vector<256x4xbf16>, vector<4x4xbf16>, vector<256x4xf32> -> vector<256x4xf32>
    %36 = arith.addf %30, %35 : vector<256x4xf32>
    %c2_57 = arith.constant 2 : index
    %c0_58 = arith.constant 0 : index
    %c0_59 = arith.constant 0 : index
    %37 = vector.load %arg5[%c2_57, %c0_58, %c0_59] : memref<20x20x4xbf16, #tpu.memory_space<vmem>>, vector<16x16x4xbf16>
    %38 = vector.shape_cast %37 : vector<16x16x4xbf16> to vector<256x4xbf16>
    %c1_60 = arith.constant 1 : index
    %c0_61 = arith.constant 0 : index
    %c0_62 = arith.constant 0 : index
    %c0_63 = arith.constant 0 : index
    %39 = vector.load %arg2[%c1_60, %c0_61, %c0_62, %c0_63] : memref<3x3x4x4xbf16, #tpu.memory_space<vmem>>, vector<1x1x4x4xbf16>
    %40 = vector.shape_cast %39 : vector<1x1x4x4xbf16> to vector<4x4xbf16>
    %cst_64 = arith.constant dense<0.000000e+00> : vector<256x4xf32>
    %41 = tpu.matmul %38, %40, %cst_64 {dimension_numbers = #tpu.dot_dimension_numbers<[1], [0], [0], [1], [0, 0, 1, 1], [], []>} : vector<256x4xbf16>, vector<4x4xbf16>, vector<256x4xf32> -> vector<256x4xf32>
    %42 = arith.addf %36, %41 : vector<256x4xf32>
    %c2_65 = arith.constant 2 : index
    %c2_66 = arith.constant 2 : index
    %c0_67 = arith.constant 0 : index
    %43 = vector.load %arg5[%c2_65, %c2_66, %c0_67] : memref<20x20x4xbf16, #tpu.memory_space<vmem>>, vector<16x16x4xbf16>
    %44 = vector.shape_cast %43 : vector<16x16x4xbf16> to vector<256x4xbf16>
    %c1_68 = arith.constant 1 : index
    %c1_69 = arith.constant 1 : index
    %c0_70 = arith.constant 0 : index
    %c0_71 = arith.constant 0 : index
    %45 = vector.load %arg2[%c1_68, %c1_69, %c0_70, %c0_71] : memref<3x3x4x4xbf16, #tpu.memory_space<vmem>>, vector<1x1x4x4xbf16>
    %46 = vector.shape_cast %45 : vector<1x1x4x4xbf16> to vector<4x4xbf16>
    %cst_72 = arith.constant dense<0.000000e+00> : vector<256x4xf32>
    %47 = tpu.matmul %44, %46, %cst_72 {dimension_numbers = #tpu.dot_dimension_numbers<[1], [0], [0], [1], [0, 0, 1, 1], [], []>} : vector<256x4xbf16>, vector<4x4xbf16>, vector<256x4xf32> -> vector<256x4xf32>
    %48 = arith.addf %42, %47 : vector<256x4xf32>
    %c2_73 = arith.constant 2 : index
    %c4_74 = arith.constant 4 : index
    %c0_75 = arith.constant 0 : index
    %49 = vector.load %arg5[%c2_73, %c4_74, %c0_75] : memref<20x20x4xbf16, #tpu.memory_space<vmem>>, vector<16x16x4xbf16>
    %50 = vector.shape_cast %49 : vector<16x16x4xbf16> to vector<256x4xbf16>
    %c1_76 = arith.constant 1 : index
    %c2_77 = arith.constant 2 : index
    %c0_78 = arith.constant 0 : index
    %c0_79 = arith.constant 0 : index
    %51 = vector.load %arg2[%c1_76, %c2_77, %c0_78, %c0_79] : memref<3x3x4x4xbf16, #tpu.memory_space<vmem>>, vector<1x1x4x4xbf16>
    %52 = vector.shape_cast %51 : vector<1x1x4x4xbf16> to vector<4x4xbf16>
    %cst_80 = arith.constant dense<0.000000e+00> : vector<256x4xf32>
    %53 = tpu.matmul %50, %52, %cst_80 {dimension_numbers = #tpu.dot_dimension_numbers<[1], [0], [0], [1], [0, 0, 1, 1], [], []>} : vector<256x4xbf16>, vector<4x4xbf16>, vector<256x4xf32> -> vector<256x4xf32>
    %54 = arith.addf %48, %53 : vector<256x4xf32>
    %c4_81 = arith.constant 4 : index
    %c0_82 = arith.constant 0 : index
    %c0_83 = arith.constant 0 : index
    %55 = vector.load %arg5[%c4_81, %c0_82, %c0_83] : memref<20x20x4xbf16, #tpu.memory_space<vmem>>, vector<16x16x4xbf16>
    %56 = vector.shape_cast %55 : vector<16x16x4xbf16> to vector<256x4xbf16>
    %c2_84 = arith.constant 2 : index
    %c0_85 = arith.constant 0 : index
    %c0_86 = arith.constant 0 : index
    %c0_87 = arith.constant 0 : index
    %57 = vector.load %arg2[%c2_84, %c0_85, %c0_86, %c0_87] : memref<3x3x4x4xbf16, #tpu.memory_space<vmem>>, vector<1x1x4x4xbf16>
    %58 = vector.shape_cast %57 : vector<1x1x4x4xbf16> to vector<4x4xbf16>
    %cst_88 = arith.constant dense<0.000000e+00> : vector<256x4xf32>
    %59 = tpu.matmul %56, %58, %cst_88 {dimension_numbers = #tpu.dot_dimension_numbers<[1], [0], [0], [1], [0, 0, 1, 1], [], []>} : vector<256x4xbf16>, vector<4x4xbf16>, vector<256x4xf32> -> vector<256x4xf32>
    %60 = arith.addf %54, %59 : vector<256x4xf32>
    %c4_89 = arith.constant 4 : index
    %c2_90 = arith.constant 2 : index
    %c0_91 = arith.constant 0 : index
    %61 = vector.load %arg5[%c4_89, %c2_90, %c0_91] : memref<20x20x4xbf16, #tpu.memory_space<vmem>>, vector<16x16x4xbf16>
    %62 = vector.shape_cast %61 : vector<16x16x4xbf16> to vector<256x4xbf16>
    %c2_92 = arith.constant 2 : index
    %c1_93 = arith.constant 1 : index
    %c0_94 = arith.constant 0 : index
    %c0_95 = arith.constant 0 : index
    %63 = vector.load %arg2[%c2_92, %c1_93, %c0_94, %c0_95] : memref<3x3x4x4xbf16, #tpu.memory_space<vmem>>, vector<1x1x4x4xbf16>
    %64 = vector.shape_cast %63 : vector<1x1x4x4xbf16> to vector<4x4xbf16>
    %cst_96 = arith.constant dense<0.000000e+00> : vector<256x4xf32>
    %65 = tpu.matmul %62, %64, %cst_96 {dimension_numbers = #tpu.dot_dimension_numbers<[1], [0], [0], [1], [0, 0, 1, 1], [], []>} : vector<256x4xbf16>, vector<4x4xbf16>, vector<256x4xf32> -> vector<256x4xf32>
    %66 = arith.addf %60, %65 : vector<256x4xf32>
    %c4_97 = arith.constant 4 : index
    %c4_98 = arith.constant 4 : index
    %c0_99 = arith.constant 0 : index
    %67 = vector.load %arg5[%c4_97, %c4_98, %c0_99] : memref<20x20x4xbf16, #tpu.memory_space<vmem>>, vector<16x16x4xbf16>
    %68 = vector.shape_cast %67 : vector<16x16x4xbf16> to vector<256x4xbf16>
    %c2_100 = arith.constant 2 : index
    %c2_101 = arith.constant 2 : index
    %c0_102 = arith.constant 0 : index
    %c0_103 = arith.constant 0 : index
    %69 = vector.load %arg2[%c2_100, %c2_101, %c0_102, %c0_103] : memref<3x3x4x4xbf16, #tpu.memory_space<vmem>>, vector<1x1x4x4xbf16>
    %70 = vector.shape_cast %69 : vector<1x1x4x4xbf16> to vector<4x4xbf16>
    %cst_104 = arith.constant dense<0.000000e+00> : vector<256x4xf32>
    %71 = tpu.matmul %68, %70, %cst_104 {dimension_numbers = #tpu.dot_dimension_numbers<[1], [0], [0], [1], [0, 0, 1, 1], [], []>} : vector<256x4xbf16>, vector<4x4xbf16>, vector<256x4xf32> -> vector<256x4xf32>
    %72 = arith.addf %66, %71 : vector<256x4xf32>
    %cst_105 = arith.constant dense<0.000000e+00> : vector<4xf32>
    %73 = vector.multi_reduction <add>, %72, %cst_105 [0] : vector<256x4xf32> to vector<4xf32>
    %74 = vector.shape_cast %73 : vector<4xf32> to vector<1x4xf32>
    %75 = arith.mulf %72, %72 : vector<256x4xf32>
    %cst_106 = arith.constant dense<0.000000e+00> : vector<4xf32>
    %76 = vector.multi_reduction <add>, %75, %cst_106 [0] : vector<256x4xf32> to vector<4xf32>
    %77 = vector.shape_cast %76 : vector<4xf32> to vector<1x4xf32>
    %cst_107 = arith.constant 3.906250e-03 : f32
    %78 = vector.broadcast %cst_107 : f32 to vector<1x4xf32>
    %79 = arith.mulf %74, %78 : vector<1x4xf32>
    %cst_108 = arith.constant 3.906250e-03 : f32
    %80 = vector.broadcast %cst_108 : f32 to vector<1x4xf32>
    %81 = arith.mulf %77, %80 : vector<1x4xf32>
    %82 = arith.mulf %79, %79 : vector<1x4xf32>
    %83 = arith.subf %81, %82 : vector<1x4xf32>
    %cst_109 = arith.constant 0.000000e+00 : f32
    %84 = vector.broadcast %cst_109 : f32 to vector<1x4xf32>
    %85 = arith.maximumf %83, %84 : vector<1x4xf32>
    %86 = vector.broadcast %79 : vector<1x4xf32> to vector<256x4xf32>
    %87 = arith.subf %72, %86 : vector<256x4xf32>
    %cst_110 = arith.constant 9.99999974E-6 : f32
    %88 = vector.broadcast %cst_110 : f32 to vector<1x4xf32>
    %89 = arith.addf %85, %88 : vector<1x4xf32>
    %90 = math.rsqrt %89 : vector<1x4xf32>
    %91 = vector.broadcast %90 : vector<1x4xf32> to vector<256x4xf32>
    %92 = arith.mulf %87, %91 : vector<256x4xf32>
    %cst_111 = arith.constant 0.000000e+00 : f32
    %93 = vector.broadcast %cst_111 : f32 to vector<256x4xf32>
    %94 = arith.maximumf %92, %93 : vector<256x4xf32>
    %95 = vector.shape_cast %94 : vector<256x4xf32> to vector<16x16x4xf32>
    %96 = arith.truncf %95 : vector<16x16x4xf32> to vector<16x16x4xbf16>
    %c1_112 = arith.constant 1 : index
    %c1_113 = arith.constant 1 : index
    %c0_114 = arith.constant 0 : index
    %97 = vector.load %arg6[%c1_112, %c1_113, %c0_114] : memref<18x18x4xbf16, #tpu.memory_space<vmem>>, vector<16x16x4xbf16>
    tpu.vector_store %arg6[%c1_112, %c1_113, %c0_114], %96 {strides = array<i32>} : memref<18x18x4xbf16, #tpu.memory_space<vmem>>, vector<16x16x4xbf16>,
    %98 = vector.extract_strided_slice %96 {offsets = [0, 1, 0], sizes = [16, 1, 4], strides = [1, 1, 1]} : vector<16x16x4xbf16> to vector<16x1x4xbf16>
    %c1_115 = arith.constant 1 : index
    %c0_116 = arith.constant 0 : index
    %c0_117 = arith.constant 0 : index
    %99 = vector.load %arg6[%c1_115, %c0_116, %c0_117] : memref<18x18x4xbf16, #tpu.memory_space<vmem>>, vector<16x1x4xbf16>
    tpu.vector_store %arg6[%c1_115, %c0_116, %c0_117], %98 {strides = array<i32>} : memref<18x18x4xbf16, #tpu.memory_space<vmem>>, vector<16x1x4xbf16>,
    %100 = vector.extract_strided_slice %96 {offsets = [0, 14, 0], sizes = [16, 1, 4], strides = [1, 1, 1]} : vector<16x16x4xbf16> to vector<16x1x4xbf16>
    %c1_118 = arith.constant 1 : index
    %c17 = arith.constant 17 : index
    %c0_119 = arith.constant 0 : index
    %101 = vector.load %arg6[%c1_118, %c17, %c0_119] : memref<18x18x4xbf16, #tpu.memory_space<vmem>>, vector<16x1x4xbf16>
    tpu.vector_store %arg6[%c1_118, %c17, %c0_119], %100 {strides = array<i32>} : memref<18x18x4xbf16, #tpu.memory_space<vmem>>, vector<16x1x4xbf16>,
    %c2_120 = arith.constant 2 : index
    %c0_121 = arith.constant 0 : index
    %c0_122 = arith.constant 0 : index
    %102 = vector.load %arg6[%c2_120, %c0_121, %c0_122] : memref<18x18x4xbf16, #tpu.memory_space<vmem>>, vector<1x18x4xbf16>
    %c0_123 = arith.constant 0 : index
    %c0_124 = arith.constant 0 : index
    %c0_125 = arith.constant 0 : index
    %103 = vector.load %arg6[%c0_123, %c0_124, %c0_125] : memref<18x18x4xbf16, #tpu.memory_space<vmem>>, vector<1x18x4xbf16>
    tpu.vector_store %arg6[%c0_123, %c0_124, %c0_125], %102 {strides = array<i32>} : memref<18x18x4xbf16, #tpu.memory_space<vmem>>, vector<1x18x4xbf16>,
    %c15_126 = arith.constant 15 : index
    %c0_127 = arith.constant 0 : index
    %c0_128 = arith.constant 0 : index
    %104 = vector.load %arg6[%c15_126, %c0_127, %c0_128] : memref<18x18x4xbf16, #tpu.memory_space<vmem>>, vector<1x18x4xbf16>
    %c17_129 = arith.constant 17 : index
    %c0_130 = arith.constant 0 : index
    %c0_131 = arith.constant 0 : index
    %105 = vector.load %arg6[%c17_129, %c0_130, %c0_131] : memref<18x18x4xbf16, #tpu.memory_space<vmem>>, vector<1x18x4xbf16>
    tpu.vector_store %arg6[%c17_129, %c0_130, %c0_131], %104 {strides = array<i32>} : memref<18x18x4xbf16, #tpu.memory_space<vmem>>, vector<1x18x4xbf16>,
    %c0_132 = arith.constant 0 : index
    %c0_133 = arith.constant 0 : index
    %c0_134 = arith.constant 0 : index
    %106 = vector.load %arg6[%c0_132, %c0_133, %c0_134] : memref<18x18x4xbf16, #tpu.memory_space<vmem>>, vector<16x16x4xbf16>
    %107 = vector.shape_cast %106 : vector<16x16x4xbf16> to vector<256x4xbf16>
    %c0_135 = arith.constant 0 : index
    %c0_136 = arith.constant 0 : index
    %c0_137 = arith.constant 0 : index
    %c0_138 = arith.constant 0 : index
    %108 = vector.load %arg3[%c0_135, %c0_136, %c0_137, %c0_138] : memref<3x3x4x4xbf16, #tpu.memory_space<vmem>>, vector<1x1x4x4xbf16>
    %109 = vector.shape_cast %108 : vector<1x1x4x4xbf16> to vector<4x4xbf16>
    %cst_139 = arith.constant dense<0.000000e+00> : vector<256x4xf32>
    %110 = tpu.matmul %107, %109, %cst_139 {dimension_numbers = #tpu.dot_dimension_numbers<[1], [0], [0], [1], [0, 0, 1, 1], [], []>} : vector<256x4xbf16>, vector<4x4xbf16>, vector<256x4xf32> -> vector<256x4xf32>
    %c0_140 = arith.constant 0 : index
    %c1_141 = arith.constant 1 : index
    %c0_142 = arith.constant 0 : index
    %111 = vector.load %arg6[%c0_140, %c1_141, %c0_142] : memref<18x18x4xbf16, #tpu.memory_space<vmem>>, vector<16x16x4xbf16>
    %112 = vector.shape_cast %111 : vector<16x16x4xbf16> to vector<256x4xbf16>
    %c0_143 = arith.constant 0 : index
    %c1_144 = arith.constant 1 : index
    %c0_145 = arith.constant 0 : index
    %c0_146 = arith.constant 0 : index
    %113 = vector.load %arg3[%c0_143, %c1_144, %c0_145, %c0_146] : memref<3x3x4x4xbf16, #tpu.memory_space<vmem>>, vector<1x1x4x4xbf16>
    %114 = vector.shape_cast %113 : vector<1x1x4x4xbf16> to vector<4x4xbf16>
    %cst_147 = arith.constant dense<0.000000e+00> : vector<256x4xf32>
    %115 = tpu.matmul %112, %114, %cst_147 {dimension_numbers = #tpu.dot_dimension_numbers<[1], [0], [0], [1], [0, 0, 1, 1], [], []>} : vector<256x4xbf16>, vector<4x4xbf16>, vector<256x4xf32> -> vector<256x4xf32>
    %116 = arith.addf %110, %115 : vector<256x4xf32>
    %c0_148 = arith.constant 0 : index
    %c2_149 = arith.constant 2 : index
    %c0_150 = arith.constant 0 : index
    %117 = vector.load %arg6[%c0_148, %c2_149, %c0_150] : memref<18x18x4xbf16, #tpu.memory_space<vmem>>, vector<16x16x4xbf16>
    %118 = vector.shape_cast %117 : vector<16x16x4xbf16> to vector<256x4xbf16>
    %c0_151 = arith.constant 0 : index
    %c2_152 = arith.constant 2 : index
    %c0_153 = arith.constant 0 : index
    %c0_154 = arith.constant 0 : index
    %119 = vector.load %arg3[%c0_151, %c2_152, %c0_153, %c0_154] : memref<3x3x4x4xbf16, #tpu.memory_space<vmem>>, vector<1x1x4x4xbf16>
    %120 = vector.shape_cast %119 : vector<1x1x4x4xbf16> to vector<4x4xbf16>
    %cst_155 = arith.constant dense<0.000000e+00> : vector<256x4xf32>
    %121 = tpu.matmul %118, %120, %cst_155 {dimension_numbers = #tpu.dot_dimension_numbers<[1], [0], [0], [1], [0, 0, 1, 1], [], []>} : vector<256x4xbf16>, vector<4x4xbf16>, vector<256x4xf32> -> vector<256x4xf32>
    %122 = arith.addf %116, %121 : vector<256x4xf32>
    %c1_156 = arith.constant 1 : index
    %c0_157 = arith.constant 0 : index
    %c0_158 = arith.constant 0 : index
    %123 = vector.load %arg6[%c1_156, %c0_157, %c0_158] : memref<18x18x4xbf16, #tpu.memory_space<vmem>>, vector<16x16x4xbf16>
    %124 = vector.shape_cast %123 : vector<16x16x4xbf16> to vector<256x4xbf16>
    %c1_159 = arith.constant 1 : index
    %c0_160 = arith.constant 0 : index
    %c0_161 = arith.constant 0 : index
    %c0_162 = arith.constant 0 : index
    %125 = vector.load %arg3[%c1_159, %c0_160, %c0_161, %c0_162] : memref<3x3x4x4xbf16, #tpu.memory_space<vmem>>, vector<1x1x4x4xbf16>
    %126 = vector.shape_cast %125 : vector<1x1x4x4xbf16> to vector<4x4xbf16>
    %cst_163 = arith.constant dense<0.000000e+00> : vector<256x4xf32>
    %127 = tpu.matmul %124, %126, %cst_163 {dimension_numbers = #tpu.dot_dimension_numbers<[1], [0], [0], [1], [0, 0, 1, 1], [], []>} : vector<256x4xbf16>, vector<4x4xbf16>, vector<256x4xf32> -> vector<256x4xf32>
    %128 = arith.addf %122, %127 : vector<256x4xf32>
    %c1_164 = arith.constant 1 : index
    %c1_165 = arith.constant 1 : index
    %c0_166 = arith.constant 0 : index
    %129 = vector.load %arg6[%c1_164, %c1_165, %c0_166] : memref<18x18x4xbf16, #tpu.memory_space<vmem>>, vector<16x16x4xbf16>
    %130 = vector.shape_cast %129 : vector<16x16x4xbf16> to vector<256x4xbf16>
    %c1_167 = arith.constant 1 : index
    %c1_168 = arith.constant 1 : index
    %c0_169 = arith.constant 0 : index
    %c0_170 = arith.constant 0 : index
    %131 = vector.load %arg3[%c1_167, %c1_168, %c0_169, %c0_170] : memref<3x3x4x4xbf16, #tpu.memory_space<vmem>>, vector<1x1x4x4xbf16>
    %132 = vector.shape_cast %131 : vector<1x1x4x4xbf16> to vector<4x4xbf16>
    %cst_171 = arith.constant dense<0.000000e+00> : vector<256x4xf32>
    %133 = tpu.matmul %130, %132, %cst_171 {dimension_numbers = #tpu.dot_dimension_numbers<[1], [0], [0], [1], [0, 0, 1, 1], [], []>} : vector<256x4xbf16>, vector<4x4xbf16>, vector<256x4xf32> -> vector<256x4xf32>
    %134 = arith.addf %128, %133 : vector<256x4xf32>
    %c1_172 = arith.constant 1 : index
    %c2_173 = arith.constant 2 : index
    %c0_174 = arith.constant 0 : index
    %135 = vector.load %arg6[%c1_172, %c2_173, %c0_174] : memref<18x18x4xbf16, #tpu.memory_space<vmem>>, vector<16x16x4xbf16>
    %136 = vector.shape_cast %135 : vector<16x16x4xbf16> to vector<256x4xbf16>
    %c1_175 = arith.constant 1 : index
    %c2_176 = arith.constant 2 : index
    %c0_177 = arith.constant 0 : index
    %c0_178 = arith.constant 0 : index
    %137 = vector.load %arg3[%c1_175, %c2_176, %c0_177, %c0_178] : memref<3x3x4x4xbf16, #tpu.memory_space<vmem>>, vector<1x1x4x4xbf16>
    %138 = vector.shape_cast %137 : vector<1x1x4x4xbf16> to vector<4x4xbf16>
    %cst_179 = arith.constant dense<0.000000e+00> : vector<256x4xf32>
    %139 = tpu.matmul %136, %138, %cst_179 {dimension_numbers = #tpu.dot_dimension_numbers<[1], [0], [0], [1], [0, 0, 1, 1], [], []>} : vector<256x4xbf16>, vector<4x4xbf16>, vector<256x4xf32> -> vector<256x4xf32>
    %140 = arith.addf %134, %139 : vector<256x4xf32>
    %c2_180 = arith.constant 2 : index
    %c0_181 = arith.constant 0 : index
    %c0_182 = arith.constant 0 : index
    %141 = vector.load %arg6[%c2_180, %c0_181, %c0_182] : memref<18x18x4xbf16, #tpu.memory_space<vmem>>, vector<16x16x4xbf16>
    %142 = vector.shape_cast %141 : vector<16x16x4xbf16> to vector<256x4xbf16>
    %c2_183 = arith.constant 2 : index
    %c0_184 = arith.constant 0 : index
    %c0_185 = arith.constant 0 : index
    %c0_186 = arith.constant 0 : index
    %143 = vector.load %arg3[%c2_183, %c0_184, %c0_185, %c0_186] : memref<3x3x4x4xbf16, #tpu.memory_space<vmem>>, vector<1x1x4x4xbf16>
    %144 = vector.shape_cast %143 : vector<1x1x4x4xbf16> to vector<4x4xbf16>
    %cst_187 = arith.constant dense<0.000000e+00> : vector<256x4xf32>
    %145 = tpu.matmul %142, %144, %cst_187 {dimension_numbers = #tpu.dot_dimension_numbers<[1], [0], [0], [1], [0, 0, 1, 1], [], []>} : vector<256x4xbf16>, vector<4x4xbf16>, vector<256x4xf32> -> vector<256x4xf32>
    %146 = arith.addf %140, %145 : vector<256x4xf32>
    %c2_188 = arith.constant 2 : index
    %c1_189 = arith.constant 1 : index
    %c0_190 = arith.constant 0 : index
    %147 = vector.load %arg6[%c2_188, %c1_189, %c0_190] : memref<18x18x4xbf16, #tpu.memory_space<vmem>>, vector<16x16x4xbf16>
    %148 = vector.shape_cast %147 : vector<16x16x4xbf16> to vector<256x4xbf16>
    %c2_191 = arith.constant 2 : index
    %c1_192 = arith.constant 1 : index
    %c0_193 = arith.constant 0 : index
    %c0_194 = arith.constant 0 : index
    %149 = vector.load %arg3[%c2_191, %c1_192, %c0_193, %c0_194] : memref<3x3x4x4xbf16, #tpu.memory_space<vmem>>, vector<1x1x4x4xbf16>
    %150 = vector.shape_cast %149 : vector<1x1x4x4xbf16> to vector<4x4xbf16>
    %cst_195 = arith.constant dense<0.000000e+00> : vector<256x4xf32>
    %151 = tpu.matmul %148, %150, %cst_195 {dimension_numbers = #tpu.dot_dimension_numbers<[1], [0], [0], [1], [0, 0, 1, 1], [], []>} : vector<256x4xbf16>, vector<4x4xbf16>, vector<256x4xf32> -> vector<256x4xf32>
    %152 = arith.addf %146, %151 : vector<256x4xf32>
    %c2_196 = arith.constant 2 : index
    %c2_197 = arith.constant 2 : index
    %c0_198 = arith.constant 0 : index
    %153 = vector.load %arg6[%c2_196, %c2_197, %c0_198] : memref<18x18x4xbf16, #tpu.memory_space<vmem>>, vector<16x16x4xbf16>
    %154 = vector.shape_cast %153 : vector<16x16x4xbf16> to vector<256x4xbf16>
    %c2_199 = arith.constant 2 : index
    %c2_200 = arith.constant 2 : index
    %c0_201 = arith.constant 0 : index
    %c0_202 = arith.constant 0 : index
    %155 = vector.load %arg3[%c2_199, %c2_200, %c0_201, %c0_202] : memref<3x3x4x4xbf16, #tpu.memory_space<vmem>>, vector<1x1x4x4xbf16>
    %156 = vector.shape_cast %155 : vector<1x1x4x4xbf16> to vector<4x4xbf16>
    %cst_203 = arith.constant dense<0.000000e+00> : vector<256x4xf32>
    %157 = tpu.matmul %154, %156, %cst_203 {dimension_numbers = #tpu.dot_dimension_numbers<[1], [0], [0], [1], [0, 0, 1, 1], [], []>} : vector<256x4xbf16>, vector<4x4xbf16>, vector<256x4xf32> -> vector<256x4xf32>
    %158 = arith.addf %152, %157 : vector<256x4xf32>
    %cst_204 = arith.constant dense<0.000000e+00> : vector<4xf32>
    %159 = vector.multi_reduction <add>, %158, %cst_204 [0] : vector<256x4xf32> to vector<4xf32>
    %160 = vector.shape_cast %159 : vector<4xf32> to vector<1x4xf32>
    %161 = arith.mulf %158, %158 : vector<256x4xf32>
    %cst_205 = arith.constant dense<0.000000e+00> : vector<4xf32>
    %162 = vector.multi_reduction <add>, %161, %cst_205 [0] : vector<256x4xf32> to vector<4xf32>
    %163 = vector.shape_cast %162 : vector<4xf32> to vector<1x4xf32>
    %cst_206 = arith.constant 3.906250e-03 : f32
    %164 = vector.broadcast %cst_206 : f32 to vector<1x4xf32>
    %165 = arith.mulf %160, %164 : vector<1x4xf32>
    %cst_207 = arith.constant 3.906250e-03 : f32
    %166 = vector.broadcast %cst_207 : f32 to vector<1x4xf32>
    %167 = arith.mulf %163, %166 : vector<1x4xf32>
    %168 = arith.mulf %165, %165 : vector<1x4xf32>
    %169 = arith.subf %167, %168 : vector<1x4xf32>
    %cst_208 = arith.constant 0.000000e+00 : f32
    %170 = vector.broadcast %cst_208 : f32 to vector<1x4xf32>
    %171 = arith.maximumf %169, %170 : vector<1x4xf32>
    %172 = vector.broadcast %165 : vector<1x4xf32> to vector<256x4xf32>
    %173 = arith.subf %158, %172 : vector<256x4xf32>
    %cst_209 = arith.constant 9.99999974E-6 : f32
    %174 = vector.broadcast %cst_209 : f32 to vector<1x4xf32>
    %175 = arith.addf %171, %174 : vector<1x4xf32>
    %176 = math.rsqrt %175 : vector<1x4xf32>
    %177 = vector.broadcast %176 : vector<1x4xf32> to vector<256x4xf32>
    %178 = arith.mulf %173, %177 : vector<256x4xf32>
    %179 = vector.shape_cast %178 : vector<256x4xf32> to vector<16x16x4xf32>
    %180 = arith.addf %1, %179 : vector<16x16x4xf32>
    %c0_210 = arith.constant 0 : index
    %c0_211 = arith.constant 0 : index
    %c0_212 = arith.constant 0 : index
    %c0_213 = arith.constant 0 : index
    %181 = vector.load %arg4[%c0_210, %c0_211, %c0_212, %c0_213] : memref<1x16x16x4xf32, #tpu.memory_space<vmem>>, vector<1x16x16x4xf32>
    %182 = vector.shape_cast %181 : vector<1x16x16x4xf32> to vector<16x16x4xf32>
    %183 = vector.shape_cast %180 : vector<16x16x4xf32> to vector<1x16x16x4xf32>
    tpu.vector_store %arg4[%c0_210, %c0_211, %c0_212, %c0_213], %183 {strides = array<i32>} : memref<1x16x16x4xf32, #tpu.memory_space<vmem>>, vector<1x16x16x4xf32>,
    return
  }
  func.func @transform_0(%arg0: i32) -> (i32, i32, i32, i32) {
    %c0_i32 = arith.constant 0 : i32
    %c0_i32_0 = arith.constant 0 : i32
    %c0_i32_1 = arith.constant 0 : i32
    %c0_i32_2 = arith.constant 0 : i32
    return %arg0, %c0_i32, %c0_i32_0, %c0_i32_1 : i32, i32, i32, i32
  }
  func.func @transform_1(%arg0: i32) -> (i32, i32, i32, i32) {
    %c0_i32 = arith.constant 0 : i32
    %c0_i32_0 = arith.constant 0 : i32
    %c0_i32_1 = arith.constant 0 : i32
    %c0_i32_2 = arith.constant 0 : i32
    %c0_i32_3 = arith.constant 0 : i32
    return %c0_i32, %c0_i32_0, %c0_i32_1, %c0_i32_2 : i32, i32, i32, i32
  }
  func.func @transform_2(%arg0: i32) -> (i32, i32, i32, i32) {
    %c0_i32 = arith.constant 0 : i32
    %c0_i32_0 = arith.constant 0 : i32
    %c0_i32_1 = arith.constant 0 : i32
    %c0_i32_2 = arith.constant 0 : i32
    %c0_i32_3 = arith.constant 0 : i32
    return %c0_i32, %c0_i32_0, %c0_i32_1, %c0_i32_2 : i32, i32, i32, i32
  }
  func.func @transform_3(%arg0: i32) -> (i32, i32, i32, i32) {
    %c0_i32 = arith.constant 0 : i32
    %c0_i32_0 = arith.constant 0 : i32
    %c0_i32_1 = arith.constant 0 : i32
    %c0_i32_2 = arith.constant 0 : i32
    return %arg0, %c0_i32, %c0_i32_0, %c0_i32_1 : i32, i32, i32, i32
  }
}

</mosaic_0001>

<bundles_post_ra>
// kernel: tpu_custom_call.1
= control target key start
LH: loop header
LB: loop body
LE: loop exit
PB: predicated region body
PF: predicated region fallthrough
CT: control target
= control target key end

     0   :  { %s10445_s12 = smov 0   ;;  %s14800_s0 = inlined_call_operand.vmem [shape: f32[2,16,16,4], index: 0, kind: input, shape index: {}]   ;;  %s14801_s1 = inlined_call_operand.vmem [shape: bf16[3,3,4,4], index: 1, kind: input, shape index: {}]   ;;  %s14802_s2 = inlined_call_operand.vmem [shape: bf16[3,3,4,4], index: 2, kind: input, shape index: {}]   ;;  %s14803_s3 = inlined_call_operand.vmem [shape: f32[2,16,16,4], index: 3, kind: output, shape index: {}]  }
   0x1 LB: > { %s9313_s13 = sadd.s32 4294967295, %s10423_s12   ;;  %p9317_p0 = scmp.ge.s32.totalorder %s10423_s12, 1  ;;  %s10423_s12 = sphi %s10445_s12, %s13_s12  }
   0x2   : > { %p137_p1 = scmp.lt.s32.totalorder %s10423_s12, 3 }
   0x4   : > { %p138_p2 = pnand %p9317_p0, %p137_p1 }
   0x6   : > { %141 = sbr.rel (%p138_p2) target bundleno = 1965 (0x7ad), region = 32 }
   0xb   : > { %v861_v0 = vld [vmem:[%s14801_s1] sm:$0x3]  ;;  %vm1156_vm0 = vcmask 1041408   ;;  %v9386_v1 = vld [vmem:[%s14801_s1 + $0x2] sm:$0x3]  ;;  %p161_p3 = scmp.lt.s32.totalorder %s9313_s13, 1 }
   0xc   : > { %v1362_v2 = vsel %vm1156_vm0, %v861_v0, 0  ;;  %v1158_v3 = vsel %vm1156_vm0, %v9386_v1, 0  ;;  %vm404_vm1 = vcmask 24576   ;;  %vm14804_vm2 = vsmask.f32 7938 }
   0xd   : > { %10335 = vmatpush.bf16.msra.mxu3 %v1362_v2  ;;  %10334 = vmatpush.bf16.msra.mxu2 %v1158_v3  ;;  %s15184_s13 = smov (!%p161_p3, %s9313_s13), 1  ;;  %v9499_v4 = vld [vmem:[%s14801_s1 + $0x4] sm:$0x3]  ;;  %v9516_v5 = vld [vmem:[%s14801_s1 + $0x6] sm:$0x3]  ;;  %vm10481_vm3 = vmand %vm404_vm1, %vm14804_vm2  ;;  %v14866_v8 = vmov 0 }
   0xe   : > { %1167 = vmatpush.bf16.msra.mxu0 %v1158_v3  ;;  %1371 = vmatpush.bf16.msra.mxu1 %v1362_v2  ;;  %s10236_s22 = sshll.u32 %s15184_s13, 8  ;;  %v1731_v6 = vsel %vm1156_vm0, %v9499_v4, 0  ;;  %v2017_v7 = vsel %vm1156_vm0, %v9516_v5, 0  ;;  %v14867_v8 = vsel %vm10481_vm3, 4294967295, %v14866_v8  ;;  %v472_v9 = vld [vmem:[#allocation2 + $0x60] sm:$0x1] }
   0xf   : > { %s10477_s25 = scalar_lea.vmem %s14800_s0, %s10236_s22  ;;  %14868 = vst [vmem:[#allocation4_spill] sm:$0xff] %v14867_v8  ;;  %vm268_vm4 = vcmask 1040384   ;;  %vm269_vm5 = vcmask 1044484   ;;  %vm400_vm6 = vcmask 27649   ;;  %vm649_vm7 = vsmask.f32 256  ;;  %s14664_s6 = scalar_lea.vmem %s14803_s3, %s10236_s22 }
  0x10   : > { %v184_v10 = vld [vmem:[%s10477_s25 + $0x60] sm:$0xff]  ;;  %v185_v11 = vld [vmem:[%s10477_s25 + $0x68] sm:$0xff]  ;;  %v186_v16 = vld [vmem:[%s10477_s25 + $0x70] sm:$0xff]  ;;  %vm550_vm8 = vcmask 25601   ;;  %vm551_vm9 = vsmask.f32 1280 }
  0x11   : > { %1740 = vmatpush.bf16.msrb.mxu2 %v1731_v6  ;;  %2026 = vmatpush.bf16.msrb.mxu3 %v2017_v7  ;;  %v176_v12 = vld [vmem:[%s10477_s25 + $0x20] sm:$0xff]  ;;  %v216_v13 = vpack.c.bf16 %v184_v10, %v184_v10  ;;  %v10488_v14 = vpack.c.bf16 %v185_v11, %v185_v11  ;;  %v177_v15 = vld [vmem:[%s10477_s25 + $0x28] sm:$0xff]  ;;  %v460_v22 = vld [vmem:[#allocation2 + $0x30] sm:$0x1]  ;;  %v10499_v23 = vpack.c.bf16 %v186_v16, %v186_v16  ;;  %vm402_vm11 = vcmask 27648  }
  0x12   : > { %v10492_v17 = vpack.c.bf16 %v176_v12, %v176_v12  ;;  %v10494_v18 = vpack.c.bf16 %v177_v15, %v177_v15  ;;  %vm10503_vm10 = vmor %vm268_vm4, %vm269_vm5  ;;  %v559_v27 = vld [vmem:[#allocation2 + $0x38] sm:$0x2]  ;;  %v174_v35 = vld [vmem:[%s10477_s25 + $0x10] sm:$0xff]  ;;  %vm942_vm13 = vcmask 1042432   ;;  %v14873_v42 = vmov 0 }
  0x13   : > { %v301_v19 = vrot.slane %v216_v13, 7  ;;  %v303_v20 = vrot.slane %v10488_v14, 7  ;;  %v473_v21 = vsel %vm10481_vm3, %v216_v13, %v472_v9  ;;  %v187_v28 = vld [vmem:[%s10477_s25 + $0x78] sm:$0xff]  ;;  %vm10515_vm12 = vmand %vm550_vm8, %vm551_vm9  ;;  %v306_v38 = vrot.slane %v10499_v23, 7  ;;  %v475_v48 = vld [vmem:[#allocation2 + $0x6c] sm:$0x1] }
  0x14   : > { %474 = vst [vmem:[#allocation2 + $0x60] sm:$0x1] %v473_v21  ;;  %v281_v25 = vrot.slane %v10492_v17, 7  ;;  %v283_v26 = vrot.slane %v10494_v18, 7  ;;  %v9324_v31 = vrot.slane %v10494_v18, 10  ;;  %v10523_v37 = vpack.c.bf16 %v187_v28, %v187_v28  ;;  %vm10534_vm14 = vmand %vm404_vm1, %vm649_vm7  ;;  %v175_v46 = vld [vmem:[%s10477_s25 + $0x18] sm:$0xff] }
  0x15   : > { %v302_v29 = vrot.slane %v301_v19, 4  ;;  %v305_v30 = vrot.slane %v303_v20, 4  ;;  %421 = vst.msk [vmem:[#allocation2 + $0x60] sm:$0xe] %vm400_vm6, %v301_v19  ;;  %v9344_v39 = vrot.slane %v216_v13, 9  ;;  %v461_v41 = vsel %vm10481_vm3, %v10492_v17, %v460_v22  ;;  %v188_v60 = vld [vmem:[%s10477_s25 + $0x80] sm:$0xff] }
  0x16   : > { %v282_v32 = vrot.slane %v281_v25, 4  ;;  %v285_v33 = vrot.slane %v283_v26, 4  ;;  %409 = vst.msk [vmem:[#allocation2 + $0x30] sm:$0xe] %vm400_vm6, %v281_v25  ;;  %v14874_v42 = vsel %vm10534_vm14, 4294967295, %v14873_v42  ;;  %v560_v43 = vsel %vm10515_vm12, %v9324_v31, %v559_v27  ;;  %v189_v12 = vld [vmem:[%s10477_s25 + $0x88] sm:$0xff] }
  0x17   : > { %v304_v36 = vsel %vm10503_vm10, %v302_v29, %v303_v20  ;;  %423 = vst.msk [vmem:[#allocation2 + $0x68] sm:$0x1] %vm404_vm1, %v305_v30  ;;  %v307_v44 = vrot.slane %v306_v38, 4  ;;  %v308_v45 = vrot.slane %v10523_v37, 7  ;;  %v10543_v47 = vpack.c.bf16 %v174_v35, %v174_v35  ;;  %v9613_v53 = vld [vmem:[%s14801_s1 + $0x8] sm:$0x3] }
  0x18   : > { %422 = vst.msk [vmem:[#allocation2 + $0x64] sm:$0xf] %vm402_vm11, %v304_v36  ;;  %v284_v40 = vsel %vm10503_vm10, %v282_v32, %v283_v26  ;;  %vm747_vm15 = vsmask.f32 7942  ;;  %vm1107_vm4 = vcmask 31744   ;;  %vm943_vm5 = vcmask 1046532  }
  0x19   : > { %14875 = vst [vmem:[#allocation5_spill] sm:$0xff] %v14874_v42  ;;  %v276_v50 = vrot.slane %v10543_v47, 7  ;;  %v309_v54 = vsel %vm10503_vm10, %v307_v44, %v308_v45  ;;  %v10554_v55 = vpack.c.bf16 %v175_v46, %v175_v46  ;;  %v9340_v56 = vrot.slane %v10492_v17, 9  ;;  %vm10566_vm9 = vmor %vm942_vm13, %vm943_vm5  ;;  %v457_v11 = vld [vmem:[#allocation2 + $0x24] sm:$0x1] }
  0x1a   : > { %410 = vst.msk [vmem:[#allocation2 + $0x34] sm:$0xf] %vm402_vm11, %v284_v40  ;;  %v2447_v57 = vsel %vm1156_vm0, %v9613_v53, 0  ;;  %v310_v58 = vrot.slane %v308_v45, 4  ;;  %v476_v59 = vsel %vm10481_vm3, %v10499_v23, %v475_v48  ;;  %v14876_v1 = vmov 0  ;;  %vm10576_vm2 = vmand %vm550_vm8, %vm747_vm15  ;;  %v172_v30 = vld [vmem:[%s10477_s25] sm:$0xff] }
  0x1b   : > { %411 = vst.msk [vmem:[#allocation2 + $0x38] sm:$0x1] %vm404_vm1, %v285_v33  ;;  %v669_v49 = vld [vmem:[#allocation2 + $0x60] sm:$0x1]  ;;  %2456 = vmatpush.bf16.msrb.mxu0 %v2447_v57  ;;  %v278_v63 = vrot.slane %v10554_v55, 7  ;;  %v14877_v1 = vsel %vm10566_vm9, 4294967295, %v14876_v1  ;;  %v10572_v7 = vpack.c.bf16 %v188_v60, %v188_v60  ;;  %v10596_v28 = vpack.c.bf16 %v189_v12, %v189_v12 }
  0x1c   : > { %462 = vst [vmem:[#allocation2 + $0x30] sm:$0x1] %v461_v41  ;;  %v670_v51 = vsel %vm10534_vm14, %v9344_v39, %v669_v49  ;;  %v878_v52 = vld [vmem:[#allocation2 + $0x60] sm:$0xe]  ;;  %v9356_v2 = vrot.slane %v10494_v18, 9  ;;  %v277_v3 = vrot.slane %v276_v50, 4  ;;  %v458_v32 = vsel %vm10481_vm3, %v10543_v47, %v457_v11 }
  0x1d   : > { %561 = vst [vmem:[#allocation2 + $0x38] sm:$0x2] %v560_v43  ;;  %v9378_v62 = vrot.slane %v878_v52, 9  ;;  %v9345_v10 = vrot.slane %v10499_v23, 9  ;;  %v280_v17 = vrot.slane %v278_v63, 4  ;;  %v9323_v23 = vrot.slane %v10554_v55, 10 }
  0x1e   : > { %671 = vst [vmem:[#allocation2 + $0x60] sm:$0x1] %v670_v51  ;;  %v879_v61 = vld [vmem:[#allocation2 + $0x68] sm:$0x1]  ;;  %v556_v18 = vld [vmem:[#allocation2 + $0x2c] sm:$0x2]  ;;  %v279_v22 = vsel %vm10503_vm10, %v277_v3, %v278_v63  ;;  %v10605_v36 = vpack.c.bf16 %v172_v30, %v172_v30 }
  0x1f   : > { %424 = vst.msk [vmem:[#allocation2 + $0x6c] sm:$0xe] %vm400_vm6, %v306_v38  ;;  %v846_v0 = vld [vmem:[#allocation2 + $0x64] sm:$0xf]  ;;  %v1006_v5 = vrot.slane %v879_v61, 5  ;;  %v311_v29 = vrot.slane %v10572_v7, 7  ;;  %v557_v41 = vsel %vm10515_vm12, %v9323_v23, %v556_v18 }
  0x20   : > { %14878 = vst [vmem:[#allocation6_spill] sm:$0xff] %v14877_v1  ;;  %v1003_v4 = vrot.slane %v846_v0, 5  ;;  %v173_v43 = vld [vmem:[%s10477_s25 + $0x8] sm:$0xff]  ;;  %v313_v46 = vrot.slane %v10596_v28, 7  ;;  %v478_v48 = vld [vmem:[#allocation2 + $0x78] sm:$0x1] }
  0x21   : > { %425 = vst.msk [vmem:[#allocation2 + $0x70] sm:$0xf] %vm402_vm11, %v309_v54  ;;  %v816_v6 = vld [vmem:[#allocation2 + $0x34] sm:$0xf]  ;;  %v312_v45 = vrot.slane %v311_v29, 4  ;;  %vm804_vm8 = vcmask 25600   ;;  %v10615_v53 = vpack.c.bf16 %v173_v43, %v173_v43 }
  0x22   : > { %477 = vst [vmem:[#allocation2 + $0x6c] sm:$0x1] %v476_v59  ;;  %v1004_v13 = vsel %vm10566_vm9, %v9378_v62, %v1003_v4  ;;  %v1005_v15 = vrot.slane %v1003_v4, 4  ;;  %v271_v54 = vrot.slane %v10605_v36, 7  ;;  %v9355_v59 = vrot.slane %v10554_v55, 9 }
  0x23   : > { %819 = vst.msk [vmem:[#allocation2 + $0x4] sm:$0xf] %vm402_vm11, %v816_v6  ;;  %v657_v16 = vld [vmem:[#allocation2 + $0x30] sm:$0x1]  ;;  %v1075_v19 = vunpack.c.l.b16 %v1004_v13  ;;  %v314_v62 = vsel %vm10503_vm10, %v312_v45, %v313_v46  ;;  %v315_v0 = vrot.slane %v313_v46, 4  ;;  %v273_v6 = vrot.slane %v10615_v53, 7 }
  0x24   : > { %426 = vst.msk [vmem:[#allocation2 + $0x74] sm:$0x1] %vm404_vm1, %v310_v58  ;;  %v658_v20 = vsel %vm10534_vm14, %v9340_v56, %v657_v16  ;;  %v755_v21 = vld [vmem:[#allocation2 + $0x38] sm:$0x2]  ;;  %v1007_v26 = vsel %vm10566_vm9, %v1005_v15, %v1006_v5  ;;  %v190_v56 = vld [vmem:[%s10477_s25 + $0x90] sm:$0xff]  ;;  %v9339_v58 = vrot.slane %v10543_v47, 9  ;;  %v479_v47 = vsel %vm10481_vm3, %v10572_v7, %v478_v48 }
  0x25   : > { %406 = vst.msk [vmem:[#allocation2 + $0x24] sm:$0xe] %vm400_vm6, %v276_v50  ;;  %v10246_v25 = vld [vmem:[#allocation2 + $0x60] sm:$0xff]  ;;  %v756_v27 = vsel %vm10576_vm2, %v9356_v2, %v755_v21  ;;  %v1076_v31 = vunpack.c.l.b16 %v1007_v26  ;;  %v191_v2 = vld [vmem:[%s10477_s25 + $0x98] sm:$0xff]  ;;  %v10632_v55 = vpack.c.bf16 %v190_v56, %v190_v56  ;;  %v272_v5 = vrot.slane %v271_v54, 4 }
  0x26   : > { %659 = vst [vmem:[#allocation2 + $0x30] sm:$0x1] %v658_v20  ;;  %9475 = vmatmul.msk.bf16.vlgmr.msra.gmra.mxu3 %vm1107_vm4, %v10246_v25  ;;  %v880_v35 = vld [vmem:[#allocation2 + $0x6c] sm:$0xe]  ;;  %v454_v13 = vld [vmem:[#allocation2 + $0x18] sm:$0x1]  ;;  %v10644_v15 = vpack.c.bf16 %v191_v2, %v191_v2 }
  0x27   : > { %757 = vst [vmem:[#allocation2 + $0x38] sm:$0x2] %v756_v27  ;;  %v1099_v38 = vpack.c.b16 %v1076_v31, %v1075_v19  ;;  %v9379_v50 = vrot.slane %v880_v35, 9  ;;  %v316_v19 = vrot.slane %v10632_v55, 7  ;;  %v274_v23 = vsel %vm10503_vm10, %v272_v5, %v273_v6 }
  0x28   : > { %v848_v33 = vld [vmem:[#allocation2 + $0x70] sm:$0xf]  ;;  %407 = vst.msk [vmem:[#allocation2 + $0x28] sm:$0xf] %vm402_vm11, %v279_v22  ;;  %v9346_v22 = vrot.slane %v10572_v7, 9  ;;  %v275_v25 = vrot.slane %v273_v6, 4 }
  0x29   : > { %v672_v39 = vld [vmem:[#allocation2 + $0x6c] sm:$0x1]  ;;  %v1010_v40 = vrot.slane %v848_v33, 5  ;;  %408 = vst.msk [vmem:[#allocation2 + $0x2c] sm:$0x1] %vm404_vm1, %v280_v17  ;;  %9395 = vmatmul.msk.bf16.vlgmr.msra.gmra.mxu2 %vm1107_vm4, %v1099_v38  ;;  %v318_v7 = vrot.slane %v10644_v15, 7 }
  0x2a   : > { %v673_v44 = vsel %vm10534_vm14, %v9345_v10, %v672_v39  ;;  %459 = vst [vmem:[#allocation2 + $0x24] sm:$0x1] %v458_v32  ;;  %v10623_v61 = vld [vmem:[#allocation2 + $0x4] sm:$0xf]  ;;  %v455_v32 = vsel %vm10481_vm3, %v10605_v36, %v454_v13  ;;  %v317_v39 = vrot.slane %v316_v19, 4  ;;  %v9338_v6 = vrot.slane %v10605_v36, 9 }
  0x2b   : > { %674 = vst [vmem:[#allocation2 + $0x6c] sm:$0x1] %v673_v44  ;;  %v881_v49 = vld [vmem:[#allocation2 + $0x74] sm:$0x1]  ;;  %v1012_v51 = vrot.slane %v1010_v40, 4  ;;  %v1011_v3 = vsel %vm10566_vm9, %v9379_v50, %v1010_v40  ;;  %v947_v10 = vrot.slane %v10623_v61, 5 }
  0x2c   : > { %v1013_v52 = vrot.slane %v881_v49, 5  ;;  %558 = vst [vmem:[#allocation2 + $0x2c] sm:$0x2] %v557_v41  ;;  %v1077_v16 = vunpack.c.l.b16 %v1011_v3  ;;  %v481_v40 = vld [vmem:[#allocation2 + $0x84] sm:$0x1]  ;;  %v320_v56 = vrot.slane %v318_v7, 4 }
  0x2d   : > { %v815_v57 = vld [vmem:[#allocation2 + $0x30] sm:$0xf]  ;;  %427 = vst.msk [vmem:[#allocation2 + $0x78] sm:$0xe] %vm400_vm6, %v311_v29  ;;  %v949_v27 = vrot.slane %v947_v10, 4  ;;  %v192_v44 = vld [vmem:[%s10477_s25 + $0xa0] sm:$0xff] }
  0x2e   : > { %v817_v60 = vld [vmem:[#allocation2 + $0x38] sm:$0x3]  ;;  %818 = vst.msk [vmem:[#allocation2] sm:$0xf] %vm402_vm11, %v815_v57  ;;  %v1014_v4 = vsel %vm10566_vm9, %v1012_v51, %v1013_v52  ;;  %v193_v57 = vld [vmem:[%s10477_s25 + $0xa8] sm:$0xff]  ;;  %vm1518_vm13 = vcmask 1045508  }
  0x2f   : > { %820 = vst.msk [vmem:[#allocation2 + $0x8] sm:$0x3] %vm804_vm8, %v817_v60  ;;  %v799_v63 = vld [vmem:[#allocation2 + $0x28] sm:$0xf]  ;;  %v1078_v17 = vunpack.c.l.b16 %v1014_v4  ;;  %v482_v4 = vsel %vm10481_vm3, %v10632_v55, %v481_v40  ;;  %v484_v40 = vld [vmem:[#allocation2 + $0x90] sm:$0x1]  ;;  %vm10926_vm15 = vmor %vm1156_vm0, %vm1518_vm13 }
  0x30   : > { %803 = vst.msk [vmem:[#allocation2 + $0x10] sm:$0xf] %vm402_vm11, %v799_v63  ;;  %v319_v63 = vsel %vm10503_vm10, %v317_v39, %v318_v7  ;;  %vm5089_vm13 = vsmask.f32 3328 }
  0x31   : > { %v654_v11 = vld [vmem:[#allocation2 + $0x24] sm:$0x1]  ;;  %428 = vst.msk [vmem:[#allocation2 + $0x7c] sm:$0xf] %vm402_vm11, %v314_v62  ;;  %v1100_v35 = vpack.c.b16 %v1078_v17, %v1077_v16 }
  0x32   : > { %v655_v12 = vsel %vm10534_vm14, %v9339_v58, %v654_v11  ;;  %480 = vst [vmem:[#allocation2 + $0x78] sm:$0x1] %v479_v47  ;;  %v10247_v20 = vld [vmem:[#allocation2 + $0x6c] sm:$0xff]  ;;  %v10673_v58 = vpack.c.bf16 %v192_v44, %v192_v44 }
  0x33   : > { %656 = vst [vmem:[#allocation2 + $0x24] sm:$0x1] %v655_v12  ;;  %v752_v18 = vld [vmem:[#allocation2 + $0x2c] sm:$0x2] }
  0x34   : > { %v753_v21 = vsel %vm10576_vm2, %v9355_v59, %v752_v18  ;;  %429 = vst.msk [vmem:[#allocation2 + $0x80] sm:$0x1] %vm404_vm1, %v315_v0  ;;  %v882_v38 = vld [vmem:[#allocation2 + $0x78] sm:$0xe]  ;;  %v10679_v0 = vpack.c.bf16 %v193_v57, %v193_v57  ;;  %v321_v5 = vrot.slane %v10673_v58, 7 }
  0x35   : > { %v862_v26 = vld [vmem:[#allocation2] sm:$0xe]  ;;  %754 = vst [vmem:[#allocation2 + $0x2c] sm:$0x2] %v753_v21  ;;  %v9380_v60 = vrot.slane %v882_v38, 9 }
  0x36   : > { %v10238_v29 = vld [vmem:[#allocation2] sm:$0xff]  ;;  %v863_v30 = vld [vmem:[#allocation2 + $0x8] sm:$0x1]  ;;  %v9370_v31 = vrot.slane %v862_v26, 9  ;;  %401 = vst.msk [vmem:[#allocation2 + $0x18] sm:$0xe] %vm400_vm6, %v271_v54  ;;  %9476 = vmatmul.msk.bf16.gmra.mxu3 %vm1107_vm4, %v10247_v20 }
  0x37   : > { %v950_v33 = vrot.slane %v863_v30, 5  ;;  %9467 = vmatmul.msk.bf16.vlgmr.msra.gmra.mxu1 %vm1107_vm4, %v10238_v29  ;;  %403 = vst.msk [vmem:[#allocation2 + $0x1c] sm:$0xf] %vm402_vm11, %v274_v23  ;;  %v10667_v48 = vld [vmem:[#allocation2 + $0x10] sm:$0xf]  ;;  %v323_v11 = vrot.slane %v10679_v0, 7 }
  0x38   : > { %v948_v41 = vsel %vm10566_vm9, %v9370_v31, %v947_v10  ;;  %v850_v43 = vld [vmem:[#allocation2 + $0x7c] sm:$0xf]  ;;  %405 = vst.msk [vmem:[#allocation2 + $0x20] sm:$0x1] %vm404_vm1, %v275_v25  ;;  %v954_v10 = vrot.slane %v10667_v48, 5  ;;  %v322_v17 = vrot.slane %v321_v5, 4 }
  0x39   : > { %v951_v45 = vsel %vm10566_vm9, %v949_v27, %v950_v33  ;;  %v1059_v46 = vunpack.c.l.b16 %v948_v41  ;;  %v675_v49 = vld [vmem:[#allocation2 + $0x78] sm:$0x1]  ;;  %v1017_v50 = vrot.slane %v850_v43, 5  ;;  %456 = vst [vmem:[#allocation2 + $0x18] sm:$0x1] %v455_v32  ;;  %9396 = vmatmul.msk.bf16.gmra.mxu2 %vm1107_vm4, %v1100_v35  ;;  %v9347_v20 = vrot.slane %v10632_v55, 9 }
  0x3a   : > { %v1060_v51 = vunpack.c.l.b16 %v951_v45  ;;  %v798_v52 = vld [vmem:[#allocation2 + $0x24] sm:$0xf]  ;;  %v676_v54 = vsel %vm10534_vm14, %v9346_v22, %v675_v49  ;;  %430 = vst.msk [vmem:[#allocation2 + $0x84] sm:$0xe] %vm400_vm6, %v316_v19  ;;  %v956_v19 = vrot.slane %v954_v10, 4  ;;  %v324_v26 = vsel %vm10503_vm10, %v322_v17, %v323_v11  ;;  %v194_v45 = vld [vmem:[%s10477_s25 + $0xb0] sm:$0xff] }
  0x3b   : > { %802 = vst.msk [vmem:[#allocation2 + $0xc] sm:$0xf] %vm402_vm11, %v798_v52  ;;  %v883_v59 = vld [vmem:[#allocation2 + $0x80] sm:$0x1]  ;;  %v1019_v62 = vrot.slane %v1017_v50, 4  ;;  %v1018_v12 = vsel %vm10566_vm9, %v9380_v60, %v1017_v50  ;;  %v325_v7 = vrot.slane %v323_v11, 4  ;;  %v485_v50 = vsel %vm10481_vm3, %v10673_v58, %v484_v40 }
  0x3c   : > { %v1091_v47 = vpack.c.b16 %v1060_v51, %v1059_v46  ;;  %v800_v2 = vld [vmem:[#allocation2 + $0x2c] sm:$0x3]  ;;  %677 = vst [vmem:[#allocation2 + $0x78] sm:$0x1] %v676_v54  ;;  %v1020_v3 = vrot.slane %v883_v59, 5  ;;  %v1079_v23 = vunpack.c.l.b16 %v1018_v12  ;;  %v195_v52 = vld [vmem:[%s10477_s25 + $0xb8] sm:$0xff]  ;;  %v10721_v57 = vpack.c.bf16 %v194_v45, %v194_v45 }
  0x3d   : > { %805 = vst.msk [vmem:[#allocation2 + $0x14] sm:$0x3] %vm804_vm8, %v800_v2  ;;  %v866_v54 = vld [vmem:[#allocation2 + $0x18] sm:$0xe]  ;;  %v10723_v59 = vpack.c.bf16 %v195_v52, %v195_v52  ;;  %v487_v11 = vld [vmem:[#allocation2 + $0x9c] sm:$0x1] }
  0x3e   : > { %9387 = vmatmul.msk.bf16.vlgmr.msra.gmra.mxu0 %vm1107_vm4, %v1091_v47  ;;  %431 = vst.msk [vmem:[#allocation2 + $0x88] sm:$0xf] %vm402_vm11, %v319_v63  ;;  %v1021_v13 = vsel %vm10566_vm9, %v1019_v62, %v1020_v3  ;;  %v10711_v43 = vld [vmem:[#allocation2 + $0x1c] sm:$0xf]  ;;  %v326_v2 = vrot.slane %v10721_v57, 7  ;;  %v9372_v3 = vrot.slane %v866_v54, 9 }
  0x3f   : > { %483 = vst [vmem:[#allocation2 + $0x84] sm:$0x1] %v482_v4  ;;  %v1080_v25 = vunpack.c.l.b16 %v1021_v13  ;;  %v867_v60 = vld [vmem:[#allocation2 + $0x20] sm:$0x1]  ;;  %v9348_v4 = vrot.slane %v10673_v58, 9 }
  0x40   : > { %v651_v16 = vld [vmem:[#allocation2 + $0x18] sm:$0x1]  ;;  %432 = vst.msk [vmem:[#allocation2 + $0x8c] sm:$0x1] %vm404_vm1, %v320_v56  ;;  %v961_v56 = vrot.slane %v10711_v43, 5  ;;  %v327_v17 = vrot.slane %v326_v2, 4 }
  0x41   : > { %v652_v36 = vsel %vm10534_vm14, %v9338_v6, %v651_v16  ;;  %433 = vst.msk [vmem:[#allocation2 + $0x90] sm:$0xe] %vm400_vm6, %v321_v5  ;;  %v1101_v38 = vpack.c.b16 %v1080_v25, %v1079_v23  ;;  %v884_v46 = vld [vmem:[#allocation2 + $0x84] sm:$0xe]  ;;  %v328_v5 = vrot.slane %v10723_v59, 7 }
  0x42   : > { %v864_v18 = vld [vmem:[#allocation2 + $0xc] sm:$0xe]  ;;  %653 = vst [vmem:[#allocation2 + $0x18] sm:$0x1] %v652_v36  ;;  %v9381_v62 = vrot.slane %v884_v46, 9  ;;  %v963_v6 = vrot.slane %v961_v56, 4  ;;  %v962_v36 = vsel %vm10566_vm9, %v9372_v3, %v961_v56 }
  0x43   : > { %v9371_v21 = vrot.slane %v864_v18, 9  ;;  %v10239_v22 = vld [vmem:[#allocation2 + $0xc] sm:$0xff]  ;;  %v10248_v29 = vld [vmem:[#allocation2 + $0x78] sm:$0xff]  ;;  %434 = vst.msk [vmem:[#allocation2 + $0x94] sm:$0xf] %vm402_vm11, %v324_v26  ;;  %v330_v18 = vrot.slane %v328_v5, 4  ;;  %v329_v25 = vsel %vm10503_vm10, %v327_v17, %v328_v5 }
  0x44   : > { %v865_v27 = vld [vmem:[#allocation2 + $0x14] sm:$0x1]  ;;  %435 = vst.msk [vmem:[#allocation2 + $0x98] sm:$0x1] %vm404_vm1, %v325_v7  ;;  %v9349_v46 = vrot.slane %v10721_v57, 9 }
  0x45   : > { %v955_v30 = vsel %vm10566_vm9, %v9371_v21, %v954_v10  ;;  %v957_v31 = vrot.slane %v865_v27, 5  ;;  %v852_v32 = vld [vmem:[#allocation2 + $0x88] sm:$0xf]  ;;  %486 = vst [vmem:[#allocation2 + $0x90] sm:$0x1] %v485_v50  ;;  %v964_v10 = vrot.slane %v867_v60, 5 }
  0x46   : > { %v1061_v33 = vunpack.c.l.b16 %v955_v30  ;;  %v678_v55 = vld [vmem:[#allocation2 + $0x84] sm:$0x1]  ;;  %9477 = vmatmul.msk.bf16.gmra.mxu3 %vm1107_vm4, %v10248_v29  ;;  %v1024_v44 = vrot.slane %v852_v32, 5  ;;  %436 = vst.msk [vmem:[#allocation2 + $0x9c] sm:$0xe] %vm400_vm6, %v326_v2  ;;  %v178_v29 = vld [vmem:[%s10477_s25 + $0x30] sm:$0xff]  ;;  %v1063_v30 = vunpack.c.l.b16 %v962_v36 }
  0x47   : > { %v958_v35 = vsel %vm10566_vm9, %v956_v19, %v957_v31  ;;  %9468 = vmatmul.msk.bf16.gmra.mxu1 %vm1107_vm4, %v10239_v22  ;;  %v679_v39 = vsel %vm10534_vm14, %v9347_v20, %v678_v55  ;;  %v885_v49 = vld [vmem:[#allocation2 + $0x8c] sm:$0x1]  ;;  %v488_v19 = vsel %vm10481_vm3, %v10721_v57, %v487_v11  ;;  %v965_v20 = vsel %vm10566_vm9, %v963_v6, %v964_v10  ;;  %v179_v55 = vld [vmem:[%s10477_s25 + $0x38] sm:$0xff]  ;;  %v490_v6 = vld [vmem:[#allocation2 + $0xa8] sm:$0x1] }
  0x48   : > { %v1062_v41 = vunpack.c.l.b16 %v958_v35  ;;  %680 = vst [vmem:[#allocation2 + $0x84] sm:$0x1] %v679_v39  ;;  %v1026_v63 = vrot.slane %v1024_v44, 4  ;;  %v1027_v47 = vrot.slane %v885_v49, 5  ;;  %v1025_v12 = vsel %vm10566_vm9, %v9381_v62, %v1024_v44  ;;  %v886_v35 = vld [vmem:[#allocation2 + $0x90] sm:$0xe] }
  0x49   : > { %9397 = vmatmul.msk.bf16.gmra.mxu2 %vm1107_vm4, %v1101_v38  ;;  %v10240_v21 = vld [vmem:[#allocation2 + $0x18] sm:$0xff]  ;;  %v1081_v22 = vunpack.c.l.b16 %v1025_v12  ;;  %437 = vst.msk [vmem:[#allocation2 + $0xa0] sm:$0xf] %vm402_vm11, %v329_v25  ;;  %v1064_v31 = vunpack.c.l.b16 %v965_v20  ;;  %v10748_v32 = vpack.c.bf16 %v178_v29, %v178_v29  ;;  %v10755_v39 = vpack.c.bf16 %v179_v55, %v179_v55  ;;  %v868_v44 = vld [vmem:[#allocation2 + $0x24] sm:$0xe] }
  0x4a   : > { %v1092_v51 = vpack.c.b16 %v1062_v41, %v1061_v33  ;;  %v1028_v13 = vsel %vm10566_vm9, %v1026_v63, %v1027_v47  ;;  %v854_v27 = vld [vmem:[#allocation2 + $0x94] sm:$0xf]  ;;  %489 = vst [vmem:[#allocation2 + $0x9c] sm:$0x1] %v488_v19  ;;  %v10751_v33 = vld [vmem:[#allocation2 + $0x28] sm:$0xf] }
  0x4b   : > { %v1082_v23 = vunpack.c.l.b16 %v1028_v13  ;;  %438 = vst.msk [vmem:[#allocation2 + $0xa4] sm:$0x1] %vm404_vm1, %v330_v18  ;;  %v1031_v38 = vrot.slane %v854_v27, 5  ;;  %v286_v40 = vrot.slane %v10748_v32, 7  ;;  %v196_v41 = vld [vmem:[%s10477_s25 + $0xc0] sm:$0xff]  ;;  %v1093_v50 = vpack.c.b16 %v1064_v31, %v1063_v30  ;;  %v197_v63 = vld [vmem:[%s10477_s25 + $0xc8] sm:$0xff] }
  0x4c   : > { %v681_v16 = vld [vmem:[#allocation2 + $0x90] sm:$0x1]  ;;  %v887_v45 = vld [vmem:[#allocation2 + $0x98] sm:$0x1]  ;;  %v10760_v49 = vpack.c.bf16 %v196_v41, %v196_v41  ;;  %v288_v54 = vrot.slane %v10755_v39, 7  ;;  %v968_v56 = vrot.slane %v10751_v33, 5  ;;  %v10770_v5 = vpack.c.bf16 %v197_v63, %v197_v63 }
  0x4d   : > { %v682_v58 = vsel %vm10534_vm14, %v9348_v4, %v681_v16  ;;  %v1102_v7 = vpack.c.b16 %v1082_v23, %v1081_v22  ;;  %v287_v52 = vrot.slane %v286_v40, 4  ;;  %412 = vst.msk [vmem:[#allocation2 + $0x3c] sm:$0xe] %vm400_vm6, %v286_v40  ;;  %v9382_v60 = vrot.slane %v886_v35, 9  ;;  %v463_v62 = vld [vmem:[#allocation2 + $0x3c] sm:$0x1] }
  0x4e   : > { %9388 = vmatmul.msk.bf16.gmra.mxu0 %vm1107_vm4, %v1092_v51  ;;  %683 = vst [vmem:[#allocation2 + $0x90] sm:$0x1] %v682_v58  ;;  %v869_v51 = vld [vmem:[#allocation2 + $0x2c] sm:$0x1]  ;;  %v331_v47 = vrot.slane %v10760_v49, 7  ;;  %v1033_v2 = vrot.slane %v1031_v38, 4  ;;  %v464_v12 = vsel %vm10481_vm3, %v10748_v32, %v463_v62  ;;  %v491_v58 = vsel %vm10481_vm3, %v10760_v49, %v490_v6 }
  0x4f   : > { %v10249_v26 = vld [vmem:[#allocation2 + $0x84] sm:$0xff]  ;;  %v1034_v57 = vrot.slane %v887_v45, 5  ;;  %v289_v4 = vsel %vm10503_vm10, %v287_v52, %v288_v54  ;;  %v290_v11 = vrot.slane %v288_v54, 4  ;;  %v9373_v13 = vrot.slane %v868_v44, 9  ;;  %465 = vst [vmem:[#allocation2 + $0x3c] sm:$0x1] %v464_v12 }
  0x50   : > { %413 = vst.msk [vmem:[#allocation2 + $0x40] sm:$0xf] %vm402_vm11, %v289_v4  ;;  %v332_v16 = vrot.slane %v331_v47, 4  ;;  %v970_v17 = vrot.slane %v968_v56, 4  ;;  %v971_v36 = vrot.slane %v869_v51, 5  ;;  %v1032_v18 = vsel %vm10566_vm9, %v9382_v60, %v1031_v38  ;;  %v10241_v25 = vld [vmem:[#allocation2 + $0x24] sm:$0xff] }
  0x51   : > { %v684_v3 = vld [vmem:[#allocation2 + $0x9c] sm:$0x1]  ;;  %414 = vst.msk [vmem:[#allocation2 + $0x44] sm:$0x1] %vm404_vm1, %v290_v11  ;;  %v1035_v19 = vsel %vm10566_vm9, %v1033_v2, %v1034_v57  ;;  %v333_v20 = vrot.slane %v10770_v5, 7  ;;  %v9341_v31 = vrot.slane %v10748_v32, 9 }
  0x52   : > { %v685_v10 = vsel %vm10534_vm14, %v9349_v46, %v684_v3  ;;  %439 = vst.msk [vmem:[#allocation2 + $0xa8] sm:$0xe] %vm400_vm6, %v331_v47  ;;  %v972_v23 = vsel %vm10566_vm9, %v970_v17, %v971_v36  ;;  %v1084_v27 = vunpack.c.l.b16 %v1035_v19  ;;  %v180_v55 = vld [vmem:[%s10477_s25 + $0x40] sm:$0xff]  ;;  %v9350_v40 = vrot.slane %v10760_v49, 9  ;;  %v10803_v45 = vld [vmem:[#allocation2 + $0x34] sm:$0xf] }
  0x53   : > { %686 = vst [vmem:[#allocation2 + $0x9c] sm:$0x1] %v685_v10  ;;  %v334_v22 = vsel %vm10503_vm10, %v332_v16, %v333_v20  ;;  %v335_v29 = vrot.slane %v333_v20, 4  ;;  %v1066_v38 = vunpack.c.l.b16 %v972_v23  ;;  %v10800_v41 = vpack.c.bf16 %v180_v55, %v180_v55  ;;  %v888_v32 = vld [vmem:[#allocation2 + $0x9c] sm:$0xe] }
  0x54   : > { %492 = vst [vmem:[#allocation2 + $0xa8] sm:$0x1] %v491_v58  ;;  %v870_v60 = vld [vmem:[#allocation2 + $0x30] sm:$0xe]  ;;  %v889_v62 = vld [vmem:[#allocation2 + $0xa4] sm:$0x1] }
  0x55   : > { %440 = vst.msk [vmem:[#allocation2 + $0xac] sm:$0xf] %vm402_vm11, %v334_v22  ;;  %v10250_v30 = vld [vmem:[#allocation2 + $0x90] sm:$0xff]  ;;  %v291_v49 = vrot.slane %v10800_v41, 7  ;;  %v871_v57 = vld [vmem:[#allocation2 + $0x38] sm:$0x1] }
  0x56   : > { %9478 = vmatmul.msk.bf16.gmra.mxu3 %vm1107_vm4, %v10249_v26  ;;  %v1083_v26 = vunpack.c.l.b16 %v1032_v18  ;;  %441 = vst.msk [vmem:[#allocation2 + $0xb0] sm:$0x1] %vm404_vm1, %v335_v29  ;;  %v660_v46 = vld [vmem:[#allocation2 + $0x3c] sm:$0x1]  ;;  %v975_v3 = vrot.slane %v10803_v45, 5  ;;  %v9383_v10 = vrot.slane %v888_v32, 9 }
  0x57   : > { %9469 = vmatmul.msk.bf16.gmra.mxu1 %vm1107_vm4, %v10240_v21  ;;  %v969_v21 = vsel %vm10566_vm9, %v9373_v13, %v968_v56  ;;  %v661_v52 = vsel %vm10534_vm14, %v9341_v31, %v660_v46  ;;  %v198_v56 = vld [vmem:[%s10477_s25 + $0xd0] sm:$0xff]  ;;  %v292_v6 = vrot.slane %v291_v49, 4  ;;  %415 = vst.msk [vmem:[#allocation2 + $0x48] sm:$0xe] %vm400_vm6, %v291_v49  ;;  %v466_v12 = vld [vmem:[#allocation2 + $0x48] sm:$0x1] }
  0x58   : > { %v1065_v35 = vunpack.c.l.b16 %v969_v21  ;;  %v1103_v44 = vpack.c.b16 %v1084_v27, %v1083_v26  ;;  %662 = vst [vmem:[#allocation2 + $0x3c] sm:$0x1] %v661_v52  ;;  %v10813_v47 = vpack.c.bf16 %v198_v56, %v198_v56  ;;  %v1041_v16 = vrot.slane %v889_v62, 5  ;;  %v199_v36 = vld [vmem:[%s10477_s25 + $0xd8] sm:$0xff]  ;;  %v493_v19 = vld [vmem:[#allocation2 + $0xb4] sm:$0x1] }
  0x59   : > { %9398 = vmatmul.msk.bf16.gmra.mxu2 %vm1107_vm4, %v1102_v7  ;;  %v856_v7 = vld [vmem:[#allocation2 + $0xa0] sm:$0xf]  ;;  %v467_v17 = vsel %vm10481_vm3, %v10800_v41, %v466_v12  ;;  %v9374_v20 = vrot.slane %v870_v60, 9  ;;  %v977_v21 = vrot.slane %v975_v3, 4  ;;  %v978_v22 = vrot.slane %v871_v57, 5  ;;  %v183_v57 = vld [vmem:[%s10477_s25 + $0x58] sm:$0xff] }
  0x5a   : > { %v1038_v51 = vrot.slane %v856_v7, 5  ;;  %v1094_v2 = vpack.c.b16 %v1066_v38, %v1065_v35  ;;  %v336_v58 = vrot.slane %v10813_v47, 7  ;;  %468 = vst [vmem:[#allocation2 + $0x48] sm:$0x1] %v467_v17  ;;  %v9342_v35 = vrot.slane %v10800_v41, 9  ;;  %v10242_v38 = vld [vmem:[#allocation2 + $0x30] sm:$0xff] }
  0x5b   : > { %v687_v63 = vld [vmem:[#allocation2 + $0xa8] sm:$0x1]  ;;  %v976_v7 = vsel %vm10566_vm9, %v9374_v20, %v975_v3  ;;  %v979_v55 = vsel %vm10566_vm9, %v977_v21, %v978_v22  ;;  %v10251_v32 = vld [vmem:[#allocation2 + $0x9c] sm:$0xff]  ;;  %v182_v41 = vld [vmem:[%s10477_s25 + $0x50] sm:$0xff]  ;;  %v9351_v62 = vrot.slane %v10813_v47, 9 }
  0x5c   : > { %v688_v4 = vsel %vm10534_vm14, %v9350_v40, %v687_v63  ;;  %v1040_v13 = vrot.slane %v1038_v51, 4  ;;  %442 = vst.msk [vmem:[#allocation2 + $0xb4] sm:$0xe] %vm400_vm6, %v336_v58  ;;  %v1039_v26 = vsel %vm10566_vm9, %v9383_v10, %v1038_v51  ;;  %v337_v29 = vrot.slane %v336_v58, 4  ;;  %v858_v52 = vld [vmem:[#allocation2 + $0xac] sm:$0xf] }
  0x5d   : > { %689 = vst [vmem:[#allocation2 + $0xa8] sm:$0x1] %v688_v4  ;;  %v1085_v40 = vunpack.c.l.b16 %v1039_v26  ;;  %v1067_v56 = vunpack.c.l.b16 %v976_v7  ;;  %v1068_v60 = vunpack.c.l.b16 %v979_v55  ;;  %v214_v63 = vpack.c.bf16 %v182_v41, %v182_v41  ;;  %v10858_v3 = vld [vmem:[#allocation2 + $0x40] sm:$0xf]  ;;  %v890_v4 = vld [vmem:[#allocation2 + $0xa8] sm:$0xe] }
  0x5e   : > { %9389 = vmatmul.msk.bf16.gmra.mxu0 %vm1107_vm4, %v1093_v50  ;;  %v181_v50 = vld [vmem:[%s10477_s25 + $0x48] sm:$0xff]  ;;  %v1042_v27 = vsel %vm10566_vm9, %v1040_v13, %v1041_v16  ;;  %v10860_v10 = vpack.c.bf16 %v183_v57, %v183_v57  ;;  %v891_v12 = vld [vmem:[#allocation2 + $0xb0] sm:$0x1]  ;;  %v982_v58 = vrot.slane %v10858_v3, 5  ;;  %v872_v20 = vld [vmem:[#allocation2 + $0x3c] sm:$0xe] }
  0x5f   : > { %v10809_v54 = vpack.c.bf16 %v181_v50, %v181_v50  ;;  %v1095_v16 = vpack.c.b16 %v1068_v60, %v1067_v56  ;;  %v873_v21 = vld [vmem:[#allocation2 + $0x44] sm:$0x1]  ;;  %v9322_v41 = vrot.slane %v10615_v53, 10 }
  0x60   : > { %v985_v7 = vrot.slane %v873_v21, 5 }
  0x61   : > { %v293_v11 = vrot.slane %v10809_v54, 7  ;;  %v663_v51 = vld [vmem:[#allocation2 + $0x48] sm:$0x1] }
  0x62   : > { %v664_v49 = vsel %vm10534_vm14, %v9342_v35, %v663_v51 }
  0x63   : > { %v294_v18 = vsel %vm10503_vm10, %v292_v6, %v293_v11  ;;  %v295_v23 = vrot.slane %v293_v11, 4  ;;  %665 = vst [vmem:[#allocation2 + $0x48] sm:$0x1] %v664_v49  ;;  %v1045_v6 = vrot.slane %v858_v52, 5  ;;  %v296_v11 = vrot.slane %v214_v63, 7 }
  0x64   : > { %416 = vst.msk [vmem:[#allocation2 + $0x4c] sm:$0xf] %vm402_vm11, %v294_v18  ;;  %v9384_v18 = vrot.slane %v890_v4, 9  ;;  %v10252_v51 = vld [vmem:[#allocation2 + $0xa8] sm:$0xff] }
  0x65   : > { %417 = vst.msk [vmem:[#allocation2 + $0x50] sm:$0x1] %vm404_vm1, %v295_v23  ;;  %v297_v17 = vrot.slane %v296_v11, 4  ;;  %v1047_v22 = vrot.slane %v1045_v6, 4  ;;  %v1048_v23 = vrot.slane %v891_v12, 5 }
  0x66   : > { %9479 = vmatmul.msk.bf16.gmra.mxu3 %vm1107_vm4, %v10250_v30  ;;  %v494_v30 = vsel %vm10481_vm3, %v10813_v47, %v493_v19  ;;  %418 = vst.msk [vmem:[#allocation2 + $0x54] sm:$0xe] %vm400_vm6, %v296_v11  ;;  %v469_v19 = vld [vmem:[#allocation2 + $0x54] sm:$0x1]  ;;  %v1046_v55 = vsel %vm10566_vm9, %v9384_v18, %v1045_v6  ;;  %v892_v6 = vld [vmem:[#allocation2 + $0xb4] sm:$0xe] }
  0x67   : > { %9470 = vmatmul.msk.bf16.gmra.mxu1 %vm1107_vm4, %v10241_v25  ;;  %v10830_v25 = vpack.c.bf16 %v199_v36, %v199_v36  ;;  %495 = vst [vmem:[#allocation2 + $0xb4] sm:$0x1] %v494_v30  ;;  %v298_v36 = vrot.slane %v10860_v10, 7  ;;  %v9375_v30 = vrot.slane %v872_v20, 9  ;;  %v1049_v35 = vsel %vm10566_vm9, %v1047_v22, %v1048_v23 }
  0x68   : > { %v9354_v22 = vrot.slane %v10615_v53, 9 }
  0x69   : > { %9399 = vmatmul.msk.bf16.gmra.mxu2 %vm1107_vm4, %v1103_v44  ;;  %v338_v31 = vrot.slane %v10830_v25, 7  ;;  %v1086_v44 = vunpack.c.l.b16 %v1042_v27  ;;  %v299_v26 = vsel %vm10503_vm10, %v297_v17, %v298_v36  ;;  %v470_v27 = vsel %vm10481_vm3, %v214_v63, %v469_v19 }
  0x6a   : > { %419 = vst.msk [vmem:[#allocation2 + $0x58] sm:$0xf] %vm402_vm11, %v299_v26  ;;  %v9663_v26 = vld [vmem:[%s14801_s1 + $0xc] sm:$0x3] }
  0x6b   : > { %v339_v46 = vsel %vm10503_vm10, %v337_v29, %v338_v31  ;;  %v340_v50 = vrot.slane %v338_v31, 4  ;;  %v300_v29 = vrot.slane %v298_v36, 4  ;;  %471 = vst [vmem:[#allocation2 + $0x54] sm:$0x1] %v470_v27  ;;  %v984_v31 = vrot.slane %v982_v58, 4 }
  0x6c   : > { %443 = vst.msk [vmem:[#allocation2 + $0xb8] sm:$0xf] %vm402_vm11, %v339_v46  ;;  %v10243_v46 = vld [vmem:[#allocation2 + $0x3c] sm:$0xff]  ;;  %v10887_v57 = vld [vmem:[#allocation2 + $0x4c] sm:$0xf]  ;;  %v9385_v36 = vrot.slane %v892_v6, 9 }
  0x6d   : > { %444 = vst.msk [vmem:[#allocation2 + $0xbc] sm:$0x1] %vm404_vm1, %v340_v50  ;;  %v1087_v50 = vunpack.c.l.b16 %v1046_v55  ;;  %v875_v17 = vld [vmem:[#allocation2 + $0x50] sm:$0x1]  ;;  %v9760_v27 = vld [vmem:[%s14801_s1 + $0xe] sm:$0x3] }
  0x6e   : > { %9390 = vmatmul.msk.bf16.gmra.mxu0 %vm1107_vm4, %v1094_v2  ;;  %v1104_v2 = vpack.c.b16 %v1086_v44, %v1085_v40  ;;  %v690_v13 = vld [vmem:[#allocation2 + $0xb4] sm:$0x1]  ;;  %420 = vst.msk [vmem:[#allocation2 + $0x5c] sm:$0x1] %vm404_vm1, %v300_v29  ;;  %v983_v40 = vsel %vm10566_vm9, %v9375_v30, %v982_v58  ;;  %v986_v44 = vsel %vm10566_vm9, %v984_v31, %v985_v7  ;;  %v992_v21 = vrot.slane %v875_v17, 5 }
  0x6f   : > { %v691_v47 = vsel %vm10534_vm14, %v9351_v62, %v690_v13  ;;  %v1069_v56 = vunpack.c.l.b16 %v983_v40  ;;  %v1070_v60 = vunpack.c.l.b16 %v986_v44  ;;  %v3131_v31 = vsel %vm1156_vm0, %v9663_v26, 0 }
  0x70   : > { %692 = vst [vmem:[#allocation2 + $0xb4] sm:$0x1] %v691_v47  ;;  %v874_v47 = vld [vmem:[#allocation2 + $0x48] sm:$0xe]  ;;  %v3561_v7 = vsel %vm1156_vm0, %v9760_v27, 0  ;;  %3140 = vmatpush.bf16.msra.mxu2 %v3131_v31 }
  0x71   : > { %v1096_v13 = vpack.c.b16 %v1070_v60, %v1069_v56  ;;  %v9376_v19 = vrot.slane %v874_v47, 9  ;;  %3570 = vmatpush.bf16.msra.mxu3 %v3561_v7  ;;  %v1454_v56 = vld [vmem:[#allocation2 + $0x8] sm:$0x3]  ;;  %v2141_v27 = vld [vmem:[#allocation2 + $0x1c] sm:$0xf] }
  0x72   : > { %v666_v49 = vld [vmem:[#allocation2 + $0x54] sm:$0x1]  ;;  %v2570_v31 = vld [vmem:[#allocation2 + $0x18] sm:$0xc] }
  0x73   : > { %v860_v52 = vld [vmem:[#allocation2 + $0xb8] sm:$0xf] }
  0x74   : > { %v1052_v11 = vrot.slane %v860_v52, 5  ;;  %v893_v12 = vld [vmem:[#allocation2 + $0xbc] sm:$0x1]  ;;  %v1522_v52 = vrot.slane %v10623_v61, 6 }
  0x75   : > { %v1055_v18 = vrot.slane %v893_v12, 5 }
  0x76   : > { %9480 = vmatmul.msk.bf16.gmra.mxu3 %vm1107_vm4, %v10251_v32  ;;  %v1088_v32 = vunpack.c.l.b16 %v1049_v35  ;;  %v1054_v58 = vrot.slane %v1052_v11, 4  ;;  %v1053_v23 = vsel %vm10566_vm9, %v9385_v36, %v1052_v11  ;;  %v1524_v61 = vrot.slane %v1522_v52, 4 }
  0x77   : > { %9471 = vmatmul.msk.bf16.gmra.mxu1 %vm1107_vm4, %v10242_v38  ;;  %v9343_v38 = vrot.slane %v214_v63, 9  ;;  %v553_v63 = vld [vmem:[#allocation2 + $0x20] sm:$0x2]  ;;  %v1089_v40 = vunpack.c.l.b16 %v1053_v23  ;;  %v1525_v11 = vrot.slane %v1454_v56, 6  ;;  %v2140_v56 = vld [vmem:[#allocation2 + $0x18] sm:$0xe] }
  0x78   : > { %v554_v4 = vsel %vm10515_vm12, %v9322_v41, %v553_v63  ;;  %v1056_v30 = vsel %vm10566_vm9, %v1054_v58, %v1055_v18  ;;  %v1453_v41 = vld [vmem:[#allocation2] sm:$0xc] }
  0x79   : > { %9400 = vmatmul.msk.bf16.gmra.mxu2 %vm1107_vm4, %v1104_v2  ;;  %v667_v62 = vsel %vm10534_vm14, %v9343_v38, %v666_v49  ;;  %v1105_v2 = vpack.c.b16 %v1088_v32, %v1087_v50  ;;  %555 = vst [vmem:[#allocation2 + $0x20] sm:$0x2] %v554_v4  ;;  %v10244_v38 = vld [vmem:[#allocation2 + $0x48] sm:$0xff]  ;;  %v1090_v44 = vunpack.c.l.b16 %v1056_v30  ;;  %v10917_v49 = vld [vmem:[#allocation2 + $0x58] sm:$0xf]  ;;  %v9483_v6 = vrot.slane %v1453_v41, 10 }
  0x7a   : > { %668 = vst [vmem:[#allocation2 + $0x54] sm:$0x1] %v667_v62  ;;  %v876_v62 = vld [vmem:[#allocation2 + $0x54] sm:$0xe]  ;;  %v996_v63 = vrot.slane %v10917_v49, 5  ;;  %v2636_v30 = vrot.slane %v2141_v27, 6 }
  0x7b   : > { %v877_v4 = vld [vmem:[#allocation2 + $0x5c] sm:$0x1]  ;;  %v9377_v47 = vrot.slane %v876_v62, 9  ;;  %v1523_v18 = vsel %vm10926_vm15, %v9483_v6, %v1522_v52  ;;  %v2238_v52 = vrot.slane %v2141_v27, 5  ;;  %v2142_v62 = vld [vmem:[#allocation2 + $0x20] sm:$0x1] }
  0x7c   : > { %v998_v17 = vrot.slane %v996_v63, 4  ;;  %v999_v36 = vrot.slane %v877_v4, 5  ;;  %v1634_v23 = vunpack.c.l.b16 %v1523_v18 }
  0x7e   : > { %9391 = vmatmul.msk.bf16.gmra.mxu0 %vm1107_vm4, %v1095_v16  ;;  %v989_v16 = vrot.slane %v10887_v57, 5 }
  0x80   : > { %v991_v20 = vrot.slane %v989_v16, 4  ;;  %v749_v29 = vld [vmem:[#allocation2 + $0x20] sm:$0x2]  ;;  %v990_v55 = vsel %vm10566_vm9, %v9376_v19, %v989_v16  ;;  %v9793_v16 = vld [vmem:[%s14801_s1 + $0x10] sm:$0x3]  ;;  %v1526_v19 = vsel %vm10926_vm15, %v1524_v61, %v1525_v11  ;;  %v9597_v61 = vrot.slane %v2140_v56, 9 }
  0x81   : > { %v750_v53 = vsel %vm10576_vm2, %v9354_v22, %v749_v29  ;;  %v1071_v50 = vunpack.c.l.b16 %v990_v55  ;;  %v3959_v58 = vsel %vm1156_vm0, %v9793_v16, 0  ;;  %v10245_v22 = vld [vmem:[#allocation2 + $0x54] sm:$0xff]  ;;  %v1635_v26 = vunpack.c.l.b16 %v1526_v19 }
  0x82   : > { %751 = vst [vmem:[#allocation2 + $0x20] sm:$0x2] %v750_v53  ;;  %v993_v35 = vsel %vm10566_vm9, %v991_v20, %v992_v21  ;;  %3968 = vmatpush.bf16.msra.mxu0 %v3959_v58  ;;  %v997_v20 = vsel %vm10566_vm9, %v9377_v47, %v996_v63  ;;  %v1000_v21 = vsel %vm10566_vm9, %v998_v17, %v999_v36  ;;  %v10254_v29 = vld [vmem:[#allocation2 + $0x18] sm:$0xff]  ;;  %v2240_v11 = vrot.slane %v2238_v52, 4 }
  0x83   : > { %v1072_v32 = vunpack.c.l.b16 %v993_v35  ;;  %v1073_v53 = vunpack.c.l.b16 %v997_v20  ;;  %v1074_v55 = vunpack.c.l.b16 %v1000_v21  ;;  %v1666_v35 = vpack.c.b16 %v1635_v26, %v1634_v23  ;;  %v2144_v26 = vld [vmem:[#allocation2 + $0x28] sm:$0xf] }
  0x84   : > { %v2241_v16 = vrot.slane %v2142_v62, 5  ;;  %v2239_v18 = vsel %vm10566_vm9, %v9597_v61, %v2238_v52  ;;  %v1457_v52 = vld [vmem:[#allocation2 + $0x18] sm:$0xc] }
  0x85   : > { %v1097_v60 = vpack.c.b16 %v1072_v32, %v1071_v50  ;;  %v1529_v50 = vrot.slane %v10667_v48, 6  ;;  %v1456_v32 = vld [vmem:[#allocation2 + $0x14] sm:$0x3]  ;;  %v9485_v61 = vrot.slane %v1457_v52, 10  ;;  %v2574_v52 = vld [vmem:[#allocation2 + $0x30] sm:$0xc] }
  0x86   : > { %9481 = vmatmul.msk.bf16.gmra.mxu3 %vm1107_vm4, %v10252_v51  ;;  %v1106_v51 = vpack.c.b16 %v1090_v44, %v1089_v40  ;;  %v2638_v40 = vrot.slane %v2636_v30, 4  ;;  %v1532_v6 = vrot.slane %v1456_v32, 6  ;;  %v2242_v20 = vsel %vm10566_vm9, %v2240_v11, %v2241_v16 }
  0x87   : > { %9472 = vmatmul.msk.bf16.gmra.mxu1 %vm1107_vm4, %v10243_v46  ;;  %v10253_v46 = vld [vmem:[#allocation2 + $0xb4] sm:$0xff]  ;;  %v1531_v4 = vrot.slane %v1529_v50, 4 }
  0x89   : > { %9401 = vmatmul.msk.bf16.gmra.mxu2 %vm1107_vm4, %v1105_v2  ;;  %v9646_v2 = vld [vmem:[%s14801_s1 + $0xa] sm:$0x3]  ;;  %v2571_v7 = vld [vmem:[#allocation2 + $0x20] sm:$0x3]  ;;  %v1533_v58 = vsel %vm10926_vm15, %v1531_v4, %v1532_v6  ;;  %v2143_v6 = vld [vmem:[#allocation2 + $0x24] sm:$0xe] }
  0x8a   : > { %v2845_v12 = vsel %vm1156_vm0, %v9646_v2, 0  ;;  %v2639_v44 = vrot.slane %v2571_v7, 6  ;;  %v1637_v23 = vunpack.c.l.b16 %v1533_v58  ;;  %v2573_v7 = vld [vmem:[#allocation2 + $0x2c] sm:$0x3] }
  0x8b   : > { %2854 = vmatpush.bf16.msrb.mxu1 %v2845_v12 }
  0x8c   : > { %v2640_v2 = vsel %vm10926_vm15, %v2638_v40, %v2639_v44  ;;  %v562_v40 = vld [vmem:[#allocation2 + $0x44] sm:$0x2] }
  0x8d   : > { %v2749_v17 = vunpack.c.l.b16 %v2640_v2 }
  0x8e   : > { %9392 = vmatmul.msk.bf16.gmra.mxu0 %vm1107_vm4, %v1096_v13 }
  0x96   : > { %9482 = vmatmul.msk.bf16.gmra.mxu3 %vm1107_vm4, %v10253_v46  ;;  %v1455_v46 = vld [vmem:[#allocation2 + $0xc] sm:$0xc] }
  0x97   : > { %9473 = vmatmul.msk.bf16.gmra.mxu1 %vm1107_vm4, %v10244_v38  ;;  %v9630_v38 = vrot.slane %v2570_v31, 10  ;;  %v2643_v31 = vrot.slane %v2144_v26, 6 }
  0x99   : > { %9402 = vmatmul.msk.bf16.gmra.mxu2 %vm1107_vm4, %v1106_v51  ;;  %v1098_v51 = vpack.c.b16 %v1074_v55, %v1073_v53  ;;  %v2637_v63 = vsel %vm10926_vm15, %v9630_v38, %v2636_v30  ;;  %v2572_v30 = vld [vmem:[#allocation2 + $0x24] sm:$0xc]  ;;  %v9325_v53 = vrot.slane %v10755_v39, 10  ;;  %v2351_v38 = vunpack.c.l.b16 %v2242_v20 }
  0x9a   : > { %v2748_v47 = vunpack.c.l.b16 %v2637_v63  ;;  %v2645_v32 = vrot.slane %v2643_v31, 4  ;;  %v2245_v63 = vrot.slane %v2144_v26, 5  ;;  %v9357_v20 = vrot.slane %v10755_v39, 9 }
  0x9b   : > { %v563_v56 = vsel %vm10515_vm12, %v9325_v53, %v562_v40 }
  0x9c   : > { %v2780_v21 = vpack.c.b16 %v2749_v17, %v2748_v47  ;;  %564 = vst [vmem:[#allocation2 + $0x44] sm:$0x2] %v563_v56  ;;  %v2575_v56 = vld [vmem:[#allocation2 + $0x38] sm:$0x3] }
  0x9e   : > { %9393 = vmatmul.msk.bf16.gmra.mxu0 %vm1107_vm4, %v1097_v60  ;;  %v9484_v60 = vrot.slane %v1455_v46, 10 }
  0xa0   : > { %v1530_v36 = vsel %vm10926_vm15, %v9484_v60, %v1529_v50  ;;  %v9631_v50 = vrot.slane %v2572_v30, 10  ;;  %v1458_v60 = vld [vmem:[#allocation2 + $0x20] sm:$0x3] }
  0xa3   : > { %v758_v30 = vld [vmem:[#allocation2 + $0x44] sm:$0x2] }
  0xa6   : > { %9581 = vmatmul.msk.bf16.vlgmr.msrb.gmra.mxu3 %vm1107_vm4, %v10254_v29  ;;  %v10255_v29 = vld [vmem:[#allocation2 + $0x24] sm:$0xff] }
  0xa7   : > { %9474 = vmatmul.msk.bf16.gmra.mxu1 %vm1107_vm4, %v10245_v22  ;;  %v1636_v22 = vunpack.c.l.b16 %v1530_v36  ;;  %v1539_v36 = vrot.slane %v1458_v60, 6  ;;  %v9326_v60 = vrot.slane %v10809_v54, 10 }
  0xa9   : > { %9500 = vmatmul.msk.bf16.vlgmr.msrb.gmra.mxu2 %vm1107_vm4, %v1666_v35  ;;  %v1413_v41 = vpop.f32.mrf.mxu3  ;;  %v2350_v35 = vunpack.c.l.b16 %v2239_v18  ;;  %v1667_v46 = vpack.c.b16 %v1637_v23, %v1636_v22  ;;  %v9598_v18 = vrot.slane %v2143_v6, 9 }
  0xab   : > { %v2382_v62 = vpack.c.b16 %v2351_v38, %v2350_v35 }
  0xac   : > { %v1209_v48 = vpop.f32.mrf.mxu2 }
  0xad   : > { %v10952_v12 = vadd.f32 %v1413_v41, %v1209_v48  ;;  %v1536_v41 = vrot.slane %v10711_v43, 6  ;;  %v2644_v48 = vsel %vm10926_vm15, %v9631_v50, %v2643_v31  ;;  %v2145_v43 = vld [vmem:[#allocation2 + $0x2c] sm:$0x1]  ;;  %v2246_v31 = vsel %vm10566_vm9, %v9598_v18, %v2245_v63 }
  0xae   : > { %9394 = vmatmul.msk.bf16.gmra.mxu0 %vm1107_vm4, %v1098_v51  ;;  %v2646_v51 = vrot.slane %v2573_v7, 6  ;;  %v2248_v22 = vrot.slane %v2145_v43, 5  ;;  %v2750_v23 = vunpack.c.l.b16 %v2644_v48  ;;  %v759_v7 = vsel %vm10576_vm2, %v9357_v20, %v758_v30 }
  0xaf   : > { %v1538_v17 = vrot.slane %v1536_v41, 4  ;;  %760 = vst [vmem:[#allocation2 + $0x44] sm:$0x2] %v759_v7  ;;  %v2653_v43 = vrot.slane %v2575_v56, 6 }
  0xb0   : > { %v2647_v47 = vsel %vm10926_vm15, %v2645_v32, %v2646_v51  ;;  %v10256_v51 = vld [vmem:[#allocation2 + $0x30] sm:$0xff] }
  0xb1   : > { %v1415_v19 = vpop.f32.mrf.mxu3  ;;  %v2751_v26 = vunpack.c.l.b16 %v2647_v47  ;;  %v1459_v47 = vld [vmem:[#allocation2 + $0x24] sm:$0xc] }
  0xb3   : > { %v2781_v35 = vpack.c.b16 %v2751_v26, %v2750_v23  ;;  %v2146_v23 = vld [vmem:[#allocation2 + $0x30] sm:$0xe] }
  0xb4   : > { %v1373_v27 = vpop.f32.mrf.mxu1  ;;  %v1211_v55 = vpop.f32.mrf.mxu2 }
  0xb5   : > { %v10963_v44 = vadd.f32 %v1415_v19, %v1211_v55  ;;  %v2247_v19 = vrot.slane %v2245_v63, 4  ;;  %v2352_v63 = vunpack.c.l.b16 %v2246_v31 }
  0xb6   : > { %9582 = vmatmul.msk.bf16.gmra.mxu3 %vm1107_vm4, %v10255_v29  ;;  %v1540_v29 = vsel %vm10926_vm15, %v1538_v17, %v1539_v36  ;;  %v1543_v17 = vrot.slane %v10751_v33, 6  ;;  %v2148_v33 = vld [vmem:[#allocation2 + $0x38] sm:$0x1] }
  0xb7   : > { %9647 = vmatmul.msk.bf16.vlgmr.msrb.gmra.mxu1 %vm1107_vm4, %v2780_v21  ;;  %v2249_v55 = vsel %vm10566_vm9, %v2247_v19, %v2248_v22  ;;  %v1639_v40 = vunpack.c.l.b16 %v1540_v29 }
  0xb8   : > { %v1545_v7 = vrot.slane %v1543_v17, 4 }
  0xb9   : > { %9501 = vmatmul.msk.bf16.gmra.mxu2 %vm1107_vm4, %v1667_v46  ;;  %v1418_v4 = vpop.f32.mrf.mxu3  ;;  %v2147_v46 = vld [vmem:[#allocation2 + $0x34] sm:$0xf] }
  0xba   : > { %v2252_v19 = vrot.slane %v2147_v46, 5 }
  0xbb   : > { %v1169_v2 = vpop.f32.mrf.mxu0 }
  0xbc   : > { %v10973_v11 = vadd.f32 %v1373_v27, %v1169_v2  ;;  %v1375_v16 = vpop.f32.mrf.mxu1  ;;  %v1214_v58 = vpop.f32.mrf.mxu2  ;;  %v1537_v27 = vsel %vm10926_vm15, %v9485_v61, %v1536_v41  ;;  %v2650_v41 = vrot.slane %v2147_v46, 6  ;;  %v2353_v2 = vunpack.c.l.b16 %v2249_v55 }
  0xbd   : > { %v10979_v21 = vadd.f32 %v1418_v4, %v1214_v58  ;;  %v1638_v38 = vunpack.c.l.b16 %v1537_v27  ;;  %v565_v4 = vld [vmem:[#allocation2 + $0x50] sm:$0x2]  ;;  %v9632_v61 = vrot.slane %v2574_v52, 10  ;;  %v1460_v58 = vld [vmem:[#allocation2 + $0x2c] sm:$0x3]  ;;  %v9486_v27 = vrot.slane %v1459_v47, 10 }
  0xbe   : > { %9614 = vmatmul.msk.bf16.vlgmr.msrb.gmra.mxu0 %vm1107_vm4, %v2382_v62  ;;  %v566_v36 = vsel %vm10515_vm12, %v9326_v60, %v565_v4  ;;  %v2383_v18 = vpack.c.b16 %v2353_v2, %v2352_v63  ;;  %v9599_v55 = vrot.slane %v2146_v23, 9  ;;  %v2255_v46 = vrot.slane %v2148_v33, 5 }
  0xbf   : > { %v1668_v48 = vpack.c.b16 %v1639_v40, %v1638_v38  ;;  %567 = vst [vmem:[#allocation2 + $0x50] sm:$0x2] %v566_v36  ;;  %v2651_v26 = vsel %vm10926_vm15, %v9632_v61, %v2650_v41  ;;  %v9358_v38 = vrot.slane %v10809_v54, 9  ;;  %v1544_v52 = vsel %vm10926_vm15, %v9486_v27, %v1543_v17  ;;  %v10257_v17 = vld [vmem:[#allocation2 + $0x3c] sm:$0xff] }
  0xc0   : > { %v2253_v60 = vsel %vm10566_vm9, %v9599_v55, %v2252_v19  ;;  %v2576_v36 = vld [vmem:[#allocation2 + $0x3c] sm:$0xc] }
  0xc1   : > { %v1420_v39 = vpop.f32.mrf.mxu3 }
  0xc3   : > { %v1171_v53 = vpop.f32.mrf.mxu0 }
  0xc4   : > { %v10991_v50 = vadd.f32 %v1375_v16, %v1171_v53  ;;  %v1378_v32 = vpop.f32.mrf.mxu1  ;;  %v1216_v62 = vpop.f32.mrf.mxu2  ;;  %v2652_v16 = vrot.slane %v2650_v41, 4  ;;  %v1546_v53 = vrot.slane %v1460_v58, 6 }
  0xc5   : > { %v10994_v6 = vadd.f32 %v1420_v39, %v1216_v62 }
  0xc6   : > { %9583 = vmatmul.msk.bf16.gmra.mxu3 %vm1107_vm4, %v10256_v51  ;;  %v2654_v31 = vsel %vm10926_vm15, %v2652_v16, %v2653_v43  ;;  %v2752_v51 = vunpack.c.l.b16 %v2651_v26  ;;  %v1547_v41 = vsel %vm10926_vm15, %v1545_v7, %v1546_v53  ;;  %v761_v56 = vld [vmem:[#allocation2 + $0x50] sm:$0x2]  ;;  %v2150_v16 = vld [vmem:[#allocation2 + $0x40] sm:$0xf]  ;;  %v568_v26 = vld [vmem:[#allocation2 + $0x5c] sm:$0x2] }
  0xc7   : > { %9648 = vmatmul.msk.bf16.gmra.mxu1 %vm1107_vm4, %v2781_v35  ;;  %v2254_v35 = vrot.slane %v2252_v19, 4  ;;  %v762_v62 = vsel %vm10576_vm2, %v9358_v38, %v761_v56  ;;  %v1641_v61 = vunpack.c.l.b16 %v1547_v41  ;;  %v2657_v58 = vrot.slane %v2150_v16, 6 }
  0xc8   : > { %763 = vst [vmem:[#allocation2 + $0x50] sm:$0x2] %v762_v62  ;;  %v9327_v19 = vrot.slane %v10860_v10, 10  ;;  %v2151_v62 = vld [vmem:[#allocation2 + $0x44] sm:$0x1] }
  0xc9   : > { %9502 = vmatmul.msk.bf16.gmra.mxu2 %vm1107_vm4, %v1668_v48  ;;  %v1423_v22 = vpop.f32.mrf.mxu3  ;;  %v2256_v2 = vsel %vm10566_vm9, %v2254_v35, %v2255_v46  ;;  %v1640_v48 = vunpack.c.l.b16 %v1544_v52  ;;  %v2659_v7 = vrot.slane %v2657_v58, 4  ;;  %v1462_v35 = vld [vmem:[#allocation2 + $0x38] sm:$0x3]  ;;  %v2259_v46 = vrot.slane %v2150_v16, 5  ;;  %v2149_v52 = vld [vmem:[#allocation2 + $0x3c] sm:$0xe] }
  0xca   : > { %v2355_v23 = vunpack.c.l.b16 %v2256_v2  ;;  %v569_v55 = vsel %vm10515_vm12, %v9327_v19, %v568_v26  ;;  %v1553_v2 = vrot.slane %v1462_v35, 6  ;;  %v9359_v16 = vrot.slane %v10860_v10, 9 }
  0xcb   : > { %v1174_v20 = vpop.f32.mrf.mxu0  ;;  %v1669_v33 = vpack.c.b16 %v1641_v61, %v1640_v48  ;;  %570 = vst [vmem:[#allocation2 + $0x5c] sm:$0x2] %v569_v55  ;;  %v9600_v48 = vrot.slane %v2149_v52, 9  ;;  %v2261_v61 = vrot.slane %v2259_v46, 4 }
  0xcc   : > { %v11004_v29 = vadd.f32 %v1378_v32, %v1174_v20  ;;  %v1380_v30 = vpop.f32.mrf.mxu1  ;;  %v1219_v39 = vpop.f32.mrf.mxu2  ;;  %v2753_v32 = vunpack.c.l.b16 %v2654_v31  ;;  %v9633_v31 = vrot.slane %v2576_v36, 10  ;;  %v2262_v36 = vrot.slane %v2151_v62, 5  ;;  %v571_v62 = vld [vmem:[#allocation2 + $0x68] sm:$0x2] }
  0xcd   : > { %v11010_v40 = vadd.f32 %v1423_v22, %v1219_v39  ;;  %v2354_v22 = vunpack.c.l.b16 %v2253_v60  ;;  %v1461_v39 = vld [vmem:[#allocation2 + $0x30] sm:$0xc] }
  0xce   : > { %9615 = vmatmul.msk.bf16.gmra.mxu0 %vm1107_vm4, %v2383_v18  ;;  %v2782_v4 = vpack.c.b16 %v2753_v32, %v2752_v51  ;;  %v2577_v18 = vld [vmem:[#allocation2 + $0x44] sm:$0x3]  ;;  %v9487_v41 = vrot.slane %v1461_v39, 10  ;;  %v2153_v39 = vld [vmem:[#allocation2 + $0x4c] sm:$0xf] }
  0xcf   : > { %v2660_v53 = vrot.slane %v2577_v18, 6  ;;  %v2384_v38 = vpack.c.b16 %v2355_v23, %v2354_v22  ;;  %v2260_v22 = vsel %vm10566_vm9, %v9600_v48, %v2259_v46  ;;  %v2578_v46 = vld [vmem:[#allocation2 + $0x48] sm:$0xc] }
  0xd1   : > { %v1425_v54 = vpop.f32.mrf.mxu3 }
  0xd3   : > { %v1176_v63 = vpop.f32.mrf.mxu0 }
  0xd4   : > { %v11022_v43 = vadd.f32 %v1380_v30, %v1176_v63  ;;  %v1383_v47 = vpop.f32.mrf.mxu1  ;;  %v1221_v20 = vpop.f32.mrf.mxu2  ;;  %v1550_v30 = vrot.slane %v10803_v45, 6  ;;  %v2658_v45 = vsel %vm10926_vm15, %v9633_v31, %v2657_v58  ;;  %v2661_v63 = vsel %vm10926_vm15, %v2659_v7, %v2660_v53 }
  0xd5   : > { %v11025_v27 = vadd.f32 %v1425_v54, %v1221_v20  ;;  %v2754_v58 = vunpack.c.l.b16 %v2658_v45  ;;  %v764_v20 = vld [vmem:[#allocation2 + $0x5c] sm:$0x2]  ;;  %v2356_v45 = vunpack.c.l.b16 %v2260_v22 }
  0xd6   : > { %9584 = vmatmul.msk.bf16.gmra.mxu3 %vm1107_vm4, %v10257_v17  ;;  %v1552_v54 = vrot.slane %v1550_v30, 4  ;;  %v1551_v18 = vsel %vm10926_vm15, %v9487_v41, %v1550_v30  ;;  %v765_v23 = vsel %vm10576_vm2, %v9359_v16, %v764_v20  ;;  %v9328_v30 = vrot.slane %v10488_v14, 10  ;;  %v2152_v20 = vld [vmem:[#allocation2 + $0x48] sm:$0xe] }
  0xd7   : > { %9649 = vmatmul.msk.bf16.gmra.mxu1 %vm1107_vm4, %v2782_v4  ;;  %v1642_v7 = vunpack.c.l.b16 %v1551_v18  ;;  %766 = vst [vmem:[#allocation2 + $0x5c] sm:$0x2] %v765_v23 }
  0xd8   : > { %v1554_v19 = vsel %vm10926_vm15, %v1552_v54, %v1553_v2  ;;  %v9634_v2 = vrot.slane %v2578_v46, 10  ;;  %v572_v16 = vsel %vm10515_vm12, %v9328_v30, %v571_v62  ;;  %v9601_v30 = vrot.slane %v2152_v20, 9 }
  0xd9   : > { %9503 = vmatmul.msk.bf16.gmra.mxu2 %vm1107_vm4, %v1669_v33  ;;  %v1428_v32 = vpop.f32.mrf.mxu3  ;;  %v2263_v33 = vsel %vm10566_vm9, %v2261_v61, %v2262_v36  ;;  %v1643_v53 = vunpack.c.l.b16 %v1554_v19  ;;  %v1463_v61 = vld [vmem:[#allocation2 + $0x3c] sm:$0xc]  ;;  %v1464_v36 = vld [vmem:[#allocation2 + $0x44] sm:$0x3]  ;;  %573 = vst [vmem:[#allocation2 + $0x68] sm:$0x2] %v572_v16 }
  0xda   : > { %v2357_v41 = vunpack.c.l.b16 %v2263_v33  ;;  %v9488_v22 = vrot.slane %v1463_v61, 10 }
  0xdb   : > { %v1179_v51 = vpop.f32.mrf.mxu0  ;;  %v1670_v54 = vpack.c.b16 %v1643_v53, %v1642_v7  ;;  %v1560_v7 = vrot.slane %v1464_v36, 6  ;;  %v9360_v53 = vrot.slane %v10488_v14, 9  ;;  %v2156_v36 = vld [vmem:[#allocation2 + $0x58] sm:$0xf] }
  0xdc   : > { %v11035_v56 = vadd.f32 %v1383_v47, %v1179_v51  ;;  %v1385_v60 = vpop.f32.mrf.mxu1  ;;  %v1224_v4 = vpop.f32.mrf.mxu2  ;;  %v2755_v47 = vunpack.c.l.b16 %v2661_v63  ;;  %v2664_v51 = vrot.slane %v2153_v39, 6  ;;  %v2671_v20 = vrot.slane %v2156_v36, 6 }
  0xdd   : > { %v11041_v17 = vadd.f32 %v1428_v32, %v1224_v4  ;;  %v2579_v32 = vld [vmem:[#allocation2 + $0x50] sm:$0x3]  ;;  %v1557_v4 = vrot.slane %v10858_v3, 6 }
  0xde   : > { %9616 = vmatmul.msk.bf16.gmra.mxu0 %vm1107_vm4, %v2384_v38  ;;  %v2783_v31 = vpack.c.b16 %v2755_v47, %v2754_v58  ;;  %v10258_v38 = vld [vmem:[#allocation2 + $0x48] sm:$0xff]  ;;  %v2667_v48 = vrot.slane %v2579_v32, 6  ;;  %v2385_v58 = vpack.c.b16 %v2357_v41, %v2356_v45  ;;  %v2266_v47 = vrot.slane %v2153_v39, 5 }
  0xdf   : > { %v2665_v3 = vsel %vm10926_vm15, %v9634_v2, %v2664_v51 }
  0xe0   : > { %v2756_v32 = vunpack.c.l.b16 %v2665_v3  ;;  %v767_v41 = vld [vmem:[#allocation2 + $0x68] sm:$0x2]  ;;  %v2267_v14 = vsel %vm10566_vm9, %v9601_v30, %v2266_v47  ;;  %v2581_v3 = vld [vmem:[#allocation2 + $0x5c] sm:$0x3]  ;;  %v1564_v30 = vrot.slane %v10887_v57, 6 }
  0xe1   : > { %v1430_v10 = vpop.f32.mrf.mxu3  ;;  %v768_v62 = vsel %vm10576_vm2, %v9360_v53, %v767_v41 }
  0xe2   : > { %769 = vst [vmem:[#allocation2 + $0x68] sm:$0x2] %v768_v62  ;;  %v2155_v62 = vld [vmem:[#allocation2 + $0x54] sm:$0xe] }
  0xe3   : > { %v1181_v26 = vpop.f32.mrf.mxu0 }
  0xe4   : > { %v11054_v55 = vadd.f32 %v1385_v60, %v1181_v26  ;;  %v1388_v35 = vpop.f32.mrf.mxu1  ;;  %v1226_v52 = vpop.f32.mrf.mxu2  ;;  %v2666_v60 = vrot.slane %v2664_v51, 4 }
  0xe5   : > { %v11056_v63 = vadd.f32 %v1430_v10, %v1226_v52  ;;  %v2154_v10 = vld [vmem:[#allocation2 + $0x50] sm:$0x1]  ;;  %v1558_v52 = vsel %vm10926_vm15, %v9488_v22, %v1557_v4 }
  0xe6   : > { %9585 = vmatmul.msk.bf16.gmra.mxu3 %vm1107_vm4, %v10258_v38  ;;  %v2668_v33 = vsel %vm10926_vm15, %v2666_v60, %v2667_v48  ;;  %v2268_v38 = vrot.slane %v2266_v47, 4  ;;  %v2269_v51 = vrot.slane %v2154_v10, 5  ;;  %v1644_v61 = vunpack.c.l.b16 %v1558_v52  ;;  %v2580_v47 = vld [vmem:[#allocation2 + $0x54] sm:$0xc] }
  0xe7   : > { %9650 = vmatmul.msk.bf16.gmra.mxu1 %vm1107_vm4, %v2783_v31  ;;  %v1559_v31 = vrot.slane %v1557_v4, 4  ;;  %v9329_v4 = vrot.slane %v10523_v37, 10  ;;  %v2358_v10 = vunpack.c.l.b16 %v2267_v14 }
  0xe8   : > { %v2270_v60 = vsel %vm10566_vm9, %v2268_v38, %v2269_v51  ;;  %v2674_v38 = vrot.slane %v2581_v3, 6  ;;  %v1465_v51 = vld [vmem:[#allocation2 + $0x48] sm:$0xc] }
  0xe9   : > { %9504 = vmatmul.msk.bf16.gmra.mxu2 %vm1107_vm4, %v1670_v54  ;;  %v1433_v19 = vpop.f32.mrf.mxu3  ;;  %v1561_v45 = vsel %vm10926_vm15, %v1559_v31, %v1560_v7  ;;  %v574_v31 = vld [vmem:[#allocation2 + $0x74] sm:$0x2] }
  0xea   : > { %v1645_v16 = vunpack.c.l.b16 %v1561_v45  ;;  %v2273_v45 = vrot.slane %v2156_v36, 5  ;;  %v9361_v36 = vrot.slane %v10523_v37, 9 }
  0xeb   : > { %v1184_v18 = vpop.f32.mrf.mxu0 }
  0xec   : > { %v11066_v23 = vadd.f32 %v1388_v35, %v1184_v18  ;;  %v1390_v26 = vpop.f32.mrf.mxu1  ;;  %v1229_v39 = vpop.f32.mrf.mxu2  ;;  %v2757_v35 = vunpack.c.l.b16 %v2668_v33  ;;  %v2359_v33 = vunpack.c.l.b16 %v2270_v60  ;;  %v1671_v53 = vpack.c.b16 %v1645_v16, %v1644_v61 }
  0xed   : > { %v11072_v46 = vadd.f32 %v1433_v19, %v1229_v39  ;;  %v10259_v19 = vld [vmem:[#allocation2 + $0x54] sm:$0xff]  ;;  %v9635_v39 = vrot.slane %v2580_v47, 10  ;;  %v1566_v16 = vrot.slane %v1564_v30, 4  ;;  %v9602_v47 = vrot.slane %v2155_v62, 9 }
  0xee   : > { %9617 = vmatmul.msk.bf16.gmra.mxu0 %vm1107_vm4, %v2385_v58  ;;  %v2784_v48 = vpack.c.b16 %v2757_v35, %v2756_v32  ;;  %v575_v32 = vsel %vm10515_vm12, %v9329_v4, %v574_v31  ;;  %v1466_v35 = vld [vmem:[#allocation2 + $0x50] sm:$0x3]  ;;  %v2386_v52 = vpack.c.b16 %v2359_v33, %v2358_v10  ;;  %v2275_v3 = vrot.slane %v2273_v45, 4 }
  0xef   : > { %576 = vst [vmem:[#allocation2 + $0x74] sm:$0x2] %v575_v32  ;;  %v2672_v57 = vsel %vm10926_vm15, %v9635_v39, %v2671_v20  ;;  %v1567_v4 = vrot.slane %v1466_v35, 6  ;;  %v2274_v37 = vsel %vm10566_vm9, %v9602_v47, %v2273_v45  ;;  %v2582_v45 = vld [vmem:[#allocation2 + $0x60] sm:$0xc] }
  0xf0   : > { %v2758_v10 = vunpack.c.l.b16 %v2672_v57  ;;  %v10260_v57 = vld [vmem:[#allocation2 + $0x60] sm:$0xff] }
  0xf1   : > { %v1435_v2 = vpop.f32.mrf.mxu3  ;;  %v1568_v31 = vsel %vm10926_vm15, %v1566_v16, %v1567_v4  ;;  %v2360_v16 = vunpack.c.l.b16 %v2274_v37 }
  0xf3   : > { %v1186_v54 = vpop.f32.mrf.mxu0 }
  0xf4   : > { %v11085_v58 = vadd.f32 %v1390_v26, %v1186_v54  ;;  %v1393_v18 = vpop.f32.mrf.mxu1  ;;  %v1231_v22 = vpop.f32.mrf.mxu2  ;;  %v2673_v26 = vrot.slane %v2671_v20, 4  ;;  %v9489_v54 = vrot.slane %v1465_v51, 10 }
  0xf5   : > { %v11087_v7 = vadd.f32 %v1435_v2, %v1231_v22 }
  0xf6   : > { %9586 = vmatmul.msk.bf16.gmra.mxu3 %vm1107_vm4, %v10259_v19  ;;  %v2675_v61 = vsel %vm10926_vm15, %v2673_v26, %v2674_v38  ;;  %v1565_v33 = vsel %vm10926_vm15, %v9489_v54, %v1564_v30  ;;  %v9330_v30 = vrot.slane %v10596_v28, 10 }
  0xf7   : > { %9651 = vmatmul.msk.bf16.gmra.mxu1 %vm1107_vm4, %v2784_v48  ;;  %v2157_v48 = vld [vmem:[#allocation2 + $0x5c] sm:$0x1]  ;;  %v1646_v35 = vunpack.c.l.b16 %v1565_v33 }
  0xf8   : > { %v2276_v20 = vrot.slane %v2157_v48, 5  ;;  %v2583_v48 = vld [vmem:[#allocation2 + $0x68] sm:$0x3] }
  0xf9   : > { %9505 = vmatmul.msk.bf16.gmra.mxu2 %vm1107_vm4, %v1671_v53  ;;  %v1438_v14 = vpop.f32.mrf.mxu3  ;;  %v770_v53 = vld [vmem:[#allocation2 + $0x74] sm:$0x2] }
  0xfa   : > { %v771_v39 = vsel %vm10576_vm2, %v9361_v36, %v770_v53  ;;  %v2277_v51 = vsel %vm10566_vm9, %v2275_v3, %v2276_v20  ;;  %v577_v36 = vld [vmem:[#allocation2 + $0x80] sm:$0x2]  ;;  %v9636_v3 = vrot.slane %v2582_v45, 10  ;;  %v1571_v20 = vrot.slane %v10917_v49, 6 }
  0xfb   : > { %v1189_v41 = vpop.f32.mrf.mxu0  ;;  %772 = vst [vmem:[#allocation2 + $0x74] sm:$0x2] %v771_v39  ;;  %v2361_v4 = vunpack.c.l.b16 %v2277_v51  ;;  %v578_v33 = vsel %vm10515_vm12, %v9330_v30, %v577_v36 }
  0xfc   : > { %v11097_v2 = vadd.f32 %v1393_v18, %v1189_v41  ;;  %v1395_v60 = vpop.f32.mrf.mxu1  ;;  %v1234_v19 = vpop.f32.mrf.mxu2  ;;  %v2759_v18 = vunpack.c.l.b16 %v2675_v61  ;;  %v2159_v41 = vld [vmem:[#allocation2 + $0x64] sm:$0xf]  ;;  %579 = vst [vmem:[#allocation2 + $0x80] sm:$0x2] %v578_v33 }
  0xfd   : > { %v11103_v22 = vadd.f32 %v1438_v14, %v1234_v19  ;;  %v2678_v54 = vrot.slane %v2159_v41, 6  ;;  %v2387_v53 = vpack.c.b16 %v2361_v4, %v2360_v16  ;;  %v2280_v37 = vrot.slane %v2159_v41, 5 }
  0xfe   : > { %9618 = vmatmul.msk.bf16.gmra.mxu0 %vm1107_vm4, %v2386_v52  ;;  %v2785_v32 = vpack.c.b16 %v2759_v18, %v2758_v10  ;;  %v1647_v52 = vunpack.c.l.b16 %v1568_v31  ;;  %v2681_v10 = vrot.slane %v2583_v48, 6  ;;  %v1467_v18 = vld [vmem:[#allocation2 + $0x54] sm:$0xc]  ;;  %v1468_v31 = vld [vmem:[#allocation2 + $0x5c] sm:$0x3]  ;;  %v9362_v41 = vrot.slane %v10596_v28, 9 }
  0xff   : > { %14883 = vst [vmem:[#allocation7_spill] sm:$0xff] %v11103_v22  ;;  %v2679_v49 = vsel %vm10926_vm15, %v9636_v3, %v2678_v54  ;;  %v9490_v51 = vrot.slane %v1467_v18, 10  ;;  %v1574_v45 = vrot.slane %v1468_v31, 6  ;;  %v2282_v16 = vrot.slane %v2280_v37, 4 }
 0x100   : > { %v1672_v47 = vpack.c.b16 %v1647_v52, %v1646_v35  ;;  %v2160_v52 = vld [vmem:[#allocation2 + $0x68] sm:$0x1]  ;;  %v2760_v36 = vunpack.c.l.b16 %v2679_v49 }
 0x101   : > { %v1440_v38 = vpop.f32.mrf.mxu3 }
 0x103   : > { %v1191_v26 = vpop.f32.mrf.mxu0 }
 0x104   : > { %v11116_v14 = vadd.f32 %v1395_v60, %v1191_v26  ;;  %v1398_v62 = vpop.f32.mrf.mxu1  ;;  %v1236_v61 = vpop.f32.mrf.mxu2  ;;  %v2680_v60 = vrot.slane %v2678_v54, 4  ;;  %v2283_v54 = vrot.slane %v2160_v52, 5  ;;  %v10261_v52 = vld [vmem:[#allocation2 + $0x6c] sm:$0xff] }
 0x105   : > { %v11118_v19 = vadd.f32 %v1440_v38, %v1236_v61  ;;  %v2158_v38 = vld [vmem:[#allocation2 + $0x60] sm:$0xe] }
 0x106   : > { %9587 = vmatmul.msk.bf16.gmra.mxu3 %vm1107_vm4, %v10260_v57  ;;  %v2682_v30 = vsel %vm10926_vm15, %v2680_v60, %v2681_v10  ;;  %v1573_v57 = vrot.slane %v1571_v20, 4  ;;  %v9603_v61 = vrot.slane %v2158_v38, 9  ;;  %v773_v60 = vld [vmem:[#allocation2 + $0x80] sm:$0x2]  ;;  %v2284_v31 = vsel %vm10566_vm9, %v2282_v16, %v2283_v54  ;;  %v2162_v38 = vld [vmem:[#allocation2 + $0x70] sm:$0xf] }
 0x107   : > { %14884 = vst [vmem:[#allocation8_spill] sm:$0xff] %v11118_v19  ;;  %9652 = vmatmul.msk.bf16.gmra.mxu1 %vm1107_vm4, %v2785_v32  ;;  %v774_v10 = vsel %vm10576_vm2, %v9362_v41, %v773_v60 }
 0x108   : > { %v1575_v3 = vsel %vm10926_vm15, %v1573_v57, %v1574_v45  ;;  %v2281_v28 = vsel %vm10566_vm9, %v9603_v61, %v2280_v37  ;;  %775 = vst [vmem:[#allocation2 + $0x80] sm:$0x2] %v774_v10  ;;  %v2584_v37 = vld [vmem:[#allocation2 + $0x6c] sm:$0xc]  ;;  %v2585_v57 = vld [vmem:[#allocation2 + $0x74] sm:$0x3] }
 0x109   : > { %9506 = vmatmul.msk.bf16.gmra.mxu2 %vm1107_vm4, %v1672_v47  ;;  %v1443_v26 = vpop.f32.mrf.mxu3  ;;  %v1572_v47 = vsel %vm10926_vm15, %v9490_v51, %v1571_v20  ;;  %v9331_v20 = vrot.slane %v10644_v15, 10  ;;  %v2362_v41 = vunpack.c.l.b16 %v2281_v28  ;;  %v580_v61 = vld [vmem:[#allocation2 + $0x8c] sm:$0x2]  ;;  %v9637_v54 = vrot.slane %v2584_v37, 10 }
 0x10b   : > { %v1194_v39 = vpop.f32.mrf.mxu0  ;;  %v581_v10 = vsel %vm10515_vm12, %v9331_v20, %v580_v61 }
 0x10c   : > { %v11128_v32 = vadd.f32 %v1398_v62, %v1194_v39  ;;  %v1400_v35 = vpop.f32.mrf.mxu1  ;;  %v1239_v48 = vpop.f32.mrf.mxu2  ;;  %v2761_v62 = vunpack.c.l.b16 %v2682_v30  ;;  %v1648_v39 = vunpack.c.l.b16 %v1572_v47  ;;  %v2685_v30 = vrot.slane %v2162_v38, 6  ;;  %582 = vst [vmem:[#allocation2 + $0x8c] sm:$0x2] %v581_v10 }
 0x10d   : > { %v11134_v4 = vadd.f32 %v1443_v26, %v1239_v48  ;;  %v1649_v26 = vunpack.c.l.b16 %v1575_v3  ;;  %v2363_v48 = vunpack.c.l.b16 %v2284_v31  ;;  %v2688_v47 = vrot.slane %v2585_v57, 6  ;;  %v1469_v3 = vld [vmem:[#allocation2 + $0x60] sm:$0xc] }
 0x10e   : > { %9619 = vmatmul.msk.bf16.gmra.mxu0 %vm1107_vm4, %v2387_v53  ;;  %v2786_v53 = vpack.c.b16 %v2761_v62, %v2760_v36  ;;  %v10348_v36 = vld [vmem:[#allocation2 + $0x64] sm:$0xf]  ;;  %v2287_v31 = vrot.slane %v2162_v38, 5  ;;  %v9491_v37 = vrot.slane %v1469_v3, 10  ;;  %v9363_v38 = vrot.slane %v10644_v15, 9 }
 0x10f   : > { %14885 = vst [vmem:[#allocation9_spill] sm:$0xff] %v11134_v4  ;;  %v1673_v16 = vpack.c.b16 %v1649_v26, %v1648_v39  ;;  %v1578_v62 = vrot.slane %v10348_v36, 6  ;;  %v2388_v28 = vpack.c.b16 %v2363_v48, %v2362_v41  ;;  %v2161_v39 = vld [vmem:[#allocation2 + $0x6c] sm:$0xe]  ;;  %v2686_v26 = vsel %vm10926_vm15, %v9637_v54, %v2685_v30 }
 0x110   : > { %v2289_v36 = vrot.slane %v2287_v31, 4  ;;  %v2762_v54 = vunpack.c.l.b16 %v2686_v26 }
 0x111   : > { %v1445_v33 = vpop.f32.mrf.mxu3  ;;  %v1580_v61 = vrot.slane %v1578_v62, 4  ;;  %v1579_v3 = vsel %vm10926_vm15, %v9491_v37, %v1578_v62  ;;  %v9332_v62 = vrot.slane %v10679_v0, 10 }
 0x112   : > { %v1650_v26 = vunpack.c.l.b16 %v1579_v3 }
 0x113   : > { %v1196_v18 = vpop.f32.mrf.mxu0 }
 0x114   : > { %v11147_v49 = vadd.f32 %v1400_v35, %v1196_v18  ;;  %v1403_v51 = vpop.f32.mrf.mxu1  ;;  %v1241_v45 = vpop.f32.mrf.mxu2  ;;  %v2687_v35 = vrot.slane %v2685_v30, 4  ;;  %v1470_v18 = vld [vmem:[#allocation2 + $0x68] sm:$0x3] }
 0x115   : > { %v11149_v60 = vadd.f32 %v1445_v33, %v1241_v45  ;;  %v2163_v45 = vld [vmem:[#allocation2 + $0x74] sm:$0x1]  ;;  %v1581_v41 = vrot.slane %v1470_v18, 6 }
 0x116   : > { %9588 = vmatmul.msk.bf16.gmra.mxu3 %vm1107_vm4, %v10261_v52  ;;  %v2689_v20 = vsel %vm10926_vm15, %v2687_v35, %v2688_v47  ;;  %v2290_v30 = vrot.slane %v2163_v45, 5  ;;  %v776_v47 = vld [vmem:[#allocation2 + $0x8c] sm:$0x2] }
 0x117   : > { %14886 = vst [vmem:[#allocation10_spill] sm:$0xff] %v11149_v60  ;;  %9653 = vmatmul.msk.bf16.gmra.mxu1 %vm1107_vm4, %v2786_v53  ;;  %v1582_v35 = vsel %vm10926_vm15, %v1580_v61, %v1581_v41  ;;  %v777_v18 = vsel %vm10576_vm2, %v9363_v38, %v776_v47  ;;  %v10262_v41 = vld [vmem:[#allocation2 + $0x78] sm:$0xff] }
 0x118   : > { %v1651_v45 = vunpack.c.l.b16 %v1582_v35  ;;  %778 = vst [vmem:[#allocation2 + $0x8c] sm:$0x2] %v777_v18  ;;  %v583_v60 = vld [vmem:[#allocation2 + $0x98] sm:$0x2]  ;;  %v1471_v35 = vld [vmem:[#allocation2 + $0x6c] sm:$0xc] }
 0x119   : > { %9507 = vmatmul.msk.bf16.gmra.mxu2 %vm1107_vm4, %v1673_v16  ;;  %v1448_v53 = vpop.f32.mrf.mxu3  ;;  %v9604_v16 = vrot.slane %v2161_v39, 9  ;;  %v584_v18 = vsel %vm10515_vm12, %v9332_v62, %v583_v60 }
 0x11a   : > { %585 = vst [vmem:[#allocation2 + $0x98] sm:$0x2] %v584_v18 }
 0x11b   : > { %v1199_v33 = vpop.f32.mrf.mxu0  ;;  %v2288_v15 = vsel %vm10566_vm9, %v9604_v16, %v2287_v31  ;;  %v2586_v31 = vld [vmem:[#allocation2 + $0x78] sm:$0xc]  ;;  %v2587_v16 = vld [vmem:[#allocation2 + $0x80] sm:$0x3] }
 0x11c   : > { %v11158_v52 = vadd.f32 %v1403_v51, %v1199_v33  ;;  %v1405_v57 = vpop.f32.mrf.mxu1  ;;  %v1244_v48 = vpop.f32.mrf.mxu2  ;;  %v2763_v51 = vunpack.c.l.b16 %v2689_v20  ;;  %v2165_v20 = vld [vmem:[#allocation2 + $0x7c] sm:$0xf]  ;;  %v2364_v47 = vunpack.c.l.b16 %v2288_v15  ;;  %v2695_v3 = vrot.slane %v2587_v16, 6 }
 0x11d   : > { %v11164_v10 = vadd.f32 %v1448_v53, %v1244_v48  ;;  %v2291_v53 = vsel %vm10566_vm9, %v2289_v36, %v2290_v30  ;;  %v2692_v48 = vrot.slane %v2165_v20, 6  ;;  %v1674_v36 = vpack.c.b16 %v1651_v45, %v1650_v26  ;;  %v2164_v26 = vld [vmem:[#allocation2 + $0x78] sm:$0xe] }
 0x11e   : > { %9620 = vmatmul.msk.bf16.gmra.mxu0 %vm1107_vm4, %v2388_v28  ;;  %v2787_v39 = vpack.c.b16 %v2763_v51, %v2762_v54  ;;  %v9638_v30 = vrot.slane %v2586_v31, 10  ;;  %v10349_v54 = vld [vmem:[#allocation2 + $0x70] sm:$0xf]  ;;  %v9492_v31 = vrot.slane %v1471_v35, 10 }
 0x11f   : > { %14887 = vst [vmem:[#allocation11_spill] sm:$0xff] %v11164_v10  ;;  %v2365_v10 = vunpack.c.l.b16 %v2291_v53  ;;  %v1585_v51 = vrot.slane %v10349_v54, 6  ;;  %v2294_v53 = vrot.slane %v2165_v20, 5  ;;  %v9364_v20 = vrot.slane %v10679_v0, 9 }
 0x120   : > { %v2693_v45 = vsel %vm10926_vm15, %v9638_v30, %v2692_v48 }
 0x121   : > { %v1450_v33 = vpop.f32.mrf.mxu3  ;;  %v2389_v15 = vpack.c.b16 %v2365_v10, %v2364_v47  ;;  %v1587_v62 = vrot.slane %v1585_v51, 4  ;;  %v2296_v54 = vrot.slane %v2294_v53, 4  ;;  %v2764_v30 = vunpack.c.l.b16 %v2693_v45 }
 0x122   : > { %v1586_v35 = vsel %vm10926_vm15, %v9492_v31, %v1585_v51  ;;  %v2168_v51 = vld [vmem:[#allocation2 + $0x88] sm:$0xf]  ;;  %v9333_v31 = vrot.slane %v10723_v59, 10 }
 0x123   : > { %v1201_v28 = vpop.f32.mrf.mxu0  ;;  %v2301_v22 = vrot.slane %v2168_v51, 5 }
 0x124   : > { %v11177_v37 = vadd.f32 %v1405_v57, %v1201_v28  ;;  %v1408_v61 = vpop.f32.mrf.mxu1  ;;  %v1246_v38 = vpop.f32.mrf.mxu2  ;;  %v2694_v57 = vrot.slane %v2692_v48, 4  ;;  %v1472_v28 = vld [vmem:[#allocation2 + $0x74] sm:$0x3] }
 0x125   : > { %v11179_v4 = vadd.f32 %v1450_v33, %v1246_v38  ;;  %v2166_v38 = vld [vmem:[#allocation2 + $0x80] sm:$0x1]  ;;  %v1588_v10 = vrot.slane %v1472_v28, 6  ;;  %v779_v28 = vld [vmem:[#allocation2 + $0x98] sm:$0x2] }
 0x126   : > { %9589 = vmatmul.msk.bf16.gmra.mxu3 %vm1107_vm4, %v10262_v41  ;;  %v2696_v60 = vsel %vm10926_vm15, %v2694_v57, %v2695_v3  ;;  %v2297_v48 = vrot.slane %v2166_v38, 5  ;;  %v1652_v38 = vunpack.c.l.b16 %v1586_v35 }
 0x127   : > { %14888 = vst [vmem:[#allocation12_spill] sm:$0xff] %v11179_v4  ;;  %9654 = vmatmul.msk.bf16.gmra.mxu1 %vm1107_vm4, %v2787_v39  ;;  %v1589_v57 = vsel %vm10926_vm15, %v1587_v62, %v1588_v10  ;;  %v10263_v10 = vld [vmem:[#allocation2 + $0x84] sm:$0xff] }
 0x128   : > { %v586_v4 = vld [vmem:[#allocation2 + $0xa4] sm:$0x2] }
 0x129   : > { %9508 = vmatmul.msk.bf16.gmra.mxu2 %vm1107_vm4, %v1674_v36  ;;  %v2028_v39 = vpop.f32.mrf.mxu3  ;;  %v9605_v36 = vrot.slane %v2164_v26, 9 }
 0x12b   : > { %v1204_v33 = vpop.f32.mrf.mxu0  ;;  %v2295_v0 = vsel %vm10566_vm9, %v9605_v36, %v2294_v53  ;;  %v2588_v53 = vld [vmem:[#allocation2 + $0x84] sm:$0xc]  ;;  %v2589_v36 = vld [vmem:[#allocation2 + $0x8c] sm:$0x3] }
 0x12c   : > { %v11188_v41 = vadd.f32 %v1408_v61, %v1204_v33  ;;  %v1410_v16 = vpop.f32.mrf.mxu1  ;;  %v1742_v47 = vpop.f32.mrf.mxu2  ;;  %v2765_v61 = vunpack.c.l.b16 %v2696_v60  ;;  %v1653_v60 = vunpack.c.l.b16 %v1589_v57  ;;  %v2702_v57 = vrot.slane %v2589_v36, 6 }
 0x12d   : > { %v1822_v18 = vadd.f32 %v1742_v47, %v10973_v11  ;;  %v2298_v11 = vsel %vm10566_vm9, %v2296_v54, %v2297_v48  ;;  %v2699_v47 = vrot.slane %v2168_v51, 6  ;;  %v9365_v51 = vrot.slane %v10723_v59, 9 }
 0x12e   : > { %9621 = vmatmul.msk.bf16.gmra.mxu0 %vm1107_vm4, %v2389_v15  ;;  %v780_v15 = vsel %vm10576_vm2, %v9364_v20, %v779_v28  ;;  %v2788_v45 = vpack.c.b16 %v2765_v61, %v2764_v30  ;;  %v2367_v28 = vunpack.c.l.b16 %v2298_v11  ;;  %v1675_v48 = vpack.c.b16 %v1653_v60, %v1652_v38  ;;  %v10350_v61 = vld [vmem:[#allocation2 + $0x7c] sm:$0xf]  ;;  %v2167_v38 = vld [vmem:[#allocation2 + $0x84] sm:$0xe] }
 0x12f   : > { %v2108_v3 = vadd.f32 %v2028_v39, %v1822_v18  ;;  %781 = vst [vmem:[#allocation2 + $0x98] sm:$0x2] %v780_v15  ;;  %v2366_v18 = vunpack.c.l.b16 %v2295_v0  ;;  %v9639_v30 = vrot.slane %v2588_v53, 10  ;;  %v1592_v35 = vrot.slane %v10350_v61, 6  ;;  %v1473_v15 = vld [vmem:[#allocation2 + $0x78] sm:$0xc] }
 0x130   : > { %v1474_v0 = vld [vmem:[#allocation2 + $0x80] sm:$0x3] }
 0x131   : > { %v2030_v26 = vpop.f32.mrf.mxu3  ;;  %v2390_v11 = vpack.c.b16 %v2367_v28, %v2366_v18  ;;  %v2700_v60 = vsel %vm10926_vm15, %v9639_v30, %v2699_v47 }
 0x133   : > { %v1206_v33 = vpop.f32.mrf.mxu0 }
 0x134   : > { %v11206_v39 = vadd.f32 %v1410_v16, %v1206_v33  ;;  %v2856_v62 = vpop.f32.mrf.mxu1  ;;  %v1744_v20 = vpop.f32.mrf.mxu2  ;;  %v2701_v16 = vrot.slane %v2699_v47, 4  ;;  %v587_v33 = vsel %vm10515_vm12, %v9333_v31, %v586_v4  ;;  %v1595_v31 = vrot.slane %v1474_v0, 6 }
 0x135   : > { %v1823_v54 = vadd.f32 %v1744_v20, %v10991_v50  ;;  %588 = vst [vmem:[#allocation2 + $0xa4] sm:$0x2] %v587_v33  ;;  %v2169_v20 = vld [vmem:[#allocation2 + $0x8c] sm:$0x1] }
 0x136   : > { %9590 = vmatmul.msk.bf16.gmra.mxu3 %vm1107_vm4, %v10263_v10  ;;  %v9493_v10 = vrot.slane %v1473_v15, 10  ;;  %v2703_v4 = vsel %vm10926_vm15, %v2701_v16, %v2702_v57  ;;  %v2304_v30 = vrot.slane %v2169_v20, 5  ;;  %v10264_v20 = vld [vmem:[#allocation2 + $0x90] sm:$0xff] }
 0x137   : > { %9655 = vmatmul.msk.bf16.gmra.mxu1 %vm1107_vm4, %v2788_v45  ;;  %v2109_v19 = vadd.f32 %v2030_v26, %v1823_v54  ;;  %v1594_v26 = vrot.slane %v1592_v35, 4  ;;  %v9606_v54 = vrot.slane %v2167_v38, 9  ;;  %v2767_v61 = vunpack.c.l.b16 %v2703_v4  ;;  %v2590_v4 = vld [vmem:[#allocation2 + $0x90] sm:$0xc] }
 0x138   : > { %v1593_v15 = vsel %vm10926_vm15, %v9493_v10, %v1592_v35  ;;  %v2171_v35 = vld [vmem:[#allocation2 + $0x94] sm:$0xf]  ;;  %v9334_v10 = vrot.slane %v10770_v5, 10 }
 0x139   : > { %9509 = vmatmul.msk.bf16.gmra.mxu2 %vm1107_vm4, %v1675_v48  ;;  %v2033_v45 = vpop.f32.mrf.mxu3  ;;  %v2303_v48 = vrot.slane %v2301_v22, 4  ;;  %v1596_v16 = vsel %vm10926_vm15, %v1594_v26, %v1595_v31  ;;  %v1654_v38 = vunpack.c.l.b16 %v1593_v15  ;;  %v2591_v26 = vld [vmem:[#allocation2 + $0x98] sm:$0x3] }
 0x13b   : > { %v2458_v50 = vpop.f32.mrf.mxu0 }
 0x13c   : > { %v2538_v53 = vadd.f32 %v2458_v50, %v2108_v3  ;;  %v2858_v36 = vpop.f32.mrf.mxu1  ;;  %v1747_v28 = vpop.f32.mrf.mxu2  ;;  %v2766_v3 = vunpack.c.l.b16 %v2700_v60  ;;  %v782_v59 = vld [vmem:[#allocation2 + $0xa4] sm:$0x2]  ;;  %v1655_v60 = vunpack.c.l.b16 %v1596_v16  ;;  %v2709_v16 = vrot.slane %v2591_v26, 6  ;;  %v2172_v26 = vld [vmem:[#allocation2 + $0x98] sm:$0x1] }
 0x13d   : > { %v1824_v47 = vadd.f32 %v1747_v28, %v11004_v29  ;;  %v783_v33 = vsel %vm10576_vm2, %v9365_v51, %v782_v59  ;;  %v2305_v29 = vsel %vm10566_vm9, %v2303_v48, %v2304_v30  ;;  %v1475_v59 = vld [vmem:[#allocation2 + $0x84] sm:$0xc] }
 0x13e   : > { %v11219_v18 = vadd.f32 %v2856_v62, %v2538_v53  ;;  %9622 = vmatmul.msk.bf16.gmra.mxu0 %vm1107_vm4, %v2390_v11  ;;  %v2302_v62 = vsel %vm10566_vm9, %v9606_v54, %v2301_v22  ;;  %v2789_v50 = vpack.c.b16 %v2767_v61, %v2766_v3  ;;  %784 = vst [vmem:[#allocation2 + $0xa4] sm:$0x2] %v783_v33  ;;  %v2706_v22 = vrot.slane %v2171_v35, 6  ;;  %v10351_v61 = vld [vmem:[#allocation2 + $0x88] sm:$0xf] }
 0x13f   : > { %v2110_v57 = vadd.f32 %v2033_v45, %v1824_v47  ;;  %v2368_v28 = vunpack.c.l.b16 %v2302_v62  ;;  %v2369_v54 = vunpack.c.l.b16 %v2305_v29  ;;  %v589_v47 = vld [vmem:[#allocation2 + $0xb0] sm:$0x2]  ;;  %v1676_v30 = vpack.c.b16 %v1655_v60, %v1654_v38  ;;  %v1476_v62 = vld [vmem:[#allocation2 + $0x8c] sm:$0x3] }
 0x140   : > { %v9640_v3 = vrot.slane %v2590_v4, 10  ;;  %v1599_v15 = vrot.slane %v10351_v61, 6  ;;  %v2308_v29 = vrot.slane %v2171_v35, 5  ;;  %v2170_v38 = vld [vmem:[#allocation2 + $0x90] sm:$0xe]  ;;  %v9366_v35 = vrot.slane %v10770_v5, 9 }
 0x141   : > { %v2035_v11 = vpop.f32.mrf.mxu3 }
 0x142   : > { %v2707_v60 = vsel %vm10926_vm15, %v9640_v3, %v2706_v22 }
 0x143   : > { %v2460_v0 = vpop.f32.mrf.mxu0 }
 0x144   : > { %v2539_v45 = vadd.f32 %v2460_v0, %v2109_v19  ;;  %v2861_v53 = vpop.f32.mrf.mxu1  ;;  %v1749_v51 = vpop.f32.mrf.mxu2  ;;  %v2708_v19 = vrot.slane %v2706_v22, 4  ;;  %v2391_v0 = vpack.c.b16 %v2369_v54, %v2368_v28 }
 0x145   : > { %v1825_v48 = vadd.f32 %v1749_v51, %v11022_v43  ;;  %v1602_v51 = vrot.slane %v1476_v62, 6 }
 0x146   : > { %v11234_v31 = vadd.f32 %v2858_v36, %v2539_v45  ;;  %9591 = vmatmul.msk.bf16.gmra.mxu3 %vm1107_vm4, %v10264_v20  ;;  %v590_v36 = vsel %vm10515_vm12, %v9334_v10, %v589_v47  ;;  %v9494_v45 = vrot.slane %v1475_v59, 10  ;;  %v2710_v10 = vsel %vm10926_vm15, %v2708_v19, %v2709_v16 }
 0x147   : > { %9656 = vmatmul.msk.bf16.gmra.mxu1 %vm1107_vm4, %v2789_v50  ;;  %v2111_v33 = vadd.f32 %v2035_v11, %v1825_v48  ;;  %591 = vst [vmem:[#allocation2 + $0xb0] sm:$0x2] %v590_v36  ;;  %v1601_v11 = vrot.slane %v1599_v15, 4  ;;  %v9607_v47 = vrot.slane %v2170_v38, 9  ;;  %v2310_v48 = vrot.slane %v2308_v29, 4 }
 0x148   : > { %v2769_v3 = vunpack.c.l.b16 %v2710_v10  ;;  %v1600_v61 = vsel %vm10926_vm15, %v9494_v45, %v1599_v15  ;;  %v11261_v15 = vld [vmem:[#allocation2 + $0xa0] sm:$0xf]  ;;  %v2593_v10 = vld [vmem:[#allocation2 + $0xa4] sm:$0x3] }
 0x149   : > { %9510 = vmatmul.msk.bf16.gmra.mxu2 %vm1107_vm4, %v1676_v30  ;;  %v2038_v50 = vpop.f32.mrf.mxu3  ;;  %v2311_v30 = vrot.slane %v2172_v26, 5  ;;  %v1603_v19 = vsel %vm10926_vm15, %v1601_v11, %v1602_v51  ;;  %v2713_v26 = vrot.slane %v11261_v15, 6 }
 0x14a   : > { %v1657_v38 = vunpack.c.l.b16 %v1603_v19  ;;  %v1477_v19 = vld [vmem:[#allocation2 + $0x90] sm:$0xc] }
 0x14b   : > { %v2463_v43 = vpop.f32.mrf.mxu0 }
 0x14c   : > { %v2540_v20 = vadd.f32 %v2463_v43, %v2110_v57  ;;  %v2863_v4 = vpop.f32.mrf.mxu1  ;;  %v1752_v54 = vpop.f32.mrf.mxu2  ;;  %v2768_v57 = vunpack.c.l.b16 %v2707_v60  ;;  %v1656_v43 = vunpack.c.l.b16 %v1600_v61  ;;  %v2716_v61 = vrot.slane %v2593_v10, 6 }
 0x14d   : > { %v1826_v22 = vadd.f32 %v1752_v54, %v11035_v56  ;;  %v2312_v56 = vsel %vm10566_vm9, %v2310_v48, %v2311_v30 }
 0x14e   : > { %v11247_v28 = vadd.f32 %v2861_v53, %v2540_v20  ;;  %9623 = vmatmul.msk.bf16.gmra.mxu0 %vm1107_vm4, %v2391_v0  ;;  %v785_v5 = vld [vmem:[#allocation2 + $0xb0] sm:$0x2]  ;;  %v2309_v53 = vsel %vm10566_vm9, %v9607_v47, %v2308_v29  ;;  %v2790_v0 = vpack.c.b16 %v2769_v3, %v2768_v57  ;;  %v10265_v20 = vld [vmem:[#allocation2 + $0x9c] sm:$0xff]  ;;  %v2371_v54 = vunpack.c.l.b16 %v2312_v56 }
 0x14f   : > { %v2112_v16 = vadd.f32 %v2038_v50, %v1826_v22  ;;  %v786_v59 = vsel %vm10576_vm2, %v9366_v35, %v785_v5  ;;  %v9335_v50 = vrot.slane %v10830_v25, 10  ;;  %v2592_v29 = vld [vmem:[#allocation2 + $0x9c] sm:$0xc]  ;;  %v2370_v35 = vunpack.c.l.b16 %v2309_v53  ;;  %v592_v47 = vld [vmem:[#allocation2 + $0xbc] sm:$0x2]  ;;  %v200_v56 = vld [vmem:[%s10477_s25 + $0xe0] sm:$0xff] }
 0x150   : > { %787 = vst [vmem:[#allocation2 + $0xb0] sm:$0x2] %v786_v59  ;;  %v1677_v22 = vpack.c.b16 %v1657_v38, %v1656_v43  ;;  %v9641_v30 = vrot.slane %v2592_v29, 10  ;;  %v2715_v3 = vrot.slane %v2713_v26, 4  ;;  %v1478_v53 = vld [vmem:[#allocation2 + $0x98] sm:$0x3] }
 0x151   : > { %v2040_v62 = vpop.f32.mrf.mxu3  ;;  %v2392_v59 = vpack.c.b16 %v2371_v54, %v2370_v35  ;;  %v2175_v38 = vld [vmem:[#allocation2 + $0xa4] sm:$0x1]  ;;  %v9367_v35 = vrot.slane %v10830_v25, 9  ;;  %v232_v54 = vpack.c.bf16 %v200_v56, %v200_v56  ;;  %v11297_v56 = vld [vmem:[#allocation2 + $0xac] sm:$0xf] }
 0x153   : > { %v2465_v36 = vpop.f32.mrf.mxu0 }
 0x154   : > { %v2541_v60 = vadd.f32 %v2465_v36, %v2111_v33  ;;  %v2866_v45 = vpop.f32.mrf.mxu1  ;;  %v1754_v51 = vpop.f32.mrf.mxu2  ;;  %v10352_v33 = vld [vmem:[#allocation2 + $0x94] sm:$0xf]  ;;  %v2173_v36 = vld [vmem:[#allocation2 + $0x9c] sm:$0xe] }
 0x155   : > { %v1827_v48 = vadd.f32 %v1754_v51, %v11054_v55  ;;  %v1606_v57 = vrot.slane %v10352_v33, 6  ;;  %v2315_v55 = vrot.slane %v11261_v15, 5  ;;  %v1609_v51 = vrot.slane %v1478_v53, 6  ;;  %v496_v15 = vld [vmem:[#allocation2 + $0xc0] sm:$0x1] }
 0x156   : > { %v11265_v11 = vadd.f32 %v2863_v4, %v2541_v60  ;;  %9592 = vmatmul.msk.bf16.gmra.mxu3 %vm1107_vm4, %v10265_v20  ;;  %v593_v4 = vsel %vm10515_vm12, %v9335_v50, %v592_v47  ;;  %v2714_v60 = vsel %vm10926_vm15, %v9641_v30, %v2713_v26  ;;  %v9495_v20 = vrot.slane %v1477_v19, 10 }
 0x157   : > { %9657 = vmatmul.msk.bf16.gmra.mxu1 %vm1107_vm4, %v2790_v0  ;;  %v2113_v5 = vadd.f32 %v2040_v62, %v1827_v48  ;;  %594 = vst [vmem:[#allocation2 + $0xbc] sm:$0x2] %v593_v4  ;;  %v2717_v62 = vsel %vm10926_vm15, %v2715_v3, %v2716_v61  ;;  %v1608_v50 = vrot.slane %v1606_v57, 4  ;;  %v9608_v26 = vrot.slane %v2173_v36, 9  ;;  %v201_v4 = vld [vmem:[%s10477_s25 + $0xe8] sm:$0xff] }
 0x158   : > { %v2318_v30 = vrot.slane %v2175_v38, 5  ;;  %v2770_v33 = vunpack.c.l.b16 %v2714_v60  ;;  %v2771_v19 = vunpack.c.l.b16 %v2717_v62  ;;  %v497_v3 = vsel %vm10481_vm3, %v232_v54, %v496_v15  ;;  %v10266_v15 = vld [vmem:[#allocation2 + $0xa8] sm:$0xff] }
 0x159   : > { %9511 = vmatmul.msk.bf16.gmra.mxu2 %vm1107_vm4, %v1677_v22  ;;  %v2043_v43 = vpop.f32.mrf.mxu3  ;;  %v2317_v22 = vrot.slane %v2315_v55, 4  ;;  %v1607_v25 = vsel %vm10926_vm15, %v9495_v20, %v1606_v57  ;;  %v11291_v61 = vpack.c.bf16 %v201_v4, %v201_v4  ;;  %v341_v53 = vrot.slane %v232_v54, 7  ;;  %498 = vst [vmem:[#allocation2 + $0xc0] sm:$0x1] %v497_v3 }
 0x15a   : > { %v2791_v20 = vpack.c.b16 %v2771_v19, %v2770_v33 }
 0x15b   : > { %v2468_v0 = vpop.f32.mrf.mxu0  ;;  %v2319_v36 = vsel %vm10566_vm9, %v2317_v22, %v2318_v30  ;;  %v343_v38 = vrot.slane %v11291_v61, 7  ;;  %445 = vst.msk [vmem:[#allocation2 + $0xc0] sm:$0xe] %vm400_vm6, %v341_v53  ;;  %v9352_v22 = vrot.slane %v232_v54, 9 }
 0x15c   : > { %v2542_v29 = vadd.f32 %v2468_v0, %v2112_v16  ;;  %v2868_v10 = vpop.f32.mrf.mxu1  ;;  %v1757_v48 = vpop.f32.mrf.mxu2  ;;  %v342_v0 = vrot.slane %v341_v53, 4  ;;  %v2373_v3 = vunpack.c.l.b16 %v2319_v36  ;;  %v10353_v53 = vld [vmem:[#allocation2 + $0xa0] sm:$0xf] }
 0x15d   : > { %v1828_v16 = vadd.f32 %v1757_v48, %v11066_v23  ;;  %v2316_v23 = vsel %vm10566_vm9, %v9608_v26, %v2315_v55  ;;  %v2594_v48 = vld [vmem:[#allocation2 + $0xa8] sm:$0xc] }
 0x15e   : > { %v11280_v47 = vadd.f32 %v2866_v45, %v2542_v29  ;;  %9624 = vmatmul.msk.bf16.gmra.mxu0 %vm1107_vm4, %v2392_v59  ;;  %v1610_v45 = vsel %vm10926_vm15, %v1608_v50, %v1609_v51  ;;  %v1658_v29 = vunpack.c.l.b16 %v1607_v25  ;;  %v788_v50 = vld [vmem:[#allocation2 + $0xbc] sm:$0x2]  ;;  %v344_v26 = vsel %vm10503_vm10, %v342_v0, %v343_v38 }
 0x15f   : > { %v2114_v59 = vadd.f32 %v2043_v43, %v1828_v16  ;;  %v1659_v62 = vunpack.c.l.b16 %v1610_v45  ;;  %v2720_v43 = vrot.slane %v11297_v56, 6  ;;  %v789_v30 = vsel %vm10576_vm2, %v9367_v35, %v788_v50  ;;  %v2595_v16 = vld [vmem:[#allocation2 + $0xb0] sm:$0x3]  ;;  %446 = vst.msk [vmem:[#allocation2 + $0xc4] sm:$0xf] %vm402_vm11, %v344_v26 }
 0x160   : > { %v2372_v4 = vunpack.c.l.b16 %v2316_v23  ;;  %790 = vst [vmem:[#allocation2 + $0xbc] sm:$0x2] %v789_v30  ;;  %v9642_v45 = vrot.slane %v2594_v48, 10  ;;  %v693_v54 = vld [vmem:[#allocation2 + $0xc0] sm:$0x1]  ;;  %v1613_v0 = vrot.slane %v10353_v53, 6 }
 0x161   : > { %v2045_v60 = vpop.f32.mrf.mxu3  ;;  %v1678_v25 = vpack.c.b16 %v1659_v62, %v1658_v29  ;;  %v2722_v35 = vrot.slane %v2720_v43, 4  ;;  %v694_v50 = vsel %vm10534_vm14, %v9352_v22, %v693_v54  ;;  %v202_v23 = vld [vmem:[%s10477_s25 + $0xf0] sm:$0xff]  ;;  %v9336_v29 = vrot.slane %v11291_v61, 10  ;;  %v499_v62 = vld [vmem:[#allocation2 + $0xcc] sm:$0x1] }
 0x162   : > { %695 = vst [vmem:[#allocation2 + $0xc0] sm:$0x1] %v694_v50  ;;  %v2176_v26 = vld [vmem:[#allocation2 + $0xa8] sm:$0xe]  ;;  %v2721_v30 = vsel %vm10926_vm15, %v9642_v45, %v2720_v43  ;;  %v234_v22 = vpack.c.bf16 %v202_v23, %v202_v23  ;;  %v2178_v54 = vld [vmem:[#allocation2 + $0xb0] sm:$0x1] }
 0x163   : > { %v2470_v57 = vpop.f32.mrf.mxu0  ;;  %v345_v53 = vrot.slane %v343_v38, 4  ;;  %v9609_v45 = vrot.slane %v2176_v26, 9  ;;  %v2772_v23 = vunpack.c.l.b16 %v2721_v30  ;;  %v203_v38 = vld [vmem:[%s10477_s25 + $0xf8] sm:$0xff]  ;;  %v2598_v9 = vld [vmem:[#allocation2 + $0xc0] sm:$0xc] }
 0x164   : > { %v2543_v51 = vadd.f32 %v2470_v57, %v2113_v5  ;;  %v2871_v55 = vpop.f32.mrf.mxu1  ;;  %v1759_v19 = vpop.f32.mrf.mxu2  ;;  %v2723_v57 = vrot.slane %v2595_v16, 6 }
 0x165   : > { %v1829_v5 = vadd.f32 %v1759_v19, %v11085_v58  ;;  %v2393_v58 = vpack.c.b16 %v2373_v3, %v2372_v4  ;;  %v595_v19 = vld [vmem:[#allocation2 + $0xc8] sm:$0x2]  ;;  %v1615_v4 = vrot.slane %v1613_v0, 4  ;;  %447 = vst.msk [vmem:[#allocation2 + $0xc8] sm:$0x1] %vm404_vm1, %v345_v53 }
 0x166   : > { %v11307_v33 = vadd.f32 %v2868_v10, %v2543_v51  ;;  %9593 = vmatmul.msk.bf16.gmra.mxu3 %vm1107_vm4, %v10266_v15  ;;  %v1479_v10 = vld [vmem:[#allocation2 + $0x9c] sm:$0xc]  ;;  %v1480_v51 = vld [vmem:[#allocation2 + $0xa4] sm:$0x3] }
 0x167   : > { %9658 = vmatmul.msk.bf16.gmra.mxu1 %vm1107_vm4, %v2791_v20  ;;  %v2115_v36 = vadd.f32 %v2045_v60, %v1829_v5  ;;  %v2322_v20 = vrot.slane %v11297_v56, 5  ;;  %v9496_v16 = vrot.slane %v1479_v10, 10  ;;  %v2724_v56 = vsel %vm10926_vm15, %v2722_v35, %v2723_v57 }
 0x168   : > { %v1616_v3 = vrot.slane %v1480_v51, 6  ;;  %v2325_v57 = vrot.slane %v2178_v54, 5  ;;  %v2773_v51 = vunpack.c.l.b16 %v2724_v56 }
 0x169   : > { %9512 = vmatmul.msk.bf16.gmra.mxu2 %vm1107_vm4, %v1678_v25  ;;  %v2048_v15 = vpop.f32.mrf.mxu3  ;;  %v500_v25 = vsel %vm10481_vm3, %v234_v22, %v499_v62  ;;  %v2324_v10 = vrot.slane %v2322_v20, 4  ;;  %v11336_v62 = vpack.c.bf16 %v203_v38, %v203_v38 }
 0x16a   : > { %501 = vst [vmem:[#allocation2 + $0xcc] sm:$0x1] %v500_v25  ;;  %v10267_v25 = vld [vmem:[#allocation2 + $0xb4] sm:$0xff] }
 0x16b   : > { %v2473_v48 = vpop.f32.mrf.mxu0  ;;  %v348_v30 = vrot.slane %v11336_v62, 7 }
 0x16c   : > { %v2544_v60 = vadd.f32 %v2473_v48, %v2114_v59  ;;  %v2873_v5 = vpop.f32.mrf.mxu1  ;;  %v1762_v43 = vpop.f32.mrf.mxu2  ;;  %v596_v59 = vsel %vm10515_vm12, %v9336_v29, %v595_v19  ;;  %v346_v48 = vrot.slane %v234_v22, 7  ;;  %v9353_v19 = vrot.slane %v234_v22, 9 }
 0x16d   : > { %v1830_v35 = vadd.f32 %v1762_v43, %v11097_v2  ;;  %597 = vst [vmem:[#allocation2 + $0xc8] sm:$0x2] %v596_v59  ;;  %v2323_v2 = vsel %vm10566_vm9, %v9609_v45, %v2322_v20  ;;  %v2596_v20 = vld [vmem:[#allocation2 + $0xb4] sm:$0xc]  ;;  %v2597_v43 = vld [vmem:[#allocation2 + $0xbc] sm:$0x3] }
 0x16e   : > { %v11324_v50 = vadd.f32 %v2871_v55, %v2544_v60  ;;  %9625 = vmatmul.msk.bf16.gmra.mxu0 %vm1107_vm4, %v2393_v58  ;;  %v1614_v55 = vsel %vm10926_vm15, %v9496_v16, %v1613_v0  ;;  %v1617_v58 = vsel %vm10926_vm15, %v1615_v4, %v1616_v3  ;;  %v347_v29 = vrot.slane %v346_v48, 4  ;;  %448 = vst.msk [vmem:[#allocation2 + $0xcc] sm:$0xe] %vm400_vm6, %v346_v48  ;;  %v11344_v3 = vld [vmem:[#allocation2 + $0xb8] sm:$0xf] }
 0x16f   : > { %v2116_v26 = vadd.f32 %v2048_v15, %v1830_v35  ;;  %v2326_v0 = vsel %vm10566_vm9, %v2324_v10, %v2325_v57  ;;  %v2792_v16 = vpack.c.b16 %v2773_v51, %v2772_v23  ;;  %v1660_v56 = vunpack.c.l.b16 %v1614_v55  ;;  %v598_v55 = vld [vmem:[#allocation2 + $0xd4] sm:$0x2] }
 0x170   : > { %v1661_v4 = vunpack.c.l.b16 %v1617_v58  ;;  %v2727_v45 = vrot.slane %v11344_v3, 6  ;;  %v349_v22 = vsel %vm10503_vm10, %v347_v29, %v348_v30  ;;  %v9337_v59 = vrot.slane %v11336_v62, 10  ;;  %v10354_v58 = vld [vmem:[#allocation2 + $0xac] sm:$0xf] }
 0x171   : > { %v2050_v54 = vpop.f32.mrf.mxu3  ;;  %449 = vst.msk [vmem:[#allocation2 + $0xd0] sm:$0xf] %vm402_vm11, %v349_v22  ;;  %v696_v10 = vld [vmem:[#allocation2 + $0xcc] sm:$0x1]  ;;  %v9368_v35 = vrot.slane %v11291_v61, 9  ;;  %v2375_v51 = vunpack.c.l.b16 %v2326_v0  ;;  %v1620_v48 = vrot.slane %v10354_v58, 6 }
 0x172   : > { %v697_v38 = vsel %vm10534_vm14, %v9353_v19, %v696_v10  ;;  %v1679_v29 = vpack.c.b16 %v1661_v4, %v1660_v56  ;;  %v2729_v61 = vrot.slane %v2727_v45, 4  ;;  %v599_v0 = vsel %vm10515_vm12, %v9337_v59, %v598_v55  ;;  %v1482_v22 = vld [vmem:[#allocation2 + $0xb0] sm:$0x3]  ;;  %v2181_v59 = vld [vmem:[#allocation2 + $0xbc] sm:$0x1] }
 0x173   : > { %v2475_v60 = vpop.f32.mrf.mxu0  ;;  %698 = vst [vmem:[#allocation2 + $0xcc] sm:$0x1] %v697_v38  ;;  %vm4396_vm10 = vsmask.f32 4368 }
 0x174   : > { %v2545_v15 = vadd.f32 %v2475_v60, %v2115_v36  ;;  %v2876_v53 = vpop.f32.mrf.mxu1  ;;  %v1764_v23 = vpop.f32.mrf.mxu2  ;;  %v2374_v36 = vunpack.c.l.b16 %v2323_v2  ;;  %v9643_v60 = vrot.slane %v2596_v20, 10  ;;  %v791_v2 = vld [vmem:[#allocation2 + $0xc8] sm:$0x2]  ;;  %600 = vst [vmem:[#allocation2 + $0xd4] sm:$0x2] %v599_v0  ;;  %vm12241_vm5 = vmor %vm649_vm7, %vm4396_vm10 }
 0x175   : > { %v1831_v24 = vadd.f32 %v1764_v23, %v11116_v14  ;;  %v792_v10 = vsel %vm10576_vm2, %v9368_v35, %v791_v2  ;;  %v1622_v23 = vrot.slane %v1620_v48, 4  ;;  %vm14940_vm7 = vsmask.f32 7938 }
 0x176   : > { %v11352_v57 = vadd.f32 %v2873_v5, %v2545_v15  ;;  %9594 = vmatmul.msk.bf16.gmra.mxu3 %vm1107_vm4, %v10267_v25  ;;  %v2730_v5 = vrot.slane %v2597_v43, 6  ;;  %v1481_v15 = vld [vmem:[#allocation2 + $0xa8] sm:$0xc]  ;;  %v2394_v14 = vpack.c.b16 %v2375_v51, %v2374_v36  ;;  %793 = vst [vmem:[#allocation2 + $0xc8] sm:$0x2] %v792_v10  ;;  %v2728_v20 = vsel %vm10926_vm15, %v9643_v60, %v2727_v45 }
 0x177   : > { %9659 = vmatmul.msk.bf16.gmra.mxu1 %vm1107_vm4, %v2792_v16  ;;  %v2117_v19 = vadd.f32 %v2050_v54, %v1831_v24  ;;  %v2329_v16 = vrot.slane %v11344_v3, 5  ;;  %v2179_v25 = vld [vmem:[#allocation2 + $0xb4] sm:$0xe]  ;;  %v9497_v34 = vrot.slane %v1481_v15, 10  ;;  %v1623_v36 = vrot.slane %v1482_v22, 6 }
 0x178   : > { %v2731_v35 = vsel %vm10926_vm15, %v2729_v61, %v2730_v5  ;;  %v350_v3 = vrot.slane %v348_v30, 4  ;;  %v9610_v55 = vrot.slane %v2179_v25, 9  ;;  %v9369_v45 = vrot.slane %v11336_v62, 9 }
 0x179   : > { %9513 = vmatmul.msk.bf16.gmra.mxu2 %vm1107_vm4, %v1679_v29  ;;  %v2053_v4 = vpop.f32.mrf.mxu3  ;;  %v2331_v58 = vrot.slane %v2329_v16, 4  ;;  %v2332_v24 = vrot.slane %v2181_v59, 5  ;;  %v2774_v29 = vunpack.c.l.b16 %v2728_v20  ;;  %v2775_v60 = vunpack.c.l.b16 %v2731_v35  ;;  %v10355_v35 = vld [vmem:[#allocation2 + $0xb8] sm:$0xf] }
 0x17a   : > { %450 = vst.msk [vmem:[#allocation2 + $0xd4] sm:$0x1] %vm404_vm1, %v350_v3  ;;  %v1621_v61 = vsel %vm10926_vm15, %v9497_v34, %v1620_v48  ;;  %v1624_v30 = vsel %vm10926_vm15, %v1622_v23, %v1623_v36  ;;  %v2330_v62 = vsel %vm10566_vm9, %v9610_v55, %v2329_v16  ;;  %v1627_v23 = vrot.slane %v10355_v35, 6  ;;  %v11409_v35 = vld [vmem:[#allocation2 + $0x34] sm:$0xf] }
 0x17b   : > { %v2478_v56 = vpop.f32.mrf.mxu0  ;;  %v2333_v0 = vsel %vm10566_vm9, %v2331_v58, %v2332_v24  ;;  %v2793_v22 = vpack.c.b16 %v2775_v60, %v2774_v29  ;;  %v1662_v10 = vunpack.c.l.b16 %v1621_v61  ;;  %v1663_v48 = vunpack.c.l.b16 %v1624_v30  ;;  %v1483_v58 = vld [vmem:[#allocation2 + $0xb4] sm:$0xc]  ;;  %v2182_v30 = vld [vmem:[#allocation2 + $0xc0] sm:$0xe] }
 0x17c   : > { %v2546_v43 = vadd.f32 %v2478_v56, %v2116_v26  ;;  %v11367_v54 = vpop.f32.mrf.mxu1  ;;  %v1767_v38 = vpop.f32.mrf.mxu2  ;;  %v2376_v59 = vunpack.c.l.b16 %v2330_v62  ;;  %v2377_v16 = vunpack.c.l.b16 %v2333_v0 }
 0x17d   : > { %v1832_v26 = vadd.f32 %v1767_v38, %v11128_v32  ;;  %v2599_v34 = vld [vmem:[#allocation2 + $0xc8] sm:$0x3]  ;;  %v1680_v3 = vpack.c.b16 %v1663_v48, %v1662_v10  ;;  %v9644_v38 = vrot.slane %v2598_v9, 10 }
 0x17e   : > { %v11371_v51 = vadd.f32 %v2876_v53, %v2546_v43  ;;  %9626 = vmatmul.msk.bf16.gmra.mxu0 %vm1107_vm4, %v2394_v14  ;;  %v794_v53 = vld [vmem:[#allocation2 + $0xd4] sm:$0x2]  ;;  %v2183_v14 = vld [vmem:[#allocation2 + $0xc4] sm:$0xf]  ;;  %v2737_v55 = vrot.slane %v2599_v34, 6  ;;  %v2395_v24 = vpack.c.b16 %v2377_v16, %v2376_v59 }
 0x17f   : > { %v2118_v5 = vadd.f32 %v2053_v4, %v1832_v26  ;;  %v795_v15 = vsel %vm10576_vm2, %v9369_v45, %v794_v53  ;;  %v10268_v4 = vld [vmem:[#allocation2 + $0xc0] sm:$0xff]  ;;  %v2734_v20 = vrot.slane %v2183_v14, 6  ;;  %v1484_v26 = vld [vmem:[#allocation2 + $0xbc] sm:$0x3]  ;;  %v2336_v29 = vrot.slane %v2183_v14, 5 }
 0x180   : > { %796 = vst [vmem:[#allocation2 + $0xd4] sm:$0x2] %v795_v15  ;;  %v9498_v53 = vrot.slane %v1483_v58, 10  ;;  %v9611_v14 = vrot.slane %v2182_v30, 9  ;;  %v2186_v58 = vld [vmem:[#allocation2 + $0xd0] sm:$0xf] }
 0x181   : > { %v2055_v2 = vpop.f32.mrf.mxu3  ;;  %v2735_v0 = vsel %vm10926_vm15, %v9644_v38, %v2734_v20  ;;  %v2600_v30 = vld [vmem:[#allocation2 + $0xcc] sm:$0xc] }
 0x182   : > { %v2776_v34 = vunpack.c.l.b16 %v2735_v0  ;;  %v1628_v59 = vsel %vm10926_vm15, %v9498_v53, %v1627_v23  ;;  %v3256_v0 = vld [vmem:[#allocation2 + $0x38] sm:$0x1] }
 0x183   : > { %v2480_v32 = vpop.f32.mrf.mxu0 }
 0x184   : > { %v11387_v56 = vadd.f32 %v2480_v32, %v2117_v19  ;;  %v2881_v25 = vpop.f32.mrf.mxu1  ;;  %v1769_v43 = vpop.f32.mrf.mxu2  ;;  %v2736_v19 = vrot.slane %v2734_v20, 4  ;;  %v2184_v32 = vld [vmem:[#allocation2 + $0xc8] sm:$0x1] }
 0x185   : > { %v1833_v36 = vadd.f32 %v1769_v43, %v11147_v49  ;;  %v1629_v49 = vrot.slane %v1627_v23, 4 }
 0x186   : > { %9595 = vmatmul.msk.bf16.gmra.mxu3 %vm1107_vm4, %v10268_v4  ;;  %v2338_v4 = vrot.slane %v2336_v29, 4 }
 0x187   : > { %9660 = vmatmul.msk.bf16.gmra.mxu1 %vm1107_vm4, %v2793_v22  ;;  %v2119_v45 = vadd.f32 %v2055_v2, %v1833_v36  ;;  %v2738_v2 = vsel %vm10926_vm15, %v2736_v19, %v2737_v55  ;;  %v1630_v22 = vrot.slane %v1484_v26, 6  ;;  %v1664_v19 = vunpack.c.l.b16 %v1628_v59 }
 0x188   : > { %v2777_v43 = vunpack.c.l.b16 %v2738_v2  ;;  %v2343_v59 = vrot.slane %v2186_v58, 5 }
 0x189   : > { %9514 = vmatmul.msk.bf16.gmra.mxu2 %vm1107_vm4, %v1680_v3  ;;  %v2058_v61 = vpop.f32.mrf.mxu3  ;;  %v1631_v20 = vsel %vm10926_vm15, %v1629_v49, %v1630_v22 }
 0x18a   : > { %v2794_v38 = vpack.c.b16 %v2777_v43, %v2776_v34  ;;  %v1665_v55 = vunpack.c.l.b16 %v1631_v20  ;;  %v3355_v34 = vrot.slane %v3256_v0, 5 }
 0x18b   : > { %v2483_v60 = vpop.f32.mrf.mxu0 }
 0x18c   : > { %v2548_v15 = vadd.f32 %v2483_v60, %v2118_v5  ;;  %v11393_v62 = vpop.f32.mrf.mxu1  ;;  %v1772_v48 = vpop.f32.mrf.mxu2  ;;  %v2339_v5 = vrot.slane %v2184_v32, 5  ;;  %v2741_v60 = vrot.slane %v2186_v58, 6  ;;  %v3254_v32 = vld [vmem:[#allocation2 + $0x30] sm:$0xe]  ;;  %v1681_v22 = vpack.c.b16 %v1665_v55, %v1664_v19 }
 0x18d   : > { %v1834_v9 = vadd.f32 %v1772_v48, %v11158_v52 }
 0x18e   : > { %v11399_v10 = vadd.f32 %v2881_v25, %v2548_v15  ;;  %9627 = vmatmul.msk.bf16.gmra.mxu0 %vm1107_vm4, %v2395_v24  ;;  %v2337_v25 = vsel %vm10566_vm9, %v9611_v14, %v2336_v29  ;;  %v2340_v52 = vsel %vm10566_vm9, %v2338_v4, %v2339_v5  ;;  %v10269_v24 = vld [vmem:[#allocation2 + $0xcc] sm:$0xff]  ;;  %v2601_v29 = vld [vmem:[#allocation2 + $0xd4] sm:$0x3]  ;;  %v2743_v48 = vrot.slane %v2741_v60, 4 }
 0x18f   : > { %v2120_v16 = vadd.f32 %v2058_v61, %v1834_v9  ;;  %v3352_v61 = vrot.slane %v11409_v35, 5  ;;  %v2378_v49 = vunpack.c.l.b16 %v2337_v25  ;;  %v2379_v15 = vunpack.c.l.b16 %v2340_v52 }
 0x190   : > { %v2744_v14 = vrot.slane %v2601_v29, 6  ;;  %v9744_v9 = vrot.slane %v3254_v32, 9  ;;  %v2345_v29 = vrot.slane %v2343_v59, 4 }
 0x191   : > { %v2060_v3 = vpop.f32.mrf.mxu3  ;;  %v3354_v5 = vrot.slane %v3352_v61, 4  ;;  %v2396_v43 = vpack.c.b16 %v2379_v15, %v2378_v49 }
 0x192   : > { %v3353_v55 = vsel %vm10566_vm9, %v9744_v9, %v3352_v61 }
 0x193   : > { %v2485_v36 = vpop.f32.mrf.mxu0  ;;  %v3356_v58 = vsel %vm10566_vm9, %v3354_v5, %v3355_v34  ;;  %v3464_v32 = vunpack.c.l.b16 %v3353_v55 }
 0x194   : > { %v11413_v26 = vadd.f32 %v2485_v36, %v2119_v45  ;;  %v2886_v23 = vpop.f32.mrf.mxu1  ;;  %v1774_v53 = vpop.f32.mrf.mxu2  ;;  %v9645_v45 = vrot.slane %v2600_v30, 10  ;;  %v2185_v36 = vld [vmem:[#allocation2 + $0xcc] sm:$0xe]  ;;  %v3465_v0 = vunpack.c.l.b16 %v3356_v58 }
 0x195   : > { %v1835_v2 = vadd.f32 %v1774_v53, %v11177_v37  ;;  %v9612_v30 = vrot.slane %v2185_v36, 9  ;;  %v3257_v36 = vld [vmem:[#allocation2 + $0x3c] sm:$0xe] }
 0x196   : > { %9596 = vmatmul.msk.bf16.gmra.mxu3 %vm1107_vm4, %v10269_v24  ;;  %v2742_v19 = vsel %vm10926_vm15, %v9645_v45, %v2741_v60  ;;  %v3496_v5 = vpack.c.b16 %v3465_v0, %v3464_v32 }
 0x197   : > { %9661 = vmatmul.msk.bf16.gmra.mxu1 %vm1107_vm4, %v2794_v38  ;;  %v2121_v4 = vadd.f32 %v2060_v3, %v1835_v2  ;;  %v2187_v38 = vld [vmem:[#allocation2 + $0xd4] sm:$0x1]  ;;  %v2745_v3 = vsel %vm10926_vm15, %v2743_v48, %v2744_v14  ;;  %v2778_v60 = vunpack.c.l.b16 %v2742_v19 }
 0x198   : > { %v2346_v49 = vrot.slane %v2187_v38, 5  ;;  %v2779_v15 = vunpack.c.l.b16 %v2745_v3  ;;  %v9745_v3 = vrot.slane %v3257_v36, 9 }
 0x199   : > { %9515 = vmatmul.msk.bf16.gmra.mxu2 %vm1107_vm4, %v1681_v22  ;;  %v2063_v25 = vpop.f32.mrf.mxu3  ;;  %v11434_v22 = vld [vmem:[#allocation2 + $0x40] sm:$0xf] }
 0x19a   : > { %v2347_v48 = vsel %vm10566_vm9, %v2345_v29, %v2346_v49  ;;  %v2795_v14 = vpack.c.b16 %v2779_v15, %v2778_v60  ;;  %v3359_v34 = vrot.slane %v11434_v22, 5  ;;  %v3750_v29 = vrot.slane %v11409_v35, 6  ;;  %v3685_v60 = vld [vmem:[#allocation2 + $0x38] sm:$0x3] }
 0x19b   : > { %v2488_v20 = vpop.f32.mrf.mxu0 }
 0x19c   : > { %v2550_v37 = vadd.f32 %v2488_v20, %v2120_v16  ;;  %v11420_v52 = vpop.f32.mrf.mxu1  ;;  %v1777_v16 = vpop.f32.mrf.mxu2  ;;  %v3360_v15 = vsel %vm10566_vm9, %v9745_v3, %v3359_v34  ;;  %v3752_v35 = vrot.slane %v3750_v29, 4 }
 0x19d   : > { %v1836_v53 = vadd.f32 %v1777_v16, %v11188_v41 }
 0x19e   : > { %v11430_v24 = vadd.f32 %v2886_v23, %v2550_v37  ;;  %9628 = vmatmul.msk.bf16.gmra.mxu0 %vm1107_vm4, %v2396_v43  ;;  %v2344_v23 = vsel %vm10566_vm9, %v9612_v30, %v2343_v59  ;;  %v3259_v37 = vld [vmem:[#allocation2 + $0x44] sm:$0x1]  ;;  %v10270_v59 = vld [vmem:[#allocation2 + $0x30] sm:$0xff] }
 0x19f   : > { %v2122_v2 = vadd.f32 %v2063_v25, %v1836_v53  ;;  %v2380_v20 = vunpack.c.l.b16 %v2344_v23  ;;  %v2381_v25 = vunpack.c.l.b16 %v2347_v48  ;;  %v3362_v55 = vrot.slane %v3259_v37, 5 }
 0x1a0   : > { %v3466_v48 = vunpack.c.l.b16 %v3360_v15 }
 0x1a1   : > { %v2065_v45 = vpop.f32.mrf.mxu3  ;;  %v2397_v58 = vpack.c.b16 %v2381_v25, %v2380_v20 }
 0x1a3   : > { %v2490_v61 = vpop.f32.mrf.mxu0 }
 0x1a4   : > { %v11440_v9 = vadd.f32 %v2490_v61, %v2121_v4  ;;  %v2891_v41 = vpop.f32.mrf.mxu1  ;;  %v1779_v43 = vpop.f32.mrf.mxu2  ;;  %v3361_v4 = vrot.slane %v3359_v34, 4 }
 0x1a5   : > { %v1837_v38 = vadd.f32 %v1779_v43, %v11206_v39  ;;  %v3684_v39 = vld [vmem:[#allocation2 + $0x30] sm:$0xc]  ;;  %v11458_v43 = vld [vmem:[#allocation2 + $0x4c] sm:$0xf] }
 0x1a6   : > { %9761 = vmatmul.msk.bf16.vlgmr.msra.gmra.mxu3 %vm1107_vm4, %v3496_v5  ;;  %v3363_v32 = vsel %vm10566_vm9, %v3361_v4, %v3362_v55  ;;  %v9777_v23 = vrot.slane %v3684_v39, 10  ;;  %v3260_v55 = vld [vmem:[#allocation2 + $0x48] sm:$0xe] }
 0x1a7   : > { %9662 = vmatmul.msk.bf16.gmra.mxu1 %vm1107_vm4, %v2795_v14  ;;  %v2123_v19 = vadd.f32 %v2065_v45, %v1837_v38  ;;  %v3467_v14 = vunpack.c.l.b16 %v3363_v32  ;;  %v3366_v38 = vrot.slane %v11458_v43, 5 }
 0x1a8   : > { %v3751_v25 = vsel %vm10926_vm15, %v9777_v23, %v3750_v29 }
 0x1a9   : > { %9728 = vmatmul.msk.bf16.vlgmr.msra.gmra.mxu2 %vm1107_vm4, %v10270_v59  ;;  %v2068_v30 = vpop.f32.mrf.mxu3  ;;  %v3862_v3 = vunpack.c.l.b16 %v3751_v25  ;;  %v3368_v39 = vrot.slane %v3366_v38, 4 }
 0x1ab   : > { %v2493_v16 = vpop.f32.mrf.mxu0 }
 0x1ac   : > { %v2552_v53 = vadd.f32 %v2493_v16, %v2122_v2  ;;  %v11448_v49 = vpop.f32.mrf.mxu1  ;;  %v1782_v61 = vpop.f32.mrf.mxu2  ;;  %v3753_v2 = vrot.slane %v3685_v60, 6 }
 0x1ad   : > { %v1838_v45 = vadd.f32 %v1782_v61, %v10952_v12  ;;  %v3497_v12 = vpack.c.b16 %v3467_v14, %v3466_v48  ;;  %v3757_v61 = vrot.slane %v11434_v22, 6 }
 0x1ae   : > { %v11454_v0 = vadd.f32 %v2891_v41, %v2552_v53  ;;  %9629 = vmatmul.msk.bf16.gmra.mxu0 %vm1107_vm4, %v2397_v58  ;;  %v3754_v41 = vsel %vm10926_vm15, %v3752_v35, %v3753_v2  ;;  %v3262_v58 = vld [vmem:[#allocation2 + $0x50] sm:$0x1]  ;;  %v9746_v53 = vrot.slane %v3260_v55, 9  ;;  %v3686_v35 = vld [vmem:[#allocation2 + $0x3c] sm:$0xc] }
 0x1af   : > { %v2124_v5 = vadd.f32 %v2068_v30, %v1838_v45  ;;  %v3863_v4 = vunpack.c.l.b16 %v3754_v41  ;;  %v10271_v30 = vld [vmem:[#allocation2 + $0x3c] sm:$0xff]  ;;  %v3369_v60 = vrot.slane %v3262_v58, 5  ;;  %v3687_v2 = vld [vmem:[#allocation2 + $0x44] sm:$0x3]  ;;  %v9778_v25 = vrot.slane %v3686_v35, 10 }
 0x1b0   : > { %v3759_v22 = vrot.slane %v3757_v61, 4 }
 0x1b1   : > { %v2070_v34 = vpop.f32.mrf.mxu3  ;;  %v3370_v48 = vsel %vm10566_vm9, %v3368_v39, %v3369_v60  ;;  %v3758_v55 = vsel %vm10926_vm15, %v9778_v25, %v3757_v61 }
 0x1b2   : > { %v3864_v39 = vunpack.c.l.b16 %v3758_v55 }
 0x1b3   : > { %v2495_v20 = vpop.f32.mrf.mxu0 }
 0x1b4   : > { %v11464_v36 = vadd.f32 %v2495_v20, %v2123_v19  ;;  %v2896_v37 = vpop.f32.mrf.mxu1  ;;  %v1784_v59 = vpop.f32.mrf.mxu2  ;;  %v3894_v19 = vpack.c.b16 %v3863_v4, %v3862_v3  ;;  %v11481_v3 = vld [vmem:[#allocation2 + $0x58] sm:$0xf] }
 0x1b5   : > { %v1839_v16 = vadd.f32 %v1784_v59, %v10963_v44  ;;  %v3367_v44 = vsel %vm10566_vm9, %v9746_v53, %v3366_v38 }
 0x1b6   : > { %9762 = vmatmul.msk.bf16.gmra.mxu3 %vm1107_vm4, %v3497_v12  ;;  %v3468_v41 = vunpack.c.l.b16 %v3367_v44  ;;  %v3469_v12 = vunpack.c.l.b16 %v3370_v48 }
 0x1b7   : > { %v2125_v29 = vadd.f32 %v2070_v34, %v1839_v16 }
 0x1b8   : > { %v3498_v16 = vpack.c.b16 %v3469_v12, %v3468_v41 }
 0x1b9   : > { %9729 = vmatmul.msk.bf16.gmra.mxu2 %vm1107_vm4, %v10271_v30  ;;  %v2073_v32 = vpop.f32.mrf.mxu3 }
 0x1bb   : > { %v2498_v15 = vpop.f32.mrf.mxu0 }
 0x1bc   : > { %v2554_v45 = vadd.f32 %v2498_v15, %v2124_v5  ;;  %v11471_v23 = vpop.f32.mrf.mxu1  ;;  %v1787_v20 = vpop.f32.mrf.mxu2  ;;  %v3760_v5 = vrot.slane %v3687_v2, 6  ;;  %v3265_v15 = vld [vmem:[#allocation2 + $0x5c] sm:$0x1] }
 0x1bd   : > { %v1840_v34 = vadd.f32 %v1787_v20, %v10979_v21  ;;  %v3373_v21 = vrot.slane %v11481_v3, 5  ;;  %v3376_v44 = vrot.slane %v3265_v15, 5 }
 0x1be   : > { %v11477_v14 = vadd.f32 %v2896_v37, %v2554_v45  ;;  %9794 = vmatmul.msk.bf16.vlgmr.msra.gmra.mxu0 %vm1107_vm4, %v3894_v19  ;;  %v3761_v37 = vsel %vm10926_vm15, %v3759_v22, %v3760_v5  ;;  %v3263_v19 = vld [vmem:[#allocation2 + $0x54] sm:$0xe]  ;;  %v10272_v45 = vld [vmem:[#allocation2 + $0x48] sm:$0xff]  ;;  %v3689_v5 = vld [vmem:[#allocation2 + $0x50] sm:$0x3] }
 0x1bf   : > { %v2126_v59 = vadd.f32 %v2073_v32, %v1840_v34  ;;  %v3865_v60 = vunpack.c.l.b16 %v3761_v37  ;;  %v9747_v35 = vrot.slane %v3263_v19, 9  ;;  %v3375_v2 = vrot.slane %v3373_v21, 4  ;;  %v3688_v22 = vld [vmem:[#allocation2 + $0x48] sm:$0xc] }
 0x1c0   : > { %v3764_v34 = vrot.slane %v11458_v43, 6  ;;  %v9779_v55 = vrot.slane %v3688_v22, 10 }
 0x1c1   : > { %v2075_v38 = vpop.f32.mrf.mxu3  ;;  %v3377_v41 = vsel %vm10566_vm9, %v3375_v2, %v3376_v44 }
 0x1c2   : > { %v3766_v37 = vrot.slane %v3764_v34, 4 }
 0x1c3   : > { %v2500_v4 = vpop.f32.mrf.mxu0 }
 0x1c4   : > { %v11487_v58 = vadd.f32 %v2500_v4, %v2125_v29  ;;  %v1789_v30 = vpop.f32.mrf.mxu2  ;;  %v2901_v53 = vpop.f32.mrf.mxu1  ;;  %v3895_v29 = vpack.c.b16 %v3865_v60, %v3864_v39  ;;  %v11504_v60 = vld [vmem:[#allocation2 + $0x64] sm:$0xf] }
 0x1c5   : > { %v1841_v32 = vadd.f32 %v1789_v30, %v10994_v6  ;;  %v3374_v6 = vsel %vm10566_vm9, %v9747_v35, %v3373_v21  ;;  %v3471_v30 = vunpack.c.l.b16 %v3377_v41 }
 0x1c6   : > { %9763 = vmatmul.msk.bf16.gmra.mxu3 %vm1107_vm4, %v3498_v16  ;;  %v3767_v16 = vrot.slane %v3689_v5, 6 }
 0x1c7   : > { %v2127_v61 = vadd.f32 %v2075_v38, %v1841_v32 }
 0x1c8   : > { %v3768_v15 = vsel %vm10926_vm15, %v3766_v37, %v3767_v16  ;;  %v3690_v16 = vld [vmem:[#allocation2 + $0x54] sm:$0xc] }
 0x1c9   : > { %9730 = vmatmul.msk.bf16.gmra.mxu2 %vm1107_vm4, %v10272_v45  ;;  %v2078_v20 = vpop.f32.mrf.mxu3  ;;  %v3380_v45 = vrot.slane %v11504_v60, 5  ;;  %v3867_v44 = vunpack.c.l.b16 %v3768_v15  ;;  %v9780_v15 = vrot.slane %v3690_v16, 10 }
 0x1cb   : > { %v2503_v48 = vpop.f32.mrf.mxu0  ;;  %v3382_v5 = vrot.slane %v3380_v45, 4 }
 0x1cc   : > { %v2556_v25 = vadd.f32 %v2503_v48, %v2126_v59  ;;  %v1792_v4 = vpop.f32.mrf.mxu2  ;;  %v11502_v43 = vpop.f32.mrf.mxu1  ;;  %v3470_v59 = vunpack.c.l.b16 %v3374_v6  ;;  %v3268_v48 = vld [vmem:[#allocation2 + $0x68] sm:$0x1] }
 0x1cd   : > { %v1842_v38 = vadd.f32 %v1792_v4, %v11010_v40  ;;  %v3383_v6 = vrot.slane %v3268_v48, 5 }
 0x1ce   : > { %v11498_v12 = vadd.f32 %v2901_v53, %v2556_v25  ;;  %9795 = vmatmul.msk.bf16.gmra.mxu0 %vm1107_vm4, %v3895_v29  ;;  %v3765_v53 = vsel %vm10926_vm15, %v9779_v55, %v3764_v34  ;;  %v3499_v40 = vpack.c.b16 %v3471_v30, %v3470_v59  ;;  %v3266_v29 = vld [vmem:[#allocation2 + $0x60] sm:$0xe]  ;;  %v10273_v25 = vld [vmem:[#allocation2 + $0x54] sm:$0xff]  ;;  %v3771_v55 = vrot.slane %v11481_v3, 6  ;;  %v3691_v59 = vld [vmem:[#allocation2 + $0x5c] sm:$0x3] }
 0x1cf   : > { %v2128_v39 = vadd.f32 %v2078_v20, %v1842_v38  ;;  %v3866_v2 = vunpack.c.l.b16 %v3765_v53  ;;  %v9748_v34 = vrot.slane %v3266_v29, 9  ;;  %v3384_v30 = vsel %vm10566_vm9, %v3382_v5, %v3383_v6 }
 0x1d0   : > { %v3772_v48 = vsel %vm10926_vm15, %v9780_v15, %v3771_v55 }
 0x1d1   : > { %v2080_v19 = vpop.f32.mrf.mxu3  ;;  %v3868_v6 = vunpack.c.l.b16 %v3772_v48 }
 0x1d3   : > { %v2505_v21 = vpop.f32.mrf.mxu0 }
 0x1d4   : > { %v11510_v32 = vadd.f32 %v2505_v21, %v2127_v61  ;;  %v1794_v35 = vpop.f32.mrf.mxu2  ;;  %v2906_v41 = vpop.f32.mrf.mxu1  ;;  %v3896_v61 = vpack.c.b16 %v3867_v44, %v3866_v2  ;;  %v11525_v44 = vld [vmem:[#allocation2 + $0x70] sm:$0xf] }
 0x1d5   : > { %v1843_v20 = vadd.f32 %v1794_v35, %v11025_v27  ;;  %v3381_v27 = vsel %vm10566_vm9, %v9748_v34, %v3380_v45  ;;  %v3774_v35 = vrot.slane %v3691_v59, 6 }
 0x1d6   : > { %9764 = vmatmul.msk.bf16.gmra.mxu3 %vm1107_vm4, %v3499_v40  ;;  %v3773_v40 = vrot.slane %v3771_v55, 4  ;;  %v3472_v3 = vunpack.c.l.b16 %v3381_v27 }
 0x1d7   : > { %v2129_v22 = vadd.f32 %v2080_v19, %v1843_v20 }
 0x1d8   : > { %v3775_v20 = vsel %vm10926_vm15, %v3773_v40, %v3774_v35  ;;  %v3692_v40 = vld [vmem:[#allocation2 + $0x60] sm:$0xc]  ;;  %v3693_v35 = vld [vmem:[#allocation2 + $0x68] sm:$0x3] }
 0x1d9   : > { %9731 = vmatmul.msk.bf16.gmra.mxu2 %vm1107_vm4, %v10273_v25  ;;  %v2083_v38 = vpop.f32.mrf.mxu3 }
 0x1db   : > { %v2508_v4 = vpop.f32.mrf.mxu0 }
 0x1dc   : > { %v2558_v37 = vadd.f32 %v2508_v4, %v2128_v39  ;;  %v1797_v19 = vpop.f32.mrf.mxu2  ;;  %v3473_v39 = vunpack.c.l.b16 %v3384_v30  ;;  %v3271_v4 = vld [vmem:[#allocation2 + $0x74] sm:$0x1] }
 0x1dd   : > { %v1844_v53 = vadd.f32 %v1797_v19, %v11041_v17  ;;  %v3387_v17 = vrot.slane %v11525_v44, 5  ;;  %v3390_v27 = vrot.slane %v3271_v4, 5 }
 0x1de   : > { %v11521_v21 = vadd.f32 %v2906_v41, %v2558_v37  ;;  %9796 = vmatmul.msk.bf16.gmra.mxu0 %vm1107_vm4, %v3896_v61  ;;  %v3500_v34 = vpack.c.b16 %v3473_v39, %v3472_v3  ;;  %v3869_v41 = vunpack.c.l.b16 %v3775_v20  ;;  %v3269_v61 = vld [vmem:[#allocation2 + $0x6c] sm:$0xe]  ;;  %v10274_v37 = vld [vmem:[#allocation2 + $0x60] sm:$0xff]  ;;  %v3781_v20 = vrot.slane %v3693_v35, 6 }
 0x1df   : > { %v2130_v2 = vadd.f32 %v2083_v38, %v1844_v53  ;;  %v9749_v55 = vrot.slane %v3269_v61, 9  ;;  %v3389_v59 = vrot.slane %v3387_v17, 4  ;;  %v3778_v53 = vrot.slane %v11504_v60, 6 }
 0x1e0   : > { %v3897_v30 = vpack.c.b16 %v3869_v41, %v3868_v6 }
 0x1e1   : > { %v2085_v45 = vpop.f32.mrf.mxu3  ;;  %v3391_v3 = vsel %vm10566_vm9, %v3389_v59, %v3390_v27  ;;  %v3780_v48 = vrot.slane %v3778_v53, 4  ;;  %v3272_v27 = vld [vmem:[#allocation2 + $0x78] sm:$0xe] }
 0x1e2   : > { %v3475_v60 = vunpack.c.l.b16 %v3391_v3 }
 0x1e3   : > { %v2510_v29 = vpop.f32.mrf.mxu0  ;;  %v3782_v61 = vsel %vm10926_vm15, %v3780_v48, %v3781_v20  ;;  %v3694_v48 = vld [vmem:[#allocation2 + $0x6c] sm:$0xc]  ;;  %v3695_v20 = vld [vmem:[#allocation2 + $0x74] sm:$0x3] }
 0x1e4   : > { %v11531_v25 = vadd.f32 %v2510_v29, %v2129_v22  ;;  %v1799_v5 = vpop.f32.mrf.mxu2  ;;  %v3871_v59 = vunpack.c.l.b16 %v3782_v61 }
 0x1e5   : > { %v1845_v38 = vadd.f32 %v1799_v5, %v11056_v63  ;;  %v3388_v63 = vsel %vm10566_vm9, %v9749_v55, %v3387_v17  ;;  %v11546_v5 = vld [vmem:[#allocation2 + $0x7c] sm:$0xf] }
 0x1e6   : > { %9765 = vmatmul.msk.bf16.gmra.mxu3 %vm1107_vm4, %v3500_v34  ;;  %v3474_v34 = vunpack.c.l.b16 %v3388_v63 }
 0x1e7   : > { %v2131_v16 = vadd.f32 %v2085_v45, %v1845_v38  ;;  %v9781_v45 = vrot.slane %v3692_v40, 10 }
 0x1e8   : > { %v3501_v38 = vpack.c.b16 %v3475_v60, %v3474_v34 }
 0x1e9   : > { %9732 = vmatmul.msk.bf16.gmra.mxu2 %vm1107_vm4, %v10274_v37  ;;  %v2088_v19 = vpop.f32.mrf.mxu3  ;;  %v3779_v17 = vsel %vm10926_vm15, %v9781_v45, %v3778_v53  ;;  %v9750_v53 = vrot.slane %v3272_v27, 9 }
 0x1ea   : > { %v3870_v55 = vunpack.c.l.b16 %v3779_v17  ;;  %v9782_v17 = vrot.slane %v3694_v48, 10  ;;  %v14892_v48 = vld [vmem:[#allocation8_spill] sm:$0xff] }
 0x1eb   : > { %v2513_v22 = vpop.f32.mrf.mxu0 }
 0x1ec   : > { %v11538_v15 = vadd.f32 %v2513_v22, %v2130_v2  ;;  %v1802_v39 = vpop.f32.mrf.mxu2  ;;  %v3898_v3 = vpack.c.b16 %v3871_v59, %v3870_v55  ;;  %v11567_v55 = vld [vmem:[#allocation2 + $0x88] sm:$0xf] }
 0x1ed   : > { %v1846_v29 = vadd.f32 %v1802_v39, %v11072_v46  ;;  %v3394_v46 = vrot.slane %v11546_v5, 5 }
 0x1ee   : > { %9797 = vmatmul.msk.bf16.gmra.mxu0 %vm1107_vm4, %v3897_v30  ;;  %v3274_v30 = vld [vmem:[#allocation2 + $0x80] sm:$0x1] }
 0x1ef   : > { %v2132_v2 = vadd.f32 %v2088_v19, %v1846_v29  ;;  %v10275_v19 = vld [vmem:[#allocation2 + $0x6c] sm:$0xff]  ;;  %v3396_v35 = vrot.slane %v3394_v46, 4  ;;  %v3397_v63 = vrot.slane %v3274_v30, 5  ;;  %v3785_v29 = vrot.slane %v11525_v44, 6 }
 0x1f1   : > { %v2090_v41 = vpop.f32.mrf.mxu3  ;;  %v3398_v34 = vsel %vm10566_vm9, %v3396_v35, %v3397_v63  ;;  %v3787_v61 = vrot.slane %v3785_v29, 4 }
 0x1f2   : > { %v3477_v44 = vunpack.c.l.b16 %v3398_v34 }
 0x1f3   : > { %v2515_v6 = vpop.f32.mrf.mxu0 }
 0x1f4   : > { %v11552_v4 = vadd.f32 %v2515_v6, %v2131_v16  ;;  %v1804_v37 = vpop.f32.mrf.mxu2  ;;  %v14890_v6 = vld [vmem:[#allocation7_spill] sm:$0xff] }
 0x1f5   : > { %v1847_v22 = vadd.f32 %v1804_v37, %v11087_v7  ;;  %v3395_v7 = vsel %vm10566_vm9, %v9750_v53, %v3394_v46  ;;  %v3786_v46 = vsel %vm10926_vm15, %v9782_v17, %v3785_v29  ;;  %v3401_v53 = vrot.slane %v11567_v55, 5 }
 0x1f6   : > { %9766 = vmatmul.msk.bf16.gmra.mxu3 %vm1107_vm4, %v3501_v38  ;;  %v3788_v38 = vrot.slane %v3695_v20, 6  ;;  %v3476_v37 = vunpack.c.l.b16 %v3395_v7  ;;  %v3872_v63 = vunpack.c.l.b16 %v3786_v46  ;;  %v10276_v7 = vld [vmem:[#allocation2 + $0x78] sm:$0xff] }
 0x1f7   : > { %v2133_v40 = vadd.f32 %v2090_v41, %v1847_v22 }
 0x1f8   : > { %v3789_v30 = vsel %vm10926_vm15, %v3787_v61, %v3788_v38  ;;  %v3792_v61 = vrot.slane %v11546_v5, 6 }
 0x1f9   : > { %9733 = vmatmul.msk.bf16.gmra.mxu2 %vm1107_vm4, %v10275_v19  ;;  %v2093_v39 = vpop.f32.mrf.mxu3  ;;  %v3502_v19 = vpack.c.b16 %v3477_v44, %v3476_v37  ;;  %v3696_v37 = vld [vmem:[#allocation2 + $0x78] sm:$0xc]  ;;  %v3697_v44 = vld [vmem:[#allocation2 + $0x80] sm:$0x3] }
 0x1fb   : > { %v2518_v16 = vpop.f32.mrf.mxu0 }
 0x1fc   : > { %v11559_v45 = vadd.f32 %v2518_v16, %v2132_v2  ;;  %v1807_v60 = vpop.f32.mrf.mxu2  ;;  %v3275_v16 = vld [vmem:[#allocation2 + $0x84] sm:$0xe] }
 0x1fd   : > { %v1848_v41 = vadd.f32 %v1807_v60, %v14890_v6  ;;  %v9751_v29 = vrot.slane %v3275_v16, 9  ;;  %v3403_v60 = vrot.slane %v3401_v53, 4 }
 0x1fe   : > { %14889 = vst [vmem:[#allocation13_spill] sm:$0xff] %v11559_v45  ;;  %9798 = vmatmul.msk.bf16.gmra.mxu0 %vm1107_vm4, %v3898_v3  ;;  %v3873_v3 = vunpack.c.l.b16 %v3789_v30  ;;  %v14894_v30 = vld [vmem:[#allocation9_spill] sm:$0xff] }
 0x1ff   : > { %v2134_v2 = vadd.f32 %v2093_v39, %v1848_v41  ;;  %v3277_v39 = vld [vmem:[#allocation2 + $0x8c] sm:$0x1] }
 0x200   : > { %v3404_v6 = vrot.slane %v3277_v39, 5  ;;  %v3899_v41 = vpack.c.b16 %v3873_v3, %v3872_v63  ;;  %v3794_v63 = vrot.slane %v3792_v61, 4  ;;  %v3795_v3 = vrot.slane %v3697_v44, 6  ;;  %v11588_v39 = vld [vmem:[#allocation2 + $0x94] sm:$0xf] }
 0x201   : > { %v2095_v27 = vpop.f32.mrf.mxu3  ;;  %v3278_v44 = vld [vmem:[#allocation2 + $0x90] sm:$0xe] }
 0x203   : > { %v2520_v59 = vpop.f32.mrf.mxu0 }
 0x204   : > { %v11573_v22 = vadd.f32 %v2520_v59, %v2133_v40  ;;  %v1809_v35 = vpop.f32.mrf.mxu2  ;;  %v3402_v59 = vsel %vm10566_vm9, %v9751_v29, %v3401_v53 }
 0x205   : > { %v1849_v20 = vadd.f32 %v1809_v35, %v14892_v48  ;;  %v9783_v35 = vrot.slane %v3696_v37, 10  ;;  %v3478_v16 = vunpack.c.l.b16 %v3402_v59  ;;  %v14896_v59 = vld [vmem:[#allocation10_spill] sm:$0xff] }
 0x206   : > { %14891 = vst [vmem:[#allocation7_spill] sm:$0xff] %v11573_v22  ;;  %9767 = vmatmul.msk.bf16.gmra.mxu3 %vm1107_vm4, %v3502_v19 }
 0x207   : > { %v2135_v34 = vadd.f32 %v2095_v27, %v1849_v20  ;;  %v3405_v27 = vsel %vm10566_vm9, %v3403_v60, %v3404_v6  ;;  %v3793_v53 = vsel %vm10926_vm15, %v9783_v35, %v3792_v61  ;;  %v3408_v6 = vrot.slane %v11588_v39, 5 }
 0x208   : > { %v3479_v5 = vunpack.c.l.b16 %v3405_v27  ;;  %v9752_v61 = vrot.slane %v3278_v44, 9 }
 0x209   : > { %9734 = vmatmul.msk.bf16.gmra.mxu2 %vm1107_vm4, %v10276_v7  ;;  %v2098_v17 = vpop.f32.mrf.mxu3  ;;  %v3796_v7 = vsel %vm10926_vm15, %v3794_v63, %v3795_v3 }
 0x20a   : > { %v3503_v60 = vpack.c.b16 %v3479_v5, %v3478_v16  ;;  %v3875_v37 = vunpack.c.l.b16 %v3796_v7  ;;  %v3799_v16 = vrot.slane %v11567_v55, 6  ;;  %v3409_v7 = vsel %vm10566_vm9, %v9752_v61, %v3408_v6 }
 0x20b   : > { %v2523_v40 = vpop.f32.mrf.mxu0 }
 0x20c   : > { %v11580_v38 = vadd.f32 %v2523_v40, %v2134_v2  ;;  %v1812_v46 = vpop.f32.mrf.mxu2  ;;  %v3874_v40 = vunpack.c.l.b16 %v3793_v53  ;;  %v3699_v53 = vld [vmem:[#allocation2 + $0x8c] sm:$0x3]  ;;  %v3801_v44 = vrot.slane %v3799_v16, 4 }
 0x20d   : > { %v1850_v19 = vadd.f32 %v1812_v46, %v14894_v30  ;;  %v10277_v46 = vld [vmem:[#allocation2 + $0x84] sm:$0xff] }
 0x20e   : > { %14893 = vst [vmem:[#allocation8_spill] sm:$0xff] %v11580_v38  ;;  %9799 = vmatmul.msk.bf16.gmra.mxu0 %vm1107_vm4, %v3899_v41  ;;  %v3900_v63 = vpack.c.b16 %v3875_v37, %v3874_v40 }
 0x20f   : > { %v2136_v2 = vadd.f32 %v2098_v17, %v1850_v19  ;;  %v3280_v17 = vld [vmem:[#allocation2 + $0x98] sm:$0x1]  ;;  %v3410_v19 = vrot.slane %v3408_v6, 4 }
 0x210   : > { %v3411_v35 = vrot.slane %v3280_v17, 5  ;;  %v3802_v17 = vrot.slane %v3699_v53, 6 }
 0x211   : > { %v2100_v20 = vpop.f32.mrf.mxu3 }
 0x212   : > { %v3803_v61 = vsel %vm10926_vm15, %v3801_v44, %v3802_v17 }
 0x213   : > { %v2525_v48 = vpop.f32.mrf.mxu0 }
 0x214   : > { %v11594_v29 = vadd.f32 %v2525_v48, %v2135_v34  ;;  %v1814_v41 = vpop.f32.mrf.mxu2  ;;  %v3698_v48 = vld [vmem:[#allocation2 + $0x84] sm:$0xc] }
 0x215   : > { %v1851_v27 = vadd.f32 %v1814_v41, %v14896_v59  ;;  %v14898_v41 = vld [vmem:[#allocation11_spill] sm:$0xff]  ;;  %v9784_v37 = vrot.slane %v3698_v48, 10  ;;  %v3480_v59 = vunpack.c.l.b16 %v3409_v7  ;;  %v3877_v7 = vunpack.c.l.b16 %v3803_v61 }
 0x216   : > { %14895 = vst [vmem:[#allocation9_spill] sm:$0xff] %v11594_v29  ;;  %9768 = vmatmul.msk.bf16.gmra.mxu3 %vm1107_vm4, %v3503_v60 }
 0x217   : > { %v2137_v30 = vadd.f32 %v2100_v20, %v1851_v27  ;;  %v3412_v20 = vsel %vm10566_vm9, %v3410_v19, %v3411_v35  ;;  %v11609_v27 = vld [vmem:[#allocation2 + $0xa0] sm:$0xf]  ;;  %v3800_v6 = vsel %vm10926_vm15, %v9784_v37, %v3799_v16 }
 0x218   : > { %v3481_v55 = vunpack.c.l.b16 %v3412_v20  ;;  %v3876_v53 = vunpack.c.l.b16 %v3800_v6  ;;  %v3281_v20 = vld [vmem:[#allocation2 + $0x9c] sm:$0xe]  ;;  %v3701_v6 = vld [vmem:[#allocation2 + $0x98] sm:$0x3] }
 0x219   : > { %9735 = vmatmul.msk.bf16.gmra.mxu2 %vm1107_vm4, %v10277_v46  ;;  %v2103_v3 = vpop.f32.mrf.mxu3  ;;  %v9753_v16 = vrot.slane %v3281_v20, 9  ;;  %v3809_v20 = vrot.slane %v3701_v6, 6  ;;  %v3284_v6 = vld [vmem:[#allocation2 + $0xa8] sm:$0xe] }
 0x21a   : > { %v3504_v35 = vpack.c.b16 %v3481_v55, %v3480_v59  ;;  %v3901_v44 = vpack.c.b16 %v3877_v7, %v3876_v53  ;;  %v3806_v59 = vrot.slane %v11588_v39, 6 }
 0x21b   : > { %v2528_v34 = vpop.f32.mrf.mxu0 }
 0x21c   : > { %v11601_v5 = vadd.f32 %v2528_v34, %v2136_v2  ;;  %v1817_v60 = vpop.f32.mrf.mxu2  ;;  %v3808_v7 = vrot.slane %v3806_v59, 4 }
 0x21d   : > { %v1852_v40 = vadd.f32 %v1817_v60, %v14898_v41  ;;  %v14900_v60 = vld [vmem:[#allocation12_spill] sm:$0xff] }
 0x21e   : > { %14897 = vst [vmem:[#allocation10_spill] sm:$0xff] %v11601_v5  ;;  %9800 = vmatmul.msk.bf16.gmra.mxu0 %vm1107_vm4, %v3900_v63  ;;  %v3415_v63 = vrot.slane %v11609_v27, 5 }
 0x21f   : > { %v2138_v2 = vadd.f32 %v2103_v3, %v1852_v40  ;;  %v3283_v3 = vld [vmem:[#allocation2 + $0xa4] sm:$0x1]  ;;  %v10278_v40 = vld [vmem:[#allocation2 + $0x90] sm:$0xff] }
 0x220   : > { %v3417_v37 = vrot.slane %v3415_v63, 4  ;;  %v3418_v42 = vrot.slane %v3283_v3, 5  ;;  %v3416_v61 = vsel %vm10566_vm9, %v9753_v16, %v3415_v63 }
 0x221   : > { %v2105_v34 = vpop.f32.mrf.mxu3  ;;  %v3482_v3 = vunpack.c.l.b16 %v3416_v61 }
 0x223   : > { %v2530_v46 = vpop.f32.mrf.mxu0 }
 0x224   : > { %v11615_v19 = vadd.f32 %v2530_v46, %v2137_v30  ;;  %v1819_v48 = vpop.f32.mrf.mxu2  ;;  %v3700_v46 = vld [vmem:[#allocation2 + $0x90] sm:$0xc] }
 0x225   : > { %v1853_v41 = vadd.f32 %v1819_v48, %v14900_v60  ;;  %v9785_v53 = vrot.slane %v3700_v46, 10  ;;  %v11630_v60 = vld [vmem:[#allocation2 + $0xac] sm:$0xf] }
 0x226   : > { %14899 = vst [vmem:[#allocation11_spill] sm:$0xff] %v11615_v19  ;;  %9769 = vmatmul.msk.bf16.gmra.mxu3 %vm1107_vm4, %v3504_v35 }
 0x227   : > { %v2139_v8 = vadd.f32 %v2105_v34, %v1853_v41  ;;  %v3419_v34 = vsel %vm10566_vm9, %v3417_v37, %v3418_v42  ;;  %v3807_v63 = vsel %vm10926_vm15, %v9785_v53, %v3806_v59  ;;  %v3810_v42 = vsel %vm10926_vm15, %v3808_v7, %v3809_v20 }
 0x228   : > { %v3483_v39 = vunpack.c.l.b16 %v3419_v34  ;;  %v3879_v46 = vunpack.c.l.b16 %v3810_v42  ;;  %v10279_v34 = vld [vmem:[#allocation2 + $0x9c] sm:$0xff]  ;;  %v9754_v59 = vrot.slane %v3284_v6, 9 }
 0x229   : > { %9736 = vmatmul.msk.bf16.gmra.mxu2 %vm1107_vm4, %v10278_v40  ;;  %v3572_v17 = vpop.f32.mrf.mxu3 }
 0x22a   : > { %v3505_v37 = vpack.c.b16 %v3483_v39, %v3482_v3  ;;  %v3813_v3 = vrot.slane %v11609_v27, 6 }
 0x22b   : > { %v2533_v30 = vpop.f32.mrf.mxu0 }
 0x22c   : > { %v11622_v55 = vadd.f32 %v2533_v30, %v2138_v2  ;;  %v3142_v35 = vpop.f32.mrf.mxu2  ;;  %v3878_v30 = vunpack.c.l.b16 %v3807_v63  ;;  %v3703_v63 = vld [vmem:[#allocation2 + $0xa4] sm:$0x3] }
 0x22d   : > { %v3222_v48 = vadd.f32 %v3142_v35, %v11219_v18  ;;  %v3422_v18 = vrot.slane %v11630_v60, 5 }
 0x22e   : > { %14901 = vst [vmem:[#allocation12_spill] sm:$0xff] %v11622_v55  ;;  %9801 = vmatmul.msk.bf16.gmra.mxu0 %vm1107_vm4, %v3901_v44  ;;  %v3902_v7 = vpack.c.b16 %v3879_v46, %v3878_v30  ;;  %v3815_v30 = vrot.slane %v3813_v3, 4  ;;  %v3816_v46 = vrot.slane %v3703_v63, 6  ;;  %v3287_v63 = vld [vmem:[#allocation2 + $0xb4] sm:$0xe] }
 0x22f   : > { %v3652_v2 = vadd.f32 %v3572_v17, %v3222_v48  ;;  %v3286_v17 = vld [vmem:[#allocation2 + $0xb0] sm:$0x1]  ;;  %v3424_v48 = vrot.slane %v3422_v18, 4 }
 0x230   : > { %v3425_v53 = vrot.slane %v3286_v17, 5  ;;  %v11651_v17 = vld [vmem:[#allocation2 + $0xb8] sm:$0xf] }
 0x231   : > { %v3574_v40 = vpop.f32.mrf.mxu3 }
 0x233   : > { %v2535_v41 = vpop.f32.mrf.mxu0 }
 0x234   : > { %v11636_v16 = vadd.f32 %v2535_v41, %v2139_v8  ;;  %v3144_v44 = vpop.f32.mrf.mxu2  ;;  %v3702_v41 = vld [vmem:[#allocation2 + $0x9c] sm:$0xc] }
 0x235   : > { %v3223_v61 = vadd.f32 %v3144_v44, %v11234_v31  ;;  %v3423_v31 = vsel %vm10566_vm9, %v9754_v59, %v3422_v18  ;;  %v9786_v44 = vrot.slane %v3702_v41, 10  ;;  %v3817_v59 = vsel %vm10926_vm15, %v3815_v30, %v3816_v46 }
 0x236   : > { %14902 = vst [vmem:[#allocation14_spill] sm:$0xff] %v11636_v16  ;;  %9770 = vmatmul.msk.bf16.gmra.mxu3 %vm1107_vm4, %v3505_v37  ;;  %v3484_v6 = vunpack.c.l.b16 %v3423_v31  ;;  %v3881_v41 = vunpack.c.l.b16 %v3817_v59 }
 0x237   : > { %v3653_v35 = vadd.f32 %v3574_v40, %v3223_v61  ;;  %v3426_v40 = vsel %vm10566_vm9, %v3424_v48, %v3425_v53  ;;  %v3814_v18 = vsel %vm10926_vm15, %v9786_v44, %v3813_v3  ;;  %v9755_v3 = vrot.slane %v3287_v63, 9 }
 0x238   : > { %v3485_v27 = vunpack.c.l.b16 %v3426_v40  ;;  %v10280_v40 = vld [vmem:[#allocation2 + $0xa8] sm:$0xff] }
 0x239   : > { %9737 = vmatmul.msk.bf16.gmra.mxu2 %vm1107_vm4, %v10279_v34  ;;  %v3577_v20 = vpop.f32.mrf.mxu3 }
 0x23a   : > { %v3506_v53 = vpack.c.b16 %v3485_v27, %v3484_v6  ;;  %v3820_v6 = vrot.slane %v11630_v60, 6 }
 0x23b   : > { %v3970_v8 = vpop.f32.mrf.mxu0 }
 0x23c   : > { %v11643_v39 = vadd.f32 %v3970_v8, %v3652_v2  ;;  %v3147_v42 = vpop.f32.mrf.mxu2  ;;  %v3880_v8 = vunpack.c.l.b16 %v3814_v18  ;;  %v3705_v18 = vld [vmem:[#allocation2 + $0xb0] sm:$0x3] }
 0x23d   : > { %v3224_v37 = vadd.f32 %v3147_v42, %v11247_v28  ;;  %v3429_v28 = vrot.slane %v11651_v17, 5 }
 0x23e   : > { %14903 = vst [vmem:[#allocation15_spill] sm:$0xff] %v11643_v39  ;;  %9802 = vmatmul.msk.bf16.gmra.mxu0 %vm1107_vm4, %v3902_v7  ;;  %v3903_v30 = vpack.c.b16 %v3881_v41, %v3880_v8  ;;  %v3822_v8 = vrot.slane %v3820_v6, 4  ;;  %v3823_v41 = vrot.slane %v3705_v18, 6  ;;  %v3290_v18 = vld [vmem:[#allocation2 + $0xc0] sm:$0xe] }
 0x23f   : > { %v3654_v2 = vadd.f32 %v3577_v20, %v3224_v37  ;;  %v3289_v20 = vld [vmem:[#allocation2 + $0xbc] sm:$0x1]  ;;  %v3431_v37 = vrot.slane %v3429_v28, 4 }
 0x240   : > { %v3432_v44 = vrot.slane %v3289_v20, 5  ;;  %v11672_v20 = vld [vmem:[#allocation2 + $0xc4] sm:$0xf] }
 0x241   : > { %v3579_v34 = vpop.f32.mrf.mxu3 }
 0x243   : > { %v3972_v61 = vpop.f32.mrf.mxu0 }
 0x244   : > { %v11657_v48 = vadd.f32 %v3972_v61, %v3653_v35  ;;  %v3149_v7 = vpop.f32.mrf.mxu2  ;;  %v3704_v61 = vld [vmem:[#allocation2 + $0xa8] sm:$0xc] }
 0x245   : > { %v3225_v31 = vadd.f32 %v3149_v7, %v11265_v11  ;;  %v3430_v11 = vsel %vm10566_vm9, %v9755_v3, %v3429_v28  ;;  %v9787_v7 = vrot.slane %v3704_v61, 10  ;;  %v3824_v3 = vsel %vm10926_vm15, %v3822_v8, %v3823_v41 }
 0x246   : > { %14904 = vst [vmem:[#allocation16_spill] sm:$0xff] %v11657_v48  ;;  %9771 = vmatmul.msk.bf16.gmra.mxu3 %vm1107_vm4, %v3506_v53  ;;  %v3486_v63 = vunpack.c.l.b16 %v3430_v11  ;;  %v3883_v61 = vunpack.c.l.b16 %v3824_v3  ;;  %v808_v3 = vld [vmem:[#allocation2 + $0xc4] sm:$0xf] }
 0x247   : > { %v3655_v42 = vadd.f32 %v3579_v34, %v3225_v31  ;;  %v3433_v34 = vsel %vm10566_vm9, %v3431_v37, %v3432_v44  ;;  %v3821_v28 = vsel %vm10926_vm15, %v9787_v7, %v3820_v6  ;;  %v9756_v6 = vrot.slane %v3290_v18, 9  ;;  %812 = vst.msk [vmem:[#allocation2 + $0xdc] sm:$0xf] %vm402_vm11, %v808_v3 }
 0x248   : > { %v3487_v60 = vunpack.c.l.b16 %v3433_v34  ;;  %v10281_v34 = vld [vmem:[#allocation2 + $0xb4] sm:$0xff] }
 0x249   : > { %9738 = vmatmul.msk.bf16.gmra.mxu2 %vm1107_vm4, %v10280_v40  ;;  %v3582_v46 = vpop.f32.mrf.mxu3 }
 0x24a   : > { %v3507_v44 = vpack.c.b16 %v3487_v60, %v3486_v63  ;;  %v3827_v63 = vrot.slane %v11651_v17, 6 }
 0x24b   : > { %v3975_v35 = vpop.f32.mrf.mxu0 }
 0x24c   : > { %v11664_v27 = vadd.f32 %v3975_v35, %v3654_v2  ;;  %v3152_v59 = vpop.f32.mrf.mxu2  ;;  %v3882_v35 = vunpack.c.l.b16 %v3821_v28  ;;  %v3707_v28 = vld [vmem:[#allocation2 + $0xbc] sm:$0x3] }
 0x24d   : > { %v3226_v53 = vadd.f32 %v3152_v59, %v11280_v47  ;;  %v3436_v47 = vrot.slane %v11672_v20, 5  ;;  %v3830_v18 = vrot.slane %v3707_v28, 6 }
 0x24e   : > { %14905 = vst [vmem:[#allocation17_spill] sm:$0xff] %v11664_v27  ;;  %9803 = vmatmul.msk.bf16.gmra.mxu0 %vm1107_vm4, %v3903_v30  ;;  %v3904_v8 = vpack.c.b16 %v3883_v61, %v3882_v35  ;;  %v809_v35 = vld [vmem:[#allocation2 + $0xc8] sm:$0x3]  ;;  %v3829_v61 = vrot.slane %v3827_v63, 4  ;;  %v4085_v22 = vsel %vm1107_vm4, %v11664_v27, 0.0 }
 0x24f   : > { %v3656_v2 = vadd.f32 %v3582_v46, %v3226_v53  ;;  %v3292_v46 = vld [vmem:[#allocation2 + $0xc8] sm:$0x1]  ;;  %v3438_v53 = vrot.slane %v3436_v47, 4  ;;  %813 = vst.msk [vmem:[#allocation2 + $0xe0] sm:$0x3] %vm804_vm8, %v809_v35 }
 0x250   : > { %v3439_v7 = vrot.slane %v3292_v46, 5 }
 0x251   : > { %v3584_v40 = vpop.f32.mrf.mxu3 }
 0x253   : > { %v3977_v31 = vpop.f32.mrf.mxu0 }
 0x254   : > { %v11678_v37 = vadd.f32 %v3977_v31, %v3655_v42  ;;  %v3154_v30 = vpop.f32.mrf.mxu2  ;;  %v3706_v31 = vld [vmem:[#allocation2 + $0xb4] sm:$0xc] }
 0x255   : > { %v3227_v11 = vadd.f32 %v3154_v30, %v11307_v33  ;;  %v3437_v33 = vsel %vm10566_vm9, %v9756_v6, %v3436_v47  ;;  %v807_v30 = vld [vmem:[#allocation2 + $0xc0] sm:$0xf] }
 0x256   : > { %9772 = vmatmul.msk.bf16.gmra.mxu3 %vm1107_vm4, %v3507_v44  ;;  %811 = vst.msk [vmem:[#allocation2 + $0xd8] sm:$0xf] %vm402_vm11, %v807_v30  ;;  %v3488_v46 = vunpack.c.l.b16 %v3437_v33  ;;  %v10282_v30 = vld [vmem:[#allocation2 + $0xc0] sm:$0xff] }
 0x257   : > { %v3657_v59 = vadd.f32 %v3584_v40, %v3227_v11  ;;  %v3440_v40 = vsel %vm10566_vm9, %v3438_v53, %v3439_v7 }
 0x258   : > { %v3489_v11 = vunpack.c.l.b16 %v3440_v40  ;;  %v3293_v40 = vld [vmem:[#allocation2 + $0xcc] sm:$0xe] }
 0x259   : > { %9739 = vmatmul.msk.bf16.gmra.mxu2 %vm1107_vm4, %v10281_v34  ;;  %v3587_v41 = vpop.f32.mrf.mxu3  ;;  %v11696_v34 = vld [vmem:[#allocation2 + $0xd0] sm:$0xf] }
 0x25b   : > { %v3980_v42 = vpop.f32.mrf.mxu0 }
 0x25c   : > { %v11685_v60 = vadd.f32 %v3980_v42, %v3656_v2  ;;  %v3157_v44 = vpop.f32.mrf.mxu2  ;;  %v9788_v2 = vrot.slane %v3706_v31, 10  ;;  %v3508_v42 = vpack.c.b16 %v3489_v11, %v3488_v46  ;;  %v3443_v31 = vrot.slane %v11696_v34, 5 }
 0x25d   : > { %v3228_v17 = vadd.f32 %v3157_v44, %v11324_v50  ;;  %v3831_v50 = vsel %vm10926_vm15, %v3829_v61, %v3830_v18  ;;  %v3834_v46 = vrot.slane %v11672_v20, 6 }
 0x25e   : > { %9804 = vmatmul.msk.bf16.gmra.mxu0 %vm1107_vm4, %v3904_v8  ;;  %v3828_v7 = vsel %vm10926_vm15, %v9788_v2, %v3827_v63  ;;  %v3885_v33 = vunpack.c.l.b16 %v3831_v50  ;;  %v9757_v63 = vrot.slane %v3293_v40, 9  ;;  %v823_v50 = vld [vmem:[#allocation2 + $0xb8] sm:$0xf] }
 0x25f   : > { %v3658_v47 = vadd.f32 %v3587_v41, %v3228_v17  ;;  %v3884_v3 = vunpack.c.l.b16 %v3828_v7  ;;  %v3295_v41 = vld [vmem:[#allocation2 + $0xd4] sm:$0x1]  ;;  %v3445_v17 = vrot.slane %v3443_v31, 4  ;;  %v3709_v7 = vld [vmem:[#allocation2 + $0xc8] sm:$0x3] }
 0x260   : > { %v3446_v2 = vrot.slane %v3295_v41, 5  ;;  %827 = vst.msk [vmem:[#allocation2 + $0xe8] sm:$0xf] %vm402_vm11, %v823_v50  ;;  %v3837_v40 = vrot.slane %v3709_v7, 6 }
 0x261   : > { %v3589_v53 = vpop.f32.mrf.mxu3  ;;  %v3905_v61 = vpack.c.b16 %v3885_v33, %v3884_v3  ;;  %v824_v3 = vld [vmem:[#allocation2 + $0xbc] sm:$0x3]  ;;  %v3836_v33 = vrot.slane %v3834_v46, 4 }
 0x262   : > { %828 = vst.msk [vmem:[#allocation2 + $0xec] sm:$0x3] %vm804_vm8, %v824_v3  ;;  %vm12279_vm8 = vmand %vm402_vm11, %vm14940_vm7 }
 0x263   : > { %v3982_v6 = vpop.f32.mrf.mxu0 }
 0x264   : > { %v11702_v8 = vadd.f32 %v3982_v6, %v3657_v59  ;;  %v3159_v28 = vpop.f32.mrf.mxu2  ;;  %v3708_v6 = vld [vmem:[#allocation2 + $0xc0] sm:$0xc] }
 0x265   : > { %v3229_v44 = vadd.f32 %v3159_v28, %v11352_v57  ;;  %v3444_v57 = vsel %vm10566_vm9, %v9757_v63, %v3443_v31  ;;  %v822_v28 = vld [vmem:[#allocation2 + $0xb4] sm:$0xf] }
 0x266   : > { %9773 = vmatmul.msk.bf16.gmra.mxu3 %vm1107_vm4, %v3508_v42  ;;  %826 = vst.msk [vmem:[#allocation2 + $0xe4] sm:$0xf] %vm402_vm11, %v822_v28  ;;  %v3490_v41 = vunpack.c.l.b16 %v3444_v57  ;;  %v3296_v57 = vld [vmem:[#allocation2 + $0xd8] sm:$0xe] }
 0x267   : > { %v3659_v35 = vadd.f32 %v3589_v53, %v3229_v44  ;;  %v3447_v53 = vsel %vm10566_vm9, %v3445_v17, %v3446_v2  ;;  %v9758_v28 = vrot.slane %v3296_v57, 9 }
 0x268   : > { %v3491_v44 = vunpack.c.l.b16 %v3447_v53  ;;  %v3298_v53 = vld [vmem:[#allocation2 + $0xe0] sm:$0x1] }
 0x269   : > { %9740 = vmatmul.msk.bf16.gmra.mxu2 %vm1107_vm4, %v10282_v30  ;;  %v3592_v18 = vpop.f32.mrf.mxu3  ;;  %v11720_v30 = vld [vmem:[#allocation2 + $0xdc] sm:$0xf] }
 0x26b   : > { %v3985_v59 = vpop.f32.mrf.mxu0 }
 0x26c   : > { %v11709_v11 = vadd.f32 %v3985_v59, %v3658_v47  ;;  %v3162_v42 = vpop.f32.mrf.mxu2  ;;  %v9789_v47 = vrot.slane %v3708_v6, 10  ;;  %v3509_v59 = vpack.c.b16 %v3491_v44, %v3490_v41  ;;  %v3450_v6 = vrot.slane %v11720_v30, 5 }
 0x26d   : > { %v3230_v20 = vadd.f32 %v3162_v42, %v11371_v51  ;;  %v3838_v51 = vsel %vm10926_vm15, %v3836_v33, %v3837_v40  ;;  %v10283_v42 = vld [vmem:[#allocation2 + $0xcc] sm:$0xff]  ;;  %v3841_v41 = vrot.slane %v11696_v34, 6 }
 0x26e   : > { %9805 = vmatmul.msk.bf16.gmra.mxu0 %vm1107_vm4, %v3905_v61  ;;  %v3835_v2 = vsel %vm10926_vm15, %v9789_v47, %v3834_v46  ;;  %v3452_v3 = vrot.slane %v3450_v6, 4  ;;  %v3453_v46 = vrot.slane %v3298_v53, 5 }
 0x26f   : > { %v3660_v31 = vadd.f32 %v3592_v18, %v3230_v20  ;;  %v3886_v50 = vunpack.c.l.b16 %v3835_v2  ;;  %v3887_v18 = vunpack.c.l.b16 %v3838_v51  ;;  %v3711_v2 = vld [vmem:[#allocation2 + $0xd4] sm:$0x3]  ;;  %v3451_v51 = vsel %vm10566_vm9, %v9758_v28, %v3450_v6 }
 0x270   : > { %v3843_v53 = vrot.slane %v3841_v41, 4  ;;  %v3492_v34 = vunpack.c.l.b16 %v3451_v51  ;;  %v10284_v51 = vld [vmem:[#allocation2 + $0xd8] sm:$0xff] }
 0x271   : > { %v11722_v17 = vpop.f32.mrf.mxu3  ;;  %v3906_v20 = vpack.c.b16 %v3887_v18, %v3886_v50 }
 0x273   : > { %v3987_v63 = vpop.f32.mrf.mxu0 }
 0x274   : > { %v11728_v61 = vadd.f32 %v3987_v63, %v3659_v35  ;;  %v11731_v7 = vpop.f32.mrf.mxu2  ;;  %v9842_v35 = vld [vmem:[%s14802_s2 + $0x2] sm:$0x3]  ;;  %v3710_v63 = vld [vmem:[#allocation2 + $0xcc] sm:$0xc] }
 0x275   : > { %v5575_v47 = vsel %vm1156_vm0, %v9842_v35, 0  ;;  %v9790_v57 = vrot.slane %v3710_v63, 10 }
 0x276   : > { %9774 = vmatmul.msk.bf16.gmra.mxu3 %vm1107_vm4, %v3509_v59  ;;  %5584 = vmatpush.bf16.msra.mxu1 %v5575_v47  ;;  %v3454_v59 = vsel %vm10566_vm9, %v3452_v3, %v3453_v46  ;;  %v11748_v47 = vld [vmem:[#allocation2 + $0xe8] sm:$0xf] }
 0x277   : > { %v3493_v35 = vunpack.c.l.b16 %v3454_v59  ;;  %v3842_v6 = vsel %vm10926_vm15, %v9790_v57, %v3841_v41 }
 0x279   : > { %9741 = vmatmul.msk.bf16.gmra.mxu2 %vm1107_vm4, %v10283_v42  ;;  %v3597_v40 = vpop.f32.mrf.mxu3  ;;  %v3844_v42 = vrot.slane %v3711_v2, 6  ;;  %v3510_v3 = vpack.c.b16 %v3493_v35, %v3492_v34  ;;  %v3301_v2 = vld [vmem:[#allocation2 + $0xec] sm:$0x1]  ;;  %v3712_v34 = vld [vmem:[#allocation2 + $0xd8] sm:$0xc] }
 0x27a   : > { %v3713_v35 = vld [vmem:[#allocation2 + $0xe0] sm:$0x3] }
 0x27b   : > { %v3990_v33 = vpop.f32.mrf.mxu0  ;;  %v3845_v28 = vsel %vm10926_vm15, %v3843_v53, %v3844_v42  ;;  %v3848_v53 = vrot.slane %v11720_v30, 6 }
 0x27c   : > { %v11740_v44 = vadd.f32 %v3990_v33, %v3660_v31  ;;  %v3167_v50 = vpop.f32.mrf.mxu2  ;;  %v3889_v63 = vunpack.c.l.b16 %v3845_v28 }
 0x27d   : > { %v3232_v18 = vadd.f32 %v3167_v50, %v11399_v10  ;;  %v3457_v10 = vrot.slane %v11748_v47, 5 }
 0x27e   : > { %9806 = vmatmul.msk.bf16.gmra.mxu0 %vm1107_vm4, %v3906_v20  ;;  %v3888_v20 = vunpack.c.l.b16 %v3842_v6 }
 0x27f   : > { %v3662_v31 = vadd.f32 %v3597_v40, %v3232_v18  ;;  %v3299_v40 = vld [vmem:[#allocation2 + $0xe4] sm:$0xe]  ;;  %v3459_v50 = vrot.slane %v3457_v10, 4  ;;  %v3460_v18 = vrot.slane %v3301_v2, 5  ;;  %v3851_v2 = vrot.slane %v3713_v35, 6 }
 0x280   : > { %v9759_v59 = vrot.slane %v3299_v40, 9  ;;  %v3907_v55 = vpack.c.b16 %v3889_v63, %v3888_v20  ;;  %v9791_v63 = vrot.slane %v3712_v34, 10  ;;  %v3850_v40 = vrot.slane %v3848_v53, 4  ;;  %v10285_v34 = vld [vmem:[#allocation2 + $0xe4] sm:$0xff] }
 0x281   : > { %v11752_v16 = vpop.f32.mrf.mxu3  ;;  %v3461_v28 = vsel %vm10566_vm9, %v3459_v50, %v3460_v18 }
 0x282   : > { %v3458_v6 = vsel %vm10566_vm9, %v9759_v59, %v3457_v10  ;;  %v3495_v30 = vunpack.c.l.b16 %v3461_v28  ;;  %v3849_v10 = vsel %vm10926_vm15, %v9791_v63, %v3848_v53  ;;  %v3852_v59 = vsel %vm10926_vm15, %v3850_v40, %v3851_v2  ;;  %v3714_v53 = vld [vmem:[#allocation2 + $0xe4] sm:$0xc] }
 0x283   : > { %v11750_v33 = vpop.f32.mrf.mxu0  ;;  %v3891_v18 = vunpack.c.l.b16 %v3852_v59  ;;  %v3855_v28 = vrot.slane %v11748_v47, 6  ;;  %v9792_v2 = vrot.slane %v3714_v53, 10 }
 0x284   : > { %v11759_v46 = vpop.f32.mrf.mxu2 }
 0x285   : > { %v3856_v47 = vsel %vm10926_vm15, %v9792_v2, %v3855_v28 }
 0x286   : > { %9775 = vmatmul.msk.bf16.gmra.mxu3 %vm1107_vm4, %v3510_v3 }
 0x289   : > { %9742 = vmatmul.msk.bf16.gmra.mxu2 %vm1107_vm4, %v10284_v51  ;;  %v3602_v57 = vpop.f32.mrf.mxu3  ;;  %v3494_v51 = vunpack.c.l.b16 %v3458_v6 }
 0x28b   : > { %v3995_v41 = vpop.f32.mrf.mxu0 }
 0x28c   : > { %v11764_v42 = vadd.f32 %v3995_v41, %v3662_v31  ;;  %v3172_v3 = vpop.f32.mrf.mxu2 }
 0x28d   : > { %v3234_v20 = vadd.f32 %v3172_v3, %v11430_v24  ;;  %v3890_v24 = vunpack.c.l.b16 %v3849_v10 }
 0x28e   : > { %9807 = vmatmul.msk.bf16.gmra.mxu0 %vm1107_vm4, %v3907_v55  ;;  %v3511_v55 = vpack.c.b16 %v3495_v30, %v3494_v51  ;;  %v3857_v51 = vrot.slane %v3855_v28, 4 }
 0x28f   : > { %v3664_v31 = vadd.f32 %v3602_v57, %v3234_v20  ;;  %v3908_v35 = vpack.c.b16 %v3891_v18, %v3890_v24  ;;  %v3715_v20 = vld [vmem:[#allocation2 + $0xec] sm:$0x3]  ;;  %v3892_v18 = vunpack.c.l.b16 %v3856_v47 }
 0x290   : > { %v3858_v30 = vrot.slane %v3715_v20, 6 }
 0x291   : > { %v11774_v19 = vpop.f32.mrf.mxu3 }
 0x293   : > { %v11772_v41 = vpop.f32.mrf.mxu0 }
 0x294   : > { %v11780_v50 = vpop.f32.mrf.mxu2 }
 0x296   : > { %9776 = vmatmul.msk.bf16.gmra.mxu3 %vm1107_vm4, %v3511_v55 }
 0x299   : > { %9743 = vmatmul.msk.bf16.gmra.mxu2 %vm1107_vm4, %v10285_v34  ;;  %v3607_v6 = vpop.f32.mrf.mxu3 }
 0x29b   : > { %v4000_v57 = vpop.f32.mrf.mxu0 }
 0x29c   : > { %v11785_v3 = vadd.f32 %v4000_v57, %v3664_v31  ;;  %v3177_v63 = vpop.f32.mrf.mxu2  ;;  %v3859_v31 = vsel %vm10926_vm15, %v3857_v51, %v3858_v30  ;;  %vm5090_vm15 = vsmask.f32 7440 }
 0x29d   : > { %v3236_v40 = vadd.f32 %v3177_v63, %v11454_v0  ;;  %v3893_v34 = vunpack.c.l.b16 %v3859_v31 }
 0x29e   : > { %9808 = vmatmul.msk.bf16.gmra.mxu0 %vm1107_vm4, %v3908_v35 }
 0x29f   : > { %v3666_v10 = vadd.f32 %v3607_v6, %v3236_v40  ;;  %v3909_v35 = vpack.c.b16 %v3893_v34, %v3892_v18 }
 0x2a1   : > { %v11791_v55 = vpop.f32.mrf.mxu3 }
 0x2a3   : > { %v11789_v59 = vpop.f32.mrf.mxu0 }
 0x2a4   : > { %v11797_v24 = vpop.f32.mrf.mxu2 }
 0x2a9   : > { %v3612_v57 = vpop.f32.mrf.mxu3 }
 0x2ab   : > { %v4005_v0 = vpop.f32.mrf.mxu0 }
 0x2ac   : > { %v11799_v53 = vadd.f32 %v4005_v0, %v3666_v10  ;;  %v3182_v6 = vpop.f32.mrf.mxu2 }
 0x2ad   : > { %v3238_v20 = vadd.f32 %v3182_v6, %v11477_v14  ;;  %v11816_v14 = vpop.f32.mrf.mxu1 }
 0x2ae   : > { %9809 = vmatmul.msk.bf16.gmra.mxu0 %vm1107_vm4, %v3909_v35 }
 0x2af   : > { %v3668_v63 = vadd.f32 %v3612_v57, %v3238_v20 }
 0x2b1   : > { %v11805_v28 = vpop.f32.mrf.mxu3 }
 0x2b3   : > { %v11803_v40 = vpop.f32.mrf.mxu0 }
 0x2b4   : > { %v11807_v13 = vpop.f32.mrf.mxu2 }
 0x2b5   : > { %v11822_v20 = vpop.f32.mrf.mxu1 }
 0x2b9   : > { %v3617_v51 = vpop.f32.mrf.mxu3 }
 0x2bb   : > { %v4010_v2 = vpop.f32.mrf.mxu0 }
 0x2bc   : > { %v11809_v30 = vadd.f32 %v4010_v2, %v3668_v63  ;;  %v3187_v47 = vpop.f32.mrf.mxu2 }
 0x2bd   : > { %v3240_v10 = vadd.f32 %v3187_v47, %v11498_v12 }
 0x2bf   : > { %v3670_v31 = vadd.f32 %v3617_v51, %v3240_v10  ;;  %v11831_v10 = vpop.f32.mrf.mxu1 }
 0x2c1   : > { %v11814_v34 = vpop.f32.mrf.mxu3 }
 0x2c3   : > { %v11812_v18 = vpop.f32.mrf.mxu0 }
 0x2c4   : > { %v11818_v35 = vpop.f32.mrf.mxu2 }
 0x2c9   : > { %v3622_v57 = vpop.f32.mrf.mxu3 }
 0x2cb   : > { %v4015_v0 = vpop.f32.mrf.mxu0 }
 0x2cc   : > { %v11820_v6 = vadd.f32 %v4015_v0, %v3670_v31  ;;  %v3192_v63 = vpop.f32.mrf.mxu2  ;;  %v11839_v0 = vpop.f32.mrf.mxu1 }
 0x2cd   : > { %v3242_v2 = vadd.f32 %v3192_v63, %v11521_v21  ;;  %14912 = vst [vmem:[#allocation24_spill] sm:$0xff] %v11839_v0  ;;  %v4152_v21 = vmul.f32 %v11657_v48, %v11657_v48 }
 0x2ce   : > { %14906 = vst [vmem:[#allocation18_spill] sm:$0xff] %v11820_v6  ;;  %v4153_v6 = vmul.f32 %v11664_v27, %v11664_v27  ;;  %v4156_v27 = vmul.f32 %v11702_v8, %v11702_v8 }
 0x2cf   : > { %v3672_v1 = vadd.f32 %v3622_v57, %v3242_v2  ;;  %v4151_v57 = vmul.f32 %v11643_v39, %v11643_v39 }
 0x2d1   : > { %v11827_v51 = vpop.f32.mrf.mxu3 }
 0x2d2   : > { %14908 = vst [vmem:[#allocation20_spill] sm:$0xff] %v11827_v51 }
 0x2d3   : > { %v11825_v12 = vpop.f32.mrf.mxu0 }
 0x2d4   : > { %14907 = vst [vmem:[#allocation19_spill] sm:$0xff] %v11825_v12  ;;  %v11829_v47 = vpop.f32.mrf.mxu2 }
 0x2d9   : > { %v11833_v29 = vpop.f32.mrf.mxu3 }
 0x2da   : > { %14909 = vst [vmem:[#allocation21_spill] sm:$0xff] %v11833_v29  ;;  %v4154_v29 = vmul.f32 %v11678_v37, %v11678_v37 }
 0x2db   : > { %v4020_v5 = vpop.f32.mrf.mxu0 }
 0x2dc   : > { %v11835_v38 = vadd.f32 %v4020_v5, %v3672_v1  ;;  %v11837_v31 = vpop.f32.mrf.mxu2  ;;  %v2945_v1 = vadd.f32 %v11367_v54, %v11387_v56  ;;  %v4083_v5 = vsel %vm1107_vm4, %v11657_v48, 0.0  ;;  %v4186_v54 = vsel %vm1107_vm4, %v4153_v6, 0.0 }
 0x2dd   : > { %14911 = vst [vmem:[#allocation23_spill] sm:$0xff] %v11837_v31  ;;  %v4155_v56 = vmul.f32 %v11685_v60, %v11685_v60  ;;  %v4089_v31 = vsel %vm1107_vm4, %v11685_v60, 0.0 }
 0x2de   : > { %14910 = vst [vmem:[#allocation22_spill] sm:$0xff] %v11835_v38  ;;  %v4184_v38 = vsel %vm1107_vm4, %v4152_v21, 0.0  ;;  %v3231_v21 = vadd.f32 %v11731_v7, %v2945_v1  ;;  %v4192_v1 = vsel %vm1107_vm4, %v4156_v27, 0.0 }
 0x2e1   : > { %v11847_v2 = vpop.f32.mrf.mxu3 }
 0x2e2   : > { %14914 = vst [vmem:[#allocation26_spill] sm:$0xff] %v11847_v2  ;;  %v4183_v2 = vsel %vm1107_vm4, %v4151_v57, 0.0  ;;  %v4188_v57 = vsel %vm1107_vm4, %v4154_v29, 0.0 }
 0x2e3   : > { %v11845_v63 = vpop.f32.mrf.mxu0  ;;  %v4185_v0 = vadd.f32 %v4184_v38, %v4183_v2  ;;  %v4190_v38 = vsel %vm1107_vm4, %v4155_v56, 0.0  ;;  %v4091_v2 = vsel %vm1107_vm4, %v11702_v8, 0.0 }
 0x2e4   : > { %14913 = vst [vmem:[#allocation25_spill] sm:$0xff] %v11845_v63  ;;  %v11858_v51 = vpop.f32.mrf.mxu2  ;;  %v4082_v63 = vsel %vm1107_vm4, %v11643_v39, 0.0  ;;  %v4087_v39 = vsel %vm1107_vm4, %v11678_v37, 0.0 }
 0x2e5   : > { %14915 = vst [vmem:[#allocation27_spill] sm:$0xff] %v11858_v51  ;;  %v4084_v48 = vadd.f32 %v4083_v5, %v4082_v63  ;;  %v2947_v51 = vadd.f32 %v11393_v62, %v11413_v26  ;;  %v4187_v6 = vadd.f32 %v4186_v54, %v4185_v0  ;;  %v4157_v62 = vmul.f32 %v11709_v11, %v11709_v11 }
 0x2e6   : > { %v3661_v26 = vadd.f32 %v11722_v17, %v3231_v21  ;;  %v4158_v5 = vmul.f32 %v11728_v61, %v11728_v61 }
 0x2e7   : > { %v4086_v45 = vadd.f32 %v4085_v22, %v4084_v48  ;;  %v3233_v29 = vadd.f32 %v11759_v46, %v2947_v51  ;;  %v2949_v22 = vadd.f32 %v11420_v52, %v11440_v9  ;;  %v11889_v48 = vpop.f32.mrf.mxu1  ;;  %v4189_v63 = vadd.f32 %v4188_v57, %v4187_v6 }
 0x2e8   : > { %v11897_v54 = vadd.f32 %v11750_v33, %v3661_v26  ;;  %v4093_v52 = vsel %vm1107_vm4, %v11709_v11, 0.0  ;;  %v4194_v9 = vsel %vm1107_vm4, %v4157_v62, 0.0  ;;  %v2951_v33 = vadd.f32 %v11448_v49, %v11464_v36 }
 0x2e9   : > { %v11880_v7 = vpop.f32.mrf.mxu3  ;;  %v4088_v0 = vadd.f32 %v4087_v39, %v4086_v45  ;;  %v4191_v51 = vadd.f32 %v4190_v38, %v4189_v63  ;;  %v4159_v45 = vmul.f32 %v11740_v44, %v11740_v44  ;;  %v3663_v39 = vadd.f32 %v11752_v16, %v3233_v29 }
 0x2ea   : > { %v3235_v27 = vadd.f32 %v11780_v50, %v2949_v22  ;;  %v4196_v57 = vsel %vm1107_vm4, %v4158_v5, 0.0  ;;  %v4160_v6 = vmul.f32 %v11897_v54, %v11897_v54  ;;  %v4097_v50 = vsel %vm1107_vm4, %v11740_v44, 0.0 }
 0x2eb   : > { %v11878_v12 = vpop.f32.mrf.mxu0  ;;  %v4090_v46 = vadd.f32 %v4089_v31, %v4088_v0  ;;  %v4193_v21 = vadd.f32 %v4192_v1, %v4191_v51  ;;  %v4095_v31 = vsel %vm1107_vm4, %v11728_v61, 0.0  ;;  %v11916_v38 = vadd.f32 %v11772_v41, %v3663_v39 }
 0x2ec   : > { %v11899_v17 = vpop.f32.mrf.mxu2  ;;  %v4198_v49 = vsel %vm1107_vm4, %v4159_v45, 0.0  ;;  %v4161_v36 = vmul.f32 %v11764_v42, %v11764_v42  ;;  %v3665_v29 = vadd.f32 %v11774_v19, %v3235_v27  ;;  %v3237_v22 = vadd.f32 %v11797_v24, %v2951_v33 }
 0x2ed   : > { %v4092_v56 = vadd.f32 %v4091_v2, %v4090_v46  ;;  %v4195_v16 = vadd.f32 %v4194_v9, %v4193_v21  ;;  %v4099_v2 = vsel %vm1107_vm4, %v11897_v54, 0.0  ;;  %v4200_v1 = vsel %vm1107_vm4, %v4160_v6, 0.0 }
 0x2ee   : > { %v4162_v5 = vmul.f32 %v11916_v38, %v11916_v38  ;;  %v11935_v46 = vadd.f32 %v11789_v59, %v3665_v29  ;;  %v2953_v19 = vadd.f32 %v11471_v23, %v11487_v58  ;;  %v4101_v45 = vsel %vm1107_vm4, %v11764_v42, 0.0 }
 0x2ef   : > { %v4094_v62 = vadd.f32 %v4093_v52, %v4092_v56  ;;  %v4197_v63 = vadd.f32 %v4196_v57, %v4195_v16  ;;  %v2921_v24 = vpop.f32.mrf.mxu1  ;;  %v4202_v39 = vsel %vm1107_vm4, %v4161_v36, 0.0  ;;  %v4163_v27 = vmul.f32 %v11785_v3, %v11785_v3 }
 0x2f0   : > { %v3667_v33 = vadd.f32 %v11791_v55, %v3237_v22  ;;  %v4103_v21 = vsel %vm1107_vm4, %v11916_v38, 0.0  ;;  %v4204_v23 = vsel %vm1107_vm4, %v4162_v5, 0.0  ;;  %v4164_v58 = vmul.f32 %v11935_v46, %v11935_v46 }
 0x2f1   : > { %v4096_v0 = vadd.f32 %v4095_v31, %v4094_v62  ;;  %v11927_v41 = vpop.f32.mrf.mxu3  ;;  %v4199_v9 = vadd.f32 %v4198_v49, %v4197_v63  ;;  %v3239_v57 = vadd.f32 %v11807_v13, %v2953_v19  ;;  %v2955_v6 = vadd.f32 %v11502_v43, %v11510_v32 }
 0x2f2   : > { %v11953_v31 = vadd.f32 %v11803_v40, %v3667_v33  ;;  %v4206_v49 = vsel %vm1107_vm4, %v4163_v27, 0.0  ;;  %v4165_v36 = vmul.f32 %v11799_v53, %v11799_v53  ;;  %v4107_v13 = vsel %vm1107_vm4, %v11935_v46, 0.0 }
 0x2f3   : > { %v11920_v26 = vpop.f32.mrf.mxu0  ;;  %v4098_v52 = vadd.f32 %v4097_v50, %v4096_v0  ;;  %v4201_v56 = vadd.f32 %v4200_v1, %v4199_v9  ;;  %v4105_v50 = vsel %vm1107_vm4, %v11785_v3, 0.0  ;;  %v3241_v22 = vadd.f32 %v11818_v35, %v2955_v6  ;;  %v14919_v6 = vld [vmem:[#allocation24_spill] sm:$0xff] }
 0x2f4   : > { %v11937_v51 = vpop.f32.mrf.mxu2  ;;  %v4208_v43 = vsel %vm1107_vm4, %v4164_v58, 0.0  ;;  %v4166_v32 = vmul.f32 %v11953_v31, %v11953_v31  ;;  %v3669_v0 = vadd.f32 %v11805_v28, %v3239_v57  ;;  %v2958_v35 = vadd.f32 %v11822_v20, %v11538_v15  ;;  %v14917_v58 = vld [vmem:[#allocation23_spill] sm:$0xff] }
 0x2f5   : > { %v4100_v59 = vadd.f32 %v4099_v2, %v4098_v52  ;;  %v4203_v55 = vadd.f32 %v4202_v39, %v4201_v56  ;;  %v2957_v2 = vadd.f32 %v11816_v14, %v11531_v25  ;;  %v4109_v52 = vsel %vm1107_vm4, %v11799_v53, 0.0 }
 0x2f6   : > { %v4210_v9 = vsel %vm1107_vm4, %v4165_v36, 0.0  ;;  %v3671_v25 = vadd.f32 %v11814_v34, %v3241_v22  ;;  %v2959_v33 = vadd.f32 %v11831_v10, %v11552_v4  ;;  %v4111_v15 = vsel %vm1107_vm4, %v11953_v31, 0.0  ;;  %v14920_v4 = vld [vmem:[#allocation7_spill] sm:$0xff]  ;;  %v14922_v22 = vld [vmem:[#allocation20_spill] sm:$0xff] }
 0x2f7   : > { %v4102_v62 = vadd.f32 %v4101_v45, %v4100_v59  ;;  %v4205_v40 = vadd.f32 %v4204_v23, %v4203_v55  ;;  %v11982_v45 = vadd.f32 %v11812_v18, %v3669_v0  ;;  %v2923_v28 = vpop.f32.mrf.mxu1  ;;  %v3243_v14 = vadd.f32 %v11829_v47, %v2957_v2  ;;  %v14918_v47 = vld [vmem:[#allocation13_spill] sm:$0xff]  ;;  %v14923_v0 = vld [vmem:[#allocation18_spill] sm:$0xff]  ;;  %v14924_v2 = vld [vmem:[#allocation27_spill] sm:$0xff] }
 0x2f8   : > { %v4212_v20 = vsel %vm1107_vm4, %v4166_v32, 0.0  ;;  %v4167_v59 = vmul.f32 %v11809_v30, %v11809_v30  ;;  %v3244_v34 = vadd.f32 %v14917_v58, %v2958_v35  ;;  %v2961_v10 = vadd.f32 %v11889_v48, %v14920_v4 }
 0x2f9   : > { %v4104_v29 = vadd.f32 %v4103_v21, %v4102_v62  ;;  %v4207_v5 = vadd.f32 %v4206_v49, %v4205_v40  ;;  %v11974_v19 = vpop.f32.mrf.mxu3  ;;  %v14916_v21 = vld [vmem:[#allocation19_spill] sm:$0xff]  ;;  %v2960_v62 = vadd.f32 %v14919_v6, %v14918_v47  ;;  %v4113_v55 = vsel %vm1107_vm4, %v11809_v30, 0.0  ;;  %v14921_v49 = vld [vmem:[#allocation8_spill] sm:$0xff]  ;;  %v14929_v6 = vld [vmem:[#allocation26_spill] sm:$0xff] }
 0x2fa   : > { %v11994_v23 = vadd.f32 %v14916_v21, %v3671_v25  ;;  %v2962_v36 = vadd.f32 %v2921_v24, %v14921_v49  ;;  %v4115_v32 = vsel %vm1107_vm4, %v11982_v45, 0.0  ;;  %v4169_v48 = vmul.f32 %v14923_v0, %v14923_v0  ;;  %v14925_v24 = vld [vmem:[#allocation25_spill] sm:$0xff] }
 0x2fb   : > { %v11958_v16 = vpop.f32.mrf.mxu0  ;;  %v4106_v1 = vadd.f32 %v4105_v50, %v4104_v29  ;;  %v4209_v27 = vadd.f32 %v4208_v43, %v4207_v5  ;;  %v4168_v50 = vmul.f32 %v11982_v45, %v11982_v45  ;;  %v4214_v43 = vsel %vm1107_vm4, %v4167_v59, 0.0  ;;  %v14927_v25 = vld [vmem:[#allocation9_spill] sm:$0xff] }
 0x2fc   : > { %v3207_v63 = vpop.f32.mrf.mxu2  ;;  %v3246_v59 = vadd.f32 %v11899_v17, %v2960_v62 }
 0x2fd   : > { %v4108_v39 = vadd.f32 %v4107_v13, %v4106_v1  ;;  %v4211_v56 = vadd.f32 %v4210_v9, %v4209_v27  ;;  %v3673_v13 = vadd.f32 %v14922_v22, %v3243_v14  ;;  %v3245_v1 = vadd.f32 %v14924_v2, %v2959_v33 }
 0x2fe   : > { %v2963_v14 = vadd.f32 %v2923_v28, %v14927_v25  ;;  %v4119_v28 = vsel %vm1107_vm4, %v11994_v23, 0.0 }
 0x2ff   : > { %v4110_v18 = vadd.f32 %v4109_v52, %v4108_v39  ;;  %v4213_v40 = vadd.f32 %v4212_v20, %v4211_v56  ;;  %v4170_v52 = vmul.f32 %v11994_v23, %v11994_v23  ;;  %v12016_v9 = vadd.f32 %v14925_v24, %v3673_v13  ;;  %v14926_v39 = vld [vmem:[#allocation21_spill] sm:$0xff]  ;;  %v14928_v56 = vld [vmem:[#allocation22_spill] sm:$0xff] }
 0x300   : > { %v3674_v27 = vadd.f32 %v14926_v39, %v3244_v34  ;;  %v4117_v20 = vsel %vm1107_vm4, %v14923_v0, 0.0  ;;  %v4171_v21 = vmul.f32 %v14928_v56, %v14928_v56  ;;  %v4218_v34 = vsel %vm1107_vm4, %v4169_v48, 0.0 }
 0x301   : > { %v4112_v29 = vadd.f32 %v4111_v15, %v4110_v18  ;;  %v4216_v15 = vsel %vm1107_vm4, %v4168_v50, 0.0  ;;  %v4215_v33 = vadd.f32 %v4214_v43, %v4213_v40  ;;  %v3639_v47 = vpop.f32.mrf.mxu3  ;;  %v3675_v4 = vadd.f32 %v14929_v6, %v3245_v1  ;;  %v2926_v50 = vpop.f32.mrf.mxu1 }
 0x302   : > { %v12027_v58 = vadd.f32 %v11878_v12, %v3674_v27  ;;  %v4220_v49 = vsel %vm1107_vm4, %v4170_v52, 0.0  ;;  %v4121_v40 = vsel %vm1107_vm4, %v14928_v56, 0.0  ;;  %v3676_v13 = vadd.f32 %v11880_v7, %v3246_v59 }
 0x303   : > { %v4032_v57 = vpop.f32.mrf.mxu0  ;;  %v4114_v35 = vadd.f32 %v4113_v55, %v4112_v29  ;;  %v3247_v55 = vadd.f32 %v11937_v51, %v2961_v10  ;;  %v4217_v17 = vadd.f32 %v4216_v15, %v4215_v33  ;;  %v4172_v29 = vmul.f32 %v12016_v9, %v12016_v9  ;;  %v14930_v33 = vld [vmem:[#allocation10_spill] sm:$0xff] }
 0x304   : > { %v3209_v5 = vpop.f32.mrf.mxu2  ;;  %v12040_v22 = vadd.f32 %v11920_v26, %v3675_v4  ;;  %v3248_v43 = vadd.f32 %v3207_v63, %v2962_v36  ;;  %v4222_v10 = vsel %vm1107_vm4, %v4171_v21, 0.0  ;;  %v4173_v48 = vmul.f32 %v12027_v58, %v12027_v58 }
 0x305   : > { %v4116_v18 = vadd.f32 %v4115_v32, %v4114_v35  ;;  %v4219_v32 = vadd.f32 %v4218_v34, %v4217_v17  ;;  %v4123_v2 = vsel %vm1107_vm4, %v12016_v9, 0.0  ;;  %v12049_v1 = vadd.f32 %v11958_v16, %v3676_v13 }
 0x306   : > { %v3677_v35 = vadd.f32 %v11927_v41, %v3247_v55  ;;  %v3249_v26 = vadd.f32 %v3209_v5, %v2963_v14  ;;  %v4224_v63 = vsel %vm1107_vm4, %v4172_v29, 0.0  ;;  %v4125_v36 = vsel %vm1107_vm4, %v12027_v58, 0.0 }
 0x307   : > { %v4118_v62 = vadd.f32 %v4117_v20, %v4116_v18  ;;  %v4221_v24 = vadd.f32 %v4220_v49, %v4219_v32  ;;  %v4174_v39 = vmul.f32 %v12040_v22, %v12040_v22  ;;  %v3678_v25 = vadd.f32 %v11974_v19, %v3248_v43 }
 0x308   : > { %v12057_v27 = vadd.f32 %v4032_v57, %v3677_v35  ;;  %v4226_v41 = vsel %vm1107_vm4, %v4173_v48, 0.0  ;;  %v4127_v5 = vsel %vm1107_vm4, %v12040_v22, 0.0  ;;  %v4175_v14 = vmul.f32 %v12049_v1, %v12049_v1 }
 0x309   : > { %v4120_v51 = vadd.f32 %v4119_v28, %v4118_v62  ;;  %v4223_v16 = vadd.f32 %v4222_v10, %v4221_v24  ;;  %v3679_v59 = vadd.f32 %v3639_v47, %v3249_v26  ;;  %v2964_v18 = vadd.f32 %v2926_v50, %v14930_v33  ;;  %v3642_v34 = vpop.f32.mrf.mxu3  ;;  %v2928_v17 = vpop.f32.mrf.mxu1 }
 0x30a   : > { %v4228_v19 = vsel %vm1107_vm4, %v4174_v39, 0.0  ;;  %v4129_v6 = vsel %vm1107_vm4, %v12049_v1, 0.0  ;;  %v4176_v4 = vmul.f32 %v12057_v27, %v12057_v27  ;;  %v4230_v47 = vsel %vm1107_vm4, %v4175_v14, 0.0 }
 0x30b   : > { %v4035_v12 = vpop.f32.mrf.mxu0  ;;  %v4122_v7 = vadd.f32 %v4121_v40, %v4120_v51  ;;  %v4225_v21 = vadd.f32 %v4224_v63, %v4223_v16  ;;  %v4131_v50 = vsel %vm1107_vm4, %v12057_v27, 0.0 }
 0x30c   : > { %v3212_v52 = vpop.f32.mrf.mxu2  ;;  %v12065_v20 = vadd.f32 %v4035_v12, %v3678_v25  ;;  %v4232_v32 = vsel %vm1107_vm4, %v4176_v4, 0.0 }
 0x30d   : > { %v4124_v15 = vadd.f32 %v4123_v2, %v4122_v7  ;;  %v4227_v62 = vadd.f32 %v4226_v41, %v4225_v21  ;;  %v3250_v12 = vadd.f32 %v3212_v52, %v2964_v18 }
 0x30e   : > { %v4177_v29 = vmul.f32 %v12065_v20, %v12065_v20  ;;  %v4133_v51 = vsel %vm1107_vm4, %v12065_v20, 0.0 }
 0x30f   : > { %v4126_v57 = vadd.f32 %v4125_v36, %v4124_v15  ;;  %v4229_v40 = vadd.f32 %v4228_v19, %v4227_v62  ;;  %v3680_v24 = vadd.f32 %v3642_v34, %v3250_v12  ;;  %v14931_v36 = vld [vmem:[#allocation11_spill] sm:$0xff] }
 0x310   : > { %v4234_v35 = vsel %vm1107_vm4, %v4177_v29, 0.0  ;;  %v2965_v39 = vadd.f32 %v2928_v17, %v14931_v36  ;;  %v14932_v17 = vld [vmem:[#allocation12_spill] sm:$0xff] }
 0x311   : > { %v4128_v49 = vadd.f32 %v4127_v5, %v4126_v57  ;;  %v4231_v48 = vadd.f32 %v4230_v47, %v4229_v40  ;;  %v3644_v5 = vpop.f32.mrf.mxu3  ;;  %v2931_v18 = vpop.f32.mrf.mxu1 }
 0x312   : > { %v2966_v62 = vadd.f32 %v2931_v18, %v14932_v17 }
 0x313   : > { %v4037_v28 = vpop.f32.mrf.mxu0  ;;  %v4130_v13 = vadd.f32 %v4129_v6, %v4128_v49  ;;  %v4233_v52 = vadd.f32 %v4232_v32, %v4231_v48 }
 0x314   : > { %v12073_v55 = vadd.f32 %v4037_v28, %v3679_v59  ;;  %v3214_v43 = vpop.f32.mrf.mxu2 }
 0x315   : > { %v4132_v2 = vadd.f32 %v4131_v50, %v4130_v13  ;;  %v4235_v15 = vadd.f32 %v4234_v35, %v4233_v52  ;;  %v3251_v33 = vadd.f32 %v3214_v43, %v2965_v39 }
 0x316   : > { %v4178_v10 = vmul.f32 %v12073_v55, %v12073_v55  ;;  %v4135_v26 = vsel %vm1107_vm4, %v12073_v55, 0.0 }
 0x317   : > { %v4134_v7 = vadd.f32 %v4133_v51, %v4132_v2  ;;  %v3681_v6 = vadd.f32 %v3644_v5, %v3251_v33  ;;  %v14933_v2 = vld [vmem:[#allocation14_spill] sm:$0xff] }
 0x318   : > { %v4236_v25 = vsel %vm1107_vm4, %v4178_v10, 0.0 }
 0x319   : > { %v4136_v41 = vadd.f32 %v4135_v26, %v4134_v7  ;;  %v4237_v21 = vadd.f32 %v4236_v25, %v4235_v15  ;;  %v3647_v12 = vpop.f32.mrf.mxu3  ;;  %v2933_v43 = vpop.f32.mrf.mxu1 }
 0x31a   : > { %v2967_v35 = vadd.f32 %v2933_v43, %v14933_v2 }
 0x31b   : > { %v4040_v63 = vpop.f32.mrf.mxu0 }
 0x31c   : > { %v12090_v16 = vadd.f32 %v4040_v63, %v3680_v24  ;;  %v3217_v19 = vpop.f32.mrf.mxu2 }
 0x31d   : > { %v3252_v29 = vadd.f32 %v3217_v19, %v2966_v62 }
 0x31e   : > { %v4137_v14 = vsel %vm1107_vm4, %v12090_v16, 0.0  ;;  %v4179_v59 = vmul.f32 %v12090_v16, %v12090_v16 }
 0x31f   : > { %v4138_v57 = vadd.f32 %v4137_v14, %v4136_v41  ;;  %v3682_v51 = vadd.f32 %v3647_v12, %v3252_v29 }
 0x320   : > { %v4238_v34 = vsel %vm1107_vm4, %v4179_v59, 0.0 }
 0x321   : > { %v4239_v28 = vadd.f32 %v4238_v34, %v4237_v21  ;;  %v3649_v39 = vpop.f32.mrf.mxu3 }
 0x323   : > { %v4042_v4 = vpop.f32.mrf.mxu0 }
 0x324   : > { %v12098_v49 = vadd.f32 %v4042_v4, %v3681_v6  ;;  %v3219_v48 = vpop.f32.mrf.mxu2 }
 0x325   : > { %v3253_v7 = vadd.f32 %v3219_v48, %v2967_v35 }
 0x326   : > { %v4139_v47 = vsel %vm1107_vm4, %v12098_v49, 0.0  ;;  %v4180_v50 = vmul.f32 %v12098_v49, %v12098_v49 }
 0x327   : > { %v4140_v40 = vadd.f32 %v4139_v47, %v4138_v57  ;;  %v3683_v15 = vadd.f32 %v3649_v39, %v3253_v7  ;;  %v14934_v39 = vld [vmem:[#allocation15_spill] sm:$0xff] }
 0x328   : > { %v4240_v13 = vsel %vm1107_vm4, %v4180_v50, 0.0 }
 0x329   : > { %v4241_v32 = vadd.f32 %v4240_v13, %v4239_v28 }
 0x32b   : > { %v4045_v10 = vpop.f32.mrf.mxu0 }
 0x32c   : > { %v12106_v26 = vadd.f32 %v4045_v10, %v3682_v51 }
 0x32e   : > { %v4141_v24 = vsel %vm1107_vm4, %v12106_v26, 0.0  ;;  %v4181_v52 = vmul.f32 %v12106_v26, %v12106_v26 }
 0x32f   : > { %v4142_v63 = vadd.f32 %v4141_v24, %v4140_v40 }
 0x330   : > { %v4242_v36 = vsel %vm1107_vm4, %v4181_v52, 0.0 }
 0x331   : > { %v4243_v25 = vadd.f32 %v4242_v36, %v4241_v32 }
 0x333   : > { %v4047_v41 = vpop.f32.mrf.mxu0 }
 0x334   : > { %v12113_v5 = vadd.f32 %v4047_v41, %v3683_v15  ;;  %v14935_v15 = vld [vmem:[#allocation16_spill] sm:$0xff] }
 0x336   : > { %v4143_v14 = vsel %vm1107_vm4, %v12113_v5, 0.0  ;;  %v4182_v59 = vmul.f32 %v12113_v5, %v12113_v5 }
 0x337   : > { %v4144_v33 = vadd.f32 %v4143_v14, %v4142_v63 }
 0x338   : > { %v4244_v18 = vsel %vm1107_vm4, %v4182_v59, 0.0 }
 0x339   : > { %v4145_v21 = vrot.slane %v4144_v33, 4  ;;  %v4245_v57 = vadd.f32 %v4244_v18, %v4243_v25 }
 0x33b   : > { %v4146_v34 = vadd.f32 %v4145_v21, %v4144_v33  ;;  %v4246_v28 = vrot.slane %v4245_v57, 4 }
 0x33d   : > { %v4147_v19 = vrot.slane %v4146_v34, 2  ;;  %v4247_v6 = vadd.f32 %v4246_v28, %v4245_v57 }
 0x33f   : > { %v4148_v4 = vadd.f32 %v4147_v19, %v4146_v34  ;;  %v4248_v17 = vrot.slane %v4247_v6, 2 }
 0x341   : > { %v4149_v62 = vrot.slane %v4148_v4, 1  ;;  %v4249_v47 = vadd.f32 %v4248_v17, %v4247_v6 }
 0x343   : > { %v4150_v50 = vadd.f32 %v4149_v62, %v4148_v4  ;;  %v4250_v29 = vrot.slane %v4249_v47, 1 }
 0x345   : > { %v4251_v12 = vadd.f32 %v4250_v29, %v4249_v47  ;;  %v12120_v40 = vmul.f32 0.00390625, %v4150_v50 }
 0x347   : > { %v4253_v13 = vmul.f32 0.00390625, %v4251_v12  ;;  %v4254_v43 = vmul.f32 %v12120_v40, %v12120_v40  ;;  %v4287_v32 = vsub.f32 %v12106_v26, %v12120_v40  ;;  %v4288_v51 = vsub.f32 %v12113_v5, %v12120_v40  ;;  %v9972_v26 = vld [vmem:[%s14802_s2 + $0x6] sm:$0x3]  ;;  %v14936_v5 = vld [vmem:[#allocation17_spill] sm:$0xff] }
 0x348   : > { %v4284_v35 = vsub.f32 %v12073_v55, %v12120_v40  ;;  %v4285_v24 = vsub.f32 %v12090_v16, %v12120_v40  ;;  %v4286_v52 = vsub.f32 %v12098_v49, %v12120_v40  ;;  %v4257_v25 = vsub.f32 %v14934_v39, %v12120_v40 }
 0x349   : > { %v4255_v10 = vsub.f32 %v4253_v13, %v4254_v43  ;;  %v4258_v41 = vsub.f32 %v14935_v15, %v12120_v40  ;;  %v4259_v14 = vsub.f32 %v14936_v5, %v12120_v40  ;;  %v6431_v59 = vsel %vm1156_vm0, %v9972_v26, 0 }
 0x34a   : > { %v4260_v18 = vsub.f32 %v11678_v37, %v12120_v40  ;;  %v4261_v21 = vsub.f32 %v11685_v60, %v12120_v40  ;;  %v4262_v57 = vsub.f32 %v11702_v8, %v12120_v40  ;;  %6440 = vmatpush.bf16.msrb.mxu0 %v6431_v59  ;;  %v4263_v34 = vsub.f32 %v11709_v11, %v12120_v40 }
 0x34b   : > { %v4256_v48 = vmax.f32 %v4255_v10, 0.0  ;;  %v4264_v28 = vsub.f32 %v11728_v61, %v12120_v40  ;;  %v4265_v19 = vsub.f32 %v11740_v44, %v12120_v40  ;;  %v4266_v6 = vsub.f32 %v11897_v54, %v12120_v40 }
 0x34c   : > { %v4267_v60 = vsub.f32 %v11764_v42, %v12120_v40  ;;  %v4268_v8 = vsub.f32 %v11916_v38, %v12120_v40  ;;  %v4269_v11 = vsub.f32 %v11785_v3, %v12120_v40  ;;  %v4270_v61 = vsub.f32 %v11935_v46, %v12120_v40 }
 0x34d   : > { %v4289_v2 = vadd.f32 1e-05, %v4256_v48  ;;  %v4271_v44 = vsub.f32 %v11799_v53, %v12120_v40  ;;  %v4272_v54 = vsub.f32 %v11953_v31, %v12120_v40  ;;  %v4273_v42 = vsub.f32 %v11809_v30, %v12120_v40 }
 0x34e   : > { %v4274_v38 = vsub.f32 %v11982_v45, %v12120_v40  ;;  %v4275_v3 = vsub.f32 %v14923_v0, %v12120_v40  ;;  %v4276_v46 = vsub.f32 %v11994_v23, %v12120_v40  ;;  %v4277_v53 = vsub.f32 %v14928_v56, %v12120_v40 }
 0x34f   : > { %10344 = vrsqrt.f32 %v4289_v2  ;;  %vm4296_vm6 = vweird.f32 %v4289_v2  ;;  %v4278_v31 = vsub.f32 %v12016_v9, %v12120_v40  ;;  %v4279_v30 = vsub.f32 %v12027_v58, %v12120_v40 }
 0x350   : > { %v4280_v45 = vsub.f32 %v12040_v22, %v12120_v40  ;;  %v4281_v62 = vsub.f32 %v12049_v1, %v12120_v40  ;;  %v4282_v5 = vsub.f32 %v12057_v27, %v12120_v40 }
 0x355   : > { %v10345_v7 = vpop.eup %10344 }
 0x356   : > { %v4291_v63 = vmul.f32 %v10345_v7, %v4289_v2  ;;  %vm4297_vm2 = vweird.f32 %v10345_v7 }
 0x357   : > { %vm4298_vm12 = vmor %vm4296_vm6, %vm4297_vm2 }
 0x358   : > { %v4292_v36 = vmul.f32 %v10345_v7, %v4291_v63  ;;  %vm12959_vm2 = vmor %vm5089_vm13, %vm5090_vm15 }
 0x35a   : > { %v4293_v33 = vmul.f32 0.5, %v4292_v36 }
 0x35c   : > { %v4294_v37 = vsub.f32 1.5, %v4293_v33 }
 0x35e   : > { %v4295_v4 = vmul.f32 %v10345_v7, %v4294_v37 }
 0x360   : > { %v4299_v17 = vsel %vm4298_vm12, %v10345_v7, %v4295_v4 }
 0x361   : > { %v4330_v0 = vmul.f32 %v4299_v17, %v4287_v32  ;;  %v4331_v47 = vmul.f32 %v4299_v17, %v4288_v51  ;;  %v4300_v50 = vmul.f32 %v4299_v17, %v4257_v25  ;;  %v4301_v23 = vmul.f32 %v4299_v17, %v4258_v41 }
 0x362   : > { %v12188_v29 = vmul.f32 %v4299_v17, %v4259_v14  ;;  %v12190_v56 = vmul.f32 %v4299_v17, %v4260_v18  ;;  %v12192_v12 = vmul.f32 %v4299_v17, %v4261_v21  ;;  %v12194_v9 = vmul.f32 %v4299_v17, %v4262_v57 }
 0x363   : > { %v4362_v13 = vmax.f32 %v4330_v0, 0.0  ;;  %v4363_v58 = vmax.f32 %v4331_v47, 0.0  ;;  %v12196_v43 = vmul.f32 %v4299_v17, %v4263_v34  ;;  %v12198_v22 = vmul.f32 %v4299_v17, %v4264_v28 }
 0x364   : > { %v12200_v10 = vmul.f32 %v4299_v17, %v4265_v19  ;;  %v12202_v1 = vmul.f32 %v4299_v17, %v4266_v6  ;;  %v12204_v32 = vmul.f32 %v4299_v17, %v4267_v60  ;;  %v12206_v51 = vmul.f32 %v4299_v17, %v4268_v8 }
 0x365   : > { %v12208_v48 = vpack.c.bf16 %v4362_v13, %v4362_v13  ;;  %v4395_v2 = vpack.c.bf16 %v4363_v58, %v4363_v58  ;;  %v12210_v7 = vmul.f32 %v4299_v17, %v4269_v11  ;;  %v12212_v63 = vmul.f32 %v4299_v17, %v4270_v61 }
 0x366   : > { %v12214_v36 = vmul.f32 %v4299_v17, %v4271_v44  ;;  %v12216_v26 = vmul.f32 %v4299_v17, %v4272_v54  ;;  %v12218_v39 = vmul.f32 %v4299_v17, %v4273_v42  ;;  %v12220_v25 = vmul.f32 %v4299_v17, %v4274_v38 }
 0x367   : > { %v4654_v15 = vshrl.u32 %v12208_v48, 16  ;;  %v4662_v41 = vshrl.u32 %v4395_v2, 16  ;;  %v4283_v14 = vsub.f32 %v12065_v20, %v12120_v40  ;;  %v12227_v59 = vmul.f32 %v4299_v17, %v4275_v3  ;;  %v4830_v20 = vld [vmem:[#allocation3 + $0xc8] sm:$0x1] }
 0x368   : > { %v12229_v33 = vmul.f32 %v4299_v17, %v4276_v46  ;;  %v12231_v18 = vmul.f32 %v4299_v17, %v4277_v53  ;;  %v12233_v21 = vmul.f32 %v4299_v17, %v4278_v31  ;;  %v4665_v28 = vshll.u32 %v4395_v2, 16 }
 0x369   : > { %v4656_v57 = vrot.slane %v4654_v15, 7  ;;  %v4664_v34 = vrot.slane %v4662_v41, 7  ;;  %v12237_v19 = vmul.f32 %v4299_v17, %v4279_v30  ;;  %v12245_v6 = vmul.f32 %v4299_v17, %v4280_v45  ;;  %v4721_v30 = vld [vmem:[#allocation3 + $0xc] sm:$0xf] }
 0x36a   : > { %v12247_v37 = vmul.f32 %v4299_v17, %v4281_v62  ;;  %v12249_v60 = vmul.f32 %v4299_v17, %v4282_v5  ;;  %v12251_v8 = vmul.f32 %v4299_v17, %v4283_v14  ;;  %v12256_v54 = vmul.f32 %v4299_v17, %v4284_v35  ;;  %v5072_v5 = vld [vmem:[%s14802_s2] sm:$0x3] }
 0x36b   : > { %v4660_v11 = vrot.slane %v4656_v57, 4  ;;  %v4667_v61 = vor.u32 %v4665_v28, %v4664_v34  ;;  %v4669_v44 = vrot.slane %v4664_v34, 4  ;;  %v12261_v4 = vmul.f32 %v4299_v17, %v4285_v24 }
 0x36c   : > { %v12266_v42 = vmul.f32 %v4299_v17, %v4286_v52  ;;  %v4332_v38 = vmax.f32 %v4300_v50, 0.0  ;;  %v4333_v55 = vmax.f32 %v4301_v23, 0.0  ;;  %v4657_v49 = vshll.u32 %v12208_v48, 16  ;;  %v4826_v23 = vld [vmem:[#allocation3 + $0xc0] sm:$0xf] }
 0x36d   : > { %v4668_v3 = vsel %vm12241_vm5, %v4660_v11, %v4667_v61  ;;  %v4831_v53 = vsel %vm10534_vm14, %v4669_v44, %v4830_v20  ;;  %v14941_v17 = vmov 0  ;;  %v9841_v13 = vrot.slane %v4665_v28, 11 }
 0x36e   : > { %4829 = vst.msk [vmem:[#allocation3 + $0xc4] sm:$0xf] %vm402_vm11, %v4668_v3  ;;  %v4364_v35 = vpack.c.bf16 %v4332_v38, %v4332_v38  ;;  %v12273_v16 = vpack.c.bf16 %v4333_v55, %v4333_v55  ;;  %v14942_v17 = vsel %vm12279_vm8, 4294967295, %v14941_v17  ;;  %v4659_v0 = vor.u32 %v4657_v49, %v4656_v57 }
 0x36f   : > { %4832 = vst [vmem:[#allocation3 + $0xc8] sm:$0x1] %v4831_v53  ;;  %v4334_v57 = vmax.f32 %v12188_v29, 0.0  ;;  %v4335_v11 = vmax.f32 %v12190_v56, 0.0  ;;  %v4336_v61 = vmax.f32 %v12192_v12, 0.0  ;;  %v4337_v44 = vmax.f32 %v12194_v9, 0.0 }
 0x370   : > { %v4399_v24 = vshrl.u32 %v4364_v35, 16  ;;  %v4407_v31 = vshrl.u32 %v12273_v16, 16  ;;  %v4402_v52 = vshll.u32 %v4364_v35, 16  ;;  %14943 = vst [vmem:[#allocation19_spill] sm:$0xff] %v14942_v17  ;;  %v4410_v62 = vshll.u32 %v12273_v16, 16 }
 0x371   : > { %v4827_v28 = vsel %vm12279_vm8, %v4659_v0, %v4826_v23  ;;  %v5795_v38 = vsel %vm1156_vm0, %v5072_v5, 0  ;;  %v4338_v3 = vmax.f32 %v12196_v43, 0.0  ;;  %v4339_v53 = vmax.f32 %v12198_v22, 0.0  ;;  %v4728_v0 = vld [vmem:[#allocation3 + $0x18] sm:$0xf] }
 0x372   : > { %v4401_v40 = vrot.slane %v4399_v24, 7  ;;  %v4409_v45 = vrot.slane %v4407_v31, 7  ;;  %v4340_v55 = vmax.f32 %v12200_v10, 0.0  ;;  %v4341_v29 = vmax.f32 %v12202_v1, 0.0  ;;  %5804 = vmatpush.bf16.msrb.mxu2 %v5795_v38  ;;  %4828 = vst [vmem:[#allocation3 + $0xc0] sm:$0xf] %v4827_v28 }
 0x373   : > { %v4342_v35 = vmax.f32 %v12204_v32, 0.0  ;;  %v4343_v16 = vmax.f32 %v12206_v51, 0.0  ;;  %v4344_v56 = vmax.f32 %v12210_v7, 0.0  ;;  %v4345_v12 = vmax.f32 %v12212_v63, 0.0  ;;  %v4725_v10 = vld [vmem:[#allocation3 + $0x14] sm:$0x1] }
 0x374   : > { %v4404_v47 = vor.u32 %v4402_v52, %v4401_v40  ;;  %v4405_v50 = vrot.slane %v4401_v40, 4  ;;  %v4412_v58 = vor.u32 %v4410_v62, %v4409_v45  ;;  %v4346_v9 = vmax.f32 %v12214_v36, 0.0 }
 0x375   : > { %v4347_v43 = vmax.f32 %v12216_v26, 0.0  ;;  %v4414_v31 = vrot.slane %v4409_v45, 4  ;;  %v12311_v22 = vpack.c.bf16 %v4334_v57, %v4334_v57  ;;  %v4348_v1 = vmax.f32 %v12218_v39, 0.0 }
 0x376   : > { %v5022_v2 = vld [vmem:[#allocation3 + $0xc8] sm:$0x1]  ;;  %v4722_v41 = vsel %vm12279_vm8, %v4404_v47, %v4721_v30  ;;  %v4413_v20 = vsel %vm12241_vm5, %v4405_v50, %v4412_v58  ;;  %v4349_v49 = vmax.f32 %v12220_v25, 0.0  ;;  %v4350_v32 = vmax.f32 %v12227_v59, 0.0 }
 0x377   : > { %v5023_v34 = vsel %vm10481_vm3, %v9841_v13, %v5022_v2  ;;  %4723 = vst [vmem:[#allocation3 + $0xc] sm:$0xf] %v4722_v41  ;;  %v12316_v51 = vpack.c.bf16 %v4335_v11, %v4335_v11  ;;  %v4351_v63 = vmax.f32 %v12229_v33, 0.0  ;;  %v4352_v40 = vmax.f32 %v12231_v18, 0.0 }
 0x378   : > { %5024 = vst [vmem:[#allocation3 + $0xc8] sm:$0x1] %v5023_v34  ;;  %v4353_v36 = vmax.f32 %v12233_v21, 0.0  ;;  %v4354_v26 = vmax.f32 %v12237_v19, 0.0  ;;  %v4355_v39 = vmax.f32 %v12245_v6, 0.0  ;;  %v4356_v25 = vmax.f32 %v12247_v37, 0.0 }
 0x379   : > { %4724 = vst.msk [vmem:[#allocation3 + $0x10] sm:$0xf] %vm402_vm11, %v4413_v20  ;;  %v4357_v59 = vmax.f32 %v12249_v60, 0.0  ;;  %v4358_v30 = vmax.f32 %v12251_v8, 0.0  ;;  %v4359_v33 = vmax.f32 %v12256_v54, 0.0  ;;  %v4726_v18 = vsel %vm10534_vm14, %v4414_v31, %v4725_v10 }
 0x37a   : > { %v4416_v21 = vshrl.u32 %v12311_v22, 16  ;;  %v4360_v19 = vmax.f32 %v12261_v4, 0.0  ;;  %v12334_v45 = vrot.slane %v4410_v62, 11  ;;  %v4424_v6 = vshrl.u32 %v12316_v51, 16  ;;  %4727 = vst [vmem:[#allocation3 + $0x14] sm:$0x1] %v4726_v18 }
 0x37b   : > { %v12337_v37 = vpack.c.bf16 %v4336_v61, %v4336_v61  ;;  %v12339_v60 = vpack.c.bf16 %v4337_v44, %v4337_v44  ;;  %v4419_v54 = vshll.u32 %v12311_v22, 16  ;;  %v12344_v47 = vpack.c.bf16 %v4338_v3, %v4338_v3  ;;  %v9955_v18 = vld [vmem:[%s14802_s2 + $0x4] sm:$0x3] }
 0x37c   : > { %v4418_v8 = vrot.slane %v4416_v21, 7  ;;  %v12346_v4 = vpack.c.bf16 %v4339_v53, %v4339_v53  ;;  %v4427_v62 = vshll.u32 %v12316_v51, 16  ;;  %v12351_v50 = vpack.c.bf16 %v4340_v55, %v4340_v55 }
 0x37d   : > { %14945 = vst [vmem:[#allocation23_spill] sm:$0xff] %v12337_v37  ;;  %v12353_v23 = vpack.c.bf16 %v4341_v29, %v4341_v29  ;;  %v12355_v2 = vpack.c.bf16 %v4342_v35, %v4342_v35  ;;  %v12357_v41 = vpack.c.bf16 %v4343_v16, %v4343_v16  ;;  %v12359_v5 = vpack.c.bf16 %v4344_v56, %v4344_v56 }
 0x37e   : > { %v4881_v7 = vld [vmem:[#allocation3 + $0xc] sm:$0x1]  ;;  %14946 = vst [vmem:[#allocation13_spill] sm:$0xff] %v12339_v60  ;;  %v4421_v13 = vor.u32 %v4419_v54, %v4418_v8  ;;  %v4422_v58 = vrot.slane %v4418_v8, 4  ;;  %v12364_v20 = vpack.c.bf16 %v4345_v12, %v4345_v12  ;;  %v12366_v57 = vpack.c.bf16 %v4346_v9, %v4346_v9 }
 0x37f   : > { %v4882_v52 = vsel %vm10534_vm14, %v4399_v24, %v4881_v7  ;;  %v4361_v24 = vmax.f32 %v12266_v42, 0.0  ;;  %14947 = vst [vmem:[#allocation24_spill] sm:$0xff] %v12344_v47  ;;  %v12348_v42 = vrot.slane %v4424_v6, 7  ;;  %v12368_v28 = vpack.c.bf16 %v4347_v43, %v4347_v43 }
 0x380   : > { %4883 = vst [vmem:[#allocation3 + $0xc] sm:$0x1] %v4882_v52  ;;  %v4729_v11 = vsel %vm12279_vm8, %v4421_v13, %v4728_v0  ;;  %v12372_v44 = vpack.c.bf16 %v4348_v1, %v4348_v1  ;;  %v12374_v38 = vpack.c.bf16 %v4349_v49, %v4349_v49  ;;  %v12376_v3 = vpack.c.bf16 %v4350_v32, %v4350_v32  ;;  %v4926_v32 = vld [vmem:[#allocation3 + $0xc0] sm:$0x1] }
 0x381   : > { %14948 = vst [vmem:[#allocation7_spill] sm:$0xff] %v12346_v4  ;;  %v4429_v34 = vor.u32 %v4427_v62, %v12348_v42  ;;  %v12380_v55 = vpack.c.bf16 %v4351_v63, %v4351_v63  ;;  %v12382_v29 = vpack.c.bf16 %v4352_v40, %v4352_v40  ;;  %v12384_v35 = vpack.c.bf16 %v4353_v36, %v4353_v36 }
 0x382   : > { %14949 = vst [vmem:[#allocation8_spill] sm:$0xff] %v12351_v50  ;;  %v12386_v16 = vpack.c.bf16 %v4354_v26, %v4354_v26  ;;  %v12390_v56 = vpack.c.bf16 %v4355_v39, %v4355_v39  ;;  %v12392_v12 = vpack.c.bf16 %v4356_v25, %v4356_v25  ;;  %v12394_v9 = vpack.c.bf16 %v4357_v59, %v4357_v59 }
 0x383   : > { %14950 = vst [vmem:[#allocation20_spill] sm:$0xff] %v12353_v23  ;;  %v4430_v53 = vsel %vm12241_vm5, %v4422_v58, %v4429_v34  ;;  %v12396_v43 = vpack.c.bf16 %v4358_v30, %v4358_v30  ;;  %v12398_v31 = vpack.c.bf16 %v4359_v33, %v4359_v33  ;;  %v12400_v10 = vpack.c.bf16 %v4360_v19, %v4360_v19 }
 0x384   : > { %14951 = vst [vmem:[#allocation18_spill] sm:$0xff] %v12355_v2  ;;  %v12402_v1 = vpack.c.bf16 %v4361_v24, %v4361_v24  ;;  %v14820_v49 = vshrl.u32 %v12337_v37, 16  ;;  %v4441_v7 = vshrl.u32 %v12339_v60, 16  ;;  %v14818_v40 = vshrl.u32 %v12344_v47, 16 }
 0x385   : > { %14952 = vst [vmem:[#allocation27_spill] sm:$0xff] %v12357_v41  ;;  %v4458_v26 = vshrl.u32 %v12346_v4, 16  ;;  %v14816_v39 = vshrl.u32 %v12351_v50, 16  ;;  %v4431_v25 = vrot.slane %v12348_v42, 4  ;;  %v4475_v30 = vshrl.u32 %v12353_v23, 16 }
 0x386   : > { %14953 = vst [vmem:[#allocation25_spill] sm:$0xff] %v12359_v5  ;;  %v14817_v24 = vshrl.u32 %v12355_v2, 16  ;;  %v4492_v8 = vshrl.u32 %v12357_v41, 16  ;;  %v14819_v13 = vshrl.u32 %v12359_v5, 16  ;;  %v4509_v34 = vshrl.u32 %v12364_v20, 16 }
 0x387   : > { %14954 = vst [vmem:[#allocation21_spill] sm:$0xff] %v12364_v20  ;;  %v10302_v61 = vld [vmem:[#allocation3 + $0xc] sm:$0xff]  ;;  %v4526_v54 = vshrl.u32 %v12368_v28, 16  ;;  %v6145_v58 = vsel %vm1156_vm0, %v9955_v18, 0  ;;  %v4560_v33 = vshrl.u32 %v12380_v55, 16  ;;  %v4577_v18 = vshrl.u32 %v12384_v35, 16 }
 0x388   : > { %14955 = vst [vmem:[#allocation9_spill] sm:$0xff] %v12366_v57  ;;  %10037 = vmatmul.msk.bf16.vlgmr.msrb.gmra.mxu0 %vm1107_vm4, %v10302_v61  ;;  %6154 = vmatpush.bf16.msrb.mxu3 %v6145_v58  ;;  %v4611_v59 = vshrl.u32 %v12394_v9, 16  ;;  %v4628_v36 = vshrl.u32 %v12398_v31, 16  ;;  %v4927_v52 = vsel %vm10534_vm14, %v4654_v15, %v4926_v32  ;;  %v12477_v63 = vrot.slane %v14820_v49, 7 }
 0x389   : > { %14956 = vst [vmem:[#allocation22_spill] sm:$0xff] %v12368_v28  ;;  %v12485_v61 = vrot.slane %v14818_v40, 7  ;;  %v12489_v48 = vrot.slane %v4458_v26, 7  ;;  %v12493_v15 = vrot.slane %v14816_v39, 7  ;;  %v12495_v51 = vrot.slane %v4475_v30, 7 }
 0x38a   : > { %14957 = vst [vmem:[#allocation26_spill] sm:$0xff] %v12372_v44  ;;  %v12501_v32 = vrot.slane %v4492_v8, 7  ;;  %v14971_v26 = vshrl.u32 %v12366_v57, 16  ;;  %v12513_v30 = vrot.slane %v4526_v54, 7  ;;  %v14973_v39 = vshrl.u32 %v12372_v44, 16 }
 0x38b   : > { %14958 = vst [vmem:[#allocation10_spill] sm:$0xff] %v12374_v38  ;;  %v14975_v8 = vshrl.u32 %v12376_v3, 16  ;;  %v12533_v54 = vrot.slane %v4577_v18, 7  ;;  %v14979_v58 = vshrl.u32 %v12386_v16, 16  ;;  %v14982_v46 = vshrl.u32 %v12396_v43, 16 }
 0x38c   : > { %14959 = vst [vmem:[#allocation11_spill] sm:$0xff] %v12376_v3  ;;  %v12552_v17 = vrot.slane %v4628_v36, 7  ;;  %v14986_v36 = vshll.u32 %v12339_v60, 16 }
 0x38d   : > { %4730 = vst [vmem:[#allocation3 + $0x18] sm:$0xf] %v4729_v11  ;;  %v12523_v40 = vrot.slane %v14975_v8, 7  ;;  %v14981_v8 = vshrl.u32 %v12392_v12, 16 }
 0x38e   : > { %14960 = vst [vmem:[#allocation12_spill] sm:$0xff] %v12380_v55 }
 0x38f   : > { %14961 = vst [vmem:[#allocation14_spill] sm:$0xff] %v12382_v29  ;;  %v12544_v6 = vrot.slane %v14981_v8, 7 }
 0x390   : > { %14962 = vst [vmem:[#allocation15_spill] sm:$0xff] %v12384_v35 }
 0x391   : > { %14963 = vst [vmem:[#allocation16_spill] sm:$0xff] %v12386_v16 }
 0x392   : > { %4731 = vst.msk [vmem:[#allocation3 + $0x1c] sm:$0xf] %vm402_vm11, %v4430_v53  ;;  %v4594_v53 = vshrl.u32 %v12390_v56, 16 }
 0x393   : > { %14964 = vst [vmem:[#allocation17_spill] sm:$0xff] %v12390_v56 }
 0x394   : > { %14965 = vst [vmem:[#allocation4_spill] sm:$0xff] %v12392_v12  ;;  %v4884_v19 = vld [vmem:[#allocation3 + $0x18] sm:$0x1] }
 0x395   : > { %14966 = vst [vmem:[#allocation28_spill] sm:$0xff] %v12394_v9  ;;  %v4885_v0 = vsel %vm10534_vm14, %v4416_v21, %v4884_v19  ;;  %v4732_v19 = vld [vmem:[#allocation3 + $0x20] sm:$0x1]  ;;  %v9827_v21 = vrot.slane %v4427_v62, 11  ;;  %v12499_v62 = vrot.slane %v14817_v24, 7  ;;  %v12517_v24 = vrot.slane %v14973_v39, 7 }
 0x396   : > { %14967 = vst [vmem:[#allocation29_spill] sm:$0xff] %v12396_v43  ;;  %v4733_v22 = vsel %vm10534_vm14, %v4431_v25, %v4732_v19  ;;  %v12507_v25 = vrot.slane %v4509_v34, 7  ;;  %v12527_v34 = vrot.slane %v4560_v33, 7  ;;  %v12537_v39 = vrot.slane %v14979_v58, 7 }
 0x397   : > { %14968 = vst [vmem:[#allocation30_spill] sm:$0xff] %v12398_v31  ;;  %v12546_v33 = vrot.slane %v4611_v59, 7  ;;  %v14983_v58 = vshrl.u32 %v12400_v10, 16  ;;  %v14985_v59 = vshll.u32 %v12337_v37, 16  ;;  %v14988_v37 = vshll.u32 %v12346_v4, 16 }
 0x398   : > { %14969 = vst [vmem:[#allocation31_spill] sm:$0xff] %v12400_v10  ;;  %v14991_v4 = vshll.u32 %v12355_v2, 16  ;;  %v14992_v10 = vshll.u32 %v12357_v41, 16 }
 0x399   : > { %14970 = vst [vmem:[#allocation32_spill] sm:$0xff] %v12402_v1  ;;  %v5027_v42 = vld [vmem:[#allocation3 + $0x1c] sm:$0xf]  ;;  %v12556_v16 = vrot.slane %v14983_v58, 7  ;;  %v12564_v8 = vor.u32 %v14985_v59, %v12477_v63 }
 0x39a   : > { %4886 = vst [vmem:[#allocation3 + $0x18] sm:$0x1] %v4885_v0  ;;  %v4543_v0 = vshrl.u32 %v12374_v38, 16 }
 0x39b   : > { %5030 = vst.msk [vmem:[#allocation3 + $0x4] sm:$0xf] %vm402_vm11, %v5027_v42  ;;  %v4645_v42 = vshrl.u32 %v12402_v1, 16 }
 0x39c   : > { %4734 = vst [vmem:[#allocation3 + $0x20] sm:$0x1] %v4733_v22  ;;  %v12511_v22 = vrot.slane %v14971_v26, 7  ;;  %v14977_v26 = vshrl.u32 %v12382_v29, 16 }
 0x39d   : > { %4928 = vst [vmem:[#allocation3 + $0xc0] sm:$0x1] %v4927_v52  ;;  %v12519_v52 = vrot.slane %v4543_v0, 7  ;;  %v12540_v0 = vrot.slane %v4594_v53, 7  ;;  %v14987_v53 = vshll.u32 %v12344_v47, 16 }
 0x39e   : > { %14972 = vst [vmem:[#allocation33_spill] sm:$0xff] %v12513_v30  ;;  %v12531_v49 = vrot.slane %v14977_v26, 7  ;;  %v12550_v26 = vrot.slane %v14982_v46, 7  ;;  %v4439_v46 = vrot.slane %v12477_v63, 4  ;;  %v4456_v63 = vrot.slane %v12485_v61, 4 }
 0x39f   : > { %14974 = vst [vmem:[#allocation34_spill] sm:$0xff] %v12519_v52  ;;  %v12579_v59 = vor.u32 %v14987_v53, %v12485_v61  ;;  %v14990_v53 = vshll.u32 %v12353_v23, 16 }
 0x3a0   : > { %14976 = vst [vmem:[#allocation35_spill] sm:$0xff] %v12527_v34 }
 0x3a1   : > { %v5026_v11 = vld [vmem:[#allocation3 + $0x18] sm:$0xf]  ;;  %14978 = vst [vmem:[#allocation36_spill] sm:$0xff] %v12533_v54  ;;  %v4480_v47 = vor.u32 %v14990_v53, %v12495_v51  ;;  %v14993_v53 = vshll.u32 %v12359_v5, 16 }
 0x3a2   : > { %5029 = vst.msk [vmem:[#allocation3] sm:$0xf] %vm402_vm11, %v5026_v11  ;;  %v12481_v11 = vrot.slane %v4441_v7, 7  ;;  %v12505_v7 = vrot.slane %v14819_v13, 7  ;;  %v10303_v19 = vld [vmem:[#allocation3 + $0x18] sm:$0xff] }
 0x3a3   : > { %v12525_v13 = vld [vmem:[#allocation3 + $0x4] sm:$0xf]  ;;  %10038 = vmatmul.msk.bf16.gmra.mxu0 %vm1107_vm4, %v10303_v19  ;;  %14980 = vst [vmem:[#allocation37_spill] sm:$0xff] %v12540_v0  ;;  %v12558_v19 = vrot.slane %v4645_v42, 7  ;;  %v4980_v12 = vld [vmem:[#allocation3 + $0x20] sm:$0x1] }
 0x3a4   : > { %v4446_v43 = vor.u32 %v14986_v36, %v12481_v11  ;;  %v4981_v42 = vsel %vm10481_vm3, %v9827_v21, %v4980_v12  ;;  %v4463_v36 = vor.u32 %v14988_v37, %v12489_v48  ;;  %v4473_v21 = vrot.slane %v12493_v15, 4 }
 0x3a5   : > { %14984 = vst [vmem:[#allocation38_spill] sm:$0xff] %v12558_v19  ;;  %v12599_v37 = vor.u32 %v14991_v4, %v12499_v62  ;;  %v12610_v23 = vor.u32 %v14993_v53, %v12505_v7  ;;  %v4507_v61 = vrot.slane %v12505_v7, 4  ;;  %v14994_v4 = vshll.u32 %v12364_v20, 16 }
 0x3a6   : > { %4982 = vst [vmem:[#allocation3 + $0x20] sm:$0x1] %v4981_v42  ;;  %v4490_v42 = vrot.slane %v12499_v62, 4  ;;  %v14995_v62 = vshll.u32 %v12366_v57, 16  ;;  %v14997_v53 = vshll.u32 %v12372_v44, 16  ;;  %v4541_v7 = vrot.slane %v12517_v24, 4 }
 0x3a7   : > { %v4514_v2 = vor.u32 %v14994_v4, %v12507_v25  ;;  %v14998_v4 = vshll.u32 %v12374_v38, 16  ;;  %v15002_v38 = vshll.u32 %v12390_v56, 16  ;;  %v15005_v56 = vshll.u32 %v12402_v1, 16 }
 0x3a8   : > { %v12619_v41 = vor.u32 %v14995_v62, %v12511_v22  ;;  %v12628_v5 = vor.u32 %v14997_v53, %v12517_v24  ;;  %v14999_v62 = vshll.u32 %v12376_v3, 16  ;;  %v4575_v53 = vrot.slane %v12531_v49, 4 }
 0x3a9   : > { %v10286_v18 = vld [vmem:[#allocation3] sm:$0xff]  ;;  %v4548_v20 = vor.u32 %v14998_v4, %v12519_v52  ;;  %v15001_v24 = vshll.u32 %v12384_v35, 16  ;;  %v4592_v4 = vrot.slane %v12537_v39, 4  ;;  %v4609_v3 = vrot.slane %v12544_v6, 4 }
 0x3aa   : > { %9923 = vmatmul.msk.bf16.vlgmr.msrb.gmra.mxu2 %vm1107_vm4, %v10286_v18  ;;  %v12574_v58 = vld [vmem:[#allocation3] sm:$0xe]  ;;  %v14989_v18 = vshll.u32 %v12351_v50, 16  ;;  %v12637_v57 = vor.u32 %v14999_v62, %v12523_v40  ;;  %v4599_v62 = vor.u32 %v15002_v38, %v12540_v0  ;;  %v15004_v35 = vshll.u32 %v12398_v31, 16  ;;  %v4739_v0 = vld [vmem:[#allocation3 + $0x2c] sm:$0x1] }
 0x3ab   : > { %v4582_v60 = vor.u32 %v15001_v24, %v12533_v54  ;;  %v4643_v54 = vrot.slane %v12556_v16, 4  ;;  %v4650_v38 = vor.u32 %v15005_v56, %v12558_v19  ;;  %v4464_v1 = vsel %vm12241_vm5, %v4456_v63, %v4463_v36  ;;  %v4746_v56 = vld [vmem:[#allocation3 + $0x38] sm:$0x1]  ;;  %v4749_v19 = vld [vmem:[#allocation3 + $0x3c] sm:$0xf] }
 0x3ac   : > { %v12589_v12 = vor.u32 %v14989_v18, %v12493_v15  ;;  %v4497_v18 = vor.u32 %v14992_v10, %v12501_v32  ;;  %v4524_v10 = vrot.slane %v12511_v22, 4  ;;  %v14996_v15 = vshll.u32 %v12368_v28, 16  ;;  %v4977_v22 = vld [vmem:[#allocation3 + $0x14] sm:$0x1]  ;;  %v12709_v36 = vld [vmem:[#allocation3 + $0x60] sm:$0xf] }
 0x3ad   : > { %v4558_v28 = vrot.slane %v12523_v40, 4  ;;  %v15003_v40 = vshll.u32 %v12394_v9, 16  ;;  %v4633_v24 = vor.u32 %v15004_v35, %v12552_v17  ;;  %v4978_v31 = vsel %vm10481_vm3, %v12334_v45, %v4977_v22  ;;  %4745 = vst.msk [vmem:[#allocation3 + $0x34] sm:$0xf] %vm402_vm11, %v4464_v1  ;;  %v12749_v22 = vld [vmem:[#allocation3 + $0x90] sm:$0xf] }
 0x3ae   : > { %v4531_v50 = vor.u32 %v14996_v15, %v12513_v30  ;;  %v15000_v15 = vshll.u32 %v12380_v55, 16  ;;  %v4735_v55 = vld [vmem:[#allocation3 + $0x24] sm:$0xf]  ;;  %v4742_v30 = vld [vmem:[#allocation3 + $0x30] sm:$0xf]  ;;  %v4447_v35 = vsel %vm12241_vm5, %v4439_v46, %v4446_v43  ;;  %v12694_v63 = vsel %vm12241_vm5, %v4541_v7, %v4548_v20 }
 0x3af   : > { %v4616_v52 = vor.u32 %v15003_v40, %v12546_v33  ;;  %v15006_v40 = vshll.u32 %v12382_v29, 16  ;;  %v12680_v29 = vsel %vm12241_vm5, %v4490_v42, %v4497_v18  ;;  %4979 = vst [vmem:[#allocation3 + $0x14] sm:$0x1] %v4978_v31  ;;  %v4753_v43 = vld [vmem:[#allocation3 + $0x44] sm:$0x1]  ;;  %v15012_v1 = vrot.slane %v12489_v48, 4 }
 0x3b0   : > { %v4565_v44 = vor.u32 %v15000_v15, %v12527_v34  ;;  %v5028_v15 = vld [vmem:[#allocation3 + $0x20] sm:$0x1]  ;;  %v4626_v34 = vrot.slane %v12550_v26, 4  ;;  %v12688_v45 = vsel %vm12241_vm5, %v4524_v10, %v4531_v50  ;;  %v12690_v46 = vld [vmem:[#allocation3 + $0x54] sm:$0xf]  ;;  %v12706_v50 = vsel %vm12241_vm5, %v4592_v4, %v4599_v62 }
 0x3b1   : > { %5031 = vst.msk [vmem:[#allocation3 + $0x8] sm:$0x1] %vm404_vm1, %v5028_v15  ;;  %v12667_v9 = vor.u32 %v15006_v40, %v12531_v49  ;;  %v4481_v15 = vsel %vm12241_vm5, %v4473_v21, %v4480_v47  ;;  %v12684_v49 = vsel %vm12241_vm5, %v4507_v61, %v4514_v2  ;;  %v12702_v2 = vsel %vm12241_vm5, %v4575_v53, %v4582_v60  ;;  %v4756_v31 = vld [vmem:[#allocation3 + $0x48] sm:$0xf]  ;;  %v12711_v21 = vld [vmem:[#allocation3 + $0x6c] sm:$0xf] }
 0x3b2   : > { %v12698_v47 = vsel %vm12241_vm5, %v4558_v28, %v4565_v44  ;;  %4738 = vst.msk [vmem:[#allocation3 + $0x28] sm:$0xf] %vm402_vm11, %v4447_v35  ;;  %v12715_v20 = vsel %vm12241_vm5, %v4609_v3, %v4616_v52  ;;  %v12719_v28 = vsel %vm12241_vm5, %v4626_v34, %v4633_v24  ;;  %v12723_v60 = vsel %vm12241_vm5, %v4643_v54, %v4650_v38  ;;  %v12729_v42 = vld [vmem:[#allocation3 + $0x78] sm:$0xf]  ;;  %v12731_v18 = vld [vmem:[#allocation3 + $0x84] sm:$0xf] }
 0x3b3   : > { %v4736_v61 = vsel %vm12279_vm8, %v12564_v8, %v4735_v55  ;;  %v15008_v3 = vld [vmem:[#allocation16_spill] sm:$0xff]  ;;  %v15010_v34 = vrot.slane %v12481_v11, 4  ;;  %v4743_v55 = vsel %vm12279_vm8, %v12579_v59, %v4742_v30  ;;  %v4747_v8 = vsel %vm10534_vm14, %v15012_v1, %v4746_v56  ;;  %v4760_v7 = vld [vmem:[#allocation3 + $0x50] sm:$0x1]  ;;  %v12770_v24 = vld [vmem:[#allocation3 + $0xa8] sm:$0xf] }
 0x3b4   : > { %v15009_v52 = vshll.u32 %v15008_v3, 16  ;;  %4737 = vst [vmem:[#allocation3 + $0x24] sm:$0xf] %v4736_v61  ;;  %v4750_v48 = vsel %vm12279_vm8, %v12589_v12, %v4749_v19  ;;  %v4764_v30 = vsel %vm12279_vm8, %v12610_v23, %v12690_v46  ;;  %v12768_v59 = vld [vmem:[#allocation3 + $0x9c] sm:$0xf]  ;;  %v15018_v38 = vrot.slane %v12574_v58, 9 }
 0x3b5   : > { %v4740_v54 = vsel %vm10534_vm14, %v15010_v34, %v4739_v0  ;;  %v15015_v0 = vld [vmem:[#allocation29_spill] sm:$0xff]  ;;  %v15020_v35 = vld [vmem:[#allocation31_spill] sm:$0xff]  ;;  %v4771_v23 = vsel %vm12279_vm8, %v12619_v41, %v12709_v36  ;;  %v4778_v56 = vsel %vm12279_vm8, %v12628_v5, %v12711_v21  ;;  %4744 = vst [vmem:[#allocation3 + $0x30] sm:$0xf] %v4743_v55  ;;  %v15022_v61 = vrot.slane %v12495_v51, 4 }
 0x3b6   : > { %v12736_v10 = vor.u32 %v15009_v52, %v12537_v39  ;;  %v15013_v39 = vld [vmem:[#allocation4_spill] sm:$0xff]  ;;  %v15016_v4 = vshll.u32 %v15015_v0, 16  ;;  %4741 = vst [vmem:[#allocation3 + $0x2c] sm:$0x1] %v4740_v54  ;;  %v15021_v19 = vshll.u32 %v15020_v35, 16  ;;  %v4785_v41 = vsel %vm12279_vm8, %v12637_v57, %v12729_v42  ;;  %v15025_v55 = vld [vmem:[#allocation33_spill] sm:$0xff] }
 0x3b7   : > { %v15014_v53 = vshll.u32 %v15013_v39, 16  ;;  %v12791_v58 = vld [vmem:[#allocation3 + $0xb4] sm:$0xf]  ;;  %v4792_v5 = vsel %vm12279_vm8, %v12667_v9, %v12731_v18  ;;  %4748 = vst [vmem:[#allocation3 + $0x38] sm:$0x1] %v4747_v8  ;;  %v4757_v51 = vsel %vm12279_vm8, %v12599_v37, %v4756_v31  ;;  %v4516_v42 = vrot.slane %v12507_v25, 4 }
 0x3b8   : > { %v12759_v62 = vor.u32 %v15016_v4, %v12550_v26  ;;  %v12781_v12 = vor.u32 %v15021_v19, %v12556_v16  ;;  %v12793_v46 = vld [vmem:[#allocation3 + $0x8] sm:$0x1]  ;;  %v4754_v16 = vsel %vm10534_vm14, %v15022_v61, %v4753_v43  ;;  %v4799_v57 = vsel %vm12279_vm8, %v12736_v10, %v12749_v22  ;;  %4751 = vst [vmem:[#allocation3 + $0x3c] sm:$0xf] %v4750_v48  ;;  %v4767_v37 = vld [vmem:[#allocation3 + $0x5c] sm:$0x1] }
 0x3b9   : > { %v12754_v11 = vor.u32 %v15014_v53, %v12544_v6  ;;  %v15017_v6 = vrot.slane %v12525_v13, 5  ;;  %v5939_v52 = vrot.slane %v12793_v46, 5  ;;  %4752 = vst.msk [vmem:[#allocation3 + $0x40] sm:$0xf] %vm402_vm11, %v4481_v15  ;;  %v15024_v10 = vrot.slane %v12501_v32, 4 }
 0x3ba   : > { %v4813_v18 = vsel %vm12279_vm8, %v12759_v62, %v12770_v24  ;;  %v4820_v34 = vsel %vm12279_vm8, %v12781_v12, %v12791_v58  ;;  %4755 = vst [vmem:[#allocation3 + $0x44] sm:$0x1] %v4754_v16  ;;  %v4533_v1 = vrot.slane %v15025_v55, 4  ;;  %v4774_v15 = vld [vmem:[#allocation3 + $0x68] sm:$0x1]  ;;  %v4768_v32 = vsel %vm10534_vm14, %v4516_v42, %v4767_v37  ;;  %v15036_v42 = vld [vmem:[#allocation27_spill] sm:$0xff] }
 0x3bb   : > { %v5937_v40 = vsel %vm10566_vm9, %v15018_v38, %v15017_v6  ;;  %v15023_v36 = vmov %v15017_v6  ;;  %v4806_v9 = vsel %vm12279_vm8, %v12754_v11, %v12768_v59  ;;  %v4761_v25 = vsel %vm10534_vm14, %v15024_v10, %v4760_v7  ;;  %4758 = vst [vmem:[#allocation3 + $0x48] sm:$0xf] %v4757_v51  ;;  %v15026_v7 = vld [vmem:[#allocation34_spill] sm:$0xff]  ;;  %v4781_v53 = vld [vmem:[#allocation3 + $0x74] sm:$0x1]  ;;  %v15028_v59 = vld [vmem:[#allocation36_spill] sm:$0xff] }
 0x3bc   : > { %v5938_v21 = vrot.slane %v15023_v36, 4  ;;  %v6048_v43 = vunpack.c.l.b16 %v5937_v40  ;;  %4759 = vst.msk [vmem:[#allocation3 + $0x4c] sm:$0xf] %vm402_vm11, %v12680_v29  ;;  %v4550_v22 = vrot.slane %v15026_v7, 4  ;;  %v4775_v11 = vsel %vm10534_vm14, %v4533_v1, %v4774_v15  ;;  %v15027_v29 = vld [vmem:[#allocation35_spill] sm:$0xff]  ;;  %v15029_v40 = vld [vmem:[#allocation37_spill] sm:$0xff] }
 0x3bd   : > { %4762 = vst [vmem:[#allocation3 + $0x50] sm:$0x1] %v4761_v25  ;;  %v4567_v4 = vrot.slane %v15027_v29, 4  ;;  %v4788_v48 = vld [vmem:[#allocation3 + $0x80] sm:$0x1]  ;;  %v4584_v6 = vrot.slane %v15028_v59, 4 }
 0x3be   : > { %v5940_v31 = vsel %vm10566_vm9, %v5938_v21, %v5939_v52  ;;  %4765 = vst [vmem:[#allocation3 + $0x54] sm:$0xf] %v4764_v30  ;;  %v4782_v30 = vsel %vm10534_vm14, %v4550_v22, %v4781_v53  ;;  %v4601_v19 = vrot.slane %v15029_v40, 4  ;;  %v4635_v16 = vrot.slane %v12552_v17, 4  ;;  %v15032_v21 = vld [vmem:[#allocation7_spill] sm:$0xff] }
 0x3bf   : > { %v6049_v54 = vunpack.c.l.b16 %v5940_v31  ;;  %4766 = vst.msk [vmem:[#allocation3 + $0x58] sm:$0xf] %vm402_vm11, %v12684_v49  ;;  %v4795_v49 = vld [vmem:[#allocation3 + $0x8c] sm:$0x1]  ;;  %v4789_v38 = vsel %vm10534_vm14, %v4567_v4, %v4788_v48  ;;  %v15033_v52 = vshll.u32 %v15032_v21, 16  ;;  %v15038_v31 = vld [vmem:[#allocation21_spill] sm:$0xff] }
 0x3c0   : > { %4769 = vst [vmem:[#allocation3 + $0x5c] sm:$0x1] %v4768_v32  ;;  %v15039_v10 = vshll.u32 %v15038_v31, 16  ;;  %v4887_v1 = vld [vmem:[#allocation3 + $0x24] sm:$0x1]  ;;  %v5102_v48 = vshll.u32 %v12525_v13, 16 }
 0x3c1   : > { %v6080_v8 = vpack.c.b16 %v6049_v54, %v6048_v43  ;;  %4772 = vst [vmem:[#allocation3 + $0x60] sm:$0xf] %v4771_v23  ;;  %v4796_v23 = vsel %vm10534_vm14, %v4584_v6, %v4795_v49  ;;  %v12879_v51 = vrot.slane %v15033_v52, 11  ;;  %v15040_v54 = vld [vmem:[#allocation38_spill] sm:$0xff]  ;;  %v5040_v32 = vld [vmem:[#allocation3] sm:$0xf] }
 0x3c2   : > { %4773 = vst.msk [vmem:[#allocation3 + $0x64] sm:$0xf] %vm402_vm11, %v12688_v45  ;;  %v4802_v45 = vld [vmem:[#allocation3 + $0x98] sm:$0x1]  ;;  %v12891_v25 = vrot.slane %v15039_v10, 11  ;;  %v4652_v55 = vrot.slane %v15040_v54, 4 }
 0x3c3   : > { %9956 = vmatmul.msk.bf16.vlgmr.msrb.gmra.mxu3 %vm1107_vm4, %v6080_v8  ;;  %4776 = vst [vmem:[#allocation3 + $0x68] sm:$0x1] %v4775_v11  ;;  %v4803_v61 = vsel %vm10534_vm14, %v4601_v19, %v4802_v45  ;;  %v4890_v8 = vld [vmem:[#allocation3 + $0x30] sm:$0x1]  ;;  %v4896_v7 = vld [vmem:[#allocation3 + $0x48] sm:$0x1] }
 0x3c4   : > { %4779 = vst [vmem:[#allocation3 + $0x6c] sm:$0xf] %v4778_v56  ;;  %v4618_v56 = vrot.slane %v12546_v33, 4  ;;  %v4823_v33 = vld [vmem:[#allocation3 + $0xbc] sm:$0x1]  ;;  %v5093_v22 = vshrl.u32 %v5040_v32, 16 }
 0x3c5   : > { %4780 = vst.msk [vmem:[#allocation3 + $0x70] sm:$0xf] %vm402_vm11, %v12694_v63  ;;  %v4809_v63 = vld [vmem:[#allocation3 + $0xa4] sm:$0x1]  ;;  %v12905_v53 = vld [vmem:[#allocation3 + $0x10] sm:$0xf]  ;;  %v4824_v29 = vsel %vm10534_vm14, %v4652_v55, %v4823_v33 }
 0x3c6   : > { %4783 = vst [vmem:[#allocation3 + $0x74] sm:$0x1] %v4782_v30  ;;  %v5887_v11 = vld [vmem:[#allocation3 + $0xc] sm:$0xe]  ;;  %v4899_v4 = vld [vmem:[#allocation3 + $0x54] sm:$0x1] }
 0x3c7   : > { %4786 = vst [vmem:[#allocation3 + $0x78] sm:$0xf] %v4785_v41  ;;  %v4810_v41 = vsel %vm10534_vm14, %v4618_v56, %v4809_v63  ;;  %v5106_v62 = vshrl.u32 %v12525_v13, 16  ;;  %v5112_v24 = vshll.u32 %v12793_v46, 16  ;;  %v15043_v13 = vld [vmem:[#allocation24_spill] sm:$0xff]  ;;  %v5104_v12 = vrot.slane %v5102_v48, 5 }
 0x3c8   : > { %4787 = vst.msk [vmem:[#allocation3 + $0x7c] sm:$0xf] %vm402_vm11, %v12698_v47  ;;  %v4816_v47 = vld [vmem:[#allocation3 + $0xb0] sm:$0x1]  ;;  %v4902_v6 = vld [vmem:[#allocation3 + $0x60] sm:$0x1] }
 0x3c9   : > { %4790 = vst [vmem:[#allocation3 + $0x80] sm:$0x1] %v4789_v38  ;;  %v4817_v15 = vsel %vm10534_vm14, %v4635_v16, %v4816_v47  ;;  %v5095_v38 = vrot.slane %v5093_v22, 4  ;;  %v15044_v46 = vshrl.u32 %v15043_v13, 16  ;;  %v5108_v58 = vrot.slane %v5106_v62, 4  ;;  %v15049_v52 = vld [vmem:[#allocation22_spill] sm:$0xff] }
 0x3ca   : > { %4793 = vst [vmem:[#allocation3 + $0x84] sm:$0xf] %v4792_v5  ;;  %v15030_v5 = vld [vmem:[#allocation13_spill] sm:$0xff]  ;;  %v10053_v47 = vld [vmem:[%s14802_s2 + $0x8] sm:$0x3]  ;;  %v5943_v21 = vrot.slane %v12905_v53, 5 }
 0x3cb   : > { %4794 = vst.msk [vmem:[#allocation3 + $0x88] sm:$0xf] %vm402_vm11, %v12702_v2  ;;  %v15031_v36 = vshll.u32 %v15030_v5, 16  ;;  %v4905_v49 = vld [vmem:[#allocation3 + $0x6c] sm:$0x1]  ;;  %v4891_v44 = vsel %vm10534_vm14, %v15044_v46, %v4890_v8  ;;  %v5109_v33 = vor.u32 %v5108_v58, %v5104_v12  ;;  %v5114_v5 = vrot.slane %v5112_v24, 5 }
 0x3cc   : > { %4797 = vst [vmem:[#allocation3 + $0x8c] sm:$0x1] %v4796_v23  ;;  %v15047_v23 = vld [vmem:[#allocation18_spill] sm:$0xff]  ;;  %v15053_v55 = vld [vmem:[#allocation9_spill] sm:$0xff]  ;;  %v5945_v48 = vrot.slane %v5943_v21, 4  ;;  %v15059_v24 = vld [vmem:[#allocation11_spill] sm:$0xff] }
 0x3cd   : > { %4800 = vst [vmem:[#allocation3 + $0x90] sm:$0xf] %v4799_v57  ;;  %v12875_v2 = vrot.slane %v15031_v36, 11  ;;  %v15034_v57 = vld [vmem:[#allocation20_spill] sm:$0xff]  ;;  %v15048_v56 = vshrl.u32 %v15047_v23, 16  ;;  %v7085_v36 = vsel %vm1156_vm0, %v10053_v47, 0 }
 0x3ce   : > { %4801 = vst.msk [vmem:[#allocation3 + $0x94] sm:$0xf] %vm402_vm11, %v12706_v50  ;;  %v15035_v43 = vshll.u32 %v15034_v57, 16  ;;  %v15037_v50 = vshll.u32 %v15036_v42, 16  ;;  %v4908_v63 = vld [vmem:[#allocation3 + $0x78] sm:$0x1]  ;;  %7094 = vmatpush.bf16.msrb.mxu1 %v7085_v36 }
 0x3cf   : > { %4804 = vst [vmem:[#allocation3 + $0x98] sm:$0x1] %v4803_v61  ;;  %v15050_v57 = vshll.u32 %v15049_v52, 16  ;;  %v15051_v42 = vld [vmem:[#allocation25_spill] sm:$0xff]  ;;  %v15055_v8 = vld [vmem:[#allocation26_spill] sm:$0xff]  ;;  %v5110_v22 = vrot.slane %v5109_v33, 4 }
 0x3d0   : > { %v12883_v17 = vrot.slane %v15035_v43, 11  ;;  %v12887_v37 = vrot.slane %v15037_v50, 11  ;;  %4807 = vst [vmem:[#allocation3 + $0x9c] sm:$0xf] %v4806_v9  ;;  %v4893_v9 = vld [vmem:[#allocation3 + $0x3c] sm:$0x1] }
 0x3d1   : > { %4808 = vst.msk [vmem:[#allocation3 + $0xa0] sm:$0xf] %vm402_vm11, %v12715_v20  ;;  %v5096_v20 = vshll.u32 %v5040_v32, 16  ;;  %v4911_v61 = vld [vmem:[#allocation3 + $0x84] sm:$0x1]  ;;  %v12943_v43 = vrot.slane %v15050_v57, 11 }
 0x3d2   : > { %4811 = vst [vmem:[#allocation3 + $0xa4] sm:$0x1] %v4810_v41  ;;  %v9940_v41 = vrot.slane %v5887_v11, 9  ;;  %v15052_v50 = vshrl.u32 %v15051_v42, 16  ;;  %v15056_v32 = vshrl.u32 %v15055_v8, 16  ;;  %v5126_v11 = vshll.u32 %v12905_v53, 16 }
 0x3d3   : > { %4814 = vst [vmem:[#allocation3 + $0xa8] sm:$0xf] %v4813_v18  ;;  %v10287_v18 = vld [vmem:[#allocation3 + $0xc] sm:$0xff]  ;;  %v5098_v40 = vrot.slane %v5096_v20, 5  ;;  %v12963_v20 = vld [vmem:[#allocation3 + $0x14] sm:$0x1] }
 0x3d4   : > { %4815 = vst.msk [vmem:[#allocation3 + $0xac] sm:$0xf] %vm402_vm11, %v12719_v28  ;;  %v15041_v28 = vld [vmem:[#allocation23_spill] sm:$0xff]  ;;  %9924 = vmatmul.msk.bf16.gmra.mxu2 %vm1107_vm4, %v10287_v18  ;;  %v4900_v31 = vsel %vm10534_vm14, %v15052_v50, %v4899_v4  ;;  %v5944_v4 = vsel %vm10566_vm9, %v9940_v41, %v5943_v21  ;;  %v5946_v62 = vrot.slane %v12963_v20, 5  ;;  %v15060_v18 = vshrl.u32 %v15059_v24, 16 }
 0x3d5   : > { %4818 = vst [vmem:[#allocation3 + $0xb0] sm:$0x1] %v4817_v15  ;;  %v15042_v30 = vshrl.u32 %v15041_v28, 16  ;;  %v5099_v16 = vor.u32 %v5098_v40, %v5095_v38  ;;  %v4914_v10 = vld [vmem:[#allocation3 + $0x90] sm:$0x1]  ;;  %v5115_v38 = vsel %vm12959_vm2, %v5110_v22, %v5114_v5  ;;  %v15063_v46 = vshrl.u32 %v15008_v3, 16 }
 0x3d6   : > { %4821 = vst [vmem:[#allocation3 + $0xb4] sm:$0xf] %v4820_v34  ;;  %v15045_v34 = vld [vmem:[#allocation8_spill] sm:$0xff]  ;;  %v4909_v28 = vsel %vm10534_vm14, %v15060_v18, %v4908_v63  ;;  %v5042_v13 = vld [vmem:[#allocation3 + $0xc] sm:$0xf]  ;;  %v15064_v3 = vshrl.u32 %v15013_v39, 16 }
 0x3d7   : > { %v4888_v59 = vsel %vm10534_vm14, %v15042_v30, %v4887_v1  ;;  %4822 = vst.msk [vmem:[#allocation3 + $0xb8] sm:$0xf] %vm402_vm11, %v12723_v60  ;;  %v15046_v19 = vshrl.u32 %v15045_v34, 16  ;;  %v4897_v60 = vsel %vm10534_vm14, %v15048_v56, %v4896_v7  ;;  %v5100_v54 = vrot.slane %v5099_v16, 4  ;;  %v15061_v30 = vld [vmem:[#allocation14_spill] sm:$0xff]  ;;  %v15069_v22 = vld [vmem:[#allocation12_spill] sm:$0xff] }
 0x3d8   : > { %4825 = vst [vmem:[#allocation3 + $0xbc] sm:$0x1] %v4824_v29  ;;  %v15054_v1 = vshrl.u32 %v15053_v55, 16  ;;  %v4983_v58 = vld [vmem:[#allocation3 + $0x2c] sm:$0x1]  ;;  %v5479_v34 = vunpack.c.l.b16 %v5115_v38  ;;  %v5130_v16 = vshrl.u32 %v12905_v53, 16 }
 0x3d9   : > { %v4894_v45 = vsel %vm10534_vm14, %v15046_v19, %v4893_v9  ;;  %4889 = vst [vmem:[#allocation3 + $0x24] sm:$0x1] %v4888_v59  ;;  %v4906_v9 = vsel %vm10534_vm14, %v15056_v32, %v4905_v49  ;;  %v5105_v29 = vsel %vm12959_vm2, %v5100_v54, %v5104_v12  ;;  %v15062_v59 = vshrl.u32 %v15061_v30, 16  ;;  %v4917_v49 = vld [vmem:[#allocation3 + $0x9c] sm:$0x1] }
 0x3da   : > { %4892 = vst [vmem:[#allocation3 + $0x30] sm:$0x1] %v4891_v44  ;;  %v4903_v15 = vsel %vm10534_vm14, %v15054_v1, %v4902_v6  ;;  %v5478_v40 = vunpack.c.l.b16 %v5105_v29  ;;  %v4915_v44 = vsel %vm10534_vm14, %v15063_v46, %v4914_v10  ;;  %v4920_v12 = vld [vmem:[#allocation3 + $0xa8] sm:$0x1]  ;;  %v5947_v19 = vsel %vm10566_vm9, %v5945_v48, %v5946_v62  ;;  %v4986_v56 = vld [vmem:[#allocation3 + $0x38] sm:$0x1] }
 0x3db   : > { %4895 = vst [vmem:[#allocation3 + $0x3c] sm:$0x1] %v4894_v45  ;;  %v4912_v6 = vsel %vm10534_vm14, %v15062_v59, %v4911_v61  ;;  %v5117_v45 = vshrl.u32 %v5042_v13, 16  ;;  %v6051_v63 = vunpack.c.l.b16 %v5947_v19  ;;  %v5120_v61 = vshll.u32 %v5042_v13, 16  ;;  %v4989_v41 = vld [vmem:[#allocation3 + $0x44] sm:$0x1] }
 0x3dc   : > { %4898 = vst [vmem:[#allocation3 + $0x48] sm:$0x1] %v4897_v60  ;;  %v6050_v60 = vunpack.c.l.b16 %v5944_v4  ;;  %v4918_v47 = vsel %vm10534_vm14, %v15064_v3, %v4917_v49  ;;  %v5510_v33 = vpack.c.b16 %v5479_v34, %v5478_v40  ;;  %v12992_v21 = vrot.slane %v5126_v11, 5  ;;  %v4992_v54 = vld [vmem:[#allocation3 + $0x50] sm:$0x1]  ;;  %v15073_v46 = vld [vmem:[#allocation17_spill] sm:$0xff] }
 0x3dd   : > { %4901 = vst [vmem:[#allocation3 + $0x54] sm:$0x1] %v4900_v31  ;;  %v4923_v23 = vld [vmem:[#allocation3 + $0xb4] sm:$0x1]  ;;  %v5119_v36 = vrot.slane %v5117_v45, 4  ;;  %v15065_v52 = vshrl.u32 %v15015_v0, 16  ;;  %v4984_v8 = vsel %vm10481_vm3, %v12875_v2, %v4983_v58  ;;  %v4987_v4 = vsel %vm10481_vm3, %v12879_v51, %v4986_v56 }
 0x3de   : > { %4904 = vst [vmem:[#allocation3 + $0x60] sm:$0x1] %v4903_v15  ;;  %v6081_v42 = vpack.c.b16 %v6051_v63, %v6050_v60  ;;  %v5122_v53 = vrot.slane %v5120_v61, 5  ;;  %v5132_v50 = vrot.slane %v5130_v16, 4  ;;  %v12998_v31 = vld [vmem:[#allocation3 + $0x1c] sm:$0xf]  ;;  %9843 = vmatmul.msk.bf16.vlgmr.msra.gmra.mxu1 %vm1107_vm4, %v5510_v33  ;;  %v4990_v2 = vsel %vm10481_vm3, %v12883_v17, %v4989_v41 }
 0x3df   : > { %4907 = vst [vmem:[#allocation3 + $0x6c] sm:$0x1] %v4906_v9  ;;  %v4921_v57 = vsel %vm10534_vm14, %v15065_v52, %v4920_v12  ;;  %v15066_v39 = vshrl.u32 %v15020_v35, 16  ;;  %v4995_v55 = vld [vmem:[#allocation3 + $0x5c] sm:$0x1]  ;;  %v15067_v0 = vld [vmem:[#allocation10_spill] sm:$0xff]  ;;  %v4993_v51 = vsel %vm10481_vm3, %v12887_v37, %v4992_v54 }
 0x3e0   : > { %4910 = vst [vmem:[#allocation3 + $0x78] sm:$0x1] %v4909_v28  ;;  %v10304_v5 = vld [vmem:[#allocation3 + $0x24] sm:$0xff]  ;;  %v15068_v1 = vshll.u32 %v15067_v0, 16  ;;  %9957 = vmatmul.msk.bf16.gmra.mxu3 %vm1107_vm4, %v6081_v42  ;;  %v5123_v35 = vor.u32 %v5122_v53, %v5119_v36  ;;  %v5136_v27 = vshll.u32 %v12963_v20, 16  ;;  %v15070_v11 = vshll.u32 %v15069_v22, 16 }
 0x3e1   : > { %4913 = vst [vmem:[#allocation3 + $0x84] sm:$0x1] %v4912_v6  ;;  %v4924_v10 = vsel %vm10534_vm14, %v15066_v39, %v4923_v23  ;;  %10039 = vmatmul.msk.bf16.gmra.mxu0 %vm1107_vm4, %v10304_v5  ;;  %v4998_v32 = vld [vmem:[#allocation3 + $0x68] sm:$0x1]  ;;  %v13013_v9 = vld [vmem:[#allocation3 + $0x20] sm:$0x1]  ;;  %v5133_v18 = vor.u32 %v5132_v50, %v12992_v21  ;;  %v4996_v12 = vsel %vm10481_vm3, %v12891_v25, %v4995_v55 }
 0x3e2   : > { %4916 = vst [vmem:[#allocation3 + $0x90] sm:$0x1] %v4915_v44  ;;  %v9834_v15 = vrot.slane %v15068_v1, 11  ;;  %v9835_v29 = vrot.slane %v15070_v11, 11  ;;  %v5001_v48 = vld [vmem:[#allocation3 + $0x74] sm:$0x1]  ;;  %v4999_v37 = vsel %vm10481_vm3, %v12943_v43, %v4998_v32 }
 0x3e3   : > { %4919 = vst [vmem:[#allocation3 + $0x9c] sm:$0x1] %v4918_v47  ;;  %v5950_v62 = vrot.slane %v12998_v31, 5  ;;  %v5004_v24 = vld [vmem:[#allocation3 + $0x80] sm:$0x1]  ;;  %v5124_v20 = vrot.slane %v5123_v35, 4 }
 0x3e4   : > { %4922 = vst [vmem:[#allocation3 + $0xa8] sm:$0x1] %v4921_v57  ;;  %v10288_v28 = vld [vmem:[#allocation3 + $0x18] sm:$0xff]  ;;  %v15071_v59 = vld [vmem:[#allocation15_spill] sm:$0xff]  ;;  %v5007_v38 = vld [vmem:[#allocation3 + $0x8c] sm:$0x1]  ;;  %v5002_v19 = vsel %vm10481_vm3, %v9834_v15, %v5001_v48  ;;  %v5005_v5 = vsel %vm10481_vm3, %v9835_v29, %v5004_v24 }
 0x3e5   : > { %4925 = vst [vmem:[#allocation3 + $0xb4] sm:$0x1] %v4924_v10  ;;  %v5888_v30 = vld [vmem:[#allocation3 + $0x18] sm:$0xe]  ;;  %v15072_v6 = vshll.u32 %v15071_v59, 16  ;;  %v5953_v40 = vrot.slane %v13013_v9, 5  ;;  %9925 = vmatmul.msk.bf16.gmra.mxu2 %vm1107_vm4, %v10288_v28  ;;  %v5129_v25 = vsel %vm12959_vm2, %v5124_v20, %v12992_v21 }
 0x3e6   : > { %4985 = vst [vmem:[#allocation3 + $0x2c] sm:$0x1] %v4984_v8  ;;  %v5044_v13 = vld [vmem:[#allocation3 + $0x18] sm:$0xf]  ;;  %v15074_v17 = vshll.u32 %v15073_v46, 16  ;;  %v5138_v34 = vrot.slane %v5136_v27, 5  ;;  %v5480_v55 = vunpack.c.l.b16 %v5129_v25 }
 0x3e7   : > { %v9836_v49 = vrot.slane %v15072_v6, 11  ;;  %4988 = vst [vmem:[#allocation3 + $0x38] sm:$0x1] %v4987_v4  ;;  %v5010_v58 = vld [vmem:[#allocation3 + $0x98] sm:$0x1]  ;;  %v9941_v23 = vrot.slane %v5888_v30, 9 }
 0x3e8   : > { %v9837_v44 = vrot.slane %v15074_v17, 11  ;;  %4991 = vst [vmem:[#allocation3 + $0x44] sm:$0x1] %v4990_v2  ;;  %v5013_v45 = vld [vmem:[#allocation3 + $0xa4] sm:$0x1]  ;;  %v5952_v56 = vrot.slane %v5950_v62, 4 }
 0x3e9   : > { %4994 = vst [vmem:[#allocation3 + $0x50] sm:$0x1] %v4993_v51  ;;  %v5134_v60 = vrot.slane %v5133_v18, 4  ;;  %v5141_v63 = vshrl.u32 %v5044_v13, 16  ;;  %v5144_v61 = vshll.u32 %v5044_v13, 16  ;;  %v15075_v16 = vld [vmem:[#allocation28_spill] sm:$0xff]  ;;  %v5008_v21 = vsel %vm10481_vm3, %v9836_v49, %v5007_v38 }
 0x3ea   : > { %v15076_v3 = vshll.u32 %v15075_v16, 16  ;;  %v15077_v41 = vld [vmem:[#allocation30_spill] sm:$0xff]  ;;  %4997 = vst [vmem:[#allocation3 + $0x5c] sm:$0x1] %v4996_v12  ;;  %v5954_v36 = vsel %vm10566_vm9, %v5952_v56, %v5953_v40  ;;  %v15079_v52 = vld [vmem:[#allocation32_spill] sm:$0xff]  ;;  %v5011_v53 = vsel %vm10481_vm3, %v9837_v44, %v5010_v58  ;;  %v5951_v0 = vsel %vm10566_vm9, %v9941_v23, %v5950_v62  ;;  %v10305_v62 = vld [vmem:[#allocation3 + $0x30] sm:$0xff] }
 0x3eb   : > { %v15078_v33 = vshll.u32 %v15077_v41, 16  ;;  %v15080_v57 = vshll.u32 %v15079_v52, 16  ;;  %5000 = vst [vmem:[#allocation3 + $0x68] sm:$0x1] %v4999_v37  ;;  %v5016_v50 = vld [vmem:[#allocation3 + $0xb0] sm:$0x1]  ;;  %v5139_v39 = vsel %vm12959_vm2, %v5134_v60, %v5138_v34  ;;  %v6053_v15 = vunpack.c.l.b16 %v5954_v36 }
 0x3ec   : > { %v9838_v47 = vrot.slane %v15076_v3, 11  ;;  %5003 = vst [vmem:[#allocation3 + $0x74] sm:$0x1] %v5002_v19  ;;  %v5019_v54 = vld [vmem:[#allocation3 + $0xbc] sm:$0x1]  ;;  %v5150_v1 = vshll.u32 %v12998_v31, 16  ;;  %v5481_v22 = vunpack.c.l.b16 %v5139_v39  ;;  %v6052_v29 = vunpack.c.l.b16 %v5951_v0 }
 0x3ed   : > { %v9839_v43 = vrot.slane %v15078_v33, 11  ;;  %v9840_v42 = vrot.slane %v15080_v57, 11  ;;  %5006 = vst [vmem:[#allocation3 + $0x80] sm:$0x1] %v5005_v5  ;;  %v5143_v8 = vrot.slane %v5141_v63, 4  ;;  %v5146_v32 = vrot.slane %v5144_v61, 5 }
 0x3ee   : > { %v5014_v10 = vsel %vm10481_vm3, %v9838_v47, %v5013_v45  ;;  %v5154_v35 = vshrl.u32 %v12998_v31, 16  ;;  %5009 = vst [vmem:[#allocation3 + $0x8c] sm:$0x1] %v5008_v21  ;;  %v5033_v4 = vld [vmem:[#allocation3 + $0xb4] sm:$0xf]  ;;  %v5511_v48 = vpack.c.b16 %v5481_v22, %v5480_v55  ;;  %v6082_v2 = vpack.c.b16 %v6053_v15, %v6052_v29  ;;  %v10289_v49 = vld [vmem:[#allocation3 + $0x24] sm:$0xff] }
 0x3ef   : > { %v5017_v27 = vsel %vm10481_vm3, %v9839_v43, %v5016_v50  ;;  %5012 = vst [vmem:[#allocation3 + $0x98] sm:$0x1] %v5011_v53  ;;  %v5020_v11 = vsel %vm10481_vm3, %v9840_v42, %v5019_v54  ;;  %v5147_v24 = vor.u32 %v5146_v32, %v5143_v8  ;;  %v5152_v20 = vrot.slane %v5150_v1, 5  ;;  %v5047_v31 = vld [vmem:[#allocation3 + $0x28] sm:$0xf]  ;;  %v10306_v47 = vld [vmem:[#allocation3 + $0x3c] sm:$0xff] }
 0x3f0   : > { %5015 = vst [vmem:[#allocation3 + $0xa4] sm:$0x1] %v5014_v10  ;;  %v5156_v18 = vrot.slane %v5154_v35, 4  ;;  %9844 = vmatmul.msk.bf16.gmra.mxu1 %vm1107_vm4, %v5511_v48  ;;  %9958 = vmatmul.msk.bf16.gmra.mxu3 %vm1107_vm4, %v6082_v2  ;;  %v5160_v14 = vshll.u32 %v13013_v9, 16  ;;  %v5076_v28 = vld [vmem:[#allocation3 + $0x2c] sm:$0x1] }
 0x3f1   : > { %5018 = vst [vmem:[#allocation3 + $0xb0] sm:$0x1] %v5017_v27  ;;  %10040 = vmatmul.msk.bf16.gmra.mxu0 %vm1107_vm4, %v10305_v62  ;;  %v5957_v30 = vrot.slane %v5047_v31, 5  ;;  %v5148_v59 = vrot.slane %v5147_v24, 4  ;;  %v5889_v51 = vld [vmem:[#allocation3 + $0x24] sm:$0xe] }
 0x3f2   : > { %5021 = vst [vmem:[#allocation3 + $0xbc] sm:$0x1] %v5020_v11  ;;  %v5157_v6 = vor.u32 %v5156_v18, %v5152_v20  ;;  %v5046_v38 = vld [vmem:[#allocation3 + $0x24] sm:$0xf]  ;;  %v5960_v40 = vrot.slane %v5076_v28, 5  ;;  %v5162_v13 = vrot.slane %v5160_v14, 5 }
 0x3f3   : > { %5037 = vst.msk [vmem:[#allocation3 + $0xcc] sm:$0xf] %vm402_vm11, %v5033_v4  ;;  %v9942_v46 = vrot.slane %v5889_v51, 9  ;;  %v5959_v17 = vrot.slane %v5957_v30, 4  ;;  %v5165_v44 = vshrl.u32 %v5046_v38, 16  ;;  %v5168_v12 = vshll.u32 %v5046_v38, 16 }
 0x3f4   : > { %v5153_v58 = vsel %vm12959_vm2, %v5148_v59, %v5152_v20  ;;  %v5158_v34 = vrot.slane %v5157_v6, 4  ;;  %v5174_v60 = vshll.u32 %v5047_v31, 16  ;;  %v5178_v63 = vshrl.u32 %v5047_v31, 16  ;;  %v5049_v33 = vld [vmem:[#allocation3 + $0x34] sm:$0xf]  ;;  %v10307_v14 = vld [vmem:[#allocation3 + $0x48] sm:$0xff] }
 0x3f5   : > { %9926 = vmatmul.msk.bf16.gmra.mxu2 %vm1107_vm4, %v10289_v49  ;;  %v5961_v9 = vsel %vm10566_vm9, %v5959_v17, %v5960_v40  ;;  %v5482_v19 = vunpack.c.l.b16 %v5153_v58  ;;  %v5958_v45 = vsel %vm10566_vm9, %v9942_v46, %v5957_v30  ;;  %v5167_v23 = vrot.slane %v5165_v44, 4  ;;  %v5077_v52 = vld [vmem:[#allocation3 + $0x38] sm:$0x1]  ;;  %v10290_v50 = vld [vmem:[#allocation3 + $0x30] sm:$0xff]  ;;  %v5051_v49 = vld [vmem:[#allocation3 + $0x40] sm:$0xf] }
 0x3f6   : > { %v5163_v37 = vsel %vm12959_vm2, %v5158_v34, %v5162_v13  ;;  %v5170_v56 = vrot.slane %v5168_v12, 5  ;;  %v6055_v25 = vunpack.c.l.b16 %v5961_v9  ;;  %v6054_v16 = vunpack.c.l.b16 %v5958_v45  ;;  %v5890_v39 = vld [vmem:[#allocation3 + $0x30] sm:$0xe]  ;;  %v5078_v38 = vld [vmem:[#allocation3 + $0x44] sm:$0x1]  ;;  %v10291_v17 = vld [vmem:[#allocation3 + $0x3c] sm:$0xff] }
 0x3f7   : > { %v5483_v61 = vunpack.c.l.b16 %v5163_v37  ;;  %v5176_v5 = vrot.slane %v5174_v60, 5  ;;  %v5180_v36 = vrot.slane %v5178_v63, 4  ;;  %v5184_v57 = vshll.u32 %v5076_v28, 16  ;;  %v5048_v54 = vld [vmem:[#allocation3 + $0x30] sm:$0xf] }
 0x3f8   : > { %v5171_v41 = vor.u32 %v5170_v56, %v5167_v23  ;;  %v6083_v43 = vpack.c.b16 %v6055_v25, %v6054_v16  ;;  %v5964_v42 = vrot.slane %v5049_v33, 5  ;;  %v5967_v10 = vrot.slane %v5077_v52, 5  ;;  %v5891_v44 = vld [vmem:[#allocation3 + $0x3c] sm:$0xe]  ;;  %v8546_v7 = vld [vmem:[#allocation3 + $0x18] sm:$0xe] }
 0x3f9   : > { %v5512_v3 = vpack.c.b16 %v5483_v61, %v5482_v19  ;;  %v5181_v53 = vor.u32 %v5180_v36, %v5176_v5  ;;  %v5186_v55 = vrot.slane %v5184_v57, 5  ;;  %v9943_v15 = vrot.slane %v5890_v39, 9  ;;  %v5050_v12 = vld [vmem:[#allocation3 + $0x3c] sm:$0xf] }
 0x3fa   : > { %v5172_v21 = vrot.slane %v5171_v41, 4  ;;  %v5966_v0 = vrot.slane %v5964_v42, 4  ;;  %v5189_v35 = vshrl.u32 %v5048_v54, 16  ;;  %v5192_v27 = vshll.u32 %v5048_v54, 16 }
 0x3fb   : > { %v5182_v8 = vrot.slane %v5181_v53, 4  ;;  %v5965_v29 = vsel %vm10566_vm9, %v9943_v15, %v5964_v42  ;;  %v5198_v2 = vshll.u32 %v5049_v33, 16  ;;  %v5202_v24 = vshrl.u32 %v5049_v33, 16  ;;  %v5892_v15 = vld [vmem:[#allocation3 + $0x48] sm:$0xe] }
 0x3fc   : > { %v5177_v1 = vsel %vm12959_vm2, %v5172_v21, %v5176_v5  ;;  %v5968_v32 = vsel %vm10566_vm9, %v5966_v0, %v5967_v10  ;;  %v5191_v48 = vrot.slane %v5189_v35, 4  ;;  %v5194_v62 = vrot.slane %v5192_v27, 5  ;;  %v5079_v10 = vld [vmem:[#allocation3 + $0x50] sm:$0x1] }
 0x3fd   : > { %v5187_v22 = vsel %vm12959_vm2, %v5182_v8, %v5186_v55  ;;  %v5484_v11 = vunpack.c.l.b16 %v5177_v1  ;;  %v6057_v4 = vunpack.c.l.b16 %v5968_v32  ;;  %v6056_v18 = vunpack.c.l.b16 %v5965_v29  ;;  %v10292_v1 = vld [vmem:[#allocation3 + $0x48] sm:$0xff] }
 0x3fe   : > { %v5485_v20 = vunpack.c.l.b16 %v5187_v22  ;;  %v5195_v30 = vor.u32 %v5194_v62, %v5191_v48  ;;  %v5200_v59 = vrot.slane %v5198_v2, 5  ;;  %v5204_v6 = vrot.slane %v5202_v24, 4  ;;  %v5052_v32 = vld [vmem:[#allocation3 + $0x48] sm:$0xf] }
 0x3ff   : > { %v6084_v28 = vpack.c.b16 %v6057_v4, %v6056_v18  ;;  %v5208_v51 = vshll.u32 %v5077_v52, 16  ;;  %v5971_v40 = vrot.slane %v5051_v49, 5  ;;  %v5974_v58 = vrot.slane %v5078_v38, 5  ;;  %v10308_v52 = vld [vmem:[#allocation3 + $0x54] sm:$0xff] }
 0x400   : > { %9845 = vmatmul.msk.bf16.gmra.mxu1 %vm1107_vm4, %v5512_v3  ;;  %9959 = vmatmul.msk.bf16.gmra.mxu3 %vm1107_vm4, %v6083_v43  ;;  %v5513_v31 = vpack.c.b16 %v5485_v20, %v5484_v11  ;;  %v5196_v13 = vrot.slane %v5195_v30, 4  ;;  %v5205_v46 = vor.u32 %v5204_v6, %v5200_v59  ;;  %v9944_v9 = vrot.slane %v5891_v44, 9 }
 0x401   : > { %10041 = vmatmul.msk.bf16.gmra.mxu0 %vm1107_vm4, %v10306_v47  ;;  %v5210_v34 = vrot.slane %v5208_v51, 5  ;;  %v5973_v37 = vrot.slane %v5971_v40, 4  ;;  %v5213_v19 = vshrl.u32 %v5050_v12, 16  ;;  %v5216_v56 = vshll.u32 %v5050_v12, 16  ;;  %v10309_v51 = vld [vmem:[#allocation3 + $0x60] sm:$0xff] }
 0x402   : > { %v5201_v45 = vsel %vm12959_vm2, %v5196_v13, %v5200_v59  ;;  %v5206_v23 = vrot.slane %v5205_v46, 4  ;;  %v5972_v61 = vsel %vm10566_vm9, %v9944_v9, %v5971_v40  ;;  %v5222_v41 = vshll.u32 %v5051_v49, 16  ;;  %v5080_v12 = vld [vmem:[#allocation3 + $0x5c] sm:$0x1] }
 0x403   : > { %v5975_v25 = vsel %vm10566_vm9, %v5973_v37, %v5974_v58  ;;  %v5486_v63 = vunpack.c.l.b16 %v5201_v45  ;;  %v5215_v16 = vrot.slane %v5213_v19, 4  ;;  %v5218_v47 = vrot.slane %v5216_v56, 5  ;;  %v10293_v37 = vld [vmem:[#allocation3 + $0x54] sm:$0xff] }
 0x404   : > { %v5211_v60 = vsel %vm12959_vm2, %v5206_v23, %v5210_v34  ;;  %v6059_v3 = vunpack.c.l.b16 %v5975_v25  ;;  %v5226_v33 = vshrl.u32 %v5051_v49, 16  ;;  %v6058_v5 = vunpack.c.l.b16 %v5972_v61  ;;  %v5893_v19 = vld [vmem:[#allocation3 + $0x54] sm:$0xe] }
 0x405   : > { %9927 = vmatmul.msk.bf16.gmra.mxu2 %vm1107_vm4, %v10290_v50  ;;  %v5487_v43 = vunpack.c.l.b16 %v5211_v60  ;;  %v5219_v42 = vor.u32 %v5218_v47, %v5215_v16  ;;  %v5224_v21 = vrot.slane %v5222_v41, 5  ;;  %v5053_v50 = vld [vmem:[#allocation3 + $0x4c] sm:$0xf]  ;;  %v5232_v39 = vshll.u32 %v5078_v38, 16  ;;  %v5054_v23 = vld [vmem:[#allocation3 + $0x54] sm:$0xf]  ;;  %v13125_v25 = vpop.f32.mrf.mxu0 }
 0x406   : > { %v6085_v57 = vpack.c.b16 %v6059_v3, %v6058_v5  ;;  %v5228_v53 = vrot.slane %v5226_v33, 4  ;;  %v5978_v54 = vrot.slane %v5053_v50, 5  ;;  %v5981_v8 = vrot.slane %v5079_v10, 5 }
 0x407   : > { %v5514_v36 = vpack.c.b16 %v5487_v43, %v5486_v63  ;;  %v5220_v55 = vrot.slane %v5219_v42, 4  ;;  %v5234_v35 = vrot.slane %v5232_v39, 5  ;;  %v9945_v27 = vrot.slane %v5892_v15, 9 }
 0x408   : > { %v5229_v0 = vor.u32 %v5228_v53, %v5224_v21  ;;  %v5980_v22 = vrot.slane %v5978_v54, 4  ;;  %v5237_v4 = vshrl.u32 %v5052_v32, 16  ;;  %v5240_v48 = vshll.u32 %v5052_v32, 16 }
 0x409   : > { %v5225_v11 = vsel %vm12959_vm2, %v5220_v55, %v5224_v21  ;;  %v5979_v20 = vsel %vm10566_vm9, %v9945_v27, %v5978_v54  ;;  %v5246_v18 = vshll.u32 %v5053_v50, 16  ;;  %v5250_v30 = vshrl.u32 %v5053_v50, 16 }
 0x40a   : > { %v5230_v29 = vrot.slane %v5229_v0, 4  ;;  %v5982_v62 = vsel %vm10566_vm9, %v5980_v22, %v5981_v8  ;;  %v5488_v24 = vunpack.c.l.b16 %v5225_v11  ;;  %v6060_v6 = vunpack.c.l.b16 %v5979_v20  ;;  %v5057_v8 = vld [vmem:[#allocation3 + $0x64] sm:$0xf] }
 0x40b   : > { %v5248_v13 = vrot.slane %v5246_v18, 5  ;;  %v5252_v46 = vrot.slane %v5250_v30, 4  ;;  %v5256_v44 = vshll.u32 %v5079_v10, 16  ;;  %v5988_v45 = vrot.slane %v5080_v12, 5  ;;  %v10310_v10 = vld [vmem:[#allocation3 + $0x6c] sm:$0xff] }
 0x40c   : > { %v5235_v2 = vsel %vm12959_vm2, %v5230_v29, %v5234_v35  ;;  %v9946_v60 = vrot.slane %v5893_v19, 9  ;;  %v5261_v3 = vshrl.u32 %v5054_v23, 16  ;;  %v5264_v47 = vshll.u32 %v5054_v23, 16  ;;  %v5081_v35 = vld [vmem:[#allocation3 + $0x68] sm:$0x1]  ;;  %v10294_v29 = vld [vmem:[#allocation3 + $0x60] sm:$0xff] }
 0x40d   : > { %v5489_v59 = vunpack.c.l.b16 %v5235_v2  ;;  %v5253_v9 = vor.u32 %v5252_v46, %v5248_v13  ;;  %v5258_v56 = vrot.slane %v5256_v44, 5  ;;  %v13135_v15 = vpop.f32.mrf.mxu0  ;;  %v5280_v32 = vshll.u32 %v5080_v12, 16  ;;  %v5056_v2 = vld [vmem:[#allocation3 + $0x60] sm:$0xf] }
 0x40e   : > { %v5266_v42 = vrot.slane %v5264_v47, 5  ;;  %v5992_v27 = vrot.slane %v5057_v8, 5  ;;  %v5288_v30 = vshll.u32 %v5056_v2, 16  ;;  %v5298_v44 = vshrl.u32 %v5057_v8, 16 }
 0x40f   : > { %v5515_v49 = vpack.c.b16 %v5489_v59, %v5488_v24  ;;  %v5254_v16 = vrot.slane %v5253_v9, 4  ;;  %v5282_v24 = vrot.slane %v5280_v32, 5  ;;  %v10311_v9 = vld [vmem:[#allocation3 + $0x78] sm:$0xff] }
 0x410   : > { %9846 = vmatmul.msk.bf16.gmra.mxu1 %vm1107_vm4, %v5513_v31  ;;  %9960 = vmatmul.msk.bf16.gmra.mxu3 %vm1107_vm4, %v6084_v28  ;;  %v6061_v31 = vunpack.c.l.b16 %v5982_v62  ;;  %v5242_v28 = vrot.slane %v5240_v48, 5  ;;  %v5995_v62 = vrot.slane %v5081_v35, 5  ;;  %v5994_v18 = vrot.slane %v5992_v27, 4 }
 0x411   : > { %10042 = vmatmul.msk.bf16.gmra.mxu0 %vm1107_vm4, %v10307_v14  ;;  %v5239_v14 = vrot.slane %v5237_v4, 4  ;;  %v5259_v33 = vsel %vm12959_vm2, %v5254_v16, %v5258_v56  ;;  %v5894_v4 = vld [vmem:[#allocation3 + $0x60] sm:$0xe]  ;;  %v5300_v56 = vrot.slane %v5298_v44, 4  ;;  %v5082_v16 = vld [vmem:[#allocation3 + $0x74] sm:$0x1] }
 0x412   : > { %v6086_v38 = vpack.c.b16 %v6061_v31, %v6060_v6  ;;  %v5491_v53 = vunpack.c.l.b16 %v5259_v33  ;;  %v9947_v20 = vrot.slane %v5894_v4, 9  ;;  %v5996_v59 = vsel %vm10566_vm9, %v5994_v18, %v5995_v62  ;;  %v10296_v44 = vld [vmem:[#allocation3 + $0x78] sm:$0xff] }
 0x413   : > { %v5243_v40 = vor.u32 %v5242_v28, %v5239_v14  ;;  %v5285_v28 = vshrl.u32 %v5056_v2, 16 }
 0x415   : > { %9928 = vmatmul.msk.bf16.gmra.mxu2 %vm1107_vm4, %v10291_v17  ;;  %v5055_v17 = vld [vmem:[#allocation3 + $0x58] sm:$0xf]  ;;  %v5244_v34 = vrot.slane %v5243_v40, 4  ;;  %v5294_v40 = vshll.u32 %v5057_v8, 16  ;;  %v5287_v46 = vrot.slane %v5285_v28, 4 }
 0x416   : > { %v5985_v58 = vrot.slane %v5055_v17, 5  ;;  %v5274_v21 = vshrl.u32 %v5055_v17, 16 }
 0x417   : > { %v5249_v61 = vsel %vm12959_vm2, %v5244_v34, %v5248_v13  ;;  %v6065_v13 = vunpack.c.l.b16 %v5996_v59  ;;  %v5296_v23 = vrot.slane %v5294_v40, 5  ;;  %v5328_v40 = vshll.u32 %v5082_v16, 16 }
 0x418   : > { %v5987_v63 = vrot.slane %v5985_v58, 4  ;;  %v5490_v43 = vunpack.c.l.b16 %v5249_v61  ;;  %v5986_v5 = vsel %vm10566_vm9, %v9946_v60, %v5985_v58  ;;  %v5059_v60 = vld [vmem:[#allocation3 + $0x70] sm:$0xf]  ;;  %v5304_v61 = vshll.u32 %v5081_v35, 16 }
 0x419   : > { %v6062_v50 = vunpack.c.l.b16 %v5986_v5  ;;  %v5895_v5 = vld [vmem:[#allocation3 + $0x6c] sm:$0xe] }
 0x41a   : > { %v5989_v41 = vsel %vm10566_vm9, %v5987_v63, %v5988_v45  ;;  %v5516_v39 = vpack.c.b16 %v5491_v53, %v5490_v43  ;;  %v10295_v43 = vld [vmem:[#allocation3 + $0x6c] sm:$0xff] }
 0x420   : > { %9847 = vmatmul.msk.bf16.gmra.mxu1 %vm1107_vm4, %v5514_v36  ;;  %9961 = vmatmul.msk.bf16.gmra.mxu3 %vm1107_vm4, %v6085_v57  ;;  %v5270_v36 = vshll.u32 %v5055_v17, 16  ;;  %v5263_v57 = vrot.slane %v5261_v3, 4  ;;  %v5290_v17 = vrot.slane %v5288_v30, 5  ;;  %v5999_v3 = vrot.slane %v5059_v60, 5 }
 0x421   : > { %10043 = vmatmul.msk.bf16.gmra.mxu0 %vm1107_vm4, %v10308_v52  ;;  %v6063_v52 = vunpack.c.l.b16 %v5989_v41  ;;  %v5301_v41 = vor.u32 %v5300_v56, %v5296_v23 }
 0x422   : > { %v5267_v55 = vor.u32 %v5266_v42, %v5263_v57  ;;  %v5272_v0 = vrot.slane %v5270_v36, 5  ;;  %v5291_v45 = vor.u32 %v5290_v17, %v5287_v46  ;;  %v5058_v36 = vld [vmem:[#allocation3 + $0x6c] sm:$0xf]  ;;  %v5306_v57 = vrot.slane %v5304_v61, 5 }
 0x423   : > { %v6087_v54 = vpack.c.b16 %v6063_v52, %v6062_v50  ;;  %v6002_v52 = vrot.slane %v5082_v16, 5  ;;  %v9948_v42 = vrot.slane %v5895_v5, 9  ;;  %v5309_v53 = vshrl.u32 %v5058_v36, 16 }
 0x424   : > { %v5268_v22 = vrot.slane %v5267_v55, 4  ;;  %v5292_v47 = vrot.slane %v5291_v45, 4  ;;  %v5330_v45 = vrot.slane %v5328_v40, 5  ;;  %v5062_v40 = vld [vmem:[#allocation3 + $0x84] sm:$0xf] }
 0x425   : > { %9929 = vmatmul.msk.bf16.gmra.mxu2 %vm1107_vm4, %v10292_v1  ;;  %v5276_v1 = vrot.slane %v5274_v21, 4  ;;  %v6001_v21 = vrot.slane %v5999_v3, 4  ;;  %v6000_v32 = vsel %vm10566_vm9, %v9948_v42, %v5999_v3  ;;  %v5311_v35 = vrot.slane %v5309_v53, 4 }
 0x426   : > { %v5273_v31 = vsel %vm12959_vm2, %v5268_v22, %v5272_v0  ;;  %v5297_v50 = vsel %vm12959_vm2, %v5292_v47, %v5296_v23  ;;  %v6066_v2 = vunpack.c.l.b16 %v6000_v32 }
 0x427   : > { %v5277_v11 = vor.u32 %v5276_v1, %v5272_v0  ;;  %v6003_v55 = vsel %vm10566_vm9, %v6001_v21, %v6002_v52  ;;  %v5494_v1 = vunpack.c.l.b16 %v5297_v50 }
 0x429   : > { %v5278_v14 = vrot.slane %v5277_v11, 4  ;;  %v5318_v11 = vshll.u32 %v5059_v60, 16 }
 0x42b   : > { %v5283_v6 = vsel %vm12959_vm2, %v5278_v14, %v5282_v24  ;;  %v5320_v30 = vrot.slane %v5318_v11, 5 }
 0x42c   : > { %v5493_v12 = vunpack.c.l.b16 %v5283_v6  ;;  %v5061_v6 = vld [vmem:[#allocation3 + $0x7c] sm:$0xf] }
 0x42d   : > { %v13140_v48 = vpop.f32.mrf.mxu2  ;;  %v5346_v50 = vshrl.u32 %v5061_v6, 16 }
 0x430   : > { %9848 = vmatmul.msk.bf16.gmra.mxu1 %vm1107_vm4, %v5515_v49  ;;  %9962 = vmatmul.msk.bf16.gmra.mxu3 %vm1107_vm4, %v6086_v38  ;;  %v13149_v49 = vpop.f32.mrf.mxu0  ;;  %v5993_v38 = vsel %vm10566_vm9, %v9947_v20, %v5992_v27  ;;  %v6067_v27 = vunpack.c.l.b16 %v6003_v55 }
 0x431   : > { %10044 = vmatmul.msk.bf16.gmra.mxu0 %vm1107_vm4, %v10309_v51  ;;  %v5492_v51 = vunpack.c.l.b16 %v5273_v31  ;;  %v6064_v58 = vunpack.c.l.b16 %v5993_v38  ;;  %v10312_v31 = vld [vmem:[#allocation3 + $0x84] sm:$0xff] }
 0x432   : > { %v6089_v14 = vpack.c.b16 %v6067_v27, %v6066_v2 }
 0x433   : > { %v5517_v34 = vpack.c.b16 %v5493_v12, %v5492_v51  ;;  %v6088_v19 = vpack.c.b16 %v6065_v13, %v6064_v58  ;;  %v5083_v13 = vld [vmem:[#allocation3 + $0x80] sm:$0x1]  ;;  %v5896_v12 = vld [vmem:[#allocation3 + $0x78] sm:$0xe] }
 0x435   : > { %9930 = vmatmul.msk.bf16.gmra.mxu2 %vm1107_vm4, %v10293_v37  ;;  %v13153_v37 = vpop.f32.mrf.mxu2 }
 0x438   : > { %v13158_v33 = vpop.f32.mrf.mxu0 }
 0x440   : > { %9849 = vmatmul.msk.bf16.gmra.mxu1 %vm1107_vm4, %v5516_v39  ;;  %9963 = vmatmul.msk.bf16.gmra.mxu3 %vm1107_vm4, %v6087_v54  ;;  %v5302_v39 = vrot.slane %v5301_v41, 4 }
 0x441   : > { %10045 = vmatmul.msk.bf16.gmra.mxu0 %vm1107_vm4, %v10310_v10  ;;  %v5312_v10 = vshll.u32 %v5058_v36, 16 }
 0x442   : > { %v5307_v0 = vsel %vm12959_vm2, %v5302_v39, %v5306_v57  ;;  %v5342_v57 = vshll.u32 %v5061_v6, 16 }
 0x443   : > { %v5314_v22 = vrot.slane %v5312_v10, 5  ;;  %v5495_v4 = vunpack.c.l.b16 %v5307_v0 }
 0x444   : > { %v5344_v11 = vrot.slane %v5342_v57, 5 }
 0x445   : > { %9931 = vmatmul.msk.bf16.gmra.mxu2 %vm1107_vm4, %v10294_v29  ;;  %v5322_v29 = vshrl.u32 %v5059_v60, 16  ;;  %v5518_v18 = vpack.c.b16 %v5495_v4, %v5494_v1  ;;  %v5315_v28 = vor.u32 %v5314_v22, %v5311_v35  ;;  %v9949_v60 = vrot.slane %v5896_v12, 9  ;;  %v10313_v35 = vld [vmem:[#allocation3 + $0x90] sm:$0xff]  ;;  %v5063_v4 = vld [vmem:[#allocation3 + $0x88] sm:$0xf] }
 0x446   : > { %v6156_v63 = vpop.f32.mrf.mxu3 }
 0x447   : > { %v5324_v59 = vrot.slane %v5322_v29, 4  ;;  %v5316_v46 = vrot.slane %v5315_v28, 4  ;;  %v5348_v29 = vrot.slane %v5346_v50, 4  ;;  %v10297_v28 = vld [vmem:[#allocation3 + $0x84] sm:$0xff] }
 0x449   : > { %v5325_v17 = vor.u32 %v5324_v59, %v5320_v30  ;;  %v5321_v61 = vsel %vm12959_vm2, %v5316_v46, %v5320_v30  ;;  %v5897_v30 = vld [vmem:[#allocation3 + $0x84] sm:$0xe] }
 0x44a   : > { %v5496_v52 = vunpack.c.l.b16 %v5321_v61  ;;  %v9950_v12 = vrot.slane %v5897_v30, 9 }
 0x44b   : > { %v5326_v16 = vrot.slane %v5325_v17, 4 }
 0x44d   : > { %v5331_v36 = vsel %vm12959_vm2, %v5326_v16, %v5330_v45  ;;  %v5366_v16 = vshll.u32 %v5063_v4, 16 }
 0x44e   : > { %v6158_v8 = vpop.f32.mrf.mxu3  ;;  %v5497_v39 = vunpack.c.l.b16 %v5331_v36  ;;  %v5370_v36 = vshrl.u32 %v5063_v4, 16 }
 0x450   : > { %9850 = vmatmul.msk.bf16.gmra.mxu1 %vm1107_vm4, %v5517_v34  ;;  %9964 = vmatmul.msk.bf16.gmra.mxu3 %vm1107_vm4, %v6088_v19  ;;  %v6009_v34 = vrot.slane %v5083_v13, 5  ;;  %v5519_v32 = vpack.c.b16 %v5497_v39, %v5496_v52  ;;  %v10314_v39 = vld [vmem:[#allocation3 + $0x9c] sm:$0xff] }
 0x451   : > { %10046 = vmatmul.msk.bf16.gmra.mxu0 %vm1107_vm4, %v10311_v9  ;;  %v5060_v9 = vld [vmem:[#allocation3 + $0x78] sm:$0xf] }
 0x452   : > { %v5333_v3 = vshrl.u32 %v5060_v9, 16  ;;  %v5336_v47 = vshll.u32 %v5060_v9, 16  ;;  %v5357_v9 = vshrl.u32 %v5062_v40, 16 }
 0x454   : > { %v5335_v21 = vrot.slane %v5333_v3, 4  ;;  %v5338_v53 = vrot.slane %v5336_v47, 5  ;;  %v5359_v47 = vrot.slane %v5357_v9, 4 }
 0x455   : > { %9932 = vmatmul.msk.bf16.gmra.mxu2 %vm1107_vm4, %v10295_v43 }
 0x456   : > { %v5339_v22 = vor.u32 %v5338_v53, %v5335_v21 }
 0x457   : > { %v13163_v54 = vpop.f32.mrf.mxu2 }
 0x45b   : > { %v5586_v62 = vpop.f32.mrf.mxu1 }
 0x45c   : > { %v5807_v20 = vadd.f32 %v13140_v48, %v5586_v62  ;;  %v6006_v48 = vrot.slane %v5061_v6, 5 }
 0x45e   : > { %v13171_v24 = vpop.f32.mrf.mxu0  ;;  %v13174_v51 = vadd.f32 %v6156_v63, %v5807_v20  ;;  %v6008_v63 = vrot.slane %v6006_v48, 4  ;;  %v5352_v20 = vshll.u32 %v5083_v13, 16 }
 0x45f   : > { %v13178_v38 = vpop.f32.mrf.mxu2 }
 0x460   : > { %9851 = vmatmul.msk.bf16.gmra.mxu1 %vm1107_vm4, %v5518_v18  ;;  %9965 = vmatmul.msk.bf16.gmra.mxu3 %vm1107_vm4, %v6089_v14  ;;  %v6010_v5 = vsel %vm10566_vm9, %v6008_v63, %v6009_v34  ;;  %v5084_v18 = vld [vmem:[#allocation3 + $0x8c] sm:$0x1]  ;;  %v5349_v14 = vor.u32 %v5348_v29, %v5344_v11  ;;  %v5354_v46 = vrot.slane %v5352_v20, 5  ;;  %v10298_v20 = vld [vmem:[#allocation3 + $0x90] sm:$0xff] }
 0x461   : > { %10047 = vmatmul.msk.bf16.gmra.mxu0 %vm1107_vm4, %v10312_v31  ;;  %v6069_v42 = vunpack.c.l.b16 %v6010_v5  ;;  %v5340_v31 = vrot.slane %v5339_v22, 4  ;;  %v6016_v6 = vrot.slane %v5084_v18, 5  ;;  %v5376_v22 = vshll.u32 %v5084_v18, 16 }
 0x462   : > { %v5350_v34 = vrot.slane %v5349_v14, 4 }
 0x463   : > { %v6161_v58 = vpop.f32.mrf.mxu3  ;;  %v5588_v19 = vpop.f32.mrf.mxu1  ;;  %v5345_v13 = vsel %vm12959_vm2, %v5340_v31, %v5344_v11  ;;  %v5085_v11 = vld [vmem:[#allocation3 + $0x98] sm:$0x1] }
 0x464   : > { %v5809_v56 = vadd.f32 %v13153_v37, %v5588_v19  ;;  %v6007_v37 = vsel %vm10566_vm9, %v9949_v60, %v6006_v48  ;;  %v5360_v19 = vshll.u32 %v5062_v40, 16  ;;  %v5355_v63 = vsel %vm12959_vm2, %v5350_v34, %v5354_v46 }
 0x465   : > { %9933 = vmatmul.msk.bf16.gmra.mxu2 %vm1107_vm4, %v10296_v44  ;;  %v6068_v0 = vunpack.c.l.b16 %v6007_v37  ;;  %v5498_v61 = vunpack.c.l.b16 %v5345_v13  ;;  %v5499_v52 = vunpack.c.l.b16 %v5355_v63  ;;  %v6023_v14 = vrot.slane %v5085_v11, 5 }
 0x466   : > { %v13181_v23 = vpop.f32.mrf.mxu0  ;;  %v13187_v41 = vadd.f32 %v6158_v8, %v5809_v56  ;;  %v5362_v5 = vrot.slane %v5360_v19, 5 }
 0x467   : > { %v6090_v27 = vpack.c.b16 %v6069_v42, %v6068_v0  ;;  %v5520_v50 = vpack.c.b16 %v5499_v52, %v5498_v61  ;;  %v5368_v0 = vrot.slane %v5366_v16, 5 }
 0x468   : > { %v13189_v43 = vpop.f32.mrf.mxu2 }
 0x46b   : > { %v6163_v10 = vpop.f32.mrf.mxu3 }
 0x46d   : > { %v5591_v55 = vpop.f32.mrf.mxu1 }
 0x46e   : > { %v13197_v1 = vpop.f32.mrf.mxu0  ;;  %v5812_v8 = vadd.f32 %v13163_v54, %v5591_v55  ;;  %v6013_v54 = vrot.slane %v5063_v4, 5  ;;  %v5363_v55 = vor.u32 %v5362_v5, %v5359_v47 }
 0x470   : > { %v13200_v62 = vadd.f32 %v6161_v58, %v5812_v8  ;;  %9852 = vmatmul.msk.bf16.gmra.mxu1 %vm1107_vm4, %v5519_v32  ;;  %v13204_v2 = vpop.f32.mrf.mxu2  ;;  %9966 = vmatmul.msk.bf16.gmra.mxu3 %vm1107_vm4, %v6090_v27  ;;  %v6015_v58 = vrot.slane %v6013_v54, 4  ;;  %v5372_v8 = vrot.slane %v5370_v36, 4  ;;  %v5065_v32 = vld [vmem:[#allocation3 + $0x94] sm:$0xf]  ;;  %v5364_v29 = vrot.slane %v5363_v55, 4 }
 0x471   : > { %10048 = vmatmul.msk.bf16.gmra.mxu0 %vm1107_vm4, %v10313_v35  ;;  %v5390_v63 = vshll.u32 %v5065_v32, 16 }
 0x472   : > { %v6017_v60 = vsel %vm10566_vm9, %v6015_v58, %v6016_v6  ;;  %v5373_v4 = vor.u32 %v5372_v8, %v5368_v0  ;;  %v5369_v18 = vsel %vm12959_vm2, %v5364_v29, %v5368_v0  ;;  %v5067_v0 = vld [vmem:[#allocation3 + $0xa0] sm:$0xf] }
 0x473   : > { %v6166_v59 = vpop.f32.mrf.mxu3  ;;  %v6071_v3 = vunpack.c.l.b16 %v6017_v60  ;;  %v5500_v60 = vunpack.c.l.b16 %v5369_v18 }
 0x475   : > { %v5593_v48 = vpop.f32.mrf.mxu1  ;;  %9934 = vmatmul.msk.bf16.gmra.mxu2 %vm1107_vm4, %v10297_v28  ;;  %v5064_v28 = vld [vmem:[#allocation3 + $0x90] sm:$0xf] }
 0x476   : > { %v13207_v17 = vpop.f32.mrf.mxu0  ;;  %v5814_v44 = vadd.f32 %v13178_v38, %v5593_v48  ;;  %v6014_v38 = vsel %vm10566_vm9, %v9950_v12, %v6013_v54  ;;  %v5898_v54 = vld [vmem:[#allocation3 + $0x90] sm:$0xe]  ;;  %v5381_v12 = vshrl.u32 %v5064_v28, 16  ;;  %v5384_v58 = vshll.u32 %v5064_v28, 16  ;;  %v5066_v28 = vld [vmem:[#allocation3 + $0x9c] sm:$0xf] }
 0x477   : > { %v6070_v42 = vunpack.c.l.b16 %v6014_v38  ;;  %v9951_v48 = vrot.slane %v5898_v54, 9  ;;  %v5899_v54 = vld [vmem:[#allocation3 + $0x9c] sm:$0xe] }
 0x478   : > { %v13213_v45 = vadd.f32 %v6163_v10, %v5814_v44  ;;  %v13215_v56 = vpop.f32.mrf.mxu2  ;;  %v5374_v44 = vrot.slane %v5373_v4, 4  ;;  %v5383_v38 = vrot.slane %v5381_v12, 4  ;;  %v5386_v16 = vrot.slane %v5384_v58, 5 }
 0x479   : > { %v6091_v10 = vpack.c.b16 %v6071_v3, %v6070_v42  ;;  %v5394_v3 = vshrl.u32 %v5065_v32, 16  ;;  %v5408_v12 = vshll.u32 %v5066_v28, 16 }
 0x47b   : > { %v6168_v37 = vpop.f32.mrf.mxu3  ;;  %v5396_v55 = vrot.slane %v5394_v3, 4  ;;  %v5410_v3 = vrot.slane %v5408_v12, 5  ;;  %v7892_v12 = vld [vmem:[#allocation3 + $0x18] sm:$0xf] }
 0x47d   : > { %v5596_v57 = vpop.f32.mrf.mxu1 }
 0x47e   : > { %v13223_v21 = vpop.f32.mrf.mxu0  ;;  %v5817_v53 = vadd.f32 %v13189_v43, %v5596_v57  ;;  %v6020_v43 = vrot.slane %v5065_v32, 5 }
 0x480   : > { %v13226_v35 = vadd.f32 %v6166_v59, %v5817_v53  ;;  %9853 = vmatmul.msk.bf16.gmra.mxu1 %vm1107_vm4, %v5520_v50  ;;  %v13230_v27 = vpop.f32.mrf.mxu2  ;;  %9967 = vmatmul.msk.bf16.gmra.mxu3 %vm1107_vm4, %v6091_v10  ;;  %v5378_v59 = vrot.slane %v5376_v22, 5  ;;  %v6022_v46 = vrot.slane %v6020_v43, 4  ;;  %v10315_v53 = vld [vmem:[#allocation3 + $0xa8] sm:$0xff]  ;;  %v5392_v10 = vrot.slane %v5390_v63, 5  ;;  %v13259_v22 = vld [vmem:[#allocation3 + $0xa4] sm:$0x1] }
 0x481   : > { %10049 = vmatmul.msk.bf16.gmra.mxu0 %vm1107_vm4, %v10314_v39  ;;  %v5387_v39 = vor.u32 %v5386_v16, %v5383_v38 }
 0x482   : > { %v6024_v9 = vsel %vm10566_vm9, %v6022_v46, %v6023_v14  ;;  %v5379_v19 = vsel %vm12959_vm2, %v5374_v44, %v5378_v59  ;;  %v5397_v4 = vor.u32 %v5396_v55, %v5392_v10  ;;  %v5405_v44 = vshrl.u32 %v5066_v28, 16  ;;  %v13279_v55 = vld [vmem:[#allocation3 + $0xb0] sm:$0x1] }
 0x483   : > { %v6171_v31 = vpop.f32.mrf.mxu3  ;;  %v6073_v61 = vunpack.c.l.b16 %v6024_v9  ;;  %v5501_v47 = vunpack.c.l.b16 %v5379_v19  ;;  %v5388_v29 = vrot.slane %v5387_v39, 4  ;;  %v10316_v39 = vld [vmem:[#allocation3 + $0xb4] sm:$0xff] }
 0x484   : > { %v5398_v18 = vrot.slane %v5397_v4, 4  ;;  %v5407_v16 = vrot.slane %v5405_v44, 4 }
 0x485   : > { %v5598_v30 = vpop.f32.mrf.mxu1  ;;  %9935 = vmatmul.msk.bf16.gmra.mxu2 %vm1107_vm4, %v10298_v20  ;;  %v5521_v57 = vpack.c.b16 %v5501_v47, %v5500_v60  ;;  %v10299_v20 = vld [vmem:[#allocation3 + $0x9c] sm:$0xff]  ;;  %v5418_v47 = vshrl.u32 %v5067_v0, 16 }
 0x486   : > { %v13233_v6 = vpop.f32.mrf.mxu0  ;;  %v5819_v40 = vadd.f32 %v13204_v2, %v5598_v30  ;;  %v6021_v2 = vsel %vm10566_vm9, %v9951_v48, %v6020_v43  ;;  %v6027_v43 = vrot.slane %v5067_v0, 5  ;;  %v9952_v48 = vrot.slane %v5899_v54, 9  ;;  %v5068_v54 = vld [vmem:[#allocation3 + $0xa8] sm:$0xf] }
 0x487   : > { %15081 = vst [vmem:[#allocation19_spill] sm:$0xff] %v13233_v6  ;;  %v6072_v52 = vunpack.c.l.b16 %v6021_v2  ;;  %v5420_v4 = vrot.slane %v5418_v47, 4 }
 0x488   : > { %v13239_v13 = vadd.f32 %v6168_v37, %v5819_v40  ;;  %v13241_v34 = vpop.f32.mrf.mxu2  ;;  %v6029_v46 = vrot.slane %v6027_v43, 4  ;;  %v6028_v63 = vsel %vm10566_vm9, %v9952_v48, %v6027_v43  ;;  %v5411_v43 = vor.u32 %v5410_v3, %v5407_v16 }
 0x489   : > { %v6092_v50 = vpack.c.b16 %v6073_v61, %v6072_v52  ;;  %v5414_v61 = vshll.u32 %v5067_v0, 16  ;;  %v5069_v52 = vld [vmem:[#allocation3 + $0xac] sm:$0xf]  ;;  %v5432_v48 = vshll.u32 %v5068_v54, 16 }
 0x48a   : > { %v5442_v3 = vshrl.u32 %v5069_v52, 16 }
 0x48b   : > { %v6173_v5 = vpop.f32.mrf.mxu3  ;;  %v5434_v16 = vrot.slane %v5432_v48, 5 }
 0x48d   : > { %v5601_v36 = vpop.f32.mrf.mxu1 }
 0x48e   : > { %v5822_v37 = vadd.f32 %v13215_v56, %v5601_v36  ;;  %v13250_v42 = vpop.f32.mrf.mxu0  ;;  %v5400_v56 = vshll.u32 %v5085_v11, 16  ;;  %v5393_v11 = vsel %vm12959_vm2, %v5388_v29, %v5392_v10  ;;  %v5416_v10 = vrot.slane %v5414_v61, 5 }
 0x48f   : > { %15082 = vst [vmem:[#allocation16_spill] sm:$0xff] %v13250_v42  ;;  %v5502_v2 = vunpack.c.l.b16 %v5393_v11  ;;  %v10300_v11 = vld [vmem:[#allocation3 + $0xa8] sm:$0xff] }
 0x490   : > { %v13252_v8 = vadd.f32 %v6171_v31, %v5822_v37  ;;  %9854 = vmatmul.msk.bf16.gmra.mxu1 %vm1107_vm4, %v5521_v57  ;;  %v13256_v32 = vpop.f32.mrf.mxu2  ;;  %9968 = vmatmul.msk.bf16.gmra.mxu3 %vm1107_vm4, %v6092_v50  ;;  %v6030_v31 = vrot.slane %v13259_v22, 5  ;;  %v5402_v59 = vrot.slane %v5400_v56, 5  ;;  %v6074_v57 = vunpack.c.l.b16 %v6028_v63  ;;  %v5900_v56 = vld [vmem:[#allocation3 + $0xa8] sm:$0xe] }
 0x491   : > { %10050 = vmatmul.msk.bf16.gmra.mxu0 %vm1107_vm4, %v10315_v53  ;;  %v9953_v28 = vrot.slane %v5900_v56, 9  ;;  %v5438_v63 = vshll.u32 %v5069_v52, 16  ;;  %v7893_v56 = vld [vmem:[#allocation3 + $0x1c] sm:$0xf] }
 0x492   : > { %v6031_v60 = vsel %vm10566_vm9, %v6029_v46, %v6030_v31  ;;  %v5412_v46 = vrot.slane %v5411_v43, 4  ;;  %v7950_v48 = vshll.u32 %v7893_v56, 16 }
 0x493   : > { %v6176_v14 = vpop.f32.mrf.mxu3  ;;  %v6075_v38 = vunpack.c.l.b16 %v6031_v60 }
 0x494   : > { %v5417_v47 = vsel %vm12959_vm2, %v5412_v46, %v5416_v10  ;;  %v7954_v46 = vshrl.u32 %v7893_v56, 16 }
 0x495   : > { %v5603_v30 = vpop.f32.mrf.mxu1  ;;  %9936 = vmatmul.msk.bf16.gmra.mxu2 %vm1107_vm4, %v10299_v20  ;;  %v6093_v29 = vpack.c.b16 %v6075_v38, %v6074_v57  ;;  %v6034_v20 = vrot.slane %v5069_v52, 5  ;;  %v7944_v57 = vshll.u32 %v7892_v12, 16 }
 0x496   : > { %v5824_v40 = vadd.f32 %v13230_v27, %v5603_v30  ;;  %v13268_v9 = vpop.f32.mrf.mxu0  ;;  %v5403_v27 = vsel %vm12959_vm2, %v5398_v18, %v5402_v59  ;;  %v6037_v30 = vrot.slane %v13279_v55, 5 }
 0x497   : > { %15083 = vst [vmem:[#allocation5_spill] sm:$0xff] %v13268_v9  ;;  %v6036_v18 = vrot.slane %v6034_v20, 4 }
 0x498   : > { %v13266_v58 = vadd.f32 %v6173_v5, %v5824_v40  ;;  %v13270_v19 = vpop.f32.mrf.mxu2  ;;  %v5503_v5 = vunpack.c.l.b16 %v5403_v27  ;;  %v5429_v40 = vshrl.u32 %v5068_v54, 16  ;;  %v5444_v54 = vrot.slane %v5442_v3, 4 }
 0x49a   : > { %v5522_v50 = vpack.c.b16 %v5503_v5, %v5502_v2  ;;  %v6038_v2 = vsel %vm10566_vm9, %v6036_v18, %v6037_v30  ;;  %v5431_v38 = vrot.slane %v5429_v40, 4  ;;  %v7946_v40 = vrot.slane %v7944_v57, 5 }
 0x49b   : > { %v6178_v36 = vpop.f32.mrf.mxu3  ;;  %v6077_v52 = vunpack.c.l.b16 %v6038_v2  ;;  %v7952_v57 = vrot.slane %v7950_v48, 5 }
 0x49d   : > { %v5606_v37 = vpop.f32.mrf.mxu1 }
 0x49e   : > { %v5827_v53 = vadd.f32 %v13241_v34, %v5606_v37  ;;  %v5424_v34 = vshll.u32 %v13259_v22, 16  ;;  %v13290_v59 = vpop.f32.mrf.mxu0  ;;  %v6035_v22 = vsel %vm10566_vm9, %v9953_v28, %v6034_v20  ;;  %v7941_v37 = vshrl.u32 %v7892_v12, 16  ;;  %v13312_v28 = vld [vmem:[#allocation3 + $0xbc] sm:$0x1] }
 0x49f   : > { %15084 = vst [vmem:[#allocation4_spill] sm:$0xff] %v13290_v59  ;;  %v5440_v20 = vrot.slane %v5438_v63, 5  ;;  %v5448_v12 = vshll.u32 %v13279_v55, 16  ;;  %v6044_v3 = vrot.slane %v13312_v28, 5 }
 0x4a0   : > { %v13281_v31 = vadd.f32 %v6176_v14, %v5827_v53  ;;  %9855 = vmatmul.msk.bf16.gmra.mxu1 %vm1107_vm4, %v5522_v50  ;;  %v13285_v0 = vpop.f32.mrf.mxu2  ;;  %9969 = vmatmul.msk.bf16.gmra.mxu3 %vm1107_vm4, %v6093_v29  ;;  %v5421_v14 = vor.u32 %v5420_v4, %v5416_v10  ;;  %v5426_v27 = vrot.slane %v5424_v34, 5  ;;  %v6076_v29 = vunpack.c.l.b16 %v6035_v22  ;;  %v5901_v34 = vld [vmem:[#allocation3 + $0xb4] sm:$0xe] }
 0x4a1   : > { %10051 = vmatmul.msk.bf16.gmra.mxu0 %vm1107_vm4, %v10316_v39  ;;  %v10184_v39 = vld [vmem:[%s14802_s2 + $0xe] sm:$0x3]  ;;  %v5504_v10 = vunpack.c.l.b16 %v5417_v47  ;;  %v5435_v4 = vor.u32 %v5434_v16, %v5431_v38  ;;  %v7943_v30 = vrot.slane %v7941_v37, 4  ;;  %v9954_v22 = vrot.slane %v5901_v34, 9  ;;  %v10317_v38 = vld [vmem:[#allocation3 + $0xc0] sm:$0xff]  ;;  %v10301_v34 = vld [vmem:[#allocation3 + $0xb4] sm:$0xff] }
 0x4a2   : > { %v5422_v5 = vrot.slane %v5421_v14, 4  ;;  %v8423_v43 = vsel %vm1156_vm0, %v10184_v39, 0  ;;  %v5445_v16 = vor.u32 %v5444_v54, %v5440_v20  ;;  %v7894_v47 = vld [vmem:[#allocation3 + $0x20] sm:$0x1]  ;;  %v7956_v39 = vrot.slane %v7954_v46, 4 }
 0x4a3   : > { %v6181_v44 = vpop.f32.mrf.mxu3  ;;  %8432 = vmatpush.bf16.msra.mxu0 %v8423_v43  ;;  %v7947_v37 = vor.u32 %v7946_v40, %v7943_v30  ;;  %v5450_v55 = vrot.slane %v5448_v12, 5  ;;  %v7960_v43 = vshll.u32 %v7894_v47, 16  ;;  %v13337_v46 = vld [vmem:[#allocation3 + $0x10] sm:$0xf] }
 0x4a4   : > { %v7957_v48 = vor.u32 %v7956_v39, %v7952_v57 }
 0x4a5   : > { %v5608_v60 = vpop.f32.mrf.mxu1  ;;  %9937 = vmatmul.msk.bf16.gmra.mxu2 %vm1107_vm4, %v10300_v11  ;;  %v7948_v40 = vrot.slane %v7947_v37, 4  ;;  %v7274_v37 = vrot.slane %v13337_v46, 5 }
 0x4a6   : > { %v5829_v61 = vadd.f32 %v13256_v32, %v5608_v60  ;;  %v5427_v32 = vsel %vm12959_vm2, %v5422_v5, %v5426_v27  ;;  %v13314_v11 = vpop.f32.mrf.mxu0  ;;  %v6094_v27 = vpack.c.b16 %v6077_v52, %v6076_v29  ;;  %v5436_v5 = vrot.slane %v5435_v4, 4  ;;  %v5070_v4 = vld [vmem:[#allocation3 + $0xb4] sm:$0xf] }
 0x4a7   : > { %v5505_v14 = vunpack.c.l.b16 %v5427_v32  ;;  %15085 = vst [vmem:[#allocation29_spill] sm:$0xff] %v13314_v11  ;;  %v7953_v39 = vsel %vm12959_vm2, %v7948_v40, %v7952_v57 }
 0x4a8   : > { %v13300_v53 = vadd.f32 %v6178_v36, %v5829_v61  ;;  %v13302_v50 = vpop.f32.mrf.mxu2  ;;  %v13310_v36 = vld [vmem:[#allocation3 + $0xb8] sm:$0xf]  ;;  %v5441_v54 = vsel %vm12959_vm2, %v5436_v5, %v5440_v20  ;;  %v5456_v20 = vshll.u32 %v5070_v4, 16  ;;  %v7208_v5 = vld [vmem:[#allocation3 + $0xc] sm:$0xe] }
 0x4a9   : > { %v6041_v2 = vrot.slane %v13310_v36, 5  ;;  %v5523_v61 = vpack.c.b16 %v5505_v14, %v5504_v10  ;;  %v5446_v10 = vrot.slane %v5445_v16, 4 }
 0x4ab   : > { %v6183_v18 = vpop.f32.mrf.mxu3  ;;  %v6042_v29 = vsel %vm10566_vm9, %v9954_v22, %v6041_v2  ;;  %v6043_v52 = vrot.slane %v6041_v2, 4  ;;  %v5451_v22 = vsel %vm12959_vm2, %v5446_v10, %v5450_v55  ;;  %v7962_v2 = vrot.slane %v7960_v43, 5 }
 0x4ac   : > { %v6078_v12 = vunpack.c.l.b16 %v6042_v29  ;;  %v7958_v55 = vrot.slane %v7957_v48, 4  ;;  %v5466_v10 = vshrl.u32 %v13310_v36, 16  ;;  %v5507_v40 = vunpack.c.l.b16 %v5451_v22 }
 0x4ad   : > { %v5611_v60 = vpop.f32.mrf.mxu1  ;;  %v6045_v30 = vsel %vm10566_vm9, %v6043_v52, %v6044_v3  ;;  %v5506_v3 = vunpack.c.l.b16 %v5441_v54  ;;  %v10103_v54 = vld [vmem:[%s14802_s2 + $0xc] sm:$0x3]  ;;  %v8326_v48 = vunpack.c.l.b16 %v7953_v39  ;;  %v5472_v39 = vshll.u32 %v13312_v28, 16  ;;  %v10217_v28 = vld [vmem:[%s14802_s2 + $0x10] sm:$0x3] }
 0x4ae   : > { %v5832_v63 = vadd.f32 %v13270_v19, %v5611_v60  ;;  %v10086_v19 = vld [vmem:[%s14802_s2 + $0xa] sm:$0x3]  ;;  %v7895_v60 = vld [vmem:[#allocation3 + $0x24] sm:$0xf]  ;;  %v13345_v16 = vpop.f32.mrf.mxu0  ;;  %v6079_v47 = vunpack.c.l.b16 %v6045_v30  ;;  %v7963_v57 = vsel %vm12959_vm2, %v7958_v55, %v7962_v2  ;;  %v5458_v30 = vrot.slane %v5456_v20, 5 }
 0x4af   : > { %15087 = vst [vmem:[#allocation31_spill] sm:$0xff] %v13345_v16  ;;  %v7965_v29 = vshrl.u32 %v7895_v60, 16  ;;  %v7968_v52 = vshll.u32 %v7895_v60, 16  ;;  %v10070_v60 = vrot.slane %v7208_v5, 9  ;;  %v8327_v9 = vunpack.c.l.b16 %v7963_v57 }
 0x4b0   : > { %v13320_v56 = vadd.f32 %v6181_v44, %v5832_v63  ;;  %9856 = vmatmul.msk.bf16.gmra.mxu1 %vm1107_vm4, %v5523_v61  ;;  %v13324_v32 = vpop.f32.mrf.mxu2  ;;  %9970 = vmatmul.msk.bf16.gmra.mxu3 %vm1107_vm4, %v6094_v27  ;;  %v7483_v44 = vsel %vm1156_vm0, %v10086_v19, 0  ;;  %v5453_v63 = vshrl.u32 %v5070_v4, 16  ;;  %v13342_v61 = vld [vmem:[#allocation3 + $0x14] sm:$0x1]  ;;  %v7896_v19 = vld [vmem:[#allocation3 + $0x28] sm:$0xf]  ;;  %v5524_v20 = vpack.c.b16 %v5507_v40, %v5506_v3 }
 0x4b1   : > { %10052 = vmatmul.msk.bf16.gmra.mxu0 %vm1107_vm4, %v10317_v38  ;;  %7492 = vmatpush.bf16.msra.mxu2 %v7483_v44  ;;  %v7277_v4 = vrot.slane %v13342_v61, 5  ;;  %v7974_v16 = vshll.u32 %v7896_v19, 16  ;;  %v7978_v11 = vshrl.u32 %v7896_v19, 16  ;;  %v5468_v42 = vrot.slane %v5466_v10, 4  ;;  %v7897_v19 = vld [vmem:[#allocation3 + $0x2c] sm:$0x1] }
 0x4b2   : > { %15086 = vst [vmem:[#allocation6_spill] sm:$0xff] %v13320_v56  ;;  %v6095_v55 = vpack.c.b16 %v6079_v47, %v6078_v12  ;;  %v8358_v5 = vpack.c.b16 %v8327_v9, %v8326_v48  ;;  %v8821_v47 = vsel %vm1156_vm0, %v10217_v28, 0 }
 0x4b3   : > { %v6186_v14 = vpop.f32.mrf.mxu3  ;;  %v7980_v10 = vrot.slane %v7978_v11, 4  ;;  %v7984_v11 = vshll.u32 %v7897_v19, 16  ;;  %8830 = vmatpush.bf16.msra.mxu1 %v8821_v47  ;;  %v7209_v19 = vld [vmem:[#allocation3 + $0x18] sm:$0xe] }
 0x4b5   : > { %v5613_v27 = vpop.f32.mrf.mxu1  ;;  %9938 = vmatmul.msk.bf16.gmra.mxu2 %vm1107_vm4, %v10301_v34  ;;  %v5455_v34 = vrot.slane %v5453_v63, 4 }
 0x4b6   : > { %v5834_v38 = vadd.f32 %v13285_v0, %v5613_v27  ;;  %v5462_v0 = vshll.u32 %v13310_v36, 16  ;;  %v7276_v27 = vrot.slane %v7274_v37, 4  ;;  %v7970_v36 = vrot.slane %v7968_v52, 5  ;;  %v13372_v3 = vpop.f32.mrf.mxu0 }
 0x4b7   : > { %15090 = vst [vmem:[#allocation35_spill] sm:$0xff] %v13372_v3 }
 0x4b8   : > { %v13350_v43 = vadd.f32 %v6183_v18, %v5834_v38  ;;  %v13352_v44 = vpop.f32.mrf.mxu2  ;;  %v7769_v18 = vsel %vm1156_vm0, %v10103_v54, 0  ;;  %v7967_v38 = vrot.slane %v7965_v29, 4  ;;  %v7278_v2 = vsel %vm10566_vm9, %v7276_v27, %v7277_v4 }
 0x4b9   : > { %7778 = vmatpush.bf16.msra.mxu3 %v7769_v18  ;;  %v5459_v54 = vor.u32 %v5458_v30, %v5455_v34  ;;  %v7275_v29 = vsel %vm10566_vm9, %v10070_v60, %v7274_v37  ;;  %v7387_v52 = vunpack.c.l.b16 %v7278_v2  ;;  %v5474_v37 = vrot.slane %v5472_v39, 5 }
 0x4ba   : > { %15088 = vst [vmem:[#allocation33_spill] sm:$0xff] %v13350_v43  ;;  %v5464_v43 = vrot.slane %v5462_v0, 5  ;;  %v7971_v57 = vor.u32 %v7970_v36, %v7967_v38  ;;  %v7976_v0 = vrot.slane %v7974_v16, 5  ;;  %v7386_v16 = vunpack.c.l.b16 %v7275_v29  ;;  %v7898_v38 = vld [vmem:[#allocation3 + $0x30] sm:$0xf] }
 0x4bb   : > { %v6188_v59 = vpop.f32.mrf.mxu3  ;;  %v5460_v12 = vrot.slane %v5459_v54, 4 }
 0x4bc   : > { %v7418_v4 = vpack.c.b16 %v7387_v52, %v7386_v16  ;;  %v7972_v34 = vrot.slane %v7971_v57, 4  ;;  %v7981_v30 = vor.u32 %v7980_v10, %v7976_v0  ;;  %v7989_v52 = vshrl.u32 %v7898_v38, 16  ;;  %v7899_v16 = vld [vmem:[#allocation3 + $0x34] sm:$0xf] }
 0x4bd   : > { %v5616_v63 = vpop.f32.mrf.mxu1  ;;  %v5465_v2 = vsel %vm12959_vm2, %v5460_v12, %v5464_v43  ;;  %v7992_v57 = vshll.u32 %v7898_v38, 16 }
 0x4be   : > { %v5837_v22 = vadd.f32 %v13302_v50, %v5616_v63  ;;  %v5469_v50 = vor.u32 %v5468_v42, %v5464_v43  ;;  %v13382_v42 = vld [vmem:[#allocation3 + $0x1c] sm:$0xf]  ;;  %v7986_v63 = vrot.slane %v7984_v11, 5  ;;  %v7977_v29 = vsel %vm12959_vm2, %v7972_v34, %v7976_v0  ;;  %v13406_v0 = vpop.f32.mrf.mxu0 }
 0x4bf   : > { %v7281_v39 = vrot.slane %v13382_v42, 5  ;;  %v7982_v43 = vrot.slane %v7981_v30, 4  ;;  %v5508_v11 = vunpack.c.l.b16 %v5465_v2  ;;  %15092 = vst [vmem:[#allocation37_spill] sm:$0xff] %v13406_v0  ;;  %v7991_v30 = vrot.slane %v7989_v52, 4  ;;  %v7900_v52 = vld [vmem:[#allocation3 + $0x38] sm:$0x1] }
 0x4c0   : > { %v13369_v18 = vadd.f32 %v6186_v14, %v5837_v22  ;;  %9857 = vmatmul.msk.bf16.gmra.mxu1 %vm1107_vm4, %v5524_v20  ;;  %v13375_v9 = vpop.f32.mrf.mxu2  ;;  %9971 = vmatmul.msk.bf16.gmra.mxu3 %vm1107_vm4, %v6095_v55  ;;  %v6554_v14 = vld [vmem:[#allocation3 + $0xc] sm:$0xf]  ;;  %v5470_v48 = vrot.slane %v5469_v50, 4  ;;  %v6612_v20 = vshll.u32 %v13337_v46, 16  ;;  %v13388_v55 = vld [vmem:[#allocation3 + $0x20] sm:$0x1] }
 0x4c1   : > { %10185 = vmatmul.msk.bf16.vlgmr.msra.gmra.mxu0 %vm1107_vm4, %v8358_v5  ;;  %v6603_v60 = vshrl.u32 %v6554_v14, 16  ;;  %v6606_v27 = vshll.u32 %v6554_v14, 16  ;;  %v6616_v5 = vshrl.u32 %v13337_v46, 16  ;;  %v7284_v12 = vrot.slane %v13388_v55, 5 }
 0x4c2   : > { %15089 = vst [vmem:[#allocation34_spill] sm:$0xff] %v13369_v18  ;;  %v5475_v22 = vsel %vm12959_vm2, %v5470_v48, %v5474_v37  ;;  %v7987_v14 = vsel %vm12959_vm2, %v7982_v43, %v7986_v63  ;;  %v13404_v47 = vrot.slane %v6612_v20, 5  ;;  %v8328_v37 = vunpack.c.l.b16 %v7977_v29 }
 0x4c3   : > { %v6191_v40 = vpop.f32.mrf.mxu3  ;;  %v6605_v28 = vrot.slane %v6603_v60, 4  ;;  %v5509_v46 = vunpack.c.l.b16 %v5475_v22  ;;  %v7283_v34 = vrot.slane %v7281_v39, 4  ;;  %v7994_v48 = vrot.slane %v7992_v57, 5  ;;  %v10318_v57 = vld [vmem:[#allocation3 + $0x18] sm:$0xff] }
 0x4c4   : > { %v7998_v60 = vshll.u32 %v7899_v16, 16  ;;  %v6622_v2 = vshll.u32 %v13342_v61, 16 }
 0x4c5   : > { %v5618_v36 = vpop.f32.mrf.mxu1  ;;  %10087 = vmatmul.msk.bf16.vlgmr.msra.gmra.mxu2 %vm1107_vm4, %v7418_v4  ;;  %v6618_v4 = vrot.slane %v6616_v5, 4  ;;  %v7285_v63 = vsel %vm10566_vm9, %v7283_v34, %v7284_v12  ;;  %v5525_v22 = vpack.c.b16 %v5509_v46, %v5508_v11 }
 0x4c6   : > { %v5839_v54 = vadd.f32 %v13324_v32, %v5618_v36  ;;  %v6608_v32 = vrot.slane %v6606_v27, 5  ;;  %v8002_v27 = vshrl.u32 %v7899_v16, 16  ;;  %v8329_v36 = vunpack.c.l.b16 %v7987_v14 }
 0x4c7   : > { %v6619_v5 = vor.u32 %v6618_v4, %v13404_v47  ;;  %v7389_v16 = vunpack.c.l.b16 %v7285_v63  ;;  %v7995_v14 = vor.u32 %v7994_v48, %v7991_v30  ;;  %v6624_v11 = vrot.slane %v6622_v2, 5  ;;  %v6557_v4 = vld [vmem:[#allocation3 + $0x18] sm:$0xf]  ;;  %v13422_v48 = vld [vmem:[#allocation3 + $0x28] sm:$0xf] }
 0x4c8   : > { %v13397_v10 = vadd.f32 %v6188_v59, %v5839_v54  ;;  %v13399_v50 = vpop.f32.mrf.mxu2  ;;  %v10071_v59 = vrot.slane %v7209_v19, 9  ;;  %v6609_v54 = vor.u32 %v6608_v32, %v6605_v28  ;;  %v8359_v29 = vpack.c.b16 %v8329_v36, %v8328_v37 }
 0x4c9   : > { %v8000_v28 = vrot.slane %v7998_v60, 5  ;;  %v8004_v32 = vrot.slane %v8002_v27, 4  ;;  %v6620_v37 = vrot.slane %v6619_v5, 4  ;;  %v7996_v34 = vrot.slane %v7995_v14, 4 }
 0x4ca   : > { %15091 = vst [vmem:[#allocation36_spill] sm:$0xff] %v13397_v10  ;;  %v7282_v19 = vsel %vm10566_vm9, %v10071_v59, %v7281_v39  ;;  %v8008_v39 = vshll.u32 %v7900_v52, 16  ;;  %v7210_v52 = vld [vmem:[#allocation3 + $0x24] sm:$0xe] }
 0x4cb   : > { %v6193_v38 = vpop.f32.mrf.mxu3  ;;  %v7388_v46 = vunpack.c.l.b16 %v7282_v19  ;;  %v8005_v30 = vor.u32 %v8004_v32, %v8000_v28  ;;  %v6625_v36 = vsel %vm12959_vm2, %v6620_v37, %v6624_v11  ;;  %v6640_v19 = vshrl.u32 %v13382_v42, 16 }
 0x4cc   : > { %v8010_v63 = vrot.slane %v8008_v39, 5  ;;  %v6989_v39 = vunpack.c.l.b16 %v6625_v36 }
 0x4cd   : > { %v5621_v20 = vpop.f32.mrf.mxu1  ;;  %v7419_v59 = vpack.c.b16 %v7389_v16, %v7388_v46  ;;  %v8001_v16 = vsel %vm12959_vm2, %v7996_v34, %v8000_v28  ;;  %v8006_v14 = vrot.slane %v8005_v30, 4  ;;  %v6642_v30 = vrot.slane %v6640_v19, 4  ;;  %v10319_v19 = vld [vmem:[#allocation3 + $0x24] sm:$0xff] }
 0x4ce   : > { %v5842_v43 = vadd.f32 %v13352_v44, %v5621_v20  ;;  %v6610_v44 = vrot.slane %v6609_v54, 4  ;;  %v7901_v54 = vld [vmem:[#allocation3 + $0x3c] sm:$0xf]  ;;  %v6627_v20 = vshrl.u32 %v6557_v4, 16  ;;  %v8330_v34 = vunpack.c.l.b16 %v8001_v16 }
 0x4cf   : > { %v8013_v32 = vshrl.u32 %v7901_v54, 16 }
 0x4d0   : > { %v13415_v61 = vadd.f32 %v6191_v40, %v5842_v43  ;;  %9858 = vmatmul.msk.bf16.gmra.mxu1 %vm1107_vm4, %v5525_v22  ;;  %v13419_v12 = vpop.f32.mrf.mxu2  ;;  %10168 = vmatmul.msk.bf16.vlgmr.msra.gmra.mxu3 %vm1107_vm4, %v10318_v57  ;;  %v13424_v40 = vpop.f32.mrf.mxu0  ;;  %v6615_v27 = vsel %vm12959_vm2, %v6610_v44, %v13404_v47  ;;  %v6630_v22 = vshll.u32 %v6557_v4, 16  ;;  %v6636_v43 = vshll.u32 %v13382_v42, 16  ;;  %v5034_v57 = vld [vmem:[#allocation3 + $0xb8] sm:$0xf]  ;;  %v7902_v42 = vld [vmem:[#allocation3 + $0x40] sm:$0xf] }
 0x4d1   : > { %10186 = vmatmul.msk.bf16.gmra.mxu0 %vm1107_vm4, %v8359_v29  ;;  %15094 = vst [vmem:[#allocation7_spill] sm:$0xff] %v13424_v40  ;;  %v13433_v29 = vld [vmem:[#allocation3 + $0x2c] sm:$0x1]  ;;  %v7288_v47 = vrot.slane %v13422_v48, 5  ;;  %v8016_v44 = vshll.u32 %v7901_v54, 16  ;;  %v6988_v46 = vunpack.c.l.b16 %v6615_v27  ;;  %v8011_v4 = vsel %vm12959_vm2, %v8006_v14, %v8010_v63 }
 0x4d2   : > { %15093 = vst [vmem:[#allocation13_spill] sm:$0xff] %v13415_v61  ;;  %v13448_v28 = vrot.slane %v6636_v43, 5  ;;  %v10072_v54 = vrot.slane %v7210_v52, 9  ;;  %v8022_v27 = vshll.u32 %v7902_v42, 16  ;;  %v8026_v36 = vshrl.u32 %v7902_v42, 16 }
 0x4d3   : > { %v6196_v60 = vpop.f32.mrf.mxu3  ;;  %5038 = vst.msk [vmem:[#allocation3 + $0xd0] sm:$0xf] %vm402_vm11, %v5034_v57  ;;  %v7290_v57 = vrot.slane %v7288_v47, 4  ;;  %v8331_v0 = vunpack.c.l.b16 %v8011_v4  ;;  %v7020_v61 = vpack.c.b16 %v6989_v39, %v6988_v46  ;;  %v6560_v46 = vld [vmem:[#allocation3 + $0x24] sm:$0xf] }
 0x4d4   : > { %v6643_v16 = vor.u32 %v6642_v30, %v13448_v28  ;;  %v7289_v14 = vsel %vm10566_vm9, %v10072_v54, %v7288_v47  ;;  %v8028_v4 = vrot.slane %v8026_v36, 4  ;;  %v5035_v39 = vld [vmem:[#allocation3 + $0xbc] sm:$0x1] }
 0x4d5   : > { %v5623_v2 = vpop.f32.mrf.mxu1  ;;  %10088 = vmatmul.msk.bf16.gmra.mxu2 %vm1107_vm4, %v7419_v59  ;;  %v6629_v59 = vrot.slane %v6627_v20, 4  ;;  %v6646_v20 = vshll.u32 %v13388_v55, 16  ;;  %v8360_v52 = vpack.c.b16 %v8331_v0, %v8330_v34  ;;  %5039 = vst.msk [vmem:[#allocation3 + $0xd4] sm:$0x1] %vm404_vm1, %v5035_v39 }
 0x4d6   : > { %v5844_v5 = vadd.f32 %v13375_v9, %v5623_v2  ;;  %v7291_v9 = vrot.slane %v13433_v29, 5  ;;  %v6632_v2 = vrot.slane %v6630_v22, 5  ;;  %v6644_v34 = vrot.slane %v6643_v16, 4 }
 0x4d7   : > { %v6648_v0 = vrot.slane %v6646_v20, 5  ;;  %v13475_v20 = vld [vmem:[#allocation3 + $0x38] sm:$0x1] }
 0x4d8   : > { %v13441_v11 = vadd.f32 %v6193_v38, %v5844_v5  ;;  %v13443_v37 = vpop.f32.mrf.mxu2  ;;  %v8015_v38 = vrot.slane %v8013_v32, 4  ;;  %v8018_v5 = vrot.slane %v8016_v44, 5  ;;  %v7292_v3 = vsel %vm10566_vm9, %v7290_v57, %v7291_v9  ;;  %v13453_v22 = vpop.f32.mrf.mxu0  ;;  %v7903_v32 = vld [vmem:[#allocation3 + $0x44] sm:$0x1]  ;;  %v13467_v57 = vld [vmem:[#allocation3 + $0x34] sm:$0xf] }
 0x4d9   : > { %v6633_v63 = vor.u32 %v6632_v2, %v6629_v59  ;;  %15096 = vst [vmem:[#allocation27_spill] sm:$0xff] %v13453_v22  ;;  %v7391_v44 = vunpack.c.l.b16 %v7292_v3  ;;  %v8024_v9 = vrot.slane %v8022_v27, 5  ;;  %v7390_v3 = vunpack.c.l.b16 %v7289_v14 }
 0x4da   : > { %15095 = vst [vmem:[#allocation20_spill] sm:$0xff] %v13441_v11  ;;  %v8019_v42 = vor.u32 %v8018_v5, %v8015_v38  ;;  %v8032_v47 = vshll.u32 %v7903_v32, 16  ;;  %v6654_v2 = vshll.u32 %v6560_v46, 16  ;;  %v7904_v38 = vld [vmem:[#allocation3 + $0x48] sm:$0xf]  ;;  %v6649_v36 = vsel %vm12959_vm2, %v6644_v34, %v6648_v0 }
 0x4db   : > { %v6198_v40 = vpop.f32.mrf.mxu3  ;;  %v7420_v30 = vpack.c.b16 %v7391_v44, %v7390_v3  ;;  %v8029_v54 = vor.u32 %v8028_v4, %v8024_v9  ;;  %v7295_v16 = vrot.slane %v13467_v57, 5  ;;  %v7211_v44 = vld [vmem:[#allocation3 + $0x30] sm:$0xe]  ;;  %v7298_v0 = vrot.slane %v13475_v20, 5  ;;  %v7905_v3 = vld [vmem:[#allocation3 + $0x4c] sm:$0xf] }
 0x4dd   : > { %v5626_v11 = vpop.f32.mrf.mxu1  ;;  %v8030_v32 = vrot.slane %v8029_v54, 4 }
 0x4de   : > { %v5847_v43 = vadd.f32 %v13399_v50, %v5626_v11  ;;  %v6634_v50 = vrot.slane %v6633_v63, 4  ;;  %v6651_v11 = vshrl.u32 %v6560_v46, 16  ;;  %v8034_v63 = vrot.slane %v8032_v47, 5 }
 0x4e0   : > { %v13459_v59 = vadd.f32 %v6196_v60, %v5847_v43  ;;  %10054 = vmatmul.msk.bf16.vlgmr.msrb.gmra.mxu1 %vm1107_vm4, %v7020_v61  ;;  %v13463_v55 = vpop.f32.mrf.mxu2  ;;  %10169 = vmatmul.msk.bf16.gmra.mxu3 %vm1107_vm4, %v10319_v19  ;;  %v8020_v60 = vrot.slane %v8019_v42, 4  ;;  %v6639_v27 = vsel %vm12959_vm2, %v6634_v50, %v13448_v28  ;;  %v6653_v19 = vrot.slane %v6651_v11, 4  ;;  %v13481_v4 = vpop.f32.mrf.mxu0 }
 0x4e1   : > { %10187 = vmatmul.msk.bf16.gmra.mxu0 %vm1107_vm4, %v8360_v52  ;;  %v6656_v52 = vrot.slane %v6654_v2, 5  ;;  %v8037_v28 = vshrl.u32 %v7904_v38, 16  ;;  %v8040_v42 = vshll.u32 %v7904_v38, 16  ;;  %15098 = vst [vmem:[#allocation38_spill] sm:$0xff] %v13481_v4  ;;  %v6660_v50 = vshll.u32 %v13422_v48, 16 }
 0x4e2   : > { %15097 = vst [vmem:[#allocation21_spill] sm:$0xff] %v13459_v59  ;;  %v8025_v14 = vsel %vm12959_vm2, %v8020_v60, %v8024_v9  ;;  %v6990_v47 = vunpack.c.l.b16 %v6639_v27  ;;  %v6991_v11 = vunpack.c.l.b16 %v6649_v36  ;;  %v8035_v9 = vsel %vm12959_vm2, %v8030_v32, %v8034_v63  ;;  %v7906_v32 = vld [vmem:[#allocation3 + $0x50] sm:$0x1] }
 0x4e3   : > { %v6201_v61 = vpop.f32.mrf.mxu3  ;;  %v8332_v2 = vunpack.c.l.b16 %v8025_v14  ;;  %v6657_v34 = vor.u32 %v6656_v52, %v6653_v19  ;;  %v7297_v60 = vrot.slane %v7295_v16, 4  ;;  %v8042_v54 = vrot.slane %v8040_v42, 5 }
 0x4e4   : > { %v8046_v38 = vshll.u32 %v7905_v3, 16  ;;  %v8333_v4 = vunpack.c.l.b16 %v8035_v9  ;;  %v6662_v22 = vrot.slane %v6660_v50, 5  ;;  %v7021_v36 = vpack.c.b16 %v6991_v11, %v6990_v47 }
 0x4e5   : > { %v5628_v5 = vpop.f32.mrf.mxu1  ;;  %10089 = vmatmul.msk.bf16.gmra.mxu2 %vm1107_vm4, %v7420_v30  ;;  %v10073_v30 = vrot.slane %v7211_v44, 9  ;;  %v6670_v59 = vshll.u32 %v13433_v29, 16  ;;  %v6658_v52 = vrot.slane %v6657_v34, 4  ;;  %v10320_v44 = vld [vmem:[#allocation3 + $0x30] sm:$0xff]  ;;  %v13509_v34 = vld [vmem:[#allocation3 + $0x40] sm:$0xf] }
 0x4e6   : > { %v5849_v43 = vadd.f32 %v13419_v12, %v5628_v5  ;;  %v6664_v12 = vshrl.u32 %v13422_v48, 16  ;;  %v8050_v5 = vshrl.u32 %v7905_v3, 16  ;;  %v8361_v19 = vpack.c.b16 %v8333_v4, %v8332_v2 }
 0x4e7   : > { %v7296_v14 = vsel %vm10566_vm9, %v10073_v30, %v7295_v16  ;;  %v8048_v50 = vrot.slane %v8046_v38, 5  ;;  %v6563_v16 = vld [vmem:[#allocation3 + $0x30] sm:$0xf]  ;;  %v6663_v11 = vsel %vm12959_vm2, %v6658_v52, %v6662_v22  ;;  %v7907_v38 = vld [vmem:[#allocation3 + $0x54] sm:$0xf] }
 0x4e8   : > { %v13483_v46 = vadd.f32 %v6198_v40, %v5849_v43  ;;  %v13485_v39 = vpop.f32.mrf.mxu2  ;;  %v8039_v40 = vrot.slane %v8037_v28, 4  ;;  %v6666_v48 = vrot.slane %v6664_v12, 4  ;;  %v8052_v12 = vrot.slane %v8050_v5, 4  ;;  %v13505_v47 = vpop.f32.mrf.mxu0  ;;  %v7212_v52 = vld [vmem:[#allocation3 + $0x3c] sm:$0xe] }
 0x4e9   : > { %v7392_v4 = vunpack.c.l.b16 %v7296_v14  ;;  %15101 = vst [vmem:[#allocation8_spill] sm:$0xff] %v13505_v47  ;;  %v7302_v14 = vrot.slane %v13509_v34, 5 }
 0x4ea   : > { %15099 = vst [vmem:[#allocation23_spill] sm:$0xff] %v13483_v46  ;;  %v7299_v46 = vsel %vm10566_vm9, %v7297_v60, %v7298_v0  ;;  %v8043_v42 = vor.u32 %v8042_v54, %v8039_v40  ;;  %v8056_v0 = vshll.u32 %v7906_v32, 16  ;;  %v8053_v2 = vor.u32 %v8052_v12, %v8048_v50 }
 0x4eb   : > { %v6203_v43 = vpop.f32.mrf.mxu3  ;;  %v7393_v28 = vunpack.c.l.b16 %v7299_v46  ;;  %v6672_v46 = vrot.slane %v6670_v59, 5  ;;  %v6675_v40 = vshrl.u32 %v6563_v16, 16  ;;  %v6678_v54 = vshll.u32 %v6563_v16, 16 }
 0x4ec   : > { %v8044_v9 = vrot.slane %v8043_v42, 4  ;;  %v6688_v59 = vshrl.u32 %v13467_v57, 16  ;;  %v8061_v42 = vshrl.u32 %v7907_v38, 16  ;;  %v8064_v12 = vshll.u32 %v7907_v38, 16 }
 0x4ed   : > { %v5631_v27 = vpop.f32.mrf.mxu1 }
 0x4ee   : > { %v5852_v63 = vadd.f32 %v13443_v37, %v5631_v27  ;;  %v6667_v37 = vor.u32 %v6666_v48, %v6662_v22  ;;  %v8058_v48 = vrot.slane %v8056_v0, 5  ;;  %v6684_v27 = vshll.u32 %v13467_v57, 16 }
 0x4ef   : > { %v8049_v32 = vsel %vm12959_vm2, %v8044_v9, %v8048_v50  ;;  %v7304_v9 = vrot.slane %v7302_v14, 4 }
 0x4f0   : > { %v13498_v3 = vadd.f32 %v6201_v61, %v5852_v63  ;;  %10055 = vmatmul.msk.bf16.gmra.mxu1 %vm1107_vm4, %v7021_v36  ;;  %v13502_v29 = vpop.f32.mrf.mxu2  ;;  %10170 = vmatmul.msk.bf16.gmra.mxu3 %vm1107_vm4, %v10320_v44  ;;  %v7421_v61 = vpack.c.b16 %v7393_v28, %v7392_v4  ;;  %v6668_v60 = vrot.slane %v6667_v37, 4  ;;  %v13514_v36 = vld [vmem:[#allocation3 + $0x44] sm:$0x1]  ;;  %v8054_v44 = vrot.slane %v8053_v2, 4  ;;  %v7908_v28 = vld [vmem:[#allocation3 + $0x58] sm:$0xf] }
 0x4f1   : > { %10188 = vmatmul.msk.bf16.gmra.mxu0 %vm1107_vm4, %v8361_v19  ;;  %v6992_v19 = vunpack.c.l.b16 %v6663_v11  ;;  %v6677_v4 = vrot.slane %v6675_v40, 4  ;;  %v7305_v0 = vrot.slane %v13514_v36, 5  ;;  %v6690_v11 = vrot.slane %v6688_v59, 4 }
 0x4f2   : > { %15100 = vst [vmem:[#allocation24_spill] sm:$0xff] %v13498_v3  ;;  %v6673_v63 = vsel %vm12959_vm2, %v6668_v60, %v6672_v46  ;;  %v8059_v16 = vsel %vm12959_vm2, %v8054_v44, %v8058_v48  ;;  %v13529_v46 = vrot.slane %v6684_v27, 5  ;;  %v8334_v50 = vunpack.c.l.b16 %v8049_v32 }
 0x4f3   : > { %v6206_v30 = vpop.f32.mrf.mxu3  ;;  %v8070_v2 = vshll.u32 %v7908_v28, 16  ;;  %v8074_v60 = vshrl.u32 %v7908_v28, 16  ;;  %v6993_v38 = vunpack.c.l.b16 %v6673_v63  ;;  %v7306_v48 = vsel %vm10566_vm9, %v7304_v9, %v7305_v0  ;;  %v7909_v63 = vld [vmem:[#allocation3 + $0x5c] sm:$0x1] }
 0x4f5   : > { %v5633_v5 = vpop.f32.mrf.mxu1  ;;  %10090 = vmatmul.msk.bf16.gmra.mxu2 %vm1107_vm4, %v7421_v61  ;;  %v10074_v61 = vrot.slane %v7212_v52, 9  ;;  %v7022_v59 = vpack.c.b16 %v6993_v38, %v6992_v19  ;;  %v6691_v52 = vor.u32 %v6690_v11, %v13529_v46  ;;  %v8080_v11 = vshll.u32 %v7909_v63, 16 }
 0x4f6   : > { %v5854_v22 = vadd.f32 %v13463_v55, %v5633_v5  ;;  %v6680_v55 = vrot.slane %v6678_v54, 5  ;;  %v8066_v5 = vrot.slane %v8064_v12, 5  ;;  %v8335_v54 = vunpack.c.l.b16 %v8059_v16  ;;  %v6566_v16 = vld [vmem:[#allocation3 + $0x3c] sm:$0xf] }
 0x4f7   : > { %v7303_v32 = vsel %vm10566_vm9, %v10074_v61, %v7302_v14  ;;  %v8076_v12 = vrot.slane %v8074_v60, 4  ;;  %v6699_v61 = vshrl.u32 %v6566_v16, 16  ;;  %v7910_v60 = vld [vmem:[#allocation3 + $0x60] sm:$0xf] }
 0x4f8   : > { %v13522_v37 = vadd.f32 %v6203_v43, %v5854_v22  ;;  %v13524_v57 = vpop.f32.mrf.mxu2  ;;  %v8063_v43 = vrot.slane %v8061_v42, 4  ;;  %v13531_v22 = vpop.f32.mrf.mxu0  ;;  %v6681_v47 = vor.u32 %v6680_v55, %v6677_v4  ;;  %v8362_v28 = vpack.c.b16 %v8335_v54, %v8334_v50  ;;  %v10321_v4 = vld [vmem:[#allocation3 + $0x3c] sm:$0xff] }
 0x4f9   : > { %15103 = vst [vmem:[#allocation22_spill] sm:$0xff] %v13531_v22  ;;  %v8072_v42 = vrot.slane %v8070_v2, 5  ;;  %v7395_v55 = vunpack.c.l.b16 %v7306_v48  ;;  %v6692_v50 = vrot.slane %v6691_v52, 4  ;;  %v6702_v2 = vshll.u32 %v6566_v16, 16 }
 0x4fa   : > { %15102 = vst [vmem:[#allocation18_spill] sm:$0xff] %v13522_v37  ;;  %v6694_v37 = vshll.u32 %v13475_v20, 16  ;;  %v8067_v20 = vor.u32 %v8066_v5, %v8063_v43  ;;  %v6682_v0 = vrot.slane %v6681_v47, 4  ;;  %v6708_v43 = vshll.u32 %v13509_v34, 16  ;;  %v13548_v5 = vld [vmem:[#allocation3 + $0x4c] sm:$0xf] }
 0x4fb   : > { %v6208_v40 = vpop.f32.mrf.mxu3  ;;  %v8077_v9 = vor.u32 %v8076_v12, %v8072_v42  ;;  %v8082_v48 = vrot.slane %v8080_v11, 5  ;;  %v6701_v52 = vrot.slane %v6699_v61, 4  ;;  %v8085_v63 = vshrl.u32 %v7910_v60, 16  ;;  %v7213_v11 = vld [vmem:[#allocation3 + $0x48] sm:$0xe] }
 0x4fc   : > { %v6696_v14 = vrot.slane %v6694_v37, 5  ;;  %v6687_v47 = vsel %vm12959_vm2, %v6682_v0, %v13529_v46  ;;  %v6704_v46 = vrot.slane %v6702_v2, 5 }
 0x4fd   : > { %v5636_v27 = vpop.f32.mrf.mxu1  ;;  %v8078_v16 = vrot.slane %v8077_v9, 4  ;;  %v8087_v2 = vrot.slane %v8085_v63, 4 }
 0x4fe   : > { %v5857_v44 = vadd.f32 %v13485_v39, %v5636_v27  ;;  %v7394_v39 = vunpack.c.l.b16 %v7303_v32  ;;  %v6697_v37 = vsel %vm12959_vm2, %v6692_v50, %v6696_v14  ;;  %v6712_v27 = vshrl.u32 %v13509_v34, 16  ;;  %v13557_v32 = vld [vmem:[#allocation3 + $0x50] sm:$0x1] }
 0x4ff   : > { %v6995_v0 = vunpack.c.l.b16 %v6697_v37  ;;  %v6710_v14 = vrot.slane %v6708_v43, 5  ;;  %v8083_v50 = vsel %vm12959_vm2, %v8078_v16, %v8082_v48  ;;  %v7312_v9 = vrot.slane %v13557_v32, 5  ;;  %v7912_v16 = vld [vmem:[#allocation3 + $0x68] sm:$0x1] }
 0x500   : > { %v13540_v22 = vadd.f32 %v6206_v30, %v5857_v44  ;;  %10056 = vmatmul.msk.bf16.gmra.mxu1 %vm1107_vm4, %v7022_v59  ;;  %v13544_v19 = vpop.f32.mrf.mxu2  ;;  %10171 = vmatmul.msk.bf16.gmra.mxu3 %vm1107_vm4, %v10321_v4  ;;  %v7422_v38 = vpack.c.b16 %v7395_v55, %v7394_v39  ;;  %v8068_v30 = vrot.slane %v8067_v20, 4  ;;  %v8088_v44 = vshll.u32 %v7910_v60, 16  ;;  %v7911_v55 = vld [vmem:[#allocation3 + $0x64] sm:$0xf] }
 0x501   : > { %10189 = vmatmul.msk.bf16.gmra.mxu0 %vm1107_vm4, %v8362_v28  ;;  %v13559_v28 = vpop.f32.mrf.mxu0  ;;  %v7309_v4 = vrot.slane %v13548_v5, 5  ;;  %v6994_v20 = vunpack.c.l.b16 %v6687_v47  ;;  %v8098_v47 = vshrl.u32 %v7911_v55, 16 }
 0x502   : > { %15104 = vst [vmem:[#allocation25_spill] sm:$0xff] %v13540_v22  ;;  %v8073_v34 = vsel %vm12959_vm2, %v8068_v30, %v8072_v42  ;;  %v8090_v60 = vrot.slane %v8088_v44, 5 }
 0x503   : > { %v6211_v54 = vpop.f32.mrf.mxu3  ;;  %15105 = vst [vmem:[#allocation9_spill] sm:$0xff] %v13559_v28  ;;  %v8336_v37 = vunpack.c.l.b16 %v8073_v34  ;;  %v10075_v28 = vrot.slane %v7213_v11, 9  ;;  %v7311_v42 = vrot.slane %v7309_v4, 4  ;;  %v7023_v30 = vpack.c.b16 %v6995_v0, %v6994_v20  ;;  %v10322_v20 = vld [vmem:[#allocation3 + $0x48] sm:$0xff] }
 0x504   : > { %v8091_v22 = vor.u32 %v8090_v60, %v8087_v2  ;;  %v8100_v44 = vrot.slane %v8098_v47, 4 }
 0x505   : > { %v5638_v59 = vpop.f32.mrf.mxu1  ;;  %10091 = vmatmul.msk.bf16.gmra.mxu2 %vm1107_vm4, %v7422_v38  ;;  %v8094_v38 = vshll.u32 %v7911_v55, 16 }
 0x506   : > { %v5859_v12 = vadd.f32 %v13502_v29, %v5638_v59  ;;  %v6714_v29 = vrot.slane %v6712_v27, 4  ;;  %v6705_v59 = vor.u32 %v6704_v46, %v6701_v52  ;;  %v7310_v46 = vsel %vm10566_vm9, %v10075_v28, %v7309_v4 }
 0x507   : > { %v8096_v63 = vrot.slane %v8094_v38, 5  ;;  %v7396_v2 = vunpack.c.l.b16 %v7310_v46  ;;  %v8092_v60 = vrot.slane %v8091_v22, 4  ;;  %v6736_v22 = vshrl.u32 %v13548_v5, 16  ;;  %v7914_v46 = vld [vmem:[#allocation3 + $0x70] sm:$0xf] }
 0x508   : > { %v13565_v39 = vadd.f32 %v6208_v40, %v5859_v12  ;;  %v13567_v61 = vpop.f32.mrf.mxu2  ;;  %v8337_v40 = vunpack.c.l.b16 %v8083_v50  ;;  %v6718_v12 = vshll.u32 %v13514_v36, 16  ;;  %v6715_v27 = vor.u32 %v6714_v29, %v6710_v14 }
 0x509   : > { %v6706_v52 = vrot.slane %v6705_v59, 4  ;;  %v13578_v11 = vpop.f32.mrf.mxu0  ;;  %v8101_v28 = vor.u32 %v8100_v44, %v8096_v63  ;;  %v6732_v59 = vshll.u32 %v13548_v5, 16  ;;  %v13598_v44 = vld [vmem:[#allocation3 + $0x5c] sm:$0x1] }
 0x50a   : > { %15106 = vst [vmem:[#allocation26_spill] sm:$0xff] %v13565_v39  ;;  %v7313_v39 = vsel %vm10566_vm9, %v7311_v42, %v7312_v9  ;;  %v8363_v34 = vpack.c.b16 %v8337_v40, %v8336_v37  ;;  %v6720_v29 = vrot.slane %v6718_v12, 5  ;;  %v8104_v9 = vshll.u32 %v7912_v16, 16  ;;  %v7913_v42 = vld [vmem:[#allocation3 + $0x6c] sm:$0xf] }
 0x50b   : > { %v6213_v43 = vpop.f32.mrf.mxu3  ;;  %v7397_v0 = vunpack.c.l.b16 %v7313_v39  ;;  %15107 = vst [vmem:[#allocation11_spill] sm:$0xff] %v13578_v11  ;;  %v6711_v4 = vsel %vm12959_vm2, %v6706_v52, %v6710_v14  ;;  %v6716_v39 = vrot.slane %v6715_v27, 4  ;;  %v8097_v14 = vsel %vm12959_vm2, %v8092_v60, %v8096_v63 }
 0x50c   : > { %v8106_v12 = vrot.slane %v8104_v9, 5  ;;  %v6996_v16 = vunpack.c.l.b16 %v6711_v4  ;;  %v8102_v27 = vrot.slane %v8101_v28, 4  ;;  %v6738_v60 = vrot.slane %v6736_v22, 4 }
 0x50d   : > { %v5641_v48 = vpop.f32.mrf.mxu1  ;;  %v7423_v38 = vpack.c.b16 %v7397_v0, %v7396_v2  ;;  %v6721_v40 = vsel %vm12959_vm2, %v6716_v39, %v6720_v29  ;;  %v8112_v0 = vshll.u32 %v7913_v42, 16  ;;  %v8338_v28 = vunpack.c.l.b16 %v8097_v14  ;;  %v7915_v14 = vld [vmem:[#allocation3 + $0x74] sm:$0x1] }
 0x50e   : > { %v5862_v55 = vadd.f32 %v13524_v57, %v5641_v48  ;;  %v6569_v57 = vld [vmem:[#allocation3 + $0x48] sm:$0xf]  ;;  %v6997_v29 = vunpack.c.l.b16 %v6721_v40  ;;  %v8107_v63 = vsel %vm12959_vm2, %v8102_v27, %v8106_v12  ;;  %v6742_v12 = vshll.u32 %v13557_v32, 16 }
 0x50f   : > { %v6723_v47 = vshrl.u32 %v6569_v57, 16  ;;  %v6726_v37 = vshll.u32 %v6569_v57, 16  ;;  %v13602_v57 = vrot.slane %v6732_v59, 5  ;;  %v8114_v59 = vrot.slane %v8112_v0, 5 }
 0x510   : > { %v13580_v36 = vadd.f32 %v6211_v54, %v5862_v55  ;;  %10057 = vmatmul.msk.bf16.gmra.mxu1 %vm1107_vm4, %v7023_v30  ;;  %v13584_v50 = vpop.f32.mrf.mxu2  ;;  %10172 = vmatmul.msk.bf16.gmra.mxu3 %vm1107_vm4, %v10322_v20  ;;  %v13589_v54 = vld [vmem:[#allocation3 + $0x58] sm:$0xf]  ;;  %v7214_v55 = vld [vmem:[#allocation3 + $0x54] sm:$0xe]  ;;  %v8109_v20 = vshrl.u32 %v7913_v42, 16  ;;  %v7024_v40 = vpack.c.b16 %v6997_v29, %v6996_v16 }
 0x511   : > { %10190 = vmatmul.msk.bf16.gmra.mxu0 %vm1107_vm4, %v8363_v34  ;;  %v7316_v52 = vrot.slane %v13589_v54, 5  ;;  %v6725_v5 = vrot.slane %v6723_v47, 4  ;;  %v6728_v9 = vrot.slane %v6726_v37, 5  ;;  %v10076_v39 = vrot.slane %v7214_v55, 9  ;;  %v13611_v42 = vpop.f32.mrf.mxu0 }
 0x512   : > { %15108 = vst [vmem:[#allocation14_spill] sm:$0xff] %v13580_v36  ;;  %v8111_v37 = vrot.slane %v8109_v20, 4  ;;  %v6739_v36 = vor.u32 %v6738_v60, %v13602_v57 }
 0x513   : > { %v6216_v30 = vpop.f32.mrf.mxu3  ;;  %15110 = vst [vmem:[#allocation12_spill] sm:$0xff] %v13611_v42  ;;  %v7318_v47 = vrot.slane %v7316_v52, 4  ;;  %v8128_v42 = vshll.u32 %v7915_v14, 16 }
 0x514   : > { %v8115_v29 = vor.u32 %v8114_v59, %v8111_v37 }
 0x515   : > { %v5643_v48 = vpop.f32.mrf.mxu1  ;;  %10092 = vmatmul.msk.bf16.gmra.mxu2 %vm1107_vm4, %v7423_v38  ;;  %v8118_v38 = vshll.u32 %v7914_v46, 16 }
 0x516   : > { %v5864_v34 = vadd.f32 %v13544_v19, %v5643_v48  ;;  %v7319_v19 = vrot.slane %v13598_v44, 5  ;;  %v8122_v48 = vshrl.u32 %v7914_v46, 16  ;;  %v7317_v46 = vsel %vm10566_vm9, %v10076_v39, %v7316_v52 }
 0x517   : > { %v8120_v20 = vrot.slane %v8118_v38, 5  ;;  %v6744_v52 = vrot.slane %v6742_v12, 5  ;;  %v7398_v39 = vunpack.c.l.b16 %v7317_v46  ;;  %v6756_v38 = vshll.u32 %v13589_v54, 16 }
 0x518   : > { %v13604_v2 = vadd.f32 %v6213_v43, %v5864_v34  ;;  %v13606_v4 = vpop.f32.mrf.mxu2  ;;  %v8339_v43 = vunpack.c.l.b16 %v8107_v63  ;;  %v6572_v34 = vld [vmem:[#allocation3 + $0x54] sm:$0xf]  ;;  %v7320_v22 = vsel %vm10566_vm9, %v7318_v47, %v7319_v19  ;;  %v8124_v0 = vrot.slane %v8122_v48, 4 }
 0x519   : > { %v6747_v63 = vshrl.u32 %v6572_v34, 16  ;;  %v7399_v60 = vunpack.c.l.b16 %v7320_v22  ;;  %v6760_v48 = vshrl.u32 %v13589_v54, 16  ;;  %v6740_v47 = vrot.slane %v6739_v36, 4  ;;  %v7215_v22 = vld [vmem:[#allocation3 + $0x60] sm:$0xe]  ;;  %v13631_v14 = vpop.f32.mrf.mxu0 }
 0x51a   : > { %15109 = vst [vmem:[#allocation10_spill] sm:$0xff] %v13604_v2  ;;  %v6729_v2 = vor.u32 %v6728_v9, %v6725_v5  ;;  %v8364_v55 = vpack.c.b16 %v8339_v43, %v8338_v28  ;;  %v6750_v5 = vshll.u32 %v6572_v34, 16  ;;  %v10323_v9 = vld [vmem:[#allocation3 + $0x54] sm:$0xff]  ;;  %v8116_v37 = vrot.slane %v8115_v29, 4  ;;  %v13629_v43 = vld [vmem:[#allocation3 + $0x64] sm:$0xf] }
 0x51b   : > { %v6218_v11 = vpop.f32.mrf.mxu3  ;;  %v8130_v34 = vrot.slane %v8128_v42, 5  ;;  %15112 = vst [vmem:[#allocation17_spill] sm:$0xff] %v13631_v14  ;;  %v13638_v54 = vld [vmem:[#allocation3 + $0x68] sm:$0x1]  ;;  %v7916_v36 = vld [vmem:[#allocation3 + $0x78] sm:$0xf] }
 0x51c   : > { %v6730_v28 = vrot.slane %v6729_v2, 4  ;;  %v6752_v59 = vrot.slane %v6750_v5, 5  ;;  %v6762_v42 = vrot.slane %v6760_v48, 4  ;;  %v10077_v5 = vrot.slane %v7215_v22, 9 }
 0x51d   : > { %v5646_v27 = vpop.f32.mrf.mxu1 }
 0x51e   : > { %v5867_v16 = vadd.f32 %v13567_v61, %v5646_v27  ;;  %v8125_v61 = vor.u32 %v8124_v0, %v8120_v20  ;;  %v6735_v12 = vsel %vm12959_vm2, %v6730_v28, %v13602_v57  ;;  %v6745_v27 = vsel %vm12959_vm2, %v6740_v47, %v6744_v52  ;;  %v7917_v28 = vld [vmem:[#allocation3 + $0x7c] sm:$0xf] }
 0x51f   : > { %v13641_v0 = vrot.slane %v6756_v38, 5  ;;  %v8121_v57 = vsel %vm12959_vm2, %v8116_v37, %v8120_v20  ;;  %v8133_v52 = vshrl.u32 %v7916_v36, 16  ;;  %v6998_v38 = vunpack.c.l.b16 %v6735_v12  ;;  %v7918_v12 = vld [vmem:[#allocation3 + $0x80] sm:$0x1] }
 0x520   : > { %v13620_v32 = vadd.f32 %v6216_v30, %v5867_v16  ;;  %10058 = vmatmul.msk.bf16.gmra.mxu1 %vm1107_vm4, %v7024_v40  ;;  %v13624_v19 = vpop.f32.mrf.mxu2  ;;  %10173 = vmatmul.msk.bf16.gmra.mxu3 %vm1107_vm4, %v10323_v9  ;;  %v6749_v30 = vrot.slane %v6747_v63, 4  ;;  %v7424_v40 = vpack.c.b16 %v7399_v60, %v7398_v39  ;;  %v8126_v46 = vrot.slane %v8125_v61, 4 }
 0x521   : > { %10191 = vmatmul.msk.bf16.gmra.mxu0 %vm1107_vm4, %v8364_v55  ;;  %v7323_v16 = vrot.slane %v13629_v43, 5  ;;  %v7326_v60 = vrot.slane %v13638_v54, 5  ;;  %v8136_v39 = vshll.u32 %v7916_v36, 16  ;;  %v6999_v47 = vunpack.c.l.b16 %v6745_v27  ;;  %v8560_v36 = vld [vmem:[#allocation3 + $0xc0] sm:$0xe] }
 0x522   : > { %15111 = vst [vmem:[#allocation15_spill] sm:$0xff] %v13620_v32  ;;  %v6753_v63 = vor.u32 %v6752_v59, %v6749_v30  ;;  %v8131_v9 = vsel %vm12959_vm2, %v8126_v46, %v8130_v34  ;;  %v6763_v20 = vor.u32 %v6762_v42, %v13641_v0  ;;  %v8142_v22 = vshll.u32 %v7917_v28, 16 }
 0x523   : > { %v6221_v2 = vpop.f32.mrf.mxu3  ;;  %v7325_v37 = vrot.slane %v7323_v16, 4  ;;  %v8341_v30 = vunpack.c.l.b16 %v8131_v9  ;;  %v7324_v34 = vsel %vm10566_vm9, %v10077_v5, %v7323_v16  ;;  %v8138_v46 = vrot.slane %v8136_v39, 5  ;;  %v13674_v39 = vpop.f32.mrf.mxu0 }
 0x524   : > { %v13656_v59 = vrot.slane %v6753_v63, 4  ;;  %v7025_v27 = vpack.c.b16 %v6999_v47, %v6998_v38  ;;  %v13668_v63 = vld [vmem:[#allocation3 + $0xc8] sm:$0x1]  ;;  %v13670_v5 = vrot.slane %v6763_v20, 4  ;;  %v7400_v14 = vunpack.c.l.b16 %v7324_v34  ;;  %15114 = vst [vmem:[#allocation30_spill] sm:$0xff] %v13674_v39  ;;  %v10324_v20 = vld [vmem:[#allocation3 + $0x60] sm:$0xff] }
 0x525   : > { %v5648_v55 = vpop.f32.mrf.mxu1  ;;  %10093 = vmatmul.msk.bf16.gmra.mxu2 %vm1107_vm4, %v7424_v40  ;;  %v8340_v40 = vunpack.c.l.b16 %v8121_v57  ;;  %v13666_v57 = vld [vmem:[#allocation3 + $0xc4] sm:$0xf]  ;;  %v8144_v47 = vrot.slane %v8142_v22, 5 }
 0x526   : > { %v5869_v29 = vadd.f32 %v13584_v50, %v5648_v55  ;;  %v6766_v50 = vshll.u32 %v13598_v44, 16  ;;  %v8135_v55 = vrot.slane %v8133_v52, 4  ;;  %v8146_v44 = vshrl.u32 %v7917_v28, 16  ;;  %v8561_v52 = vld [vmem:[#allocation3 + $0xcc] sm:$0xe] }
 0x527   : > { %v8365_v16 = vpack.c.b16 %v8341_v30, %v8340_v40  ;;  %v6759_v38 = vsel %vm12959_vm2, %v13656_v59, %v13641_v0  ;;  %v7939_v40 = vld [vmem:[#allocation3 + $0xd4] sm:$0x1]  ;;  %v8710_v32 = vrot.slane %v13666_v57, 5  ;;  %v8152_v0 = vshll.u32 %v7918_v12, 16 }
 0x528   : > { %v13650_v61 = vadd.f32 %v6218_v11, %v5869_v29  ;;  %v13652_v48 = vpop.f32.mrf.mxu2  ;;  %v7327_v11 = vsel %vm10566_vm9, %v7325_v37, %v7326_v60  ;;  %v13664_v42 = vrot.slane %v6766_v50, 5  ;;  %v10215_v60 = vrot.slane %v8560_v36, 9  ;;  %v6575_v37 = vld [vmem:[#allocation3 + $0x60] sm:$0xf] }
 0x529   : > { %v7401_v50 = vunpack.c.l.b16 %v7327_v11  ;;  %v8139_v30 = vor.u32 %v8138_v46, %v8135_v55  ;;  %v8148_v34 = vrot.slane %v8146_v44, 4  ;;  %v8713_v36 = vrot.slane %v13668_v63, 5 }
 0x52a   : > { %15113 = vst [vmem:[#allocation28_spill] sm:$0xff] %v13650_v61  ;;  %v13672_v61 = vld [vmem:[#allocation3 + $0xd0] sm:$0xf]  ;;  %v10216_v59 = vrot.slane %v8561_v52, 9  ;;  %v6771_v11 = vshrl.u32 %v6575_v37, 16  ;;  %v8711_v55 = vsel %vm10566_vm9, %v10215_v60, %v8710_v32  ;;  %v8712_v46 = vrot.slane %v8710_v32, 4 }
 0x52b   : > { %v13662_v29 = vpop.f32.mrf.mxu3  ;;  %v8717_v22 = vrot.slane %v13672_v61, 5  ;;  %v8720_v44 = vrot.slane %v7939_v40, 5  ;;  %v8140_v39 = vrot.slane %v8139_v30, 4  ;;  %v8149_v12 = vor.u32 %v8148_v34, %v8144_v47  ;;  %v13695_v52 = vld [vmem:[#allocation3 + $0x70] sm:$0xf] }
 0x52c   : > { %v6769_v32 = vsel %vm12959_vm2, %v13670_v5, %v13664_v42  ;;  %v8154_v40 = vrot.slane %v8152_v0, 5  ;;  %v13706_v30 = vld [vmem:[#allocation3 + $0x74] sm:$0x1]  ;;  %v13716_v0 = vpop.f32.mrf.mxu0 }
 0x52d   : > { %v5651_v9 = vpop.f32.mrf.mxu1  ;;  %v8145_v5 = vsel %vm12959_vm2, %v8140_v39, %v8144_v47  ;;  %15118 = vst [vmem:[#allocation41_spill] sm:$0xff] %v13716_v0 }
 0x52e   : > { %v5872_v28 = vadd.f32 %v13606_v4, %v5651_v9  ;;  %v6774_v9 = vshll.u32 %v6575_v37, 16 }
 0x530   : > { %v13683_v3 = vadd.f32 %v6221_v2, %v5872_v28  ;;  %10059 = vmatmul.msk.bf16.gmra.mxu1 %vm1107_vm4, %v7025_v27  ;;  %v13687_v4 = vpop.f32.mrf.mxu2  ;;  %10174 = vmatmul.msk.bf16.gmra.mxu3 %vm1107_vm4, %v10324_v20  ;;  %v7425_v2 = vpack.c.b16 %v7401_v50, %v7400_v14  ;;  %v7919_v28 = vld [vmem:[#allocation3 + $0x84] sm:$0xf]  ;;  %v8718_v27 = vsel %vm10566_vm9, %v10216_v59, %v8717_v22  ;;  %v8752_v14 = vunpack.c.l.b16 %v8711_v55 }
 0x531   : > { %10192 = vmatmul.msk.bf16.gmra.mxu0 %vm1107_vm4, %v8365_v16  ;;  %v8719_v16 = vrot.slane %v8717_v22, 4  ;;  %v8714_v20 = vsel %vm10566_vm9, %v8712_v46, %v8713_v36  ;;  %v8157_v34 = vshrl.u32 %v7919_v28, 16  ;;  %v8160_v36 = vshll.u32 %v7919_v28, 16 }
 0x532   : > { %15115 = vst [vmem:[#allocation32_spill] sm:$0xff] %v13683_v3  ;;  %v8754_v3 = vunpack.c.l.b16 %v8718_v27  ;;  %v8753_v60 = vunpack.c.l.b16 %v8714_v20  ;;  %v6773_v46 = vrot.slane %v6771_v11, 4  ;;  %v7330_v27 = vrot.slane %v13695_v52, 5 }
 0x533   : > { %v6226_v10 = vpop.f32.mrf.mxu3  ;;  %v8721_v50 = vsel %vm10566_vm9, %v8719_v16, %v8720_v44  ;;  %v8150_v55 = vrot.slane %v8149_v12, 4  ;;  %v6776_v44 = vrot.slane %v6774_v9, 5  ;;  %v7216_v16 = vld [vmem:[#allocation3 + $0x6c] sm:$0xe]  ;;  %v6784_v11 = vshrl.u32 %v13629_v43, 16 }
 0x534   : > { %v8755_v59 = vunpack.c.l.b16 %v8721_v50  ;;  %v13710_v42 = vpack.c.b16 %v8753_v60, %v8752_v14  ;;  %v7333_v14 = vrot.slane %v13706_v30, 5  ;;  %v7920_v60 = vld [vmem:[#allocation3 + $0x88] sm:$0xf]  ;;  %v8159_v47 = vrot.slane %v8157_v34, 4 }
 0x535   : > { %v5653_v37 = vpop.f32.mrf.mxu1  ;;  %10094 = vmatmul.msk.bf16.gmra.mxu2 %vm1107_vm4, %v7425_v2  ;;  %v8155_v39 = vsel %vm12959_vm2, %v8150_v55, %v8154_v40  ;;  %v7000_v9 = vunpack.c.l.b16 %v6759_v38  ;;  %v8342_v12 = vunpack.c.l.b16 %v8145_v5  ;;  %v10078_v50 = vrot.slane %v7216_v16, 9 }
 0x536   : > { %v5874_v22 = vadd.f32 %v13624_v19, %v5653_v37  ;;  %15116 = vst [vmem:[#allocation39_spill] sm:$0xff] %v13710_v42  ;;  %v13714_v2 = vpack.c.b16 %v8755_v59, %v8754_v3  ;;  %v6780_v19 = vshll.u32 %v13629_v43, 16  ;;  %v8162_v3 = vrot.slane %v8160_v36, 5 }
 0x537   : > { %v7332_v37 = vrot.slane %v7330_v27, 4  ;;  %v6777_v59 = vor.u32 %v6776_v44, %v6773_v46  ;;  %v8343_v0 = vunpack.c.l.b16 %v8155_v39  ;;  %v6786_v43 = vrot.slane %v6784_v11, 4  ;;  %v10325_v46 = vld [vmem:[#allocation3 + $0x6c] sm:$0xff]  ;;  %v13743_v39 = vld [vmem:[#allocation3 + $0x7c] sm:$0xf] }
 0x538   : > { %15117 = vst [vmem:[#allocation40_spill] sm:$0xff] %v13714_v2  ;;  %v13719_v28 = vadd.f32 %v13662_v29, %v5874_v22  ;;  %v13721_v20 = vpop.f32.mrf.mxu2  ;;  %v7001_v29 = vunpack.c.l.b16 %v6769_v32  ;;  %v8166_v22 = vshll.u32 %v7920_v60, 16  ;;  %v8170_v2 = vshrl.u32 %v7920_v60, 16  ;;  %v7921_v32 = vld [vmem:[#allocation3 + $0x8c] sm:$0x1] }
 0x539   : > { %v7334_v18 = vsel %vm10566_vm9, %v7332_v37, %v7333_v14  ;;  %v8163_v6 = vor.u32 %v8162_v3, %v8159_v47  ;;  %v8366_v38 = vpack.c.b16 %v8343_v0, %v8342_v12  ;;  %v7331_v36 = vsel %vm10566_vm9, %v10078_v50, %v7330_v27  ;;  %v6578_v60 = vld [vmem:[#allocation3 + $0x6c] sm:$0xf]  ;;  %v7922_v47 = vld [vmem:[#allocation3 + $0x90] sm:$0xf] }
 0x53a   : > { %15119 = vst [vmem:[#allocation42_spill] sm:$0xff] %v13719_v28  ;;  %v6782_v28 = vrot.slane %v6780_v19, 5  ;;  %v7026_v34 = vpack.c.b16 %v7001_v29, %v7000_v9  ;;  %v6790_v5 = vshll.u32 %v13638_v54, 16  ;;  %v7403_v55 = vunpack.c.l.b16 %v7334_v18  ;;  %v13741_v54 = vpop.f32.mrf.mxu0 }
 0x53b   : > { %v6228_v42 = vpop.f32.mrf.mxu3  ;;  %v8168_v44 = vrot.slane %v8166_v22, 5  ;;  %v8172_v16 = vrot.slane %v8170_v2, 4  ;;  %v7402_v27 = vunpack.c.l.b16 %v7331_v36  ;;  %v8164_v0 = vrot.slane %v8163_v6, 4  ;;  %15120 = vst [vmem:[#allocation43_spill] sm:$0xff] %v13741_v54 }
 0x53c   : > { %v8176_v14 = vshll.u32 %v7921_v32, 16  ;;  %v6792_v18 = vrot.slane %v6790_v5, 5  ;;  %v6795_v50 = vshrl.u32 %v6578_v60, 16  ;;  %v6798_v37 = vshll.u32 %v6578_v60, 16 }
 0x53d   : > { %v5656_v56 = vpop.f32.mrf.mxu1  ;;  %v7426_v2 = vpack.c.b16 %v7403_v55, %v7402_v27  ;;  %v8169_v6 = vsel %vm12959_vm2, %v8164_v0, %v8168_v44  ;;  %v6804_v22 = vshll.u32 %v13695_v52, 16  ;;  %v8184_v36 = vshll.u32 %v7922_v47, 16  ;;  %v7217_v55 = vld [vmem:[#allocation3 + $0x78] sm:$0xe]  ;;  %v7923_v27 = vld [vmem:[#allocation3 + $0x94] sm:$0xf] }
 0x53e   : > { %v5877_v40 = vadd.f32 %v13652_v48, %v5656_v56  ;;  %v6778_v56 = vrot.slane %v6777_v59, 4  ;;  %v6787_v48 = vor.u32 %v6786_v43, %v6782_v28  ;;  %v8178_v59 = vrot.slane %v8176_v14, 5 }
 0x53f   : > { %v6808_v43 = vshrl.u32 %v13695_v52, 16  ;;  %v6800_v52 = vrot.slane %v6798_v37, 5  ;;  %v8344_v0 = vunpack.c.l.b16 %v8169_v6  ;;  %v13765_v14 = vrot.slane %v6804_v22, 5 }
 0x540   : > { %v13734_v19 = vadd.f32 %v6226_v10, %v5877_v40  ;;  %10060 = vmatmul.msk.bf16.gmra.mxu1 %vm1107_vm4, %v7026_v34  ;;  %v13738_v11 = vpop.f32.mrf.mxu2  ;;  %10175 = vmatmul.msk.bf16.gmra.mxu3 %vm1107_vm4, %v10325_v46  ;;  %v8173_v10 = vor.u32 %v8172_v16, %v8168_v44  ;;  %v6783_v9 = vsel %vm12959_vm2, %v6778_v56, %v6782_v28  ;;  %v6788_v12 = vrot.slane %v6787_v48, 4  ;;  %v13752_v40 = vld [vmem:[#allocation3 + $0x80] sm:$0x1] }
 0x541   : > { %10193 = vmatmul.msk.bf16.gmra.mxu0 %vm1107_vm4, %v8366_v38  ;;  %v7337_v28 = vrot.slane %v13743_v39, 5  ;;  %v8181_v38 = vshrl.u32 %v7922_v47, 16  ;;  %v7002_v46 = vunpack.c.l.b16 %v6783_v9  ;;  %v6797_v56 = vrot.slane %v6795_v50, 4 }
 0x542   : > { %v6793_v32 = vsel %vm12959_vm2, %v6788_v12, %v6792_v18  ;;  %v8174_v5 = vrot.slane %v8173_v10, 4  ;;  %v7340_v48 = vrot.slane %v13752_v40, 5  ;;  %v6810_v60 = vrot.slane %v6808_v43, 4 }
 0x543   : > { %v6231_v3 = vpop.f32.mrf.mxu3  ;;  %v10079_v18 = vrot.slane %v7217_v55, 9  ;;  %v8183_v10 = vrot.slane %v8181_v38, 4  ;;  %v8186_v47 = vrot.slane %v8184_v36, 5  ;;  %v8190_v9 = vshll.u32 %v7923_v27, 16 }
 0x544   : > { %v8194_v12 = vshrl.u32 %v7923_v27, 16  ;;  %v6811_v43 = vor.u32 %v6810_v60, %v13765_v14  ;;  %v6581_v27 = vld [vmem:[#allocation3 + $0x78] sm:$0xf] }
 0x545   : > { %v5658_v29 = vpop.f32.mrf.mxu1  ;;  %10095 = vmatmul.msk.bf16.gmra.mxu2 %vm1107_vm4, %v7426_v2  ;;  %v7339_v2 = vrot.slane %v7337_v28, 4  ;;  %v8187_v55 = vor.u32 %v8186_v47, %v8183_v10  ;;  %v6819_v60 = vshrl.u32 %v6581_v27, 16 }
 0x546   : > { %v5879_v34 = vadd.f32 %v13687_v4, %v5658_v29  ;;  %v8179_v4 = vsel %vm12959_vm2, %v8174_v5, %v8178_v59  ;;  %v13767_v29 = vpop.f32.mrf.mxu0  ;;  %v7924_v5 = vld [vmem:[#allocation3 + $0x98] sm:$0x1] }
 0x547   : > { %15122 = vst [vmem:[#allocation45_spill] sm:$0xff] %v13767_v29  ;;  %v8345_v37 = vunpack.c.l.b16 %v8179_v4  ;;  %v7341_v6 = vsel %vm10566_vm9, %v7339_v2, %v7340_v48  ;;  %v10326_v4 = vld [vmem:[#allocation3 + $0x78] sm:$0xff]  ;;  %v6812_v2 = vrot.slane %v6811_v43, 4  ;;  %v8188_v10 = vrot.slane %v8187_v55, 4  ;;  %v7218_v55 = vld [vmem:[#allocation3 + $0x84] sm:$0xe] }
 0x548   : > { %v13758_v44 = vadd.f32 %v6228_v42, %v5879_v34  ;;  %v13760_v16 = vpop.f32.mrf.mxu2  ;;  %v7003_v42 = vunpack.c.l.b16 %v6793_v32  ;;  %v6801_v34 = vor.u32 %v6800_v52, %v6797_v56  ;;  %v7338_v32 = vsel %vm10566_vm9, %v10079_v18, %v7337_v28 }
 0x549   : > { %v8367_v36 = vpack.c.b16 %v8345_v37, %v8344_v0  ;;  %v7405_v56 = vunpack.c.l.b16 %v7341_v6  ;;  %v8192_v52 = vrot.slane %v8190_v9, 5  ;;  %v7404_v28 = vunpack.c.l.b16 %v7338_v32  ;;  %v7925_v37 = vld [vmem:[#allocation3 + $0x9c] sm:$0xf] }
 0x54a   : > { %15121 = vst [vmem:[#allocation44_spill] sm:$0xff] %v13758_v44  ;;  %v6814_v44 = vshll.u32 %v13706_v30, 16  ;;  %v7027_v22 = vpack.c.b16 %v7003_v42, %v7002_v46  ;;  %v8196_v30 = vrot.slane %v8194_v12, 4  ;;  %v6802_v46 = vrot.slane %v6801_v34, 4 }
 0x54b   : > { %v6233_v50 = vpop.f32.mrf.mxu3  ;;  %v8200_v0 = vshll.u32 %v7924_v5, 16  ;;  %v6822_v18 = vshll.u32 %v6581_v27, 16  ;;  %v7427_v47 = vpack.c.b16 %v7405_v56, %v7404_v28  ;;  %v6828_v43 = vshll.u32 %v13743_v39, 16 }
 0x54c   : > { %v6816_v48 = vrot.slane %v6814_v44, 5  ;;  %v8197_v42 = vor.u32 %v8196_v30, %v8192_v52  ;;  %v6807_v44 = vsel %vm12959_vm2, %v6802_v46, %v13765_v14  ;;  %v8193_v14 = vsel %vm12959_vm2, %v8188_v10, %v8192_v52 }
 0x54d   : > { %v5661_v59 = vpop.f32.mrf.mxu1  ;;  %v8202_v6 = vrot.slane %v8200_v0, 5  ;;  %v6832_v5 = vshrl.u32 %v13743_v39, 16  ;;  %v8205_v56 = vshrl.u32 %v7925_v37, 16  ;;  %v8208_v30 = vshll.u32 %v7925_v37, 16 }
 0x54e   : > { %v5882_v38 = vadd.f32 %v13721_v20, %v5661_v59  ;;  %v6817_v12 = vsel %vm12959_vm2, %v6812_v2, %v6816_v48  ;;  %v6821_v59 = vrot.slane %v6819_v60, 4  ;;  %v7004_v48 = vunpack.c.l.b16 %v6807_v44  ;;  %v7926_v60 = vld [vmem:[#allocation3 + $0xa0] sm:$0xf] }
 0x54f   : > { %v10080_v39 = vrot.slane %v7218_v55, 9  ;;  %v6830_v10 = vrot.slane %v6828_v43, 5  ;;  %v8210_v37 = vrot.slane %v8208_v30, 5  ;;  %v6522_v44 = vadd.f32 %v13125_v25, %v13174_v51  ;;  %v10327_v30 = vld [vmem:[#allocation3 + $0x84] sm:$0xff] }
 0x550   : > { %v13776_v29 = vadd.f32 %v6231_v3, %v5882_v38  ;;  %10061 = vmatmul.msk.bf16.gmra.mxu1 %vm1107_vm4, %v7027_v22  ;;  %v13780_v20 = vpop.f32.mrf.mxu2  ;;  %10176 = vmatmul.msk.bf16.gmra.mxu3 %vm1107_vm4, %v10326_v4  ;;  %v13783_v3 = vld [vmem:[#allocation3 + $0x88] sm:$0xf]  ;;  %v6824_v22 = vrot.slane %v6822_v18, 5  ;;  %v13794_v38 = vld [vmem:[#allocation3 + $0x8c] sm:$0x1]  ;;  %v8198_v4 = vrot.slane %v8197_v42, 4  ;;  %v8346_v18 = vunpack.c.l.b16 %v8193_v14 }
 0x551   : > { %10194 = vmatmul.msk.bf16.gmra.mxu0 %vm1107_vm4, %v8367_v36  ;;  %v13796_v36 = vpop.f32.mrf.mxu0  ;;  %v7344_v27 = vrot.slane %v13783_v3, 5  ;;  %v7347_v0 = vrot.slane %v13794_v38, 5 }
 0x552   : > { %15123 = vst [vmem:[#allocation46_spill] sm:$0xff] %v13776_v29  ;;  %v8203_v52 = vsel %vm12959_vm2, %v8198_v4, %v8202_v6  ;;  %v6825_v2 = vor.u32 %v6824_v22, %v6821_v59  ;;  %v6838_v59 = vshll.u32 %v13752_v40, 16  ;;  %v6584_v29 = vld [vmem:[#allocation3 + $0x84] sm:$0xf] }
 0x553   : > { %v13785_v9 = vpop.f32.mrf.mxu3  ;;  %15124 = vst [vmem:[#allocation47_spill] sm:$0xff] %v13796_v36  ;;  %v7346_v42 = vrot.slane %v7344_v27, 4  ;;  %v8347_v36 = vunpack.c.l.b16 %v8203_v52  ;;  %v7345_v22 = vsel %vm10566_vm9, %v10080_v39, %v7344_v27  ;;  %v6843_v39 = vshrl.u32 %v6584_v29, 16 }
 0x554   : > { %v6826_v55 = vrot.slane %v6825_v2, 4  ;;  %v7406_v27 = vunpack.c.l.b16 %v7345_v22  ;;  %v6846_v2 = vshll.u32 %v6584_v29, 16 }
 0x555   : > { %v5663_v34 = vpop.f32.mrf.mxu1  ;;  %10096 = vmatmul.msk.bf16.gmra.mxu2 %vm1107_vm4, %v7427_v47  ;;  %v6834_v47 = vrot.slane %v6832_v5, 4  ;;  %v8368_v5 = vpack.c.b16 %v8347_v36, %v8346_v18  ;;  %v6840_v36 = vrot.slane %v6838_v59, 5  ;;  %v13843_v59 = vld [vmem:[#allocation3 + $0x98] sm:$0x1] }
 0x556   : > { %v5884_v32 = vadd.f32 %v13738_v11, %v5663_v34  ;;  %v7005_v11 = vunpack.c.l.b16 %v6817_v12  ;;  %v8207_v34 = vrot.slane %v8205_v56, 4  ;;  %v7348_v12 = vsel %vm10566_vm9, %v7346_v42, %v7347_v0  ;;  %v7927_v56 = vld [vmem:[#allocation3 + $0xa4] sm:$0x1] }
 0x557   : > { %v6835_v4 = vor.u32 %v6834_v47, %v6830_v10  ;;  %v7407_v25 = vunpack.c.l.b16 %v7348_v12  ;;  %v8224_v0 = vshll.u32 %v7927_v56, 16  ;;  %v6831_v18 = vsel %vm12959_vm2, %v6826_v55, %v6830_v10 }
 0x558   : > { %v13803_v46 = vadd.f32 %v6233_v50, %v5884_v32  ;;  %v13805_v28 = vpop.f32.mrf.mxu2  ;;  %v8214_v50 = vshll.u32 %v7926_v60, 16  ;;  %v8218_v32 = vshrl.u32 %v7926_v60, 16  ;;  %v7028_v14 = vpack.c.b16 %v7005_v11, %v7004_v48 }
 0x559   : > { %v8211_v51 = vor.u32 %v8210_v37, %v8207_v34  ;;  %v13819_v54 = vpop.f32.mrf.mxu0  ;;  %v7428_v47 = vpack.c.b16 %v7407_v25, %v7406_v27  ;;  %v13832_v37 = vld [vmem:[#allocation3 + $0x94] sm:$0xf]  ;;  %v8226_v29 = vrot.slane %v8224_v0, 5 }
 0x55a   : > { %15125 = vst [vmem:[#allocation48_spill] sm:$0xff] %v13803_v46  ;;  %v8216_v60 = vrot.slane %v8214_v50, 5  ;;  %v8220_v52 = vrot.slane %v8218_v32, 4  ;;  %v6523_v50 = vadd.f32 %v13135_v15, %v13187_v41  ;;  %v6848_v15 = vrot.slane %v6846_v2, 5  ;;  %v7219_v41 = vld [vmem:[#allocation3 + $0x90] sm:$0xe] }
 0x55b   : > { %v13812_v46 = vpop.f32.mrf.mxu3  ;;  %v8212_v42 = vrot.slane %v8211_v51, 4 }
 0x55c   : > { %v8221_v34 = vor.u32 %v8220_v52, %v8216_v60 }
 0x55d   : > { %v7096_v6 = vpop.f32.mrf.mxu1  ;;  %v8217_v55 = vsel %vm12959_vm2, %v8212_v42, %v8216_v60 }
 0x55e   : > { %v7176_v43 = vadd.f32 %v7096_v6, %v6522_v44  ;;  %v6852_v44 = vshll.u32 %v13783_v3, 16  ;;  %v7006_v6 = vunpack.c.l.b16 %v6831_v18  ;;  %v6862_v18 = vshll.u32 %v13794_v38, 16 }
 0x560   : > { %v7574_v48 = vadd.f32 %v13760_v16, %v7176_v43  ;;  %10062 = vmatmul.msk.bf16.gmra.mxu1 %vm1107_vm4, %v7028_v14  ;;  %v13824_v40 = vpop.f32.mrf.mxu2  ;;  %10177 = vmatmul.msk.bf16.gmra.mxu3 %vm1107_vm4, %v10327_v30  ;;  %v6836_v16 = vrot.slane %v6835_v4, 4  ;;  %v6856_v14 = vshrl.u32 %v13783_v3, 16  ;;  %v6845_v43 = vrot.slane %v6843_v39, 4 }
 0x561   : > { %10195 = vmatmul.msk.bf16.gmra.mxu0 %vm1107_vm4, %v8368_v5  ;;  %v7351_v5 = vrot.slane %v13832_v37, 5  ;;  %v8222_v4 = vrot.slane %v8221_v34, 4  ;;  %v6854_v3 = vrot.slane %v6852_v44, 5  ;;  %v10081_v39 = vrot.slane %v7219_v41, 9  ;;  %v13855_v60 = vpop.f32.mrf.mxu0 }
 0x562   : > { %v13828_v11 = vadd.f32 %v13785_v9, %v7574_v48  ;;  %v7928_v9 = vld [vmem:[#allocation3 + $0xa8] sm:$0xf]  ;;  %v6841_v10 = vsel %vm12959_vm2, %v6836_v16, %v6840_v36  ;;  %v7354_v48 = vrot.slane %v13843_v59, 5  ;;  %v7929_v36 = vld [vmem:[#allocation3 + $0xac] sm:$0xf]  ;;  %v6858_v0 = vrot.slane %v6856_v14, 4 }
 0x563   : > { %v13836_v32 = vpop.f32.mrf.mxu3  ;;  %v8229_v56 = vshrl.u32 %v7928_v9, 16  ;;  %v8232_v30 = vshll.u32 %v7928_v9, 16  ;;  %v7007_v51 = vunpack.c.l.b16 %v6841_v10  ;;  %v8227_v27 = vsel %vm12959_vm2, %v8222_v4, %v8226_v29  ;;  %v7930_v4 = vld [vmem:[#allocation3 + $0xb0] sm:$0x1] }
 0x564   : > { %v6849_v16 = vor.u32 %v6848_v15, %v6845_v43  ;;  %v8242_v44 = vshrl.u32 %v7929_v36, 16  ;;  %v6524_v9 = vadd.f32 %v13149_v49, %v13200_v62  ;;  %v8349_v10 = vunpack.c.l.b16 %v8227_v27 }
 0x565   : > { %v7098_v12 = vpop.f32.mrf.mxu1  ;;  %10097 = vmatmul.msk.bf16.gmra.mxu2 %vm1107_vm4, %v7428_v47  ;;  %v7353_v47 = vrot.slane %v7351_v5, 4  ;;  %v8231_v42 = vrot.slane %v8229_v56, 4  ;;  %v8234_v34 = vrot.slane %v8232_v30, 5  ;;  %v7029_v14 = vpack.c.b16 %v7007_v51, %v7006_v6  ;;  %v10328_v56 = vld [vmem:[#allocation3 + $0x90] sm:$0xff] }
 0x566   : > { %v7177_v22 = vadd.f32 %v7098_v12, %v6523_v50  ;;  %v8238_v50 = vshll.u32 %v7929_v36, 16  ;;  %v6850_v15 = vrot.slane %v6849_v16, 4  ;;  %v8248_v27 = vshll.u32 %v7930_v4, 16 }
 0x567   : > { %v7355_v38 = vsel %vm10566_vm9, %v7353_v47, %v7354_v48  ;;  %v8235_v49 = vor.u32 %v8234_v34, %v8231_v42  ;;  %v13881_v47 = vld [vmem:[#allocation3 + $0xa0] sm:$0xf]  ;;  %v6525_v34 = vadd.f32 %v13158_v33, %v13213_v45 }
 0x568   : > { %v7575_v25 = vadd.f32 %v13780_v20, %v7177_v22  ;;  %v13849_v52 = vpop.f32.mrf.mxu2  ;;  %v8348_v20 = vunpack.c.l.b16 %v8217_v55  ;;  %v6864_v22 = vrot.slane %v6862_v18, 5  ;;  %v7352_v55 = vsel %vm10566_vm9, %v10081_v39, %v7351_v5  ;;  %v6587_v5 = vld [vmem:[#allocation3 + $0x90] sm:$0xf] }
 0x569   : > { %v7409_v30 = vunpack.c.l.b16 %v7355_v38  ;;  %v8240_v62 = vrot.slane %v8238_v50, 5  ;;  %v7408_v48 = vunpack.c.l.b16 %v7352_v55  ;;  %v6855_v18 = vsel %vm12959_vm2, %v6850_v15, %v6854_v3  ;;  %v13883_v42 = vpop.f32.mrf.mxu0 }
 0x56a   : > { %v13858_v2 = vadd.f32 %v13812_v46, %v7575_v25  ;;  %v6859_v46 = vor.u32 %v6858_v0, %v6854_v3  ;;  %v8369_v43 = vpack.c.b16 %v8349_v10, %v8348_v20  ;;  %v8244_v25 = vrot.slane %v8242_v44, 4 }
 0x56b   : > { %v13862_v12 = vpop.f32.mrf.mxu3  ;;  %v7429_v39 = vpack.c.b16 %v7409_v30, %v7408_v48  ;;  %v8236_v20 = vrot.slane %v8235_v49, 4  ;;  %v6870_v44 = vshll.u32 %v6587_v5, 16  ;;  %v7008_v3 = vunpack.c.l.b16 %v6855_v18 }
 0x56c   : > { %v6860_v51 = vrot.slane %v6859_v46, 4  ;;  %v8245_v16 = vor.u32 %v8244_v25, %v8240_v62  ;;  %v8250_v38 = vrot.slane %v8248_v27, 5  ;;  %v7358_v33 = vrot.slane %v13881_v47, 5 }
 0x56d   : > { %v7101_v29 = vpop.f32.mrf.mxu1  ;;  %v8241_v45 = vsel %vm12959_vm2, %v8236_v20, %v8240_v62  ;;  %v6872_v25 = vrot.slane %v6870_v44, 5  ;;  %v6886_v27 = vshll.u32 %v13843_v59, 16 }
 0x56e   : > { %v7178_v41 = vadd.f32 %v7101_v29, %v6524_v9  ;;  %v7931_v9 = vld [vmem:[#allocation3 + $0xb4] sm:$0xf]  ;;  %v6876_v29 = vshll.u32 %v13832_v37, 16  ;;  %v8246_v15 = vrot.slane %v8245_v16, 4  ;;  %v8350_v18 = vunpack.c.l.b16 %v8241_v45 }
 0x56f   : > { %v8253_v55 = vshrl.u32 %v7931_v9, 16  ;;  %v8256_v4 = vshll.u32 %v7931_v9, 16 }
 0x570   : > { %v7576_v36 = vadd.f32 %v13805_v28, %v7178_v41  ;;  %10063 = vmatmul.msk.bf16.gmra.mxu1 %vm1107_vm4, %v7029_v14  ;;  %v13871_v6 = vpop.f32.mrf.mxu2  ;;  %10178 = vmatmul.msk.bf16.gmra.mxu3 %vm1107_vm4, %v10328_v56  ;;  %v6865_v28 = vsel %vm12959_vm2, %v6860_v51, %v6864_v22  ;;  %v13891_v14 = vld [vmem:[#allocation3 + $0xa4] sm:$0x1]  ;;  %v6880_v41 = vshrl.u32 %v13832_v37, 16  ;;  %v7932_v51 = vld [vmem:[#allocation3 + $0xb8] sm:$0xf]  ;;  %v8251_v37 = vsel %vm12959_vm2, %v8246_v15, %v8250_v38 }
 0x571   : > { %10196 = vmatmul.msk.bf16.gmra.mxu0 %vm1107_vm4, %v8369_v43  ;;  %v7009_v22 = vunpack.c.l.b16 %v6865_v28  ;;  %v7220_v43 = vld [vmem:[#allocation3 + $0x9c] sm:$0xe]  ;;  %v13903_v48 = vrot.slane %v6876_v29, 5  ;;  %v7360_v28 = vrot.slane %v7358_v33, 4  ;;  %v8258_v20 = vrot.slane %v8256_v4, 5  ;;  %v13915_v29 = vpop.f32.mrf.mxu0 }
 0x572   : > { %v13875_v0 = vadd.f32 %v13836_v32, %v7576_v36  ;;  %v6867_v32 = vshrl.u32 %v6587_v5, 16  ;;  %v7361_v36 = vrot.slane %v13891_v14, 5  ;;  %v10082_v62 = vrot.slane %v7220_v43, 9  ;;  %v7933_v15 = vld [vmem:[#allocation3 + $0xbc] sm:$0x1] }
 0x573   : > { %v13887_v50 = vpop.f32.mrf.mxu3  ;;  %v8262_v16 = vshll.u32 %v7932_v51, 16  ;;  %v8351_v9 = vunpack.c.l.b16 %v8251_v37 }
 0x574   : > { %v6869_v49 = vrot.slane %v6867_v32, 4  ;;  %v6526_v32 = vadd.f32 %v13171_v24, %v13226_v35  ;;  %v7362_v59 = vsel %vm10566_vm9, %v7360_v28, %v7361_v36  ;;  %v7359_v45 = vsel %vm10566_vm9, %v10082_v62, %v7358_v33  ;;  %v6590_v24 = vld [vmem:[#allocation3 + $0x9c] sm:$0xf] }
 0x575   : > { %v7103_v10 = vpop.f32.mrf.mxu1  ;;  %10098 = vmatmul.msk.bf16.gmra.mxu2 %vm1107_vm4, %v7429_v39  ;;  %v8255_v39 = vrot.slane %v8253_v55, 4  ;;  %v10329_v35 = vld [vmem:[#allocation3 + $0x9c] sm:$0xff]  ;;  %v7411_v55 = vunpack.c.l.b16 %v7362_v59  ;;  %v7410_v33 = vunpack.c.l.b16 %v7359_v45  ;;  %v6891_v37 = vshrl.u32 %v6590_v24, 16 }
 0x576   : > { %v7179_v46 = vadd.f32 %v7103_v10, %v6525_v34  ;;  %v8266_v34 = vshrl.u32 %v7932_v51, 16  ;;  %v6873_v10 = vor.u32 %v6872_v25, %v6869_v49  ;;  %v8272_v51 = vshll.u32 %v7933_v15, 16 }
 0x577   : > { %v8259_v4 = vor.u32 %v8258_v20, %v8255_v39  ;;  %v6894_v62 = vshll.u32 %v6590_v24, 16  ;;  %v7430_v28 = vpack.c.b16 %v7411_v55, %v7410_v33  ;;  %v13929_v20 = vld [vmem:[#allocation3 + $0xac] sm:$0xf]  ;;  %v6893_v59 = vrot.slane %v6891_v37, 4 }
 0x578   : > { %v7577_v56 = vadd.f32 %v13824_v40, %v7179_v46  ;;  %v13898_v30 = vpop.f32.mrf.mxu2  ;;  %v6882_v40 = vrot.slane %v6880_v41, 4  ;;  %v8370_v41 = vpack.c.b16 %v8351_v9, %v8350_v18  ;;  %v8268_v49 = vrot.slane %v8266_v34, 4 }
 0x57a   : > { %v13907_v5 = vadd.f32 %v13862_v12, %v7577_v56  ;;  %v7030_v12 = vpack.c.b16 %v7009_v22, %v7008_v3  ;;  %v6883_v43 = vor.u32 %v6882_v40, %v13903_v48  ;;  %v8264_v56 = vrot.slane %v8262_v16, 5 }
 0x57b   : > { %v13911_v44 = vpop.f32.mrf.mxu3  ;;  %v6874_v3 = vrot.slane %v6873_v10, 4  ;;  %v6888_v22 = vrot.slane %v6886_v27, 5  ;;  %v6527_v27 = vadd.f32 %v13181_v23, %v13239_v13  ;;  %v8274_v10 = vrot.slane %v8272_v51, 5 }
 0x57c   : > { %v6884_v40 = vrot.slane %v6883_v43, 4  ;;  %v8269_v39 = vor.u32 %v8268_v49, %v8264_v56  ;;  %v6904_v13 = vshrl.u32 %v13881_v47, 16 }
 0x57d   : > { %v7106_v38 = vpop.f32.mrf.mxu1  ;;  %v6879_v34 = vsel %vm12959_vm2, %v6874_v3, %v13903_v48  ;;  %v7365_v48 = vrot.slane %v13929_v20, 5 }
 0x57e   : > { %v7180_v46 = vadd.f32 %v7106_v38, %v6526_v32  ;;  %v6889_v32 = vsel %vm12959_vm2, %v6884_v40, %v6888_v22  ;;  %v6896_v38 = vrot.slane %v6894_v62, 5  ;;  %v8270_v45 = vrot.slane %v8269_v39, 4 }
 0x57f   : > { %v7011_v49 = vunpack.c.l.b16 %v6889_v32  ;;  %v6906_v62 = vrot.slane %v6904_v13, 4  ;;  %v7367_v40 = vrot.slane %v7365_v48, 4  ;;  %v8290_v39 = vshrl.u32 %v13666_v57, 16 }
 0x580   : > { %v7578_v25 = vadd.f32 %v13849_v52, %v7180_v46  ;;  %10064 = vmatmul.msk.bf16.gmra.mxu1 %vm1107_vm4, %v7030_v12  ;;  %v13923_v36 = vpop.f32.mrf.mxu2  ;;  %10179 = vmatmul.msk.bf16.gmra.mxu3 %vm1107_vm4, %v10329_v35  ;;  %v8260_v52 = vrot.slane %v8259_v4, 4  ;;  %v6900_v12 = vshll.u32 %v13881_v47, 16  ;;  %v13942_v46 = vld [vmem:[#allocation3 + $0xb0] sm:$0x1]  ;;  %v13948_v35 = vpop.f32.mrf.mxu0  ;;  %v7010_v4 = vunpack.c.l.b16 %v6879_v34 }
 0x581   : > { %10197 = vmatmul.msk.bf16.gmra.mxu0 %vm1107_vm4, %v8370_v41  ;;  %v7221_v41 = vld [vmem:[#allocation3 + $0xa8] sm:$0xe]  ;;  %v7368_v3 = vrot.slane %v13942_v46, 5  ;;  %v8275_v47 = vsel %vm12959_vm2, %v8270_v45, %v8274_v10  ;;  %v6897_v22 = vor.u32 %v6896_v38, %v6893_v59  ;;  %v6910_v59 = vshll.u32 %v13891_v14, 16 }
 0x582   : > { %v13927_v18 = vadd.f32 %v13887_v50, %v7578_v25  ;;  %v7934_v50 = vld [vmem:[#allocation3 + $0xc0] sm:$0xf]  ;;  %v8265_v43 = vsel %vm12959_vm2, %v8260_v52, %v8264_v56  ;;  %v6902_v33 = vrot.slane %v6900_v12, 5  ;;  %v10083_v51 = vrot.slane %v7221_v41, 9 }
 0x583   : > { %v13933_v16 = vpop.f32.mrf.mxu3  ;;  %v8277_v15 = vshrl.u32 %v7934_v50, 16  ;;  %v8280_v24 = vshll.u32 %v7934_v50, 16  ;;  %v8352_v37 = vunpack.c.l.b16 %v8265_v43  ;;  %v8286_v52 = vshll.u32 %v13666_v57, 16  ;;  %v10330_v57 = vld [vmem:[#allocation3 + $0xa8] sm:$0xff] }
 0x584   : > { %v8353_v32 = vunpack.c.l.b16 %v8275_v47  ;;  %v7369_v50 = vsel %vm10566_vm9, %v7367_v40, %v7368_v3  ;;  %v6898_v10 = vrot.slane %v6897_v22, 4  ;;  %v7366_v13 = vsel %vm10566_vm9, %v10083_v51, %v7365_v48 }
 0x585   : > { %v7108_v9 = vpop.f32.mrf.mxu1  ;;  %10099 = vmatmul.msk.bf16.gmra.mxu2 %vm1107_vm4, %v7430_v28  ;;  %v8279_v28 = vrot.slane %v8277_v15, 4  ;;  %v7413_v41 = vunpack.c.l.b16 %v7369_v50  ;;  %v6912_v14 = vrot.slane %v6910_v59, 5 }
 0x586   : > { %v7181_v23 = vadd.f32 %v7108_v9, %v6527_v27  ;;  %v6528_v27 = vadd.f32 %v13197_v1, %v13252_v8  ;;  %v8371_v12 = vpack.c.b16 %v8353_v32, %v8352_v37  ;;  %v8288_v1 = vrot.slane %v8286_v52, 5  ;;  %v13982_v37 = vld [vmem:[#allocation3 + $0xb8] sm:$0xf] }
 0x587   : > { %v8292_v8 = vrot.slane %v8290_v39, 4  ;;  %v13989_v39 = vld [vmem:[#allocation3 + $0xbc] sm:$0x1]  ;;  %v7372_v50 = vrot.slane %v13982_v37, 5 }
 0x588   : > { %v7579_v55 = vadd.f32 %v13871_v6, %v7181_v23  ;;  %v13951_v25 = vpop.f32.mrf.mxu2  ;;  %v8282_v6 = vrot.slane %v8280_v24, 5  ;;  %v6907_v23 = vor.u32 %v6906_v62, %v6902_v33  ;;  %v7412_v24 = vunpack.c.l.b16 %v7366_v13  ;;  %v13975_v48 = vpop.f32.mrf.mxu0 }
 0x589   : > { %v8293_v51 = vor.u32 %v8292_v8, %v8288_v1  ;;  %v6529_v62 = vadd.f32 %v13207_v17, %v13266_v58 }
 0x58a   : > { %v13957_v56 = vadd.f32 %v13911_v44, %v7579_v55  ;;  %v7031_v44 = vpack.c.b16 %v7011_v49, %v7010_v4  ;;  %v8283_v43 = vor.u32 %v8282_v6, %v8279_v28  ;;  %v8296_v55 = vshll.u32 %v13668_v63, 16  ;;  %v6593_v49 = vld [vmem:[#allocation3 + $0xa8] sm:$0xf]  ;;  %v7937_v63 = vld [vmem:[#allocation3 + $0xcc] sm:$0xf] }
 0x58b   : > { %v7797_v34 = vpop.f32.mrf.mxu3  ;;  %v6908_v3 = vrot.slane %v6907_v23, 4  ;;  %v7431_v47 = vpack.c.b16 %v7413_v41, %v7412_v24  ;;  %v6918_v52 = vshll.u32 %v6593_v49, 16  ;;  %v8294_v58 = vrot.slane %v8293_v51, 4 }
 0x58c   : > { %v8284_v22 = vrot.slane %v8283_v43, 4  ;;  %v8298_v6 = vrot.slane %v8296_v55, 5  ;;  %v7375_v23 = vrot.slane %v13989_v39, 5  ;;  %v6928_v43 = vshrl.u32 %v13929_v20, 16 }
 0x58d   : > { %v7111_v9 = vpop.f32.mrf.mxu1  ;;  %v6920_v41 = vrot.slane %v6918_v52, 5  ;;  %v10331_v52 = vld [vmem:[#allocation3 + $0xb4] sm:$0xff] }
 0x58e   : > { %v7182_v38 = vadd.f32 %v7111_v9, %v6528_v27  ;;  %v8289_v17 = vsel %vm12959_vm2, %v8284_v22, %v8288_v1  ;;  %v7222_v9 = vld [vmem:[#allocation3 + $0xb4] sm:$0xe]  ;;  %v8299_v13 = vsel %vm12959_vm2, %v8294_v58, %v8298_v6 }
 0x58f   : > { %v8354_v1 = vunpack.c.l.b16 %v8289_v17 }
 0x590   : > { %v7580_v45 = vadd.f32 %v13898_v30, %v7182_v38  ;;  %10065 = vmatmul.msk.bf16.gmra.mxu1 %vm1107_vm4, %v7031_v44  ;;  %10180 = vmatmul.msk.bf16.gmra.mxu3 %vm1107_vm4, %v10330_v57  ;;  %v13972_v15 = vpop.f32.mrf.mxu2  ;;  %v6903_v30 = vsel %vm12959_vm2, %v6898_v10, %v6902_v33  ;;  %v6915_v33 = vshrl.u32 %v6593_v49, 16  ;;  %v8301_v44 = vshrl.u32 %v7937_v63, 16 }
 0x591   : > { %10198 = vmatmul.msk.bf16.gmra.mxu0 %vm1107_vm4, %v8371_v12  ;;  %v7012_v32 = vunpack.c.l.b16 %v6903_v30  ;;  %v8304_v10 = vshll.u32 %v7937_v63, 16  ;;  %v6924_v12 = vshll.u32 %v13929_v20, 16  ;;  %v8310_v30 = vshll.u32 %v13672_v61, 16 }
 0x592   : > { %v13978_v4 = vadd.f32 %v13933_v16, %v7580_v45  ;;  %v6913_v16 = vsel %vm12959_vm2, %v6908_v3, %v6912_v14  ;;  %v6917_v57 = vrot.slane %v6915_v33, 4  ;;  %v10084_v45 = vrot.slane %v7222_v9, 9  ;;  %v14006_v3 = vpop.f32.mrf.mxu0 }
 0x593   : > { %v7800_v40 = vpop.f32.mrf.mxu3  ;;  %v7013_v38 = vunpack.c.l.b16 %v6913_v16  ;;  %v7374_v14 = vrot.slane %v7372_v50, 4  ;;  %v8306_v55 = vrot.slane %v8304_v10, 5  ;;  %v8314_v49 = vshrl.u32 %v13672_v61, 16 }
 0x594   : > { %v8355_v20 = vunpack.c.l.b16 %v8299_v13  ;;  %v6921_v63 = vor.u32 %v6920_v41, %v6917_v57  ;;  %v6930_v33 = vrot.slane %v6928_v43, 4  ;;  %v7373_v61 = vsel %vm10566_vm9, %v10084_v45, %v7372_v50  ;;  %v14021_v57 = vld [vmem:[#allocation3 + $0xc4] sm:$0xf] }
 0x595   : > { %v7113_v28 = vpop.f32.mrf.mxu1  ;;  %10100 = vmatmul.msk.bf16.gmra.mxu2 %vm1107_vm4, %v7431_v47  ;;  %v6530_v47 = vadd.f32 %v13223_v21, %v13281_v31  ;;  %v8312_v58 = vrot.slane %v8310_v30, 5  ;;  %v8316_v21 = vrot.slane %v8314_v49, 4  ;;  %v7414_v9 = vunpack.c.l.b16 %v7373_v61 }
 0x596   : > { %v7183_v27 = vadd.f32 %v7113_v28, %v6529_v62  ;;  %v7032_v62 = vpack.c.b16 %v7013_v38, %v7012_v32  ;;  %v6926_v28 = vrot.slane %v6924_v12, 5  ;;  %v8372_v6 = vpack.c.b16 %v8355_v20, %v8354_v1  ;;  %v6596_v1 = vld [vmem:[#allocation3 + $0xb4] sm:$0xf] }
 0x597   : > { %v6934_v32 = vshll.u32 %v13942_v46, 16  ;;  %v6922_v50 = vrot.slane %v6921_v63, 4  ;;  %v8317_v13 = vor.u32 %v8316_v21, %v8312_v58  ;;  %v7223_v63 = vld [vmem:[#allocation3 + $0xc0] sm:$0xe] }
 0x598   : > { %v7581_v59 = vadd.f32 %v13923_v36, %v7183_v27  ;;  %v14002_v24 = vpop.f32.mrf.mxu2  ;;  %v8303_v36 = vrot.slane %v8301_v44, 4  ;;  %v10356_v44 = vld [vmem:[#allocation3 + $0xd4] sm:$0x1]  ;;  %v6931_v38 = vor.u32 %v6930_v33, %v6926_v28 }
 0x599   : > { %v8320_v10 = vshll.u32 %v10356_v44, 16  ;;  %v6927_v49 = vsel %vm12959_vm2, %v6922_v50, %v6926_v28  ;;  %v15128_v44 = vld [vmem:[#allocation16_spill] sm:$0xff] }
 0x59a   : > { %v14000_v8 = vadd.f32 %v7797_v34, %v7581_v59  ;;  %v7376_v34 = vsel %vm10566_vm9, %v7374_v14, %v7375_v23  ;;  %v8307_v17 = vor.u32 %v8306_v55, %v8303_v36  ;;  %v6936_v14 = vrot.slane %v6934_v32, 5  ;;  %v14028_v36 = vld [vmem:[#allocation3 + $0xc8] sm:$0x1]  ;;  %v14030_v55 = vpop.f32.mrf.mxu0 }
 0x59b   : > { %v7802_v22 = vpop.f32.mrf.mxu3  ;;  %v7415_v27 = vunpack.c.l.b16 %v7376_v34  ;;  %v8318_v34 = vrot.slane %v8317_v13, 4  ;;  %v7014_v61 = vunpack.c.l.b16 %v6927_v49  ;;  %v6948_v32 = vshll.u32 %v13982_v37, 16 }
 0x59c   : > { %v8308_v23 = vrot.slane %v8307_v17, 4  ;;  %v10085_v17 = vrot.slane %v7223_v63, 9 }
 0x59d   : > { %v7116_v51 = vpop.f32.mrf.mxu1  ;;  %v7432_v12 = vpack.c.b16 %v7415_v27, %v7414_v9  ;;  %v15127_v9 = vld [vmem:[#allocation6_spill] sm:$0xff] }
 0x59e   : > { %v7184_v16 = vadd.f32 %v7116_v51, %v6530_v47  ;;  %v6932_v47 = vrot.slane %v6931_v38, 4  ;;  %v8313_v20 = vsel %vm12959_vm2, %v8308_v23, %v8312_v58  ;;  %v6939_v51 = vshrl.u32 %v6596_v1, 16 }
 0x59f   : > { %v8356_v27 = vunpack.c.l.b16 %v8313_v20 }
 0x5a0   : > { %v7582_v31 = vadd.f32 %v13951_v25, %v7184_v16  ;;  %10066 = vmatmul.msk.bf16.gmra.mxu1 %vm1107_vm4, %v7032_v62  ;;  %10181 = vmatmul.msk.bf16.gmra.mxu3 %vm1107_vm4, %v10331_v52  ;;  %v15126_v25 = vld [vmem:[#allocation19_spill] sm:$0xff]  ;;  %v14025_v46 = vpop.f32.mrf.mxu2  ;;  %v6942_v62 = vshll.u32 %v6596_v1, 16  ;;  %v6937_v33 = vsel %vm12959_vm2, %v6932_v47, %v6936_v14  ;;  %v6941_v21 = vrot.slane %v6939_v51, 4  ;;  %v10332_v14 = vld [vmem:[#allocation3 + $0xc0] sm:$0xff] }
 0x5a1   : > { %10199 = vmatmul.msk.bf16.gmra.mxu0 %vm1107_vm4, %v8372_v6  ;;  %v6531_v41 = vadd.f32 %v15126_v25, %v13300_v53  ;;  %v7379_v53 = vrot.slane %v14021_v57, 5  ;;  %v7382_v6 = vrot.slane %v14028_v36, 5  ;;  %v7015_v50 = vunpack.c.l.b16 %v6937_v33  ;;  %v15130_v33 = vld [vmem:[#allocation5_spill] sm:$0xff] }
 0x5a2   : > { %v14019_v59 = vadd.f32 %v7800_v40, %v7582_v31  ;;  %v8322_v40 = vrot.slane %v8320_v10, 5  ;;  %v6944_v31 = vrot.slane %v6942_v62, 5  ;;  %v6532_v10 = vadd.f32 %v15128_v44, %v15127_v9  ;;  %v14053_v47 = vpop.f32.mrf.mxu0 }
 0x5a3   : > { %v7805_v43 = vpop.f32.mrf.mxu3  ;;  %v7381_v58 = vrot.slane %v7379_v53, 4  ;;  %v7033_v25 = vpack.c.b16 %v7015_v50, %v7014_v61  ;;  %v7380_v1 = vsel %vm10566_vm9, %v10085_v17, %v7379_v53 }
 0x5a4   : > { %v8323_v28 = vsel %vm12959_vm2, %v8318_v34, %v8322_v40  ;;  %v6945_v40 = vor.u32 %v6944_v31, %v6941_v21  ;;  %v6958_v34 = vshll.u32 %v13989_v39, 16  ;;  %v7416_v51 = vunpack.c.l.b16 %v7380_v1 }
 0x5a5   : > { %v7118_v45 = vpop.f32.mrf.mxu1  ;;  %10101 = vmatmul.msk.bf16.gmra.mxu2 %vm1107_vm4, %v7432_v12  ;;  %v8357_v12 = vunpack.c.l.b16 %v8323_v28  ;;  %v7383_v23 = vsel %vm10566_vm9, %v7381_v58, %v7382_v6  ;;  %v15129_v6 = vld [vmem:[#allocation33_spill] sm:$0xff] }
 0x5a6   : > { %v7185_v30 = vadd.f32 %v7118_v45, %v6531_v41  ;;  %v7417_v49 = vunpack.c.l.b16 %v7383_v23  ;;  %v6946_v62 = vrot.slane %v6945_v40, 4  ;;  %v6533_v61 = vadd.f32 %v15130_v33, %v15129_v6  ;;  %v15133_v6 = vld [vmem:[#allocation36_spill] sm:$0xff]  ;;  %v15134_v33 = vld [vmem:[#allocation29_spill] sm:$0xff] }
 0x5a7   : > { %v8373_v41 = vpack.c.b16 %v8357_v12, %v8356_v27  ;;  %v6599_v27 = vld [vmem:[#allocation3 + $0xc0] sm:$0xf]  ;;  %v6960_v17 = vrot.slane %v6958_v34, 5  ;;  %v6972_v23 = vshll.u32 %v14021_v57, 16 }
 0x5a8   : > { %v7583_v16 = vadd.f32 %v13972_v15, %v7185_v30  ;;  %v6952_v15 = vshrl.u32 %v13982_v37, 16  ;;  %v7524_v45 = vpop.f32.mrf.mxu2  ;;  %v6950_v37 = vrot.slane %v6948_v32, 5  ;;  %v6963_v31 = vshrl.u32 %v6599_v27, 16 }
 0x5aa   : > { %v14043_v52 = vadd.f32 %v7802_v22, %v7583_v16  ;;  %v6954_v30 = vrot.slane %v6952_v15, 4  ;;  %v7433_v16 = vpack.c.b16 %v7417_v49, %v7416_v51  ;;  %v6951_v21 = vsel %vm12959_vm2, %v6946_v62, %v6950_v37 }
 0x5ab   : > { %v7807_v38 = vpop.f32.mrf.mxu3  ;;  %v6965_v50 = vrot.slane %v6963_v31, 4  ;;  %v6982_v51 = vshll.u32 %v14028_v36, 16 }
 0x5ac   : > { %v6955_v63 = vor.u32 %v6954_v30, %v6950_v37  ;;  %v10333_v30 = vld [vmem:[#allocation3 + $0xcc] sm:$0xff] }
 0x5ad   : > { %v7121_v22 = vpop.f32.mrf.mxu1 }
 0x5ae   : > { %v7186_v13 = vadd.f32 %v7121_v22, %v6532_v10  ;;  %v6956_v39 = vrot.slane %v6955_v63, 4  ;;  %v7016_v10 = vunpack.c.l.b16 %v6951_v21  ;;  %v6976_v22 = vshrl.u32 %v14021_v57, 16 }
 0x5b0   : > { %v7584_v20 = vadd.f32 %v14002_v24, %v7186_v13  ;;  %10067 = vmatmul.msk.bf16.gmra.mxu1 %vm1107_vm4, %v7033_v25  ;;  %10182 = vmatmul.msk.bf16.gmra.mxu3 %vm1107_vm4, %v10332_v14  ;;  %v6961_v15 = vsel %vm12959_vm2, %v6956_v39, %v6960_v17  ;;  %v7526_v9 = vpop.f32.mrf.mxu2  ;;  %v15131_v13 = vld [vmem:[#allocation34_spill] sm:$0xff]  ;;  %v15132_v25 = vld [vmem:[#allocation4_spill] sm:$0xff]  ;;  %v6984_v17 = vrot.slane %v6982_v51, 5 }
 0x5b1   : > { %10200 = vmatmul.msk.bf16.gmra.mxu0 %vm1107_vm4, %v8373_v41  ;;  %v6534_v41 = vadd.f32 %v15132_v25, %v15131_v13  ;;  %v7017_v1 = vunpack.c.l.b16 %v6961_v15 }
 0x5b2   : > { %v14060_v53 = vadd.f32 %v7805_v43, %v7584_v20  ;;  %v6966_v43 = vshll.u32 %v6599_v27, 16  ;;  %v6974_v20 = vrot.slane %v6972_v23, 5 }
 0x5b3   : > { %v7810_v28 = vpop.f32.mrf.mxu3  ;;  %v7034_v37 = vpack.c.b16 %v7017_v1, %v7016_v10 }
 0x5b4   : > { %v6968_v12 = vrot.slane %v6966_v43, 5  ;;  %v15135_v43 = vld [vmem:[#allocation13_spill] sm:$0xff] }
 0x5b5   : > { %v7123_v24 = vpop.f32.mrf.mxu1  ;;  %10102 = vmatmul.msk.bf16.gmra.mxu2 %vm1107_vm4, %v7433_v16 }
 0x5b6   : > { %v7187_v58 = vadd.f32 %v7123_v24, %v6533_v61  ;;  %v6969_v49 = vor.u32 %v6968_v12, %v6965_v50  ;;  %v6535_v61 = vadd.f32 %v15134_v33, %v15133_v6 }
 0x5b8   : > { %v7585_v32 = vadd.f32 %v14025_v46, %v7187_v58  ;;  %v7529_v62 = vpop.f32.mrf.mxu2  ;;  %v6970_v63 = vrot.slane %v6969_v49, 4 }
 0x5ba   : > { %v14070_v44 = vadd.f32 %v7807_v38, %v7585_v32  ;;  %v6978_v38 = vrot.slane %v6976_v22, 4  ;;  %v15136_v32 = vld [vmem:[#allocation31_spill] sm:$0xff] }
 0x5bb   : > { %v7812_v14 = vpop.f32.mrf.mxu3  ;;  %v6536_v15 = vadd.f32 %v15136_v32, %v15135_v43  ;;  %v10359_v43 = vld [vmem:[#allocation3 + $0x28] sm:$0xf] }
 0x5bc   : > { %v6979_v16 = vor.u32 %v6978_v38, %v6974_v20  ;;  %v8619_v32 = vrot.slane %v10359_v43, 5 }
 0x5bd   : > { %v7126_v40 = vpop.f32.mrf.mxu1 }
 0x5be   : > { %v7188_v46 = vadd.f32 %v7126_v40, %v6534_v41  ;;  %v6980_v21 = vrot.slane %v6979_v16, 4  ;;  %v10357_v41 = vld [vmem:[#allocation3 + $0x1c] sm:$0xf] }
 0x5c0   : > { %v7586_v34 = vadd.f32 %v7524_v45, %v7188_v46  ;;  %10068 = vmatmul.msk.bf16.gmra.mxu1 %vm1107_vm4, %v7034_v37  ;;  %10183 = vmatmul.msk.bf16.gmra.mxu3 %vm1107_vm4, %v10333_v30  ;;  %v6975_v45 = vsel %vm12959_vm2, %v6970_v63, %v6974_v20  ;;  %v6985_v36 = vsel %vm12959_vm2, %v6980_v21, %v6984_v17  ;;  %v7531_v12 = vpop.f32.mrf.mxu2  ;;  %v15137_v46 = vld [vmem:[#allocation20_spill] sm:$0xff]  ;;  %v15138_v37 = vld [vmem:[#allocation35_spill] sm:$0xff]  ;;  %v10201_v20 = vrot.slane %v8546_v7, 9 }
 0x5c1   : > { %v7018_v31 = vunpack.c.l.b16 %v6975_v45  ;;  %v7019_v10 = vunpack.c.l.b16 %v6985_v36  ;;  %v6537_v30 = vadd.f32 %v15138_v37, %v15137_v46  ;;  %v8621_v7 = vrot.slane %v8619_v32, 4 }
 0x5c2   : > { %v14079_v57 = vadd.f32 %v7810_v28, %v7586_v34 }
 0x5c3   : > { %v7815_v24 = vpop.f32.mrf.mxu3  ;;  %v7035_v22 = vpack.c.b16 %v7019_v10, %v7018_v31  ;;  %v8547_v10 = vld [vmem:[#allocation3 + $0x24] sm:$0xe] }
 0x5c5   : > { %v7128_v27 = vpop.f32.mrf.mxu1 }
 0x5c6   : > { %v7189_v58 = vadd.f32 %v7128_v27, %v6535_v61  ;;  %v15139_v27 = vld [vmem:[#allocation21_spill] sm:$0xff] }
 0x5c8   : > { %v7587_v39 = vadd.f32 %v7526_v9, %v7189_v58  ;;  %v8612_v9 = vrot.slane %v10357_v41, 5  ;;  %v7534_v51 = vpop.f32.mrf.mxu2 }
 0x5ca   : > { %v14087_v28 = vadd.f32 %v7812_v14, %v7587_v39  ;;  %v10358_v14 = vld [vmem:[#allocation3 + $0x20] sm:$0x1]  ;;  %v8614_v38 = vrot.slane %v8612_v9, 4  ;;  %v8613_v6 = vsel %vm10566_vm9, %v10201_v20, %v8612_v9  ;;  %v10202_v9 = vrot.slane %v8547_v10, 9 }
 0x5cb   : > { %v7817_v13 = vpop.f32.mrf.mxu3  ;;  %v8615_v40 = vrot.slane %v10358_v14, 5  ;;  %v8724_v58 = vunpack.c.l.b16 %v8613_v6 }
 0x5cc   : > { %v8620_v37 = vsel %vm10566_vm9, %v10202_v9, %v8619_v32 }
 0x5cd   : > { %v7131_v50 = vpop.f32.mrf.mxu1 }
 0x5ce   : > { %v7190_v23 = vadd.f32 %v7131_v50, %v6536_v15 }
 0x5d0   : > { %v7588_v25 = vadd.f32 %v7529_v62, %v7190_v23  ;;  %10069 = vmatmul.msk.bf16.gmra.mxu1 %vm1107_vm4, %v7035_v22  ;;  %v8616_v62 = vsel %vm10566_vm9, %v8614_v38, %v8615_v40  ;;  %v7536_v31 = vpop.f32.mrf.mxu2  ;;  %v15141_v22 = vld [vmem:[#allocation23_spill] sm:$0xff]  ;;  %v15143_v38 = vld [vmem:[#allocation24_spill] sm:$0xff] }
 0x5d1   : > { %v8725_v61 = vunpack.c.l.b16 %v8616_v62  ;;  %v8726_v62 = vunpack.c.l.b16 %v8620_v37 }
 0x5d2   : > { %v14092_v1 = vadd.f32 %v7815_v24, %v7588_v25  ;;  %v15140_v24 = vld [vmem:[#allocation37_spill] sm:$0xff] }
 0x5d3   : > { %v7820_v16 = vpop.f32.mrf.mxu3  ;;  %v6538_v17 = vadd.f32 %v15140_v24, %v15139_v27  ;;  %v8756_v39 = vpack.c.b16 %v8725_v61, %v8724_v58  ;;  %v10361_v24 = vld [vmem:[#allocation3 + $0x34] sm:$0xf] }
 0x5d5   : > { %v7133_v49 = vpop.f32.mrf.mxu1 }
 0x5d6   : > { %v7191_v34 = vadd.f32 %v7133_v49, %v6537_v30 }
 0x5d8   : > { %v7589_v63 = vadd.f32 %v7531_v12, %v7191_v34  ;;  %v10360_v12 = vld [vmem:[#allocation3 + $0x2c] sm:$0x1]  ;;  %v7539_v20 = vpop.f32.mrf.mxu2  ;;  %v15144_v34 = vld [vmem:[#allocation27_spill] sm:$0xff] }
 0x5d9   : > { %v8622_v23 = vrot.slane %v10360_v12, 5 }
 0x5da   : > { %v14100_v33 = vadd.f32 %v7817_v13, %v7589_v63  ;;  %v15142_v13 = vld [vmem:[#allocation7_spill] sm:$0xff] }
 0x5db   : > { %v7822_v50 = vpop.f32.mrf.mxu3  ;;  %v6539_v25 = vadd.f32 %v15142_v13, %v15141_v22  ;;  %v8623_v40 = vsel %vm10566_vm9, %v8621_v7, %v8622_v23 }
 0x5dc   : > { %v8727_v49 = vunpack.c.l.b16 %v8623_v40  ;;  %v15148_v40 = vld [vmem:[#allocation8_spill] sm:$0xff] }
 0x5dd   : > { %v7136_v45 = vpop.f32.mrf.mxu1 }
 0x5de   : > { %v7192_v21 = vadd.f32 %v7136_v45, %v6538_v17  ;;  %v8757_v61 = vpack.c.b16 %v8727_v49, %v8726_v62  ;;  %v8626_v17 = vrot.slane %v10361_v24, 5  ;;  %v8548_v45 = vld [vmem:[#allocation3 + $0x30] sm:$0xe] }
 0x5e0   : > { %v7590_v36 = vadd.f32 %v7534_v51, %v7192_v21  ;;  %10218 = vmatmul.msk.bf16.vlgmr.msra.gmra.mxu1 %vm1107_vm4, %v8756_v39  ;;  %v6540_v51 = vadd.f32 %v15144_v34, %v15143_v38  ;;  %v10362_v21 = vld [vmem:[#allocation3 + $0x38] sm:$0x1]  ;;  %v7541_v32 = vpop.f32.mrf.mxu2  ;;  %v8628_v12 = vrot.slane %v8626_v17, 4 }
 0x5e1   : > { %v8629_v39 = vrot.slane %v10362_v21, 5 }
 0x5e2   : > { %v14105_v15 = vadd.f32 %v7820_v16, %v7590_v36  ;;  %v15145_v36 = vld [vmem:[#allocation18_spill] sm:$0xff] }
 0x5e3   : > { %v7825_v16 = vpop.f32.mrf.mxu3  ;;  %v8630_v13 = vsel %vm10566_vm9, %v8628_v12, %v8629_v39  ;;  %v15151_v12 = vld [vmem:[#allocation14_spill] sm:$0xff] }
 0x5e4   : > { %v8729_v7 = vunpack.c.l.b16 %v8630_v13 }
 0x5e5   : > { %v7138_v41 = vpop.f32.mrf.mxu1 }
 0x5e6   : > { %v7193_v14 = vadd.f32 %v7138_v41, %v6539_v25 }
 0x5e8   : > { %v7591_v46 = vadd.f32 %v7536_v31, %v7193_v14  ;;  %v15146_v31 = vld [vmem:[#allocation38_spill] sm:$0xff]  ;;  %v15147_v14 = vld [vmem:[#allocation25_spill] sm:$0xff]  ;;  %v7544_v34 = vpop.f32.mrf.mxu2 }
 0x5e9   : > { %v6541_v43 = vadd.f32 %v15146_v31, %v15145_v36 }
 0x5ea   : > { %v14113_v30 = vadd.f32 %v7822_v50, %v7591_v46  ;;  %v10203_v50 = vrot.slane %v8548_v45, 9  ;;  %v6542_v46 = vadd.f32 %v15148_v40, %v15147_v14  ;;  %v15150_v45 = vld [vmem:[#allocation22_spill] sm:$0xff] }
 0x5eb   : > { %v7827_v22 = vpop.f32.mrf.mxu3  ;;  %v10365_v14 = vld [vmem:[#allocation3 + $0x4c] sm:$0xf] }
 0x5ec   : > { %v8627_v41 = vsel %vm10566_vm9, %v10203_v50, %v8626_v17  ;;  %v15149_v17 = vld [vmem:[#allocation26_spill] sm:$0xff]  ;;  %v8640_v40 = vrot.slane %v10365_v14, 5 }
 0x5ed   : > { %v7141_v63 = vpop.f32.mrf.mxu1  ;;  %v8728_v37 = vunpack.c.l.b16 %v8627_v41  ;;  %v6543_v21 = vadd.f32 %v15150_v45, %v15149_v17  ;;  %v15155_v17 = vld [vmem:[#allocation15_spill] sm:$0xff]  ;;  %v15156_v45 = vld [vmem:[#allocation12_spill] sm:$0xff] }
 0x5ee   : > { %v7194_v6 = vadd.f32 %v7141_v63, %v6540_v51  ;;  %v10363_v63 = vld [vmem:[#allocation3 + $0x40] sm:$0xf] }
 0x5ef   : > { %v8758_v38 = vpack.c.b16 %v8729_v7, %v8728_v37  ;;  %v10366_v37 = vld [vmem:[#allocation3 + $0x50] sm:$0x1] }
 0x5f0   : > { %v7592_v27 = vadd.f32 %v7539_v20, %v7194_v6  ;;  %10219 = vmatmul.msk.bf16.gmra.mxu1 %vm1107_vm4, %v8757_v61  ;;  %v8549_v61 = vld [vmem:[#allocation3 + $0x3c] sm:$0xe] }
 0x5f1   : > { %v10204_v36 = vrot.slane %v8549_v61, 9 }
 0x5f2   : > { %v14118_v58 = vadd.f32 %v7825_v16, %v7592_v27  ;;  %v8633_v16 = vrot.slane %v10363_v63, 5  ;;  %v10364_v27 = vld [vmem:[#allocation3 + $0x44] sm:$0x1]  ;;  %v8642_v63 = vrot.slane %v8640_v40, 4 }
 0x5f3   : > { %v7830_v62 = vpop.f32.mrf.mxu3  ;;  %v8636_v24 = vrot.slane %v10364_v27, 5 }
 0x5f4   : > { %v8635_v31 = vrot.slane %v8633_v16, 4 }
 0x5f5   : > { %v7143_v10 = vpop.f32.mrf.mxu1 }
 0x5f6   : > { %v7195_v23 = vadd.f32 %v7143_v10, %v6541_v43  ;;  %v8634_v10 = vsel %vm10566_vm9, %v10204_v36, %v8633_v16 }
 0x5f7   : > { %v8730_v13 = vunpack.c.l.b16 %v8634_v10  ;;  %v10367_v10 = vld [vmem:[#allocation3 + $0x58] sm:$0xf] }
 0x5f8   : > { %v7593_v25 = vadd.f32 %v7541_v32, %v7195_v23  ;;  %v8637_v32 = vsel %vm10566_vm9, %v8635_v31, %v8636_v24  ;;  %v15152_v23 = vld [vmem:[#allocation9_spill] sm:$0xff] }
 0x5f9   : > { %v8731_v50 = vunpack.c.l.b16 %v8637_v32 }
 0x5fa   : > { %v14126_v9 = vadd.f32 %v7827_v22, %v7593_v25  ;;  %v6544_v22 = vadd.f32 %v15152_v23, %v15151_v12  ;;  %v8551_v12 = vld [vmem:[#allocation3 + $0x54] sm:$0xe]  ;;  %v10368_v23 = vld [vmem:[#allocation3 + $0x5c] sm:$0x1] }
 0x5fb   : > { %v8759_v7 = vpack.c.b16 %v8731_v50, %v8730_v13  ;;  %v8647_v50 = vrot.slane %v10367_v10, 5  ;;  %v15157_v13 = vld [vmem:[#allocation28_spill] sm:$0xff]  ;;  %v15162_v10 = vld [vmem:[#allocation41_spill] sm:$0xff] }
 0x5fd   : > { %v7146_v49 = vpop.f32.mrf.mxu1 }
 0x5fe   : > { %v7196_v20 = vadd.f32 %v7146_v49, %v6542_v46  ;;  %v8550_v46 = vld [vmem:[#allocation3 + $0x48] sm:$0xe]  ;;  %v8643_v49 = vrot.slane %v10366_v37, 5 }
 0x600   : > { %v7594_v51 = vadd.f32 %v7544_v34, %v7196_v20  ;;  %10220 = vmatmul.msk.bf16.gmra.mxu1 %vm1107_vm4, %v8758_v38  ;;  %v15153_v20 = vld [vmem:[#allocation10_spill] sm:$0xff]  ;;  %v15154_v38 = vld [vmem:[#allocation11_spill] sm:$0xff]  ;;  %v8644_v61 = vsel %vm10566_vm9, %v8642_v63, %v8643_v49 }
 0x601   : > { %v6545_v34 = vadd.f32 %v15154_v38, %v15153_v20  ;;  %v8733_v24 = vunpack.c.l.b16 %v8644_v61 }
 0x602   : > { %v14131_v6 = vadd.f32 %v7830_v62, %v7594_v51  ;;  %v10205_v62 = vrot.slane %v8550_v46, 9  ;;  %v8649_v46 = vrot.slane %v8647_v50, 4 }
 0x604   : > { %v8641_v27 = vsel %vm10566_vm9, %v10205_v62, %v8640_v40  ;;  %v10206_v40 = vrot.slane %v8551_v12, 9 }
 0x605   : > { %v7148_v39 = vpop.f32.mrf.mxu1 }
 0x606   : > { %v14135_v43 = vadd.f32 %v7148_v39, %v6543_v21  ;;  %v6546_v21 = vadd.f32 %v15156_v45, %v15155_v17  ;;  %v8732_v39 = vunpack.c.l.b16 %v8641_v27  ;;  %v8648_v20 = vsel %vm10566_vm9, %v10206_v40, %v8647_v50  ;;  %v10369_v17 = vld [vmem:[#allocation3 + $0x64] sm:$0xf]  ;;  %v15163_v40 = vld [vmem:[#allocation43_spill] sm:$0xff] }
 0x607   : > { %v8734_v63 = vunpack.c.l.b16 %v8648_v20  ;;  %v8654_v45 = vrot.slane %v10369_v17, 5  ;;  %v15164_v17 = vld [vmem:[#allocation44_spill] sm:$0xff] }
 0x608   : > { %v8760_v32 = vpack.c.b16 %v8733_v24, %v8732_v39  ;;  %v10370_v39 = vld [vmem:[#allocation3 + $0x68] sm:$0x1] }
 0x60d   : > { %v7151_v25 = vpop.f32.mrf.mxu1 }
 0x60e   : > { %v14143_v41 = vadd.f32 %v7151_v25, %v6544_v22  ;;  %v8650_v22 = vrot.slane %v10368_v23, 5  ;;  %v15158_v25 = vld [vmem:[#allocation17_spill] sm:$0xff] }
 0x610   : > { %10221 = vmatmul.msk.bf16.gmra.mxu1 %vm1107_vm4, %v8759_v7  ;;  %v6547_v7 = vadd.f32 %v15158_v25, %v15157_v13  ;;  %v8651_v49 = vsel %vm10566_vm9, %v8649_v46, %v8650_v22  ;;  %v8656_v22 = vrot.slane %v8654_v45, 4  ;;  %v6550_v46 = vadd.f32 %v15163_v40, %v13734_v19 }
 0x611   : > { %v8735_v38 = vunpack.c.l.b16 %v8651_v49 }
 0x613   : > { %v8761_v24 = vpack.c.b16 %v8735_v38, %v8734_v63  ;;  %v8553_v63 = vld [vmem:[#allocation3 + $0x6c] sm:$0xe] }
 0x615   : > { %v7153_v51 = vpop.f32.mrf.mxu1 }
 0x616   : > { %v14148_v16 = vadd.f32 %v7153_v51, %v6545_v34  ;;  %v15159_v34 = vld [vmem:[#allocation32_spill] sm:$0xff]  ;;  %v15160_v51 = vld [vmem:[#allocation30_spill] sm:$0xff] }
 0x617   : > { %v6548_v62 = vadd.f32 %v15160_v51, %v15159_v34  ;;  %v10371_v51 = vld [vmem:[#allocation3 + $0x70] sm:$0xf] }
 0x61d   : > { %v7156_v36 = vpop.f32.mrf.mxu1 }
 0x61e   : > { %v14156_v31 = vadd.f32 %v7156_v36, %v6546_v21  ;;  %v8552_v21 = vld [vmem:[#allocation3 + $0x60] sm:$0xe]  ;;  %v8657_v36 = vrot.slane %v10370_v39, 5 }
 0x61f   : > { %v10207_v23 = vrot.slane %v8552_v21, 9  ;;  %v15165_v21 = vld [vmem:[#allocation45_spill] sm:$0xff] }
 0x620   : > { %10222 = vmatmul.msk.bf16.gmra.mxu1 %vm1107_vm4, %v8760_v32  ;;  %v15161_v32 = vld [vmem:[#allocation42_spill] sm:$0xff]  ;;  %v8658_v25 = vsel %vm10566_vm9, %v8656_v22, %v8657_v36  ;;  %v6551_v39 = vadd.f32 %v15165_v21, %v15164_v17  ;;  %v10208_v36 = vrot.slane %v8553_v63, 9  ;;  %v15167_v22 = vld [vmem:[#allocation47_spill] sm:$0xff] }
 0x621   : > { %v6549_v12 = vadd.f32 %v15162_v10, %v15161_v32 }
 0x625   : > { %v7158_v14 = vpop.f32.mrf.mxu1 }
 0x626   : > { %v14161_v37 = vadd.f32 %v7158_v14, %v6547_v7  ;;  %v8655_v7 = vsel %vm10566_vm9, %v10207_v23, %v8654_v45  ;;  %v8737_v14 = vunpack.c.l.b16 %v8658_v25  ;;  %v15166_v23 = vld [vmem:[#allocation46_spill] sm:$0xff] }
 0x627   : > { %v8736_v49 = vunpack.c.l.b16 %v8655_v7  ;;  %v6552_v25 = vadd.f32 %v15167_v22, %v15166_v23  ;;  %v10375_v22 = vld [vmem:[#allocation3 + $0x88] sm:$0xf] }
 0x629   : > { %v8762_v34 = vpack.c.b16 %v8737_v14, %v8736_v49  ;;  %v10373_v49 = vld [vmem:[#allocation3 + $0x7c] sm:$0xf] }
 0x62d   : > { %v7161_v61 = vpop.f32.mrf.mxu1 }
 0x62e   : > { %v14169_v27 = vadd.f32 %v7161_v61, %v6548_v62  ;;  %v8661_v62 = vrot.slane %v10371_v51, 5  ;;  %v10372_v61 = vld [vmem:[#allocation3 + $0x74] sm:$0x1]  ;;  %v10374_v51 = vld [vmem:[#allocation3 + $0x80] sm:$0x1] }
 0x62f   : > { %v8671_v63 = vrot.slane %v10374_v51, 5 }
 0x630   : > { %10223 = vmatmul.msk.bf16.gmra.mxu1 %vm1107_vm4, %v8761_v24  ;;  %v8664_v24 = vrot.slane %v10372_v61, 5  ;;  %v8663_v32 = vrot.slane %v8661_v62, 4  ;;  %v15168_v61 = vld [vmem:[#allocation48_spill] sm:$0xff] }
 0x632   : > { %v8665_v19 = vsel %vm10566_vm9, %v8663_v32, %v8664_v24  ;;  %v6553_v24 = vadd.f32 %v13819_v54, %v15168_v61 }
 0x635   : > { %v7163_v50 = vpop.f32.mrf.mxu1 }
 0x636   : > { %v14174_v13 = vadd.f32 %v7163_v50, %v6549_v12  ;;  %v8662_v12 = vsel %vm10566_vm9, %v10208_v36, %v8661_v62  ;;  %v8739_v50 = vunpack.c.l.b16 %v8665_v19  ;;  %v8514_v19 = vadd.f32 %v13855_v60, %v13828_v11 }
 0x637   : > { %v8738_v7 = vunpack.c.l.b16 %v8662_v12 }
 0x63d   : > { %v7166_v20 = vpop.f32.mrf.mxu1 }
 0x63e   : > { %v14182_v38 = vadd.f32 %v7166_v20, %v6550_v46  ;;  %v8763_v46 = vpack.c.b16 %v8739_v50, %v8738_v7  ;;  %v8668_v20 = vrot.slane %v10373_v49, 5  ;;  %v14211_v7 = vpop.f32.mrf.mxu0 }
 0x640   : > { %10224 = vmatmul.msk.bf16.gmra.mxu1 %vm1107_vm4, %v8762_v34  ;;  %v8554_v34 = vld [vmem:[#allocation3 + $0x78] sm:$0xe]  ;;  %v8670_v21 = vrot.slane %v8668_v20, 4 }
 0x641   : > { %v10209_v17 = vrot.slane %v8554_v34, 9 }
 0x643   : > { %v8669_v36 = vsel %vm10566_vm9, %v10209_v17, %v8668_v20  ;;  %v8515_v20 = vadd.f32 %v13883_v42, %v13858_v2  ;;  %v8516_v17 = vadd.f32 %v13915_v29, %v13875_v0 }
 0x644   : > { %v8740_v12 = vunpack.c.l.b16 %v8669_v36  ;;  %v10377_v36 = vld [vmem:[#allocation3 + $0x94] sm:$0xf] }
 0x645   : > { %v7168_v45 = vpop.f32.mrf.mxu1 }
 0x646   : > { %v14187_v10 = vadd.f32 %v7168_v45, %v6551_v39  ;;  %v8672_v45 = vsel %vm10566_vm9, %v8670_v21, %v8671_v63 }
 0x647   : > { %v8741_v32 = vunpack.c.l.b16 %v8672_v45 }
 0x649   : > { %v8764_v54 = vpack.c.b16 %v8741_v32, %v8740_v12  ;;  %v8682_v32 = vrot.slane %v10377_v36, 5  ;;  %v10378_v12 = vld [vmem:[#allocation3 + $0x98] sm:$0x1] }
 0x64d   : > { %v7171_v14 = vpop.f32.mrf.mxu1 }
 0x64e   : > { %v14195_v40 = vadd.f32 %v7171_v14, %v6552_v25  ;;  %v8675_v25 = vrot.slane %v10375_v22, 5  ;;  %v8555_v14 = vld [vmem:[#allocation3 + $0x84] sm:$0xe] }
 0x64f   : > { %v10210_v51 = vrot.slane %v8555_v14, 9  ;;  %v8684_v14 = vrot.slane %v8682_v32, 4 }
 0x650   : > { %10225 = vmatmul.msk.bf16.gmra.mxu1 %vm1107_vm4, %v8763_v46  ;;  %v10376_v46 = vld [vmem:[#allocation3 + $0x8c] sm:$0x1]  ;;  %v8677_v11 = vrot.slane %v8675_v25, 4 }
 0x651   : > { %v8678_v49 = vrot.slane %v10376_v46, 5  ;;  %v8676_v61 = vsel %vm10566_vm9, %v10210_v51, %v8675_v25 }
 0x652   : > { %v8742_v21 = vunpack.c.l.b16 %v8676_v61  ;;  %v10379_v61 = vld [vmem:[#allocation3 + $0xa0] sm:$0xf] }
 0x653   : > { %v8679_v63 = vsel %vm10566_vm9, %v8677_v11, %v8678_v49 }
 0x655   : > { %v7173_v62 = vpop.f32.mrf.mxu1 }
 0x656   : > { %v14200_v39 = vadd.f32 %v7173_v62, %v6553_v24  ;;  %v8743_v24 = vunpack.c.l.b16 %v8679_v63  ;;  %v14221_v62 = vpop.f32.mrf.mxu0 }
 0x658   : > { %v8765_v42 = vpack.c.b16 %v8743_v24, %v8742_v21  ;;  %v8689_v24 = vrot.slane %v10379_v61, 5  ;;  %v10380_v21 = vld [vmem:[#allocation3 + $0xa4] sm:$0x1] }
 0x65d   : > { %v8832_v50 = vpop.f32.mrf.mxu1 }
 0x65e   : > { %v14208_v23 = vadd.f32 %v8832_v50, %v8514_v19  ;;  %v8556_v19 = vld [vmem:[#allocation3 + $0x90] sm:$0xe]  ;;  %v8685_v50 = vrot.slane %v10378_v12, 5  ;;  %v14230_v46 = vpop.f32.mrf.mxu0 }
 0x65f   : > { %v10211_v25 = vrot.slane %v8556_v19, 9 }
 0x660   : > { %10226 = vmatmul.msk.bf16.gmra.mxu1 %vm1107_vm4, %v8764_v54  ;;  %v8517_v54 = vadd.f32 %v13948_v35, %v13907_v5  ;;  %v8686_v29 = vsel %vm10566_vm9, %v8684_v14, %v8685_v50 }
 0x661   : > { %v8683_v49 = vsel %vm10566_vm9, %v10211_v25, %v8682_v32 }
 0x662   : > { %v8744_v51 = vunpack.c.l.b16 %v8683_v49 }
 0x665   : > { %v8834_v34 = vpop.f32.mrf.mxu1 }
 0x666   : > { %v14215_v60 = vadd.f32 %v8834_v34, %v8515_v20  ;;  %v8745_v20 = vunpack.c.l.b16 %v8686_v29  ;;  %v8518_v34 = vadd.f32 %v13975_v48, %v13927_v18  ;;  %v14242_v63 = vpop.f32.mrf.mxu0  ;;  %v8691_v18 = vrot.slane %v8689_v24, 4 }
 0x668   : > { %v8766_v35 = vpack.c.b16 %v8745_v20, %v8744_v51  ;;  %v8558_v20 = vld [vmem:[#allocation3 + $0xa8] sm:$0xe] }
 0x66d   : > { %v8837_v45 = vpop.f32.mrf.mxu1 }
 0x66e   : > { %v14225_v2 = vadd.f32 %v8837_v45, %v8516_v17  ;;  %v8557_v17 = vld [vmem:[#allocation3 + $0x9c] sm:$0xe]  ;;  %v8692_v45 = vrot.slane %v10380_v21, 5  ;;  %v8464_v50 = vpop.f32.mrf.mxu0 }
 0x66f   : > { %v10212_v32 = vrot.slane %v8557_v17, 9 }
 0x670   : > { %10227 = vmatmul.msk.bf16.gmra.mxu1 %vm1107_vm4, %v8765_v42  ;;  %v8519_v42 = vadd.f32 %v14006_v3, %v13957_v56  ;;  %v8693_v19 = vsel %vm10566_vm9, %v8691_v18, %v8692_v45  ;;  %v10381_v3 = vld [vmem:[#allocation3 + $0xac] sm:$0xf] }
 0x671   : > { %v8690_v12 = vsel %vm10566_vm9, %v10212_v32, %v8689_v24  ;;  %v8696_v49 = vrot.slane %v10381_v3, 5  ;;  %v10213_v24 = vrot.slane %v8558_v20, 9 }
 0x672   : > { %v8746_v25 = vunpack.c.l.b16 %v8690_v12 }
 0x673   : > { %v8698_v17 = vrot.slane %v8696_v49, 4  ;;  %v8697_v21 = vsel %vm10566_vm9, %v10213_v24, %v8696_v49 }
 0x675   : > { %v8839_v22 = vpop.f32.mrf.mxu1 }
 0x676   : > { %v14232_v0 = vadd.f32 %v8839_v22, %v8517_v54  ;;  %v8747_v54 = vunpack.c.l.b16 %v8693_v19  ;;  %v8520_v22 = vadd.f32 %v14030_v55, %v13978_v4 }
 0x678   : > { %v8767_v56 = vpack.c.b16 %v8747_v54, %v8746_v25  ;;  %v8559_v54 = vld [vmem:[#allocation3 + $0xb4] sm:$0xe] }
 0x679   : > { %v10214_v3 = vrot.slane %v8559_v54, 9 }
 0x67d   : > { %v8842_v11 = vpop.f32.mrf.mxu1 }
 0x67e   : > { %v14240_v5 = vadd.f32 %v8842_v11, %v8518_v34  ;;  %v10382_v34 = vld [vmem:[#allocation3 + $0xb0] sm:$0x1]  ;;  %v8466_v11 = vpop.f32.mrf.mxu0 }
 0x67f   : > { %v8699_v51 = vrot.slane %v10382_v34, 5 }
 0x680   : > { %10228 = vmatmul.msk.bf16.gmra.mxu1 %vm1107_vm4, %v8766_v35  ;;  %v8521_v35 = vadd.f32 %v14053_v47, %v14000_v8  ;;  %v10383_v47 = vld [vmem:[#allocation3 + $0xb8] sm:$0xf] }
 0x681   : > { %v8700_v55 = vsel %vm10566_vm9, %v8698_v17, %v8699_v51  ;;  %v8703_v12 = vrot.slane %v10383_v47, 5 }
 0x682   : > { %v8749_v45 = vunpack.c.l.b16 %v8700_v55  ;;  %v8525_v55 = vadd.f32 %v14242_v63, %v14070_v44 }
 0x683   : > { %v8705_v49 = vrot.slane %v8703_v12, 4  ;;  %v8704_v34 = vsel %vm10566_vm9, %v10214_v3, %v8703_v12 }
 0x685   : > { %v8844_v36 = vpop.f32.mrf.mxu1 }
 0x686   : > { %v14247_v48 = vadd.f32 %v8844_v36, %v8519_v42  ;;  %v8522_v42 = vadd.f32 %v14211_v7, %v14019_v59  ;;  %v8748_v36 = vunpack.c.l.b16 %v8697_v21  ;;  %v8469_v18 = vpop.f32.mrf.mxu0 }
 0x687   : > { %v8528_v44 = vadd.f32 %v8469_v18, %v14092_v1 }
 0x688   : > { %v8768_v8 = vpack.c.b16 %v8749_v45, %v8748_v36 }
 0x68d   : > { %v8847_v14 = vpop.f32.mrf.mxu1 }
 0x68e   : > { %v14255_v29 = vadd.f32 %v8847_v14, %v8520_v22  ;;  %v10384_v22 = vld [vmem:[#allocation3 + $0xbc] sm:$0x1]  ;;  %v8523_v14 = vadd.f32 %v14221_v62, %v14043_v52  ;;  %v8471_v20 = vpop.f32.mrf.mxu0 }
 0x68f   : > { %v8706_v25 = vrot.slane %v10384_v22, 5 }
 0x690   : > { %10229 = vmatmul.msk.bf16.gmra.mxu1 %vm1107_vm4, %v8767_v56 }
 0x691   : > { %v8707_v7 = vsel %vm10566_vm9, %v8705_v49, %v8706_v25  ;;  %v15176_v25 = vld [vmem:[#allocation40_spill] sm:$0xff] }
 0x692   : > { %v8751_v51 = vunpack.c.l.b16 %v8707_v7 }
 0x695   : > { %v8849_v61 = vpop.f32.mrf.mxu1 }
 0x696   : > { %v14260_v4 = vadd.f32 %v8849_v61, %v8521_v35  ;;  %v8524_v35 = vadd.f32 %v14230_v46, %v14060_v53  ;;  %v8750_v61 = vunpack.c.l.b16 %v8704_v34  ;;  %v8474_v62 = vpop.f32.mrf.mxu0  ;;  %v15174_v53 = vld [vmem:[#allocation39_spill] sm:$0xff]  ;;  %v8527_v46 = vadd.f32 %v8466_v11, %v14087_v28  ;;  %v14311_v34 = vpop.f32.mrf.mxu2 }
 0x697   : > { %v8530_v11 = vadd.f32 %v8474_v62, %v14105_v15 }
 0x698   : > { %15169 = vst [vmem:[#allocation19_spill] sm:$0xff] %v14260_v4  ;;  %v8769_v52 = vpack.c.b16 %v8751_v51, %v8750_v61  ;;  %v14313_v51 = vpop.f32.mrf.mxu3 }
 0x69d   : > { %v8852_v32 = vpop.f32.mrf.mxu1 }
 0x69e   : > { %v14268_v19 = vadd.f32 %v8852_v32, %v8522_v42  ;;  %v8476_v26 = vpop.f32.mrf.mxu0  ;;  %v8526_v42 = vadd.f32 %v8464_v50, %v14079_v57  ;;  %v8529_v57 = vadd.f32 %v8471_v20, %v14100_v33  ;;  %v14320_v15 = vpop.f32.mrf.mxu2 }
 0x69f   : > { %v8531_v1 = vadd.f32 %v8476_v26, %v14113_v30 }
 0x6a0   : > { %10230 = vmatmul.msk.bf16.gmra.mxu1 %vm1107_vm4, %v8768_v8 }
 0x6a5   : > { %v8854_v56 = vpop.f32.mrf.mxu1 }
 0x6a6   : > { %v14273_v59 = vadd.f32 %v8854_v56, %v8523_v14  ;;  %v8479_v47 = vpop.f32.mrf.mxu0 }
 0x6a7   : > { %v8532_v33 = vadd.f32 %v8479_v47, %v14118_v58 }
 0x6a8   : > { %15170 = vst [vmem:[#allocation6_spill] sm:$0xff] %v14273_v59 }
 0x6ad   : > { %v8857_v24 = vpop.f32.mrf.mxu1 }
 0x6ae   : > { %v14281_v17 = vadd.f32 %v8857_v24, %v8524_v35  ;;  %v8481_v22 = vpop.f32.mrf.mxu0  ;;  %v14323_v24 = vpop.f32.mrf.mxu3 }
 0x6af   : > { %v8533_v61 = vadd.f32 %v8481_v22, %v14126_v9  ;;  %v9013_v9 = vmul.f32 %v14208_v23, %v14208_v23 }
 0x6b0   : > { %15171 = vst [vmem:[#allocation16_spill] sm:$0xff] %v14281_v17  ;;  %10231 = vmatmul.msk.bf16.gmra.mxu1 %vm1107_vm4, %v8769_v52 }
 0x6b5   : > { %v8859_v21 = vpop.f32.mrf.mxu1 }
 0x6b6   : > { %v14286_v45 = vadd.f32 %v8859_v21, %v8525_v55  ;;  %v8484_v56 = vpop.f32.mrf.mxu0  ;;  %v14329_v55 = vpop.f32.mrf.mxu2 }
 0x6b7   : > { %v8534_v28 = vadd.f32 %v8484_v56, %v14131_v6  ;;  %v14333_v26 = vpop.f32.mrf.mxu3 }
 0x6b8   : > { %15172 = vst [vmem:[#allocation33_spill] sm:$0xff] %v14286_v45 }
 0x6bd   : > { %v8862_v36 = vpop.f32.mrf.mxu1 }
 0x6be   : > { %v14289_v32 = vadd.f32 %v8862_v36, %v8526_v42  ;;  %v14318_v6 = vpop.f32.mrf.mxu0  ;;  %v9014_v42 = vmul.f32 %v14215_v60, %v14215_v60  ;;  %v8945_v36 = vsel %vm1107_vm4, %v14215_v60, 0.0  ;;  %v14352_v22 = vpop.f32.mrf.mxu2 }
 0x6c0   : > { %15173 = vst [vmem:[#allocation5_spill] sm:$0xff] %v14289_v32  ;;  %10232 = vmatmul.msk.bf16.gmra.mxu1 %vm1107_vm4, %v15174_v53  ;;  %v9015_v53 = vmul.f32 %v14225_v2, %v14225_v2  ;;  %v9046_v47 = vsel %vm1107_vm4, %v9014_v42, 0.0 }
 0x6c2   : > { %v9048_v56 = vsel %vm1107_vm4, %v9015_v53, 0.0 }
 0x6c5   : > { %v8864_v8 = vpop.f32.mrf.mxu1 }
 0x6c6   : > { %v14294_v12 = vadd.f32 %v8864_v8, %v8527_v46  ;;  %v14327_v62 = vpop.f32.mrf.mxu0  ;;  %v8944_v8 = vsel %vm1107_vm4, %v14208_v23, 0.0 }
 0x6c8   : > { %15175 = vst [vmem:[#allocation34_spill] sm:$0xff] %v14294_v12 }
 0x6cd   : > { %v8867_v63 = vpop.f32.mrf.mxu1 }
 0x6ce   : > { %v14297_v54 = vadd.f32 %v8867_v63, %v8528_v44  ;;  %v14343_v46 = vpop.f32.mrf.mxu0  ;;  %v8947_v44 = vsel %vm1107_vm4, %v14225_v2, 0.0  ;;  %v9016_v63 = vmul.f32 %v14232_v0, %v14232_v0 }
 0x6d0   : > { %10233 = vmatmul.msk.bf16.gmra.mxu1 %vm1107_vm4, %v15176_v25  ;;  %v8946_v25 = vadd.f32 %v8945_v36, %v8944_v8  ;;  %v9019_v36 = vmul.f32 %v14255_v29, %v14255_v29 }
 0x6d5   : > { %v8869_v50 = vpop.f32.mrf.mxu1 }
 0x6d6   : > { %v14302_v14 = vadd.f32 %v8869_v50, %v8529_v57  ;;  %v9045_v50 = vsel %vm1107_vm4, %v9013_v9, 0.0  ;;  %v8953_v9 = vsel %vm1107_vm4, %v14247_v48, 0.0 }
 0x6dd   : > { %v8872_v3 = vpop.f32.mrf.mxu1 }
 0x6de   : > { %v14306_v49 = vadd.f32 %v8872_v3, %v8530_v11  ;;  %v9017_v11 = vmul.f32 %v14240_v5, %v14240_v5  ;;  %v9047_v3 = vadd.f32 %v9046_v47, %v9045_v50 }
 0x6e0   : > { %v9052_v42 = vsel %vm1107_vm4, %v9017_v11, 0.0  ;;  %v9056_v11 = vsel %vm1107_vm4, %v9019_v36, 0.0 }
 0x6e5   : > { %v8874_v18 = vpop.f32.mrf.mxu1 }
 0x6e6   : > { %v14309_v7 = vadd.f32 %v8874_v18, %v8531_v1  ;;  %v8948_v1 = vadd.f32 %v8947_v44, %v8946_v25  ;;  %v9050_v18 = vsel %vm1107_vm4, %v9016_v63, 0.0  ;;  %v8955_v44 = vsel %vm1107_vm4, %v14255_v29, 0.0  ;;  %v14379_v25 = vpop.f32.mrf.mxu0 }
 0x6e7   : > { %v9020_v63 = vmul.f32 %v14260_v4, %v14260_v4 }
 0x6ed   : > { %v8877_v20 = vpop.f32.mrf.mxu1 }
 0x6ee   : > { %v14316_v35 = vadd.f32 %v8877_v20, %v8532_v33  ;;  %v8951_v33 = vsel %vm1107_vm4, %v14240_v5, 0.0  ;;  %v9018_v20 = vmul.f32 %v14247_v48, %v14247_v48 }
 0x6f0   : > { %v9054_v47 = vsel %vm1107_vm4, %v9018_v20, 0.0 }
 0x6f5   : > { %v8879_v30 = vpop.f32.mrf.mxu1 }
 0x6f6   : > { %v14325_v52 = vadd.f32 %v8879_v30, %v8533_v61  ;;  %v14367_v61 = vpop.f32.mrf.mxu3  ;;  %v9049_v30 = vadd.f32 %v9048_v56, %v9047_v3  ;;  %v8957_v3 = vsel %vm1107_vm4, %v14260_v4, 0.0  ;;  %v9023_v4 = vmul.f32 %v14281_v17, %v14281_v17 }
 0x6f8   : > { %v9051_v53 = vadd.f32 %v9050_v18, %v9049_v30  ;;  %v7556_v18 = vpop.f32.mrf.mxu2  ;;  %v9058_v30 = vsel %vm1107_vm4, %v9020_v63, 0.0 }
 0x6fa   : > { %v9053_v50 = vadd.f32 %v9052_v42, %v9051_v53  ;;  %v9022_v42 = vmul.f32 %v14273_v59, %v14273_v59 }
 0x6fd   : > { %v8882_v21 = vpop.f32.mrf.mxu1 }
 0x6fe   : > { %v14331_v58 = vadd.f32 %v8882_v21, %v8534_v28  ;;  %v8949_v28 = vsel %vm1107_vm4, %v14232_v0, 0.0 }
 0x6ff   : > { %v8950_v21 = vadd.f32 %v8949_v28, %v8948_v1  ;;  %v9021_v1 = vmul.f32 %v14268_v19, %v14268_v19 }
 0x701   : > { %v8952_v8 = vadd.f32 %v8951_v33, %v8950_v21  ;;  %v9055_v33 = vadd.f32 %v9054_v47, %v9053_v50  ;;  %v8959_v21 = vsel %vm1107_vm4, %v14268_v19, 0.0  ;;  %v9060_v36 = vsel %vm1107_vm4, %v9021_v1, 0.0  ;;  %v14398_v47 = vpop.f32.mrf.mxu3 }
 0x702   : > { %v9062_v50 = vsel %vm1107_vm4, %v9022_v42, 0.0 }
 0x703   : > { %v8954_v56 = vadd.f32 %v8953_v9, %v8952_v8  ;;  %v9057_v9 = vadd.f32 %v9056_v11, %v9055_v33  ;;  %v8961_v8 = vsel %vm1107_vm4, %v14273_v59, 0.0  ;;  %v9024_v11 = vmul.f32 %v14286_v45, %v14286_v45 }
 0x704   : > { %v8965_v59 = vsel %vm1107_vm4, %v14286_v45, 0.0 }
 0x705   : > { %v14354_v57 = vpop.f32.mrf.mxu1  ;;  %v8956_v20 = vadd.f32 %v8955_v44, %v8954_v56  ;;  %v9059_v44 = vadd.f32 %v9058_v30, %v9057_v9  ;;  %v8963_v56 = vsel %vm1107_vm4, %v14281_v17, 0.0  ;;  %v9025_v30 = vmul.f32 %v14289_v32, %v14289_v32 }
 0x707   : > { %v8958_v53 = vadd.f32 %v8957_v3, %v8956_v20  ;;  %v9061_v3 = vadd.f32 %v9060_v36, %v9059_v44  ;;  %v9064_v20 = vsel %vm1107_vm4, %v9023_v4, 0.0  ;;  %v8967_v36 = vsel %vm1107_vm4, %v14289_v32, 0.0  ;;  %v7559_v44 = vpop.f32.mrf.mxu2 }
 0x708   : > { %v7595_v4 = vadd.f32 %v14311_v34, %v14135_v43  ;;  %v9068_v17 = vsel %vm1107_vm4, %v9025_v30, 0.0  ;;  %v7597_v32 = vadd.f32 %v14329_v55, %v14148_v16  ;;  %v9028_v34 = vmul.f32 %v14302_v14, %v14302_v14 }
 0x709   : > { %v8960_v63 = vadd.f32 %v8959_v21, %v8958_v53  ;;  %v14412_v21 = vpop.f32.mrf.mxu0  ;;  %v9063_v42 = vadd.f32 %v9062_v50, %v9061_v3  ;;  %v9066_v53 = vsel %vm1107_vm4, %v9024_v11, 0.0  ;;  %v8969_v50 = vsel %vm1107_vm4, %v14294_v12, 0.0  ;;  %v7845_v30 = vpop.f32.mrf.mxu3 }
 0x70a   : > { %v7596_v11 = vadd.f32 %v14320_v15, %v14143_v41  ;;  %v7598_v41 = vadd.f32 %v14352_v22, %v14156_v31  ;;  %v8973_v16 = vsel %vm1107_vm4, %v14302_v14, 0.0  ;;  %v9029_v15 = vmul.f32 %v14306_v49, %v14306_v49 }
 0x70b   : > { %v8962_v1 = vadd.f32 %v8961_v8, %v8960_v63  ;;  %v9026_v8 = vmul.f32 %v14294_v12, %v14294_v12  ;;  %v9065_v63 = vadd.f32 %v9064_v20, %v9063_v42  ;;  %v7881_v20 = vadd.f32 %v14313_v51, %v7595_v4 }
 0x70c   : > { %v7882_v55 = vadd.f32 %v14323_v24, %v7596_v11  ;;  %v7883_v51 = vadd.f32 %v14333_v26, %v7597_v32  ;;  %v9030_v31 = vmul.f32 %v14309_v7, %v14309_v7  ;;  %v7599_v4 = vadd.f32 %v7556_v18, %v14161_v37 }
 0x70d   : > { %v14381_v28 = vpop.f32.mrf.mxu1  ;;  %v8964_v9 = vadd.f32 %v8963_v56, %v8962_v1  ;;  %v9027_v56 = vmul.f32 %v14297_v54, %v14297_v54  ;;  %v9067_v3 = vadd.f32 %v9066_v53, %v9065_v63  ;;  %v9070_v43 = vsel %vm1107_vm4, %v9026_v8, 0.0 }
 0x70e   : > { %v8975_v8 = vsel %vm1107_vm4, %v14306_v49, 0.0  ;;  %v7884_v24 = vadd.f32 %v14367_v61, %v7598_v41  ;;  %v9076_v11 = vsel %vm1107_vm4, %v9029_v15, 0.0  ;;  %v8977_v32 = vsel %vm1107_vm4, %v14309_v7, 0.0 }
 0x70f   : > { %v8966_v45 = vadd.f32 %v8965_v59, %v8964_v9  ;;  %v8971_v59 = vsel %vm1107_vm4, %v14297_v54, 0.0  ;;  %v9069_v42 = vadd.f32 %v9068_v17, %v9067_v3  ;;  %v9074_v17 = vsel %vm1107_vm4, %v9028_v34, 0.0 }
 0x710   : > { %v9031_v26 = vmul.f32 %v14316_v35, %v14316_v35  ;;  %v7600_v3 = vadd.f32 %v7559_v44, %v14169_v27  ;;  %v8979_v61 = vsel %vm1107_vm4, %v14316_v35, 0.0  ;;  %v9032_v18 = vmul.f32 %v14325_v52, %v14325_v52 }
 0x711   : > { %v8968_v1 = vadd.f32 %v8967_v36, %v8966_v45  ;;  %v9072_v45 = vsel %vm1107_vm4, %v9027_v56, 0.0  ;;  %v9071_v53 = vadd.f32 %v9070_v43, %v9069_v42  ;;  %v8499_v22 = vpop.f32.mrf.mxu0  ;;  %v8535_v56 = vadd.f32 %v14318_v6, %v7881_v20 }
 0x712   : > { %v9078_v6 = vsel %vm1107_vm4, %v9030_v31, 0.0  ;;  %v8536_v34 = vadd.f32 %v14327_v62, %v7882_v55  ;;  %v7885_v20 = vadd.f32 %v14398_v47, %v7599_v4  ;;  %v9033_v44 = vmul.f32 %v14331_v58, %v14331_v58  ;;  %v7847_v62 = vpop.f32.mrf.mxu3 }
 0x713   : > { %v8970_v9 = vadd.f32 %v8969_v50, %v8968_v1  ;;  %v9073_v63 = vadd.f32 %v9072_v45, %v9071_v53  ;;  %v7561_v1 = vpop.f32.mrf.mxu2  ;;  %v14460_v37 = vadd.f32 %v14354_v57, %v8535_v56  ;;  %v9080_v57 = vsel %vm1107_vm4, %v9031_v26, 0.0 }
 0x714   : > { %v8981_v41 = vsel %vm1107_vm4, %v14325_v52, 0.0  ;;  %v14475_v45 = vadd.f32 %v14381_v28, %v8536_v34  ;;  %v7886_v15 = vadd.f32 %v7845_v30, %v7600_v3  ;;  %v8538_v28 = vadd.f32 %v14379_v25, %v7884_v24 }
 0x715   : > { %v14405_v33 = vpop.f32.mrf.mxu1  ;;  %v8972_v36 = vadd.f32 %v8971_v59, %v8970_v9  ;;  %v9075_v43 = vadd.f32 %v9074_v17, %v9073_v63  ;;  %v9034_v53 = vmul.f32 %v14460_v37, %v14460_v37  ;;  %v8983_v17 = vsel %vm1107_vm4, %v14331_v58, 0.0 }
 0x716   : > { %v8985_v30 = vsel %vm1107_vm4, %v14460_v37, 0.0  ;;  %v8987_v24 = vsel %vm1107_vm4, %v14475_v45, 0.0 }
 0x717   : > { %v8974_v50 = vadd.f32 %v8973_v16, %v8972_v36  ;;  %v9077_v42 = vadd.f32 %v9076_v11, %v9075_v43  ;;  %v8537_v16 = vadd.f32 %v14343_v46, %v7883_v51  ;;  %v9082_v36 = vsel %vm1107_vm4, %v9032_v18, 0.0 }
 0x718   : > { %v9084_v46 = vsel %vm1107_vm4, %v9033_v44, 0.0  ;;  %v9035_v51 = vmul.f32 %v14475_v45, %v14475_v45  ;;  %v9086_v25 = vsel %vm1107_vm4, %v9034_v53, 0.0  ;;  %v8540_v43 = vadd.f32 %v8499_v22, %v7886_v15 }
 0x719   : > { %v8976_v59 = vadd.f32 %v8975_v8, %v8974_v50  ;;  %v9079_v55 = vadd.f32 %v9078_v6, %v9077_v42  ;;  %v14484_v8 = vadd.f32 %v14405_v33, %v8537_v16  ;;  %v8539_v50 = vadd.f32 %v14412_v21, %v7885_v20  ;;  %v8501_v56 = vpop.f32.mrf.mxu0 }
 0x71a   : > { %v7601_v33 = vadd.f32 %v7561_v1, %v14174_v13 }
 0x71b   : > { %v8978_v27 = vadd.f32 %v8977_v32, %v8976_v59  ;;  %v9081_v31 = vadd.f32 %v9080_v57, %v9079_v55  ;;  %v9036_v26 = vmul.f32 %v14484_v8, %v14484_v8  ;;  %v8989_v13 = vsel %vm1107_vm4, %v14484_v8, 0.0 }
 0x71c   : > { %v7887_v42 = vadd.f32 %v7847_v62, %v7601_v33 }
 0x71d   : > { %v8892_v12 = vpop.f32.mrf.mxu1  ;;  %v8980_v47 = vadd.f32 %v8979_v61, %v8978_v27  ;;  %v9083_v11 = vadd.f32 %v9082_v36, %v9081_v31  ;;  %v9088_v61 = vsel %vm1107_vm4, %v9035_v51, 0.0  ;;  %v9090_v27 = vsel %vm1107_vm4, %v9036_v26, 0.0 }
 0x71e   : > { %v14492_v63 = vadd.f32 %v8892_v12, %v8538_v28  ;;  %v7564_v12 = vpop.f32.mrf.mxu2  ;;  %v8541_v28 = vadd.f32 %v8501_v56, %v7887_v42 }
 0x71f   : > { %v8982_v4 = vadd.f32 %v8981_v41, %v8980_v47  ;;  %v9085_v59 = vadd.f32 %v9084_v46, %v9083_v11  ;;  %v7602_v53 = vadd.f32 %v7564_v12, %v14182_v38 }
 0x720   : > { %v9037_v1 = vmul.f32 %v14492_v63, %v14492_v63  ;;  %v8991_v22 = vsel %vm1107_vm4, %v14492_v63, 0.0 }
 0x721   : > { %v8984_v32 = vadd.f32 %v8983_v17, %v8982_v4  ;;  %v9087_v34 = vadd.f32 %v9086_v25, %v9085_v59  ;;  %v8504_v31 = vpop.f32.mrf.mxu0 }
 0x722   : > { %v9092_v16 = vsel %vm1107_vm4, %v9037_v1, 0.0 }
 0x723   : > { %v8986_v6 = vadd.f32 %v8985_v30, %v8984_v32  ;;  %v9089_v57 = vadd.f32 %v9088_v61, %v9087_v34 }
 0x725   : > { %v8894_v9 = vpop.f32.mrf.mxu1  ;;  %v8988_v20 = vadd.f32 %v8987_v24, %v8986_v6  ;;  %v9091_v62 = vadd.f32 %v9090_v27, %v9089_v57 }
 0x726   : > { %v14501_v3 = vadd.f32 %v8894_v9, %v8539_v50  ;;  %v7850_v9 = vpop.f32.mrf.mxu3  ;;  %v7566_v33 = vpop.f32.mrf.mxu2 }
 0x727   : > { %v8990_v41 = vadd.f32 %v8989_v13, %v8988_v20  ;;  %v9093_v4 = vadd.f32 %v9092_v16, %v9091_v62  ;;  %v7888_v25 = vadd.f32 %v7850_v9, %v7602_v53  ;;  %v7603_v6 = vadd.f32 %v7566_v33, %v14187_v10 }
 0x728   : > { %v9038_v44 = vmul.f32 %v14501_v3, %v14501_v3  ;;  %v8993_v15 = vsel %vm1107_vm4, %v14501_v3, 0.0 }
 0x729   : > { %v8992_v47 = vadd.f32 %v8991_v22, %v8990_v41  ;;  %v8506_v1 = vpop.f32.mrf.mxu0 }
 0x72a   : > { %v9094_v36 = vsel %vm1107_vm4, %v9038_v44, 0.0 }
 0x72b   : > { %v8994_v46 = vadd.f32 %v8993_v15, %v8992_v47  ;;  %v9095_v11 = vadd.f32 %v9094_v36, %v9093_v4 }
 0x72d   : > { %v8897_v21 = vpop.f32.mrf.mxu1 }
 0x72e   : > { %v14508_v18 = vadd.f32 %v8897_v21, %v8540_v43  ;;  %v7852_v12 = vpop.f32.mrf.mxu3  ;;  %v8542_v21 = vadd.f32 %v8504_v31, %v7888_v25  ;;  %v7569_v27 = vpop.f32.mrf.mxu2 }
 0x72f   : > { %v7889_v34 = vadd.f32 %v7852_v12, %v7603_v6  ;;  %v7604_v57 = vadd.f32 %v7569_v27, %v14195_v40 }
 0x730   : > { %v9039_v55 = vmul.f32 %v14508_v18, %v14508_v18  ;;  %v8995_v17 = vsel %vm1107_vm4, %v14508_v18, 0.0 }
 0x731   : > { %v8996_v32 = vadd.f32 %v8995_v17, %v8994_v46  ;;  %v8543_v10 = vadd.f32 %v8506_v1, %v7889_v34  ;;  %v8509_v53 = vpop.f32.mrf.mxu0 }
 0x732   : > { %v9096_v51 = vsel %vm1107_vm4, %v9039_v55, 0.0 }
 0x733   : > { %v9097_v26 = vadd.f32 %v9096_v51, %v9095_v11 }
 0x735   : > { %v8899_v30 = vpop.f32.mrf.mxu1 }
 0x736   : > { %v14525_v50 = vadd.f32 %v8899_v30, %v8541_v28  ;;  %v7855_v41 = vpop.f32.mrf.mxu3  ;;  %v7571_v28 = vpop.f32.mrf.mxu2 }
 0x737   : > { %v7890_v55 = vadd.f32 %v7855_v41, %v7604_v57  ;;  %v7605_v40 = vadd.f32 %v7571_v28, %v14200_v39 }
 0x738   : > { %v8997_v38 = vsel %vm1107_vm4, %v14525_v50, 0.0  ;;  %v9040_v24 = vmul.f32 %v14525_v50, %v14525_v50 }
 0x739   : > { %v8998_v56 = vadd.f32 %v8997_v38, %v8996_v32  ;;  %v8544_v4 = vadd.f32 %v8509_v53, %v7890_v55 }
 0x73a   : > { %v9098_v43 = vsel %vm1107_vm4, %v9040_v24, 0.0  ;;  %v8511_v24 = vpop.f32.mrf.mxu0 }
 0x73b   : > { %v9099_v59 = vadd.f32 %v9098_v43, %v9097_v26 }
 0x73d   : > { %v8902_v61 = vpop.f32.mrf.mxu1 }
 0x73e   : > { %v14533_v13 = vadd.f32 %v8902_v61, %v8542_v21  ;;  %v7857_v51 = vpop.f32.mrf.mxu3 }
 0x73f   : > { %v7891_v33 = vadd.f32 %v7857_v51, %v7605_v40 }
 0x740   : > { %v8999_v20 = vsel %vm1107_vm4, %v14533_v13, 0.0  ;;  %v9041_v42 = vmul.f32 %v14533_v13, %v14533_v13 }
 0x741   : > { %v9000_v22 = vadd.f32 %v8999_v20, %v8998_v56  ;;  %v8545_v56 = vadd.f32 %v8511_v24, %v7891_v33 }
 0x742   : > { %v9100_v44 = vsel %vm1107_vm4, %v9041_v42, 0.0 }
 0x743   : > { %v9101_v9 = vadd.f32 %v9100_v44, %v9099_v59 }
 0x745   : > { %v8904_v16 = vpop.f32.mrf.mxu1 }
 0x746   : > { %v14541_v15 = vadd.f32 %v8904_v16, %v8543_v10 }
 0x748   : > { %v9001_v62 = vsel %vm1107_vm4, %v14541_v15, 0.0  ;;  %v9042_v47 = vmul.f32 %v14541_v15, %v14541_v15 }
 0x749   : > { %v9002_v36 = vadd.f32 %v9001_v62, %v9000_v22 }
 0x74a   : > { %v9102_v17 = vsel %vm1107_vm4, %v9042_v47, 0.0 }
 0x74b   : > { %v9103_v31 = vadd.f32 %v9102_v17, %v9101_v9 }
 0x74d   : > { %v8907_v46 = vpop.f32.mrf.mxu1 }
 0x74e   : > { %v14549_v30 = vadd.f32 %v8907_v46, %v8544_v4 }
 0x750   : > { %v9003_v11 = vsel %vm1107_vm4, %v14549_v30, 0.0  ;;  %v9043_v32 = vmul.f32 %v14549_v30, %v14549_v30 }
 0x751   : > { %v9004_v25 = vadd.f32 %v9003_v11, %v9002_v36 }
 0x752   : > { %v9104_v38 = vsel %vm1107_vm4, %v9043_v32, 0.0 }
 0x753   : > { %v9105_v26 = vadd.f32 %v9104_v38, %v9103_v31 }
 0x755   : > { %v8909_v43 = vpop.f32.mrf.mxu1 }
 0x756   : > { %v14556_v39 = vadd.f32 %v8909_v43, %v8545_v56 }
 0x758   : > { %v9005_v12 = vsel %vm1107_vm4, %v14556_v39, 0.0  ;;  %v9044_v59 = vmul.f32 %v14556_v39, %v14556_v39 }
 0x759   : > { %v9006_v6 = vadd.f32 %v9005_v12, %v9004_v25 }
 0x75a   : > { %v9106_v21 = vsel %vm1107_vm4, %v9044_v59, 0.0 }
 0x75b   : > { %v9007_v61 = vrot.slane %v9006_v6, 4  ;;  %v9107_v1 = vadd.f32 %v9106_v21, %v9105_v26 }
 0x75d   : > { %v9008_v34 = vadd.f32 %v9007_v61, %v9006_v6  ;;  %v9108_v20 = vrot.slane %v9107_v1, 4 }
 0x75f   : > { %v9009_v42 = vrot.slane %v9008_v34, 2  ;;  %v9109_v27 = vadd.f32 %v9108_v20, %v9107_v1  ;;  %v15182_v20 = vld [vmem:[#allocation34_spill] sm:$0xff] }
 0x761   : > { %v9010_v22 = vadd.f32 %v9009_v42, %v9008_v34  ;;  %v9110_v44 = vrot.slane %v9109_v27, 2 }
 0x763   : > { %v9011_v9 = vrot.slane %v9010_v22, 1  ;;  %v9111_v57 = vadd.f32 %v9110_v44, %v9109_v27 }
 0x765   : > { %v9012_v10 = vadd.f32 %v9011_v9, %v9010_v22  ;;  %v9112_v41 = vrot.slane %v9111_v57, 1 }
 0x767   : > { %v9113_v16 = vadd.f32 %v9112_v41, %v9111_v57  ;;  %v14563_v55 = vmul.f32 0.00390625, %v9012_v10 }
 0x769   : > { %v9115_v62 = vmul.f32 0.00390625, %v9113_v16  ;;  %v9116_v47 = vmul.f32 %v14563_v55, %v14563_v55  ;;  %v9145_v17 = vsub.f32 %v14508_v18, %v14563_v55  ;;  %v9146_v28 = vsub.f32 %v14525_v50, %v14563_v55 }
 0x76a   : > { %v9147_v31 = vsub.f32 %v14533_v13, %v14563_v55  ;;  %v9148_v40 = vsub.f32 %v14541_v15, %v14563_v55  ;;  %v9149_v4 = vsub.f32 %v14549_v30, %v14563_v55  ;;  %v9150_v46 = vsub.f32 %v14556_v39, %v14563_v55  ;;  %v10388_v30 = vld [vmem:[%s10477_s25 + $0x18] sm:$0xff]  ;;  %v10390_v39 = vld [vmem:[%s10477_s25 + $0x28] sm:$0xff] }
 0x76b   : > { %v9117_v53 = vsub.f32 %v9115_v62, %v9116_v47  ;;  %v9119_v25 = vsub.f32 %v14208_v23, %v14563_v55  ;;  %v9120_v38 = vsub.f32 %v14215_v60, %v14563_v55  ;;  %v9121_v24 = vsub.f32 %v14225_v2, %v14563_v55  ;;  %v15177_v23 = vld [vmem:[#allocation19_spill] sm:$0xff]  ;;  %v15178_v2 = vld [vmem:[#allocation6_spill] sm:$0xff] }
 0x76c   : > { %v9122_v26 = vsub.f32 %v14232_v0, %v14563_v55  ;;  %v9123_v56 = vsub.f32 %v14240_v5, %v14563_v55  ;;  %v9124_v43 = vsub.f32 %v14247_v48, %v14563_v55  ;;  %v9125_v12 = vsub.f32 %v14255_v29, %v14563_v55  ;;  %v15179_v0 = vld [vmem:[#allocation16_spill] sm:$0xff]  ;;  %v15180_v5 = vld [vmem:[#allocation33_spill] sm:$0xff] }
 0x76d   : > { %v9118_v36 = vmax.f32 %v9117_v53, 0.0  ;;  %v9126_v6 = vsub.f32 %v15177_v23, %v14563_v55  ;;  %v9127_v60 = vsub.f32 %v14268_v19, %v14563_v55  ;;  %v9128_v21 = vsub.f32 %v15178_v2, %v14563_v55  ;;  %v15181_v48 = vld [vmem:[#allocation5_spill] sm:$0xff] }
 0x76e   : > { %v9129_v61 = vsub.f32 %v15179_v0, %v14563_v55  ;;  %v9130_v1 = vsub.f32 %v15180_v5, %v14563_v55  ;;  %v9131_v34 = vsub.f32 %v15181_v48, %v14563_v55  ;;  %v9132_v42 = vsub.f32 %v15182_v20, %v14563_v55  ;;  %v10389_v5 = vld [vmem:[%s10477_s25 + $0x20] sm:$0xff] }
 0x76f   : > { %v9151_v51 = vadd.f32 1e-05, %v9118_v36  ;;  %v9133_v19 = vsub.f32 %v14297_v54, %v14563_v55  ;;  %v9134_v27 = vsub.f32 %v14302_v14, %v14563_v55  ;;  %v9135_v22 = vsub.f32 %v14306_v49, %v14563_v55  ;;  %v10393_v20 = vld [vmem:[%s10477_s25 + $0x40] sm:$0xff] }
 0x770   : > { %v9136_v44 = vsub.f32 %v14309_v7, %v14563_v55  ;;  %v9137_v9 = vsub.f32 %v14316_v35, %v14563_v55  ;;  %v9138_v10 = vsub.f32 %v14325_v52, %v14563_v55  ;;  %v9139_v54 = vsub.f32 %v14331_v58, %v14563_v55 }
 0x771   : > { %10346 = vrsqrt.f32 %v9151_v51  ;;  %vm9158_vm1 = vweird.f32 %v9151_v51  ;;  %v9140_v14 = vsub.f32 %v14460_v37, %v14563_v55  ;;  %v9141_v49 = vsub.f32 %v14475_v45, %v14563_v55 }
 0x772   : > { %v9142_v7 = vsub.f32 %v14484_v8, %v14563_v55  ;;  %v9143_v35 = vsub.f32 %v14492_v63, %v14563_v55  ;;  %v9144_v41 = vsub.f32 %v14501_v3, %v14563_v55 }
 0x777   : > { %v10347_v33 = vpop.eup %10346 }
 0x778   : > { %v9153_v11 = vmul.f32 %v10347_v33, %v9151_v51  ;;  %vm9159_vm0 = vweird.f32 %v10347_v33 }
 0x779   : > { %vm9160_vm3 = vmor %vm9158_vm1, %vm9159_vm0 }
 0x77a   : > { %v9154_v32 = vmul.f32 %v10347_v33, %v9153_v11 }
 0x77c   : > { %v9155_v59 = vmul.f32 0.5, %v9154_v32 }
 0x77e   : > { %v9156_v29 = vsub.f32 1.5, %v9155_v59 }
 0x780   : > { %v9157_v57 = vmul.f32 %v10347_v33, %v9156_v29 }
 0x782   : > { %v9161_v52 = vsel %vm9160_vm3, %v10347_v33, %v9157_v57 }
 0x783   : > { %v9162_v16 = vmul.f32 %v9161_v52, %v9119_v25  ;;  %v9163_v62 = vmul.f32 %v9161_v52, %v9120_v38  ;;  %v9164_v58 = vmul.f32 %v9161_v52, %v9121_v24  ;;  %v9165_v47 = vmul.f32 %v9161_v52, %v9122_v26 }
 0x784   : > { %v9166_v53 = vmul.f32 %v9161_v52, %v9123_v56  ;;  %v9167_v37 = vmul.f32 %v9161_v52, %v9124_v43  ;;  %v9168_v36 = vmul.f32 %v9161_v52, %v9125_v12  ;;  %v9169_v51 = vmul.f32 %v9161_v52, %v9126_v6 }
 0x785   : > { %v9170_v45 = vmul.f32 %v9161_v52, %v9127_v60  ;;  %v9171_v11 = vmul.f32 %v9161_v52, %v9128_v21  ;;  %v9172_v32 = vmul.f32 %v9161_v52, %v9129_v61  ;;  %v9173_v59 = vmul.f32 %v9161_v52, %v9130_v1  ;;  %v10386_v21 = vld [vmem:[%s10477_s25 + $0x8] sm:$0xff] }
 0x786   : > { %v9174_v8 = vmul.f32 %v9161_v52, %v9131_v34  ;;  %v9175_v23 = vmul.f32 %v9161_v52, %v9132_v42  ;;  %v9176_v63 = vmul.f32 %v9161_v52, %v9133_v19  ;;  %v9177_v2 = vmul.f32 %v9161_v52, %v9134_v27  ;;  %v10392_v34 = vld [vmem:[%s10477_s25 + $0x38] sm:$0xff]  ;;  %v10394_v19 = vld [vmem:[%s10477_s25 + $0x48] sm:$0xff] }
 0x787   : > { %v9178_v0 = vmul.f32 %v9161_v52, %v9135_v22  ;;  %v14631_v3 = vmul.f32 %v9161_v52, %v9136_v44  ;;  %v14633_v33 = vmul.f32 %v9161_v52, %v9137_v9  ;;  %v14635_v25 = vmul.f32 %v9161_v52, %v9138_v10  ;;  %v10395_v22 = vld [vmem:[%s10477_s25 + $0x50] sm:$0xff]  ;;  %v10396_v9 = vld [vmem:[%s10477_s25 + $0x58] sm:$0xff]  ;;  %v10397_v10 = vld [vmem:[%s10477_s25 + $0x60] sm:$0xff] }
 0x788   : > { %v14637_v38 = vmul.f32 %v9161_v52, %v9139_v54  ;;  %v14639_v24 = vmul.f32 %v9161_v52, %v9140_v14  ;;  %v14641_v26 = vmul.f32 %v9161_v52, %v9141_v49  ;;  %v14643_v56 = vmul.f32 %v9161_v52, %v9142_v7  ;;  %v10398_v14 = vld [vmem:[%s10477_s25 + $0x68] sm:$0xff]  ;;  %v10399_v7 = vld [vmem:[%s10477_s25 + $0x70] sm:$0xff] }
 0x789   : > { %v14645_v43 = vmul.f32 %v9161_v52, %v9143_v35  ;;  %v14647_v12 = vmul.f32 %v9161_v52, %v9144_v41  ;;  %v14652_v6 = vmul.f32 %v9161_v52, %v9145_v17  ;;  %v14657_v60 = vmul.f32 %v9161_v52, %v9146_v28  ;;  %v10385_v28 = vld [vmem:[%s10477_s25] sm:$0xff]  ;;  %v10400_v41 = vld [vmem:[%s10477_s25 + $0x78] sm:$0xff] }
 0x78a   : > { %v14669_v18 = vmul.f32 %v9161_v52, %v9147_v31  ;;  %v14674_v17 = vmul.f32 %v9161_v52, %v9148_v40  ;;  %v14679_v50 = vmul.f32 %v9161_v52, %v9149_v4  ;;  %v14684_v13 = vmul.f32 %v9161_v52, %v9150_v46  ;;  %v10387_v40 = vld [vmem:[%s10477_s25 + $0x10] sm:$0xff] }
 0x78b   : > { %v9194_v31 = vadd.f32 %v10385_v28, %v9162_v16  ;;  %v9195_v15 = vadd.f32 %v10386_v21, %v9163_v62  ;;  %v9196_v61 = vadd.f32 %v10387_v40, %v9164_v58  ;;  %v9197_v4 = vadd.f32 %v10388_v30, %v9165_v47  ;;  %v10391_v46 = vld [vmem:[%s10477_s25 + $0x30] sm:$0xff]  ;;  %v10401_v16 = vld [vmem:[%s10477_s25 + $0x80] sm:$0xff]  ;;  %v10402_v58 = vld [vmem:[%s10477_s25 + $0x88] sm:$0xff] }
 0x78c   : > { %v9198_v1 = vadd.f32 %v10389_v5, %v9166_v53  ;;  %v9199_v55 = vadd.f32 %v10390_v39, %v9167_v37  ;;  %v9200_v48 = vadd.f32 %v10391_v46, %v9168_v36  ;;  %v9201_v29 = vadd.f32 %v10392_v34, %v9169_v51  ;;  %v10403_v53 = vld [vmem:[%s10477_s25 + $0x90] sm:$0xff]  ;;  %v10404_v36 = vld [vmem:[%s10477_s25 + $0x98] sm:$0xff]  ;;  %v10414_v28 = vld [vmem:[%s10477_s25 + $0xe8] sm:$0xff] }
 0x78d   : > { %9226 = vst.msk [vmem:[%s14664_s6] sm:$0xff] %vm1107_vm4, %v9194_v31  ;;  %v9202_v42 = vadd.f32 %v10393_v20, %v9170_v45  ;;  %v9203_v27 = vadd.f32 %v10394_v19, %v9171_v11  ;;  %v9204_v44 = vadd.f32 %v10395_v22, %v9172_v32  ;;  %v9205_v57 = vadd.f32 %v10396_v9, %v9173_v59  ;;  %v10405_v45 = vld [vmem:[%s10477_s25 + $0xa0] sm:$0xff]  ;;  %v10406_v32 = vld [vmem:[%s10477_s25 + $0xa8] sm:$0xff]  ;;  %v10415_v31 = vld [vmem:[%s10477_s25 + $0xf0] sm:$0xff] }
 0x78e   : > { %9227 = vst.msk [vmem:[%s14664_s6 + $0x8] sm:$0xff] %vm1107_vm4, %v9195_v15  ;;  %v9206_v54 = vadd.f32 %v10397_v10, %v9174_v8  ;;  %v9207_v49 = vadd.f32 %v10398_v14, %v9175_v23  ;;  %v9208_v35 = vadd.f32 %v10399_v7, %v9176_v63  ;;  %v9209_v52 = vadd.f32 %v10400_v41, %v9177_v2  ;;  %v10407_v8 = vld [vmem:[%s10477_s25 + $0xb0] sm:$0xff]  ;;  %v10408_v63 = vld [vmem:[%s10477_s25 + $0xb8] sm:$0xff] }
 0x78f   : > { %9228 = vst.msk [vmem:[%s14664_s6 + $0x10] sm:$0xff] %vm1107_vm4, %v9196_v61  ;;  %v9210_v62 = vadd.f32 %v10401_v16, %v9178_v0  ;;  %v9211_v47 = vadd.f32 %v10402_v58, %v14631_v3  ;;  %v9212_v37 = vadd.f32 %v10403_v53, %v14633_v33  ;;  %v9213_v51 = vadd.f32 %v10404_v36, %v14635_v25  ;;  %v10409_v0 = vld [vmem:[%s10477_s25 + $0xc0] sm:$0xff]  ;;  %v10410_v33 = vld [vmem:[%s10477_s25 + $0xc8] sm:$0xff] }
 0x790   : > { %9229 = vst.msk [vmem:[%s14664_s6 + $0x18] sm:$0xff] %vm1107_vm4, %v9197_v4  ;;  %v9214_v11 = vadd.f32 %v10405_v45, %v14637_v38  ;;  %v9215_v59 = vadd.f32 %v10406_v32, %v14639_v24  ;;  %v9216_v23 = vadd.f32 %v10407_v8, %v14641_v26  ;;  %v9217_v2 = vadd.f32 %v10408_v63, %v14643_v56  ;;  %v10411_v38 = vld [vmem:[%s10477_s25 + $0xd0] sm:$0xff]  ;;  %v10412_v26 = vld [vmem:[%s10477_s25 + $0xd8] sm:$0xff] }
 0x791   : > { %9230 = vst.msk [vmem:[%s14664_s6 + $0x20] sm:$0xff] %vm1107_vm4, %v9198_v1  ;;  %v9218_v3 = vadd.f32 %v10409_v0, %v14645_v43  ;;  %v9219_v25 = vadd.f32 %v10410_v33, %v14647_v12  ;;  %v9220_v24 = vadd.f32 %v10411_v38, %v14652_v6  ;;  %v9221_v56 = vadd.f32 %v10412_v26, %v14657_v60  ;;  %v10413_v43 = vld [vmem:[%s10477_s25 + $0xe0] sm:$0xff]  ;;  %v10416_v60 = vld [vmem:[%s10477_s25 + $0xf8] sm:$0xff] }
 0x792   : > { %9231 = vst.msk [vmem:[%s14664_s6 + $0x28] sm:$0xff] %vm1107_vm4, %v9199_v55  ;;  %v9222_v12 = vadd.f32 %v10413_v43, %v14669_v18  ;;  %v9223_v6 = vadd.f32 %v10414_v28, %v14674_v17  ;;  %v9224_v21 = vadd.f32 %v10415_v31, %v14679_v50  ;;  %v9225_v15 = vadd.f32 %v10416_v60, %v14684_v13 }
 0x793   : > { %9232 = vst.msk [vmem:[%s14664_s6 + $0x30] sm:$0xff] %vm1107_vm4, %v9200_v48 }
 0x794   : > { %9233 = vst.msk [vmem:[%s14664_s6 + $0x38] sm:$0xff] %vm1107_vm4, %v9201_v29 }
 0x795   : > { %9234 = vst.msk [vmem:[%s14664_s6 + $0x40] sm:$0xff] %vm1107_vm4, %v9202_v42 }
 0x796   : > { %9235 = vst.msk [vmem:[%s14664_s6 + $0x48] sm:$0xff] %vm1107_vm4, %v9203_v27 }
 0x797   : > { %9236 = vst.msk [vmem:[%s14664_s6 + $0x50] sm:$0xff] %vm1107_vm4, %v9204_v44 }
 0x798   : > { %9237 = vst.msk [vmem:[%s14664_s6 + $0x58] sm:$0xff] %vm1107_vm4, %v9205_v57 }
 0x799   : > { %9238 = vst.msk [vmem:[%s14664_s6 + $0x60] sm:$0xff] %vm1107_vm4, %v9206_v54 }
 0x79a   : > { %9239 = vst.msk [vmem:[%s14664_s6 + $0x68] sm:$0xff] %vm1107_vm4, %v9207_v49 }
 0x79b   : > { %9240 = vst.msk [vmem:[%s14664_s6 + $0x70] sm:$0xff] %vm1107_vm4, %v9208_v35 }
 0x79c   : > { %9241 = vst.msk [vmem:[%s14664_s6 + $0x78] sm:$0xff] %vm1107_vm4, %v9209_v52 }
 0x79d   : > { %9242 = vst.msk [vmem:[%s14664_s6 + $0x80] sm:$0xff] %vm1107_vm4, %v9210_v62 }
 0x79e   : > { %9243 = vst.msk [vmem:[%s14664_s6 + $0x88] sm:$0xff] %vm1107_vm4, %v9211_v47 }
 0x79f   : > { %9244 = vst.msk [vmem:[%s14664_s6 + $0x90] sm:$0xff] %vm1107_vm4, %v9212_v37 }
 0x7a0   : > { %9245 = vst.msk [vmem:[%s14664_s6 + $0x98] sm:$0xff] %vm1107_vm4, %v9213_v51 }
 0x7a1   : > { %9246 = vst.msk [vmem:[%s14664_s6 + $0xa0] sm:$0xff] %vm1107_vm4, %v9214_v11 }
 0x7a2   : > { %9247 = vst.msk [vmem:[%s14664_s6 + $0xa8] sm:$0xff] %vm1107_vm4, %v9215_v59 }
 0x7a3   : > { %9248 = vst.msk [vmem:[%s14664_s6 + $0xb0] sm:$0xff] %vm1107_vm4, %v9216_v23 }
 0x7a4   : > { %9249 = vst.msk [vmem:[%s14664_s6 + $0xb8] sm:$0xff] %vm1107_vm4, %v9217_v2 }
 0x7a5   : > { %9250 = vst.msk [vmem:[%s14664_s6 + $0xc0] sm:$0xff] %vm1107_vm4, %v9218_v3 }
 0x7a6   : > { %9251 = vst.msk [vmem:[%s14664_s6 + $0xc8] sm:$0xff] %vm1107_vm4, %v9219_v25 }
 0x7a7   : > { %9252 = vst.msk [vmem:[%s14664_s6 + $0xd0] sm:$0xff] %vm1107_vm4, %v9220_v24 }
 0x7a8   : > { %9253 = vst.msk [vmem:[%s14664_s6 + $0xd8] sm:$0xff] %vm1107_vm4, %v9221_v56 }
 0x7a9   : > { %9254 = vst.msk [vmem:[%s14664_s6 + $0xe0] sm:$0xff] %vm1107_vm4, %v9222_v12 }
 0x7aa   : > { %9255 = vst.msk [vmem:[%s14664_s6 + $0xe8] sm:$0xff] %vm1107_vm4, %v9223_v6 }
 0x7ab   : > { %9256 = vst.msk [vmem:[%s14664_s6 + $0xf0] sm:$0xff] %vm1107_vm4, %v9224_v21 }
 0x7ac   : > { %9257 = vst.msk [vmem:[%s14664_s6 + $0xf8] sm:$0xff] %vm1107_vm4, %v9225_v15 }
 0x7ad PF: > { %s13_s12 = sadd.s32 1, %s10423_s12  }
 0x7ae   : > { %p10_p4 = scmp.ge.s32.totalorder %s13_s12, 4  }
 0x7b0   :  { %12 = sbr.rel (!%p10_p4) target bundleno = 1 (0x1), region = 90 }

</bundles_post_ra>
